<compile_context>
chip_gen: v7x
topology: tpu7x:2x2x1
jax: 0.10.0
libtpu: 0.0.40
codegen_flags: <defaults>
</compile_context>

<pallas_src>
import functools

import jax
import jax.numpy as jnp
from jax import lax
from jax.experimental import pallas as pl
from jax.experimental.pallas import tpu as pltpu


def _gelu_exact(x):
    # PyTorch activation='gelu' => exact erf-based GELU (kept in f32 so the
    # same kernel is valid on v5e, which has no bf16 VPU/EUP).
    return 0.5 * x * (1.0 + lax.erf(x * 0.7071067811865476))


def _layer_norm(h, gamma, beta, eps=1e-5):
    mu = jnp.mean(h, axis=-1, keepdims=True)
    var = jnp.mean((h - mu) ** 2, axis=-1, keepdims=True)
    return (h - mu) * lax.rsqrt(var + eps) * gamma + beta


def _transformer_kernel(num_layers, num_heads, ff_chunk,
                        x_ref, bias_ref, cls_ref,
                        wp_ref, bp_ref,
                        wqkv_ref, bqkv_ref, wo_ref, bo_ref,
                        g1_ref, be1_ref,
                        w1_ref, b1_ref, w2_ref, b2_ref,
                        g2_ref, be2_ref,
                        wout_ref, bout_ref,
                        out_ref):
    Bblk, Spad, Din = x_ref.shape            # block of Bblk sequences per step
    D = wp_ref.shape[1]
    FF = w1_ref.shape[2]
    H = num_heads
    hd = D // H
    M = Bblk * Spad
    scale = 1.0 / float(hd) ** 0.5
    bf16 = jnp.bfloat16

    x = x_ref[...].reshape(M, Din)           # stacked sequences (row b*Spad = CLS slot)
    key_bias = bias_ref[...]                 # (Bblk, 1, Spad) additive key-padding bias

    # ---- input projection (bf16 weights/acts, f32 accumulate) ----
    h = jnp.dot(x.astype(bf16), wp_ref[...],
                preferred_element_type=jnp.float32) + bp_ref[...]

    # overwrite the CLS slot (sequence position 0 of every sequence)
    is_cls = (lax.broadcasted_iota(jnp.int32, (M, D), 0) % Spad) == 0
    h = jnp.where(is_cls, cls_ref[...], h)

    for l in range(num_layers):
        # ---- multi-head self-attention (post-norm encoder layer) ----
        qkv = jnp.dot(h.astype(bf16), wqkv_ref[l],
                      preferred_element_type=jnp.float32) + bqkv_ref[l]   # (M, 3D)

        head_outs = []
        for hh in range(H):
            qh = qkv[:, hh * hd:(hh + 1) * hd].reshape(Bblk, Spad, hd).astype(bf16)
            kh = qkv[:, D + hh * hd:D + (hh + 1) * hd].reshape(Bblk, Spad, hd).astype(bf16)
            vh = qkv[:, 2 * D + hh * hd:2 * D + (hh + 1) * hd].reshape(Bblk, Spad, hd).astype(bf16)

            s = jnp.einsum('bqd,bkd->bqk', qh, kh,
                           preferred_element_type=jnp.float32) * scale
            s = s + key_bias                                  # mask padded keys
            s = s - jnp.max(s, axis=-1, keepdims=True)
            p = jnp.exp(s)
            p = p * pl.reciprocal(jnp.sum(p, axis=-1, keepdims=True), approx=True)
            oh = jnp.einsum('bqk,bkd->bqd', p.astype(bf16), vh,
                            preferred_element_type=jnp.float32)          # (Bblk,Spad,hd)
            head_outs.append(oh.reshape(M, hd))

        # single (M,D)x(D,D) out-projection (lane concat of the H head slices)
        heads = jnp.concatenate(head_outs, axis=-1)                       # (M, D)
        attn = jnp.dot(heads.astype(bf16), wo_ref[l],
                       preferred_element_type=jnp.float32) + bo_ref[l]
        h = _layer_norm(h + attn, g1_ref[l], be1_ref[l])

        # ---- feed-forward, chunked over the FF dim to bound the live (M,FF) f32 ----
        h_b = h.astype(bf16)
        f_acc = jnp.zeros((M, D), jnp.float32)
        for lo in range(0, FF, ff_chunk):
            hi = min(lo + ff_chunk, FF)
            f = jnp.dot(h_b, w1_ref[l, :, lo:hi],
                        preferred_element_type=jnp.float32) + b1_ref[l, :, lo:hi]
            f = _gelu_exact(f)
            f_acc = f_acc + jnp.dot(f.astype(bf16), w2_ref[l, lo:hi, :],
                                    preferred_element_type=jnp.float32)
        f_acc = f_acc + b2_ref[l]
        h = _layer_norm(h + f_acc, g2_ref[l], be2_ref[l])

    # ---- CLS readout + classifier head (dropout is identity at inference) ----
    cls_out = h.reshape(Bblk, Spad, D)[:, 0, :]                 # (Bblk, D)
    logits = jnp.dot(cls_out, wout_ref[...],
                     preferred_element_type=jnp.float32) + bout_ref[...]
    out_ref[...] = logits.reshape(out_ref.shape)


def _full_spec(arr):
    nd = arr.ndim
    return pl.BlockSpec(arr.shape, lambda b, _nd=nd: (0,) * _nd)


def transformer_classifier(x, mask, params, *, num_heads=4, batch_block=16,
                           ff_chunk=512):
    """x: (B, T, input_dim) float32, mask: (B, T) bool (True = padded)."""
    B, T, Din = x.shape
    D = params["wp"].shape[1]
    C = params["wout"].shape[1]
    L = params["wqkv"].shape[0]

    S = T + 1                                   # CLS + T timesteps
    Spad = ((S + 7) // 8) * 8                   # pad sequence to sublane multiple

    Bblk = max(1, min(batch_block, B))          # sequences per grid step
    # v7x has 2 TensorCores: keep >= 2 steps on the "parallel" batch axis.
    if B >= 2 and -(-B // Bblk) < 2:
        Bblk = (B + 1) // 2
    Bpad = -(-B // Bblk) * Bblk
    nsteps = Bpad // Bblk
    Cpad = -(-C // 128) * 128                   # lane-dense classifier output

    # padded inputs: row 0 is the CLS placeholder; rows >= S and padded batch
    # rows are fully key-masked (CLS key stays valid -> softmax never 0/0).
    x_pad = jnp.zeros((Bpad, Spad, Din), x.dtype).at[:B, 1:S, :].set(x)
    full_mask = jnp.ones((Bpad, Spad), dtype=bool)
    full_mask = full_mask.at[:, 0].set(False)
    full_mask = full_mask.at[:B, 1:S].set(mask)
    bias = jnp.where(full_mask, jnp.float32(-1e30), jnp.float32(0.0))[:, None, :]

    bf16 = jnp.bfloat16
    wout_pad = jnp.zeros((D, Cpad), jnp.float32).at[:, :C].set(params["wout"])
    bout_pad = jnp.zeros((1, Cpad), jnp.float32).at[:, :C].set(params["bout"])

    weight_args = (params["cls"],
                   params["wp"].astype(bf16), params["bp"],
                   params["wqkv"].astype(bf16), params["bqkv"],
                   params["wo"].astype(bf16), params["bo"],
                   params["g1"], params["be1"],
                   params["w1"].astype(bf16), params["b1"],
                   params["w2"].astype(bf16), params["b2"],
                   params["g2"], params["be2"],
                   wout_pad, bout_pad)

    kernel = functools.partial(_transformer_kernel, L, num_heads, ff_chunk)

    out = pl.pallas_call(
        kernel,
        out_shape=jax.ShapeDtypeStruct((nsteps, Bblk, Cpad), jnp.float32),
        grid=(nsteps,),
        in_specs=[
            pl.BlockSpec((Bblk, Spad, Din), lambda b: (b, 0, 0)),   # x_pad
            pl.BlockSpec((Bblk, 1, Spad), lambda b: (b, 0, 0)),     # additive mask bias
        ] + [_full_spec(w) for w in weight_args],
        out_specs=pl.BlockSpec((1, Bblk, Cpad), lambda b: (b, 0, 0)),
        compiler_params=pltpu.CompilerParams(
            dimension_semantics=("parallel",),
            vmem_limit_bytes=32 * 1024 * 1024),
    )(x_pad, bias, *weight_args)
    return out.reshape(Bpad, Cpad)[:B, :C]


def init_params(key, input_dim, model_dim, num_classes, num_layers, dim_ff):
    D, L, FF = model_dim, num_layers, dim_ff
    ks = jax.random.split(key, 8)

    def rnd(k, shape, scale=0.02):
        return scale * jax.random.normal(k, shape, jnp.float32)

    return {
        "wp":   rnd(ks[0], (input_dim, D)),
        "bp":   jnp.zeros((1, D), jnp.float32),
        "cls":  jax.random.normal(ks[1], (1, D), jnp.float32),
        "wqkv": rnd(ks[2], (L, D, 3 * D)),
        "bqkv": jnp.zeros((L, 1, 3 * D), jnp.float32),
        "wo":   rnd(ks[3], (L, D, D)),
        "bo":   jnp.zeros((L, 1, D), jnp.float32),
        "g1":   jnp.ones((L, 1, D), jnp.float32),
        "be1":  jnp.zeros((L, 1, D), jnp.float32),
        "w1":   rnd(ks[4], (L, D, FF)),
        "b1":   jnp.zeros((L, 1, FF), jnp.float32),
        "w2":   rnd(ks[5], (L, FF, D)),
        "b2":   jnp.zeros((L, 1, D), jnp.float32),
        "g2":   jnp.ones((L, 1, D), jnp.float32),
        "be2":  jnp.zeros((L, 1, D), jnp.float32),
        "wout": rnd(ks[6], (D, num_classes)),
        "bout": jnp.zeros((1, num_classes), jnp.float32),
    }


if __name__ == "__main__":
    B, T = 2, 8
    INPUT_DIM = 12
    MODEL_DIM = 32
    NUM_CLASSES = 5
    NUM_HEADS = 4
    NUM_LAYERS = 4
    DIM_FF = 2048  # PyTorch nn.TransformerEncoderLayer default dim_feedforward

    key = jax.random.PRNGKey(0)
    k_x, k_p = jax.random.split(key)

    x = jax.random.normal(k_x, (B, T, INPUT_DIM), jnp.float32)
    # key-padding mask: True = padded.  Batch 0 has its last 2 steps padded.
    mask = jnp.zeros((B, T), dtype=bool).at[0, T - 2:].set(True)

    params = init_params(k_p, INPUT_DIM, MODEL_DIM, NUM_CLASSES, NUM_LAYERS, DIM_FF)

    out = transformer_classifier(x, mask, params, num_heads=NUM_HEADS)
    out = jax.block_until_ready(out)
    assert out.shape == (B, NUM_CLASSES)
    print("KERNEL_OK")
</pallas_src>

<mosaic_0001>
module attributes {stable_mosaic.version = 11 : i64} {
  func.func @_transformer_kernel(%arg0: i32, %arg1: memref<1x16x12xf32, #tpu.memory_space<vmem>>, %arg2: memref<1x1x16xf32, #tpu.memory_space<vmem>>, %arg3: memref<1x32xf32, #tpu.memory_space<vmem>>, %arg4: memref<12x32xbf16, #tpu.memory_space<vmem>>, %arg5: memref<1x32xf32, #tpu.memory_space<vmem>>, %arg6: memref<4x32x96xbf16, #tpu.memory_space<vmem>>, %arg7: memref<4x1x96xf32, #tpu.memory_space<vmem>>, %arg8: memref<4x32x32xbf16, #tpu.memory_space<vmem>>, %arg9: memref<4x1x32xf32, #tpu.memory_space<vmem>>, %arg10: memref<4x1x32xf32, #tpu.memory_space<vmem>>, %arg11: memref<4x1x32xf32, #tpu.memory_space<vmem>>, %arg12: memref<4x32x2048xbf16, #tpu.memory_space<vmem>>, %arg13: memref<4x1x2048xf32, #tpu.memory_space<vmem>>, %arg14: memref<4x2048x32xbf16, #tpu.memory_space<vmem>>, %arg15: memref<4x1x32xf32, #tpu.memory_space<vmem>>, %arg16: memref<4x1x32xf32, #tpu.memory_space<vmem>>, %arg17: memref<4x1x32xf32, #tpu.memory_space<vmem>>, %arg18: memref<32x128xf32, #tpu.memory_space<vmem>>, %arg19: memref<1x128xf32, #tpu.memory_space<vmem>>, %arg20: memref<1x1x128xf32, #tpu.memory_space<vmem>>) attributes {dimension_semantics = [#tpu.dimension_semantics<parallel>], iteration_bounds = array<i64: 2>, scalar_prefetch = 0 : i64, scratch_operands = 0 : i64, tpu.core_type = #tpu.core_type<tc>, window_params = [{transform_indices = @transform_0, window_bounds = array<i64: 1, 16, 12>}, {transform_indices = @transform_1, window_bounds = array<i64: 1, 1, 16>}, {pipeline_mode = #tpu.pipeline_mode<synchronous>, transform_indices = @transform_2, window_bounds = array<i64: 1, 32>}, {pipeline_mode = #tpu.pipeline_mode<synchronous>, transform_indices = @transform_3, window_bounds = array<i64: 12, 32>}, {pipeline_mode = #tpu.pipeline_mode<synchronous>, transform_indices = @transform_4, window_bounds = array<i64: 1, 32>}, {pipeline_mode = #tpu.pipeline_mode<synchronous>, transform_indices = @transform_5, window_bounds = array<i64: 4, 32, 96>}, {pipeline_mode = #tpu.pipeline_mode<synchronous>, transform_indices = @transform_6, window_bounds = array<i64: 4, 1, 96>}, {pipeline_mode = #tpu.pipeline_mode<synchronous>, transform_indices = @transform_7, window_bounds = array<i64: 4, 32, 32>}, {pipeline_mode = #tpu.pipeline_mode<synchronous>, transform_indices = @transform_8, window_bounds = array<i64: 4, 1, 32>}, {pipeline_mode = #tpu.pipeline_mode<synchronous>, transform_indices = @transform_9, window_bounds = array<i64: 4, 1, 32>}, {pipeline_mode = #tpu.pipeline_mode<synchronous>, transform_indices = @transform_10, window_bounds = array<i64: 4, 1, 32>}, {pipeline_mode = #tpu.pipeline_mode<synchronous>, transform_indices = @transform_11, window_bounds = array<i64: 4, 32, 2048>}, {pipeline_mode = #tpu.pipeline_mode<synchronous>, transform_indices = @transform_12, window_bounds = array<i64: 4, 1, 2048>}, {pipeline_mode = #tpu.pipeline_mode<synchronous>, transform_indices = @transform_13, window_bounds = array<i64: 4, 2048, 32>}, {pipeline_mode = #tpu.pipeline_mode<synchronous>, transform_indices = @transform_14, window_bounds = array<i64: 4, 1, 32>}, {pipeline_mode = #tpu.pipeline_mode<synchronous>, transform_indices = @transform_15, window_bounds = array<i64: 4, 1, 32>}, {pipeline_mode = #tpu.pipeline_mode<synchronous>, transform_indices = @transform_16, window_bounds = array<i64: 4, 1, 32>}, {pipeline_mode = #tpu.pipeline_mode<synchronous>, transform_indices = @transform_17, window_bounds = array<i64: 32, 128>}, {pipeline_mode = #tpu.pipeline_mode<synchronous>, transform_indices = @transform_18, window_bounds = array<i64: 1, 128>}, {transform_indices = @transform_19, window_bounds = array<i64: 1, 1, 128>}]} {
    %c0 = arith.constant 0 : index
    %c0_0 = arith.constant 0 : index
    %c0_1 = arith.constant 0 : index
    %0 = vector.load %arg1[%c0, %c0_0, %c0_1] : memref<1x16x12xf32, #tpu.memory_space<vmem>>, vector<1x16x12xf32>
    %1 = vector.shape_cast %0 : vector<1x16x12xf32> to vector<16x12xf32>
    %c0_2 = arith.constant 0 : index
    %c0_3 = arith.constant 0 : index
    %c0_4 = arith.constant 0 : index
    %2 = vector.load %arg2[%c0_2, %c0_3, %c0_4] : memref<1x1x16xf32, #tpu.memory_space<vmem>>, vector<1x1x16xf32>
    %3 = arith.truncf %1 : vector<16x12xf32> to vector<16x12xbf16>
    %c0_5 = arith.constant 0 : index
    %c0_6 = arith.constant 0 : index
    %4 = vector.load %arg4[%c0_5, %c0_6] : memref<12x32xbf16, #tpu.memory_space<vmem>>, vector<12x32xbf16>
    %cst = arith.constant dense<0.000000e+00> : vector<16x32xf32>
    %5 = tpu.matmul %3, %4, %cst {dimension_numbers = #tpu.dot_dimension_numbers<[1], [0], [0], [1], [0, 0, 1, 1], [], []>} : vector<16x12xbf16>, vector<12x32xbf16>, vector<16x32xf32> -> vector<16x32xf32>
    %c0_7 = arith.constant 0 : index
    %c0_8 = arith.constant 0 : index
    %6 = vector.load %arg5[%c0_7, %c0_8] : memref<1x32xf32, #tpu.memory_space<vmem>>, vector<1x32xf32>
    %7 = vector.broadcast %6 : vector<1x32xf32> to vector<16x32xf32>
    %8 = arith.addf %5, %7 : vector<16x32xf32>
    %9 = tpu.iota {dimensions = array<i32: 0>} : vector<16x32xi32>
    %c16_i32 = arith.constant 16 : i32
    %c0_i32 = arith.constant 0 : i32
    %10 = arith.cmpi eq, %c16_i32, %c0_i32 : i32
    %c1_i32 = arith.constant 1 : i32
    %11 = arith.select %10, %c1_i32, %c16_i32 : i32
    %12 = vector.broadcast %11 : i32 to vector<16x32xi32>
    %13 = arith.remsi %9, %12 : vector<16x32xi32>
    %c0_i32_9 = arith.constant 0 : i32
    %14 = vector.broadcast %c0_i32_9 : i32 to vector<16x32xi32>
    %15 = arith.cmpi ne, %13, %14 : vector<16x32xi32>
    %c0_i32_10 = arith.constant 0 : i32
    %16 = vector.broadcast %c0_i32_10 : i32 to vector<16x32xi32>
    %17 = arith.cmpi slt, %13, %16 : vector<16x32xi32>
    %c0_i32_11 = arith.constant 0 : i32
    %18 = arith.cmpi slt, %11, %c0_i32_11 : i32
    %19 = vector.broadcast %18 : i1 to vector<16x32xi1>
    %20 = vector.broadcast %19 : vector<16x32xi1> to vector<16x32xi1>
    %21 = arith.xori %17, %20 : vector<16x32xi1>
    %22 = arith.andi %21, %15 : vector<16x32xi1>
    %23 = vector.broadcast %11 : i32 to vector<16x32xi32>
    %24 = arith.addi %13, %23 : vector<16x32xi32>
    %25 = arith.select %22, %24, %13 : vector<16x32xi1>, vector<16x32xi32>
    %c0_i32_12 = arith.constant 0 : i32
    %26 = vector.broadcast %c0_i32_12 : i32 to vector<16x32xi32>
    %27 = arith.cmpi eq, %25, %26 : vector<16x32xi32>
    %c0_13 = arith.constant 0 : index
    %c0_14 = arith.constant 0 : index
    %28 = vector.load %arg3[%c0_13, %c0_14] : memref<1x32xf32, #tpu.memory_space<vmem>>, vector<1x32xf32>
    %29 = vector.shape_cast %28 : vector<1x32xf32> to vector<1x32xf32>
    %30 = vector.broadcast %29 : vector<1x32xf32> to vector<16x32xf32>
    %31 = arith.select %27, %30, %8 : vector<16x32xi1>, vector<16x32xf32>
    %32 = arith.truncf %31 : vector<16x32xf32> to vector<16x32xbf16>
    %c0_15 = arith.constant 0 : index
    %c0_16 = arith.constant 0 : index
    %c0_17 = arith.constant 0 : index
    %33 = vector.load %arg6[%c0_15, %c0_16, %c0_17] : memref<4x32x96xbf16, #tpu.memory_space<vmem>>, vector<1x32x96xbf16>
    %34 = vector.shape_cast %33 : vector<1x32x96xbf16> to vector<32x96xbf16>
    %cst_18 = arith.constant dense<0.000000e+00> : vector<16x96xf32>
    %35 = tpu.matmul %32, %34, %cst_18 {dimension_numbers = #tpu.dot_dimension_numbers<[1], [0], [0], [1], [0, 0, 1, 1], [], []>} : vector<16x32xbf16>, vector<32x96xbf16>, vector<16x96xf32> -> vector<16x96xf32>
    %c0_19 = arith.constant 0 : index
    %c0_20 = arith.constant 0 : index
    %c0_21 = arith.constant 0 : index
    %36 = vector.load %arg7[%c0_19, %c0_20, %c0_21] : memref<4x1x96xf32, #tpu.memory_space<vmem>>, vector<1x1x96xf32>
    %37 = vector.shape_cast %36 : vector<1x1x96xf32> to vector<1x96xf32>
    %38 = vector.broadcast %37 : vector<1x96xf32> to vector<16x96xf32>
    %39 = arith.addf %35, %38 : vector<16x96xf32>
    %40 = vector.extract_strided_slice %39 {offsets = [0, 0], sizes = [16, 8], strides = [1, 1]} : vector<16x96xf32> to vector<16x8xf32>
    %41 = vector.shape_cast %40 : vector<16x8xf32> to vector<1x16x8xf32>
    %42 = arith.truncf %41 : vector<1x16x8xf32> to vector<1x16x8xbf16>
    %43 = vector.extract_strided_slice %39 {offsets = [0, 32], sizes = [16, 8], strides = [1, 1]} : vector<16x96xf32> to vector<16x8xf32>
    %44 = vector.shape_cast %43 : vector<16x8xf32> to vector<1x16x8xf32>
    %45 = arith.truncf %44 : vector<1x16x8xf32> to vector<1x16x8xbf16>
    %46 = vector.extract_strided_slice %39 {offsets = [0, 64], sizes = [16, 8], strides = [1, 1]} : vector<16x96xf32> to vector<16x8xf32>
    %47 = vector.shape_cast %46 : vector<16x8xf32> to vector<1x16x8xf32>
    %48 = arith.truncf %47 : vector<1x16x8xf32> to vector<1x16x8xbf16>
    "tpu.trace_start"() <{level = 10 : i32, message = "bqd,bkd->bqk"}> : () -> ()
    %cst_22 = arith.constant dense<0.000000e+00> : vector<1x16x16xf32>
    %49 = tpu.matmul %42, %45, %cst_22 {dimension_numbers = #tpu.dot_dimension_numbers<[2], [2], [1], [1], [0, 0, 0, 1, 1, 1], [0], [0]>} : vector<1x16x8xbf16>, vector<1x16x8xbf16>, vector<1x16x16xf32> -> vector<1x16x16xf32>
    "tpu.trace_stop"() : () -> ()
    %cst_23 = arith.constant 0.353553385 : f32
    %50 = vector.broadcast %cst_23 : f32 to vector<1x16x16xf32>
    %51 = arith.mulf %49, %50 : vector<1x16x16xf32>
    %52 = vector.broadcast %2 : vector<1x1x16xf32> to vector<1x16x16xf32>
    %53 = arith.addf %51, %52 : vector<1x16x16xf32>
    %cst_24 = arith.constant dense<0xFF800000> : vector<1x16xf32>
    %54 = vector.multi_reduction <maximumf>, %53, %cst_24 [2] : vector<1x16x16xf32> to vector<1x16xf32>
    %55 = vector.shape_cast %54 : vector<1x16xf32> to vector<1x16x1xf32>
    %56 = vector.broadcast %55 : vector<1x16x1xf32> to vector<1x16x16xf32>
    %57 = arith.subf %53, %56 : vector<1x16x16xf32>
    %58 = math.exp %57 : vector<1x16x16xf32>
    %cst_25 = arith.constant dense<0.000000e+00> : vector<1x16xf32>
    %59 = vector.multi_reduction <add>, %58, %cst_25 [2] : vector<1x16x16xf32> to vector<1x16xf32>
    %60 = vector.shape_cast %59 : vector<1x16xf32> to vector<1x16x1xf32>
    %61 = tpu.reciprocal %60 {approx = true} : vector<1x16x1xf32> -> vector<1x16x1xf32>
    %62 = vector.broadcast %61 : vector<1x16x1xf32> to vector<1x16x16xf32>
    %63 = arith.mulf %58, %62 : vector<1x16x16xf32>
    %64 = arith.truncf %63 : vector<1x16x16xf32> to vector<1x16x16xbf16>
    "tpu.trace_start"() <{level = 10 : i32, message = "bqk,bkd->bqd"}> : () -> ()
    %cst_26 = arith.constant dense<0.000000e+00> : vector<1x16x8xf32>
    %65 = tpu.matmul %64, %48, %cst_26 {dimension_numbers = #tpu.dot_dimension_numbers<[2], [1], [1], [2], [0, 0, 0, 1, 1, 2], [0], [0]>} : vector<1x16x16xbf16>, vector<1x16x8xbf16>, vector<1x16x8xf32> -> vector<1x16x8xf32>
    "tpu.trace_stop"() : () -> ()
    %66 = vector.shape_cast %65 : vector<1x16x8xf32> to vector<16x8xf32>
    %67 = vector.extract_strided_slice %39 {offsets = [0, 8], sizes = [16, 8], strides = [1, 1]} : vector<16x96xf32> to vector<16x8xf32>
    %68 = vector.shape_cast %67 : vector<16x8xf32> to vector<1x16x8xf32>
    %69 = arith.truncf %68 : vector<1x16x8xf32> to vector<1x16x8xbf16>
    %70 = vector.extract_strided_slice %39 {offsets = [0, 40], sizes = [16, 8], strides = [1, 1]} : vector<16x96xf32> to vector<16x8xf32>
    %71 = vector.shape_cast %70 : vector<16x8xf32> to vector<1x16x8xf32>
    %72 = arith.truncf %71 : vector<1x16x8xf32> to vector<1x16x8xbf16>
    %73 = vector.extract_strided_slice %39 {offsets = [0, 72], sizes = [16, 8], strides = [1, 1]} : vector<16x96xf32> to vector<16x8xf32>
    %74 = vector.shape_cast %73 : vector<16x8xf32> to vector<1x16x8xf32>
    %75 = arith.truncf %74 : vector<1x16x8xf32> to vector<1x16x8xbf16>
    "tpu.trace_start"() <{level = 10 : i32, message = "bqd,bkd->bqk"}> : () -> ()
    %cst_27 = arith.constant dense<0.000000e+00> : vector<1x16x16xf32>
    %76 = tpu.matmul %69, %72, %cst_27 {dimension_numbers = #tpu.dot_dimension_numbers<[2], [2], [1], [1], [0, 0, 0, 1, 1, 1], [0], [0]>} : vector<1x16x8xbf16>, vector<1x16x8xbf16>, vector<1x16x16xf32> -> vector<1x16x16xf32>
    "tpu.trace_stop"() : () -> ()
    %cst_28 = arith.constant 0.353553385 : f32
    %77 = vector.broadcast %cst_28 : f32 to vector<1x16x16xf32>
    %78 = arith.mulf %76, %77 : vector<1x16x16xf32>
    %79 = vector.broadcast %2 : vector<1x1x16xf32> to vector<1x16x16xf32>
    %80 = arith.addf %78, %79 : vector<1x16x16xf32>
    %cst_29 = arith.constant dense<0xFF800000> : vector<1x16xf32>
    %81 = vector.multi_reduction <maximumf>, %80, %cst_29 [2] : vector<1x16x16xf32> to vector<1x16xf32>
    %82 = vector.shape_cast %81 : vector<1x16xf32> to vector<1x16x1xf32>
    %83 = vector.broadcast %82 : vector<1x16x1xf32> to vector<1x16x16xf32>
    %84 = arith.subf %80, %83 : vector<1x16x16xf32>
    %85 = math.exp %84 : vector<1x16x16xf32>
    %cst_30 = arith.constant dense<0.000000e+00> : vector<1x16xf32>
    %86 = vector.multi_reduction <add>, %85, %cst_30 [2] : vector<1x16x16xf32> to vector<1x16xf32>
    %87 = vector.shape_cast %86 : vector<1x16xf32> to vector<1x16x1xf32>
    %88 = tpu.reciprocal %87 {approx = true} : vector<1x16x1xf32> -> vector<1x16x1xf32>
    %89 = vector.broadcast %88 : vector<1x16x1xf32> to vector<1x16x16xf32>
    %90 = arith.mulf %85, %89 : vector<1x16x16xf32>
    %91 = arith.truncf %90 : vector<1x16x16xf32> to vector<1x16x16xbf16>
    "tpu.trace_start"() <{level = 10 : i32, message = "bqk,bkd->bqd"}> : () -> ()
    %cst_31 = arith.constant dense<0.000000e+00> : vector<1x16x8xf32>
    %92 = tpu.matmul %91, %75, %cst_31 {dimension_numbers = #tpu.dot_dimension_numbers<[2], [1], [1], [2], [0, 0, 0, 1, 1, 2], [0], [0]>} : vector<1x16x16xbf16>, vector<1x16x8xbf16>, vector<1x16x8xf32> -> vector<1x16x8xf32>
    "tpu.trace_stop"() : () -> ()
    %93 = vector.shape_cast %92 : vector<1x16x8xf32> to vector<16x8xf32>
    %94 = vector.extract_strided_slice %39 {offsets = [0, 16], sizes = [16, 8], strides = [1, 1]} : vector<16x96xf32> to vector<16x8xf32>
    %95 = vector.shape_cast %94 : vector<16x8xf32> to vector<1x16x8xf32>
    %96 = arith.truncf %95 : vector<1x16x8xf32> to vector<1x16x8xbf16>
    %97 = vector.extract_strided_slice %39 {offsets = [0, 48], sizes = [16, 8], strides = [1, 1]} : vector<16x96xf32> to vector<16x8xf32>
    %98 = vector.shape_cast %97 : vector<16x8xf32> to vector<1x16x8xf32>
    %99 = arith.truncf %98 : vector<1x16x8xf32> to vector<1x16x8xbf16>
    %100 = vector.extract_strided_slice %39 {offsets = [0, 80], sizes = [16, 8], strides = [1, 1]} : vector<16x96xf32> to vector<16x8xf32>
    %101 = vector.shape_cast %100 : vector<16x8xf32> to vector<1x16x8xf32>
    %102 = arith.truncf %101 : vector<1x16x8xf32> to vector<1x16x8xbf16>
    "tpu.trace_start"() <{level = 10 : i32, message = "bqd,bkd->bqk"}> : () -> ()
    %cst_32 = arith.constant dense<0.000000e+00> : vector<1x16x16xf32>
    %103 = tpu.matmul %96, %99, %cst_32 {dimension_numbers = #tpu.dot_dimension_numbers<[2], [2], [1], [1], [0, 0, 0, 1, 1, 1], [0], [0]>} : vector<1x16x8xbf16>, vector<1x16x8xbf16>, vector<1x16x16xf32> -> vector<1x16x16xf32>
    "tpu.trace_stop"() : () -> ()
    %cst_33 = arith.constant 0.353553385 : f32
    %104 = vector.broadcast %cst_33 : f32 to vector<1x16x16xf32>
    %105 = arith.mulf %103, %104 : vector<1x16x16xf32>
    %106 = vector.broadcast %2 : vector<1x1x16xf32> to vector<1x16x16xf32>
    %107 = arith.addf %105, %106 : vector<1x16x16xf32>
    %cst_34 = arith.constant dense<0xFF800000> : vector<1x16xf32>
    %108 = vector.multi_reduction <maximumf>, %107, %cst_34 [2] : vector<1x16x16xf32> to vector<1x16xf32>
    %109 = vector.shape_cast %108 : vector<1x16xf32> to vector<1x16x1xf32>
    %110 = vector.broadcast %109 : vector<1x16x1xf32> to vector<1x16x16xf32>
    %111 = arith.subf %107, %110 : vector<1x16x16xf32>
    %112 = math.exp %111 : vector<1x16x16xf32>
    %cst_35 = arith.constant dense<0.000000e+00> : vector<1x16xf32>
    %113 = vector.multi_reduction <add>, %112, %cst_35 [2] : vector<1x16x16xf32> to vector<1x16xf32>
    %114 = vector.shape_cast %113 : vector<1x16xf32> to vector<1x16x1xf32>
    %115 = tpu.reciprocal %114 {approx = true} : vector<1x16x1xf32> -> vector<1x16x1xf32>
    %116 = vector.broadcast %115 : vector<1x16x1xf32> to vector<1x16x16xf32>
    %117 = arith.mulf %112, %116 : vector<1x16x16xf32>
    %118 = arith.truncf %117 : vector<1x16x16xf32> to vector<1x16x16xbf16>
    "tpu.trace_start"() <{level = 10 : i32, message = "bqk,bkd->bqd"}> : () -> ()
    %cst_36 = arith.constant dense<0.000000e+00> : vector<1x16x8xf32>
    %119 = tpu.matmul %118, %102, %cst_36 {dimension_numbers = #tpu.dot_dimension_numbers<[2], [1], [1], [2], [0, 0, 0, 1, 1, 2], [0], [0]>} : vector<1x16x16xbf16>, vector<1x16x8xbf16>, vector<1x16x8xf32> -> vector<1x16x8xf32>
    "tpu.trace_stop"() : () -> ()
    %120 = vector.shape_cast %119 : vector<1x16x8xf32> to vector<16x8xf32>
    %121 = vector.extract_strided_slice %39 {offsets = [0, 24], sizes = [16, 8], strides = [1, 1]} : vector<16x96xf32> to vector<16x8xf32>
    %122 = vector.shape_cast %121 : vector<16x8xf32> to vector<1x16x8xf32>
    %123 = arith.truncf %122 : vector<1x16x8xf32> to vector<1x16x8xbf16>
    %124 = vector.extract_strided_slice %39 {offsets = [0, 56], sizes = [16, 8], strides = [1, 1]} : vector<16x96xf32> to vector<16x8xf32>
    %125 = vector.shape_cast %124 : vector<16x8xf32> to vector<1x16x8xf32>
    %126 = arith.truncf %125 : vector<1x16x8xf32> to vector<1x16x8xbf16>
    %127 = vector.extract_strided_slice %39 {offsets = [0, 88], sizes = [16, 8], strides = [1, 1]} : vector<16x96xf32> to vector<16x8xf32>
    %128 = vector.shape_cast %127 : vector<16x8xf32> to vector<1x16x8xf32>
    %129 = arith.truncf %128 : vector<1x16x8xf32> to vector<1x16x8xbf16>
    "tpu.trace_start"() <{level = 10 : i32, message = "bqd,bkd->bqk"}> : () -> ()
    %cst_37 = arith.constant dense<0.000000e+00> : vector<1x16x16xf32>
    %130 = tpu.matmul %123, %126, %cst_37 {dimension_numbers = #tpu.dot_dimension_numbers<[2], [2], [1], [1], [0, 0, 0, 1, 1, 1], [0], [0]>} : vector<1x16x8xbf16>, vector<1x16x8xbf16>, vector<1x16x16xf32> -> vector<1x16x16xf32>
    "tpu.trace_stop"() : () -> ()
    %cst_38 = arith.constant 0.353553385 : f32
    %131 = vector.broadcast %cst_38 : f32 to vector<1x16x16xf32>
    %132 = arith.mulf %130, %131 : vector<1x16x16xf32>
    %133 = vector.broadcast %2 : vector<1x1x16xf32> to vector<1x16x16xf32>
    %134 = arith.addf %132, %133 : vector<1x16x16xf32>
    %cst_39 = arith.constant dense<0xFF800000> : vector<1x16xf32>
    %135 = vector.multi_reduction <maximumf>, %134, %cst_39 [2] : vector<1x16x16xf32> to vector<1x16xf32>
    %136 = vector.shape_cast %135 : vector<1x16xf32> to vector<1x16x1xf32>
    %137 = vector.broadcast %136 : vector<1x16x1xf32> to vector<1x16x16xf32>
    %138 = arith.subf %134, %137 : vector<1x16x16xf32>
    %139 = math.exp %138 : vector<1x16x16xf32>
    %cst_40 = arith.constant dense<0.000000e+00> : vector<1x16xf32>
    %140 = vector.multi_reduction <add>, %139, %cst_40 [2] : vector<1x16x16xf32> to vector<1x16xf32>
    %141 = vector.shape_cast %140 : vector<1x16xf32> to vector<1x16x1xf32>
    %142 = tpu.reciprocal %141 {approx = true} : vector<1x16x1xf32> -> vector<1x16x1xf32>
    %143 = vector.broadcast %142 : vector<1x16x1xf32> to vector<1x16x16xf32>
    %144 = arith.mulf %139, %143 : vector<1x16x16xf32>
    %145 = arith.truncf %144 : vector<1x16x16xf32> to vector<1x16x16xbf16>
    "tpu.trace_start"() <{level = 10 : i32, message = "bqk,bkd->bqd"}> : () -> ()
    %cst_41 = arith.constant dense<0.000000e+00> : vector<1x16x8xf32>
    %146 = tpu.matmul %145, %129, %cst_41 {dimension_numbers = #tpu.dot_dimension_numbers<[2], [1], [1], [2], [0, 0, 0, 1, 1, 2], [0], [0]>} : vector<1x16x16xbf16>, vector<1x16x8xbf16>, vector<1x16x8xf32> -> vector<1x16x8xf32>
    "tpu.trace_stop"() : () -> ()
    %147 = vector.shape_cast %146 : vector<1x16x8xf32> to vector<16x8xf32>
    %148 = tpu.concatenate %66, %93, %120, %147 in 1 : vector<16x8xf32>, vector<16x8xf32>, vector<16x8xf32>, vector<16x8xf32> -> vector<16x32xf32>
    %149 = arith.truncf %148 : vector<16x32xf32> to vector<16x32xbf16>
    %c0_42 = arith.constant 0 : index
    %c0_43 = arith.constant 0 : index
    %c0_44 = arith.constant 0 : index
    %150 = vector.load %arg8[%c0_42, %c0_43, %c0_44] : memref<4x32x32xbf16, #tpu.memory_space<vmem>>, vector<1x32x32xbf16>
    %151 = vector.shape_cast %150 : vector<1x32x32xbf16> to vector<32x32xbf16>
    %cst_45 = arith.constant dense<0.000000e+00> : vector<16x32xf32>
    %152 = tpu.matmul %149, %151, %cst_45 {dimension_numbers = #tpu.dot_dimension_numbers<[1], [0], [0], [1], [0, 0, 1, 1], [], []>} : vector<16x32xbf16>, vector<32x32xbf16>, vector<16x32xf32> -> vector<16x32xf32>
    %c0_46 = arith.constant 0 : index
    %c0_47 = arith.constant 0 : index
    %c0_48 = arith.constant 0 : index
    %153 = vector.load %arg9[%c0_46, %c0_47, %c0_48] : memref<4x1x32xf32, #tpu.memory_space<vmem>>, vector<1x1x32xf32>
    %154 = vector.shape_cast %153 : vector<1x1x32xf32> to vector<1x32xf32>
    %155 = vector.broadcast %154 : vector<1x32xf32> to vector<16x32xf32>
    %156 = arith.addf %152, %155 : vector<16x32xf32>
    %157 = arith.addf %31, %156 : vector<16x32xf32>
    %c0_49 = arith.constant 0 : index
    %c0_50 = arith.constant 0 : index
    %c0_51 = arith.constant 0 : index
    %158 = vector.load %arg10[%c0_49, %c0_50, %c0_51] : memref<4x1x32xf32, #tpu.memory_space<vmem>>, vector<1x1x32xf32>
    %159 = vector.shape_cast %158 : vector<1x1x32xf32> to vector<1x32xf32>
    %c0_52 = arith.constant 0 : index
    %c0_53 = arith.constant 0 : index
    %c0_54 = arith.constant 0 : index
    %160 = vector.load %arg11[%c0_52, %c0_53, %c0_54] : memref<4x1x32xf32, #tpu.memory_space<vmem>>, vector<1x1x32xf32>
    %161 = vector.shape_cast %160 : vector<1x1x32xf32> to vector<1x32xf32>
    %cst_55 = arith.constant dense<0.000000e+00> : vector<16xf32>
    %162 = vector.multi_reduction <add>, %157, %cst_55 [1] : vector<16x32xf32> to vector<16xf32>
    %163 = vector.shape_cast %162 : vector<16xf32> to vector<16x1xf32>
    %cst_56 = arith.constant 3.200000e+01 : f32
    %164 = vector.broadcast %cst_56 : f32 to vector<16x1xf32>
    %165 = arith.divf %163, %164 : vector<16x1xf32>
    %166 = vector.broadcast %165 : vector<16x1xf32> to vector<16x32xf32>
    %167 = arith.subf %157, %166 : vector<16x32xf32>
    %168 = arith.mulf %167, %167 : vector<16x32xf32>
    %cst_57 = arith.constant dense<0.000000e+00> : vector<16xf32>
    %169 = vector.multi_reduction <add>, %168, %cst_57 [1] : vector<16x32xf32> to vector<16xf32>
    %170 = vector.shape_cast %169 : vector<16xf32> to vector<16x1xf32>
    %cst_58 = arith.constant 3.200000e+01 : f32
    %171 = vector.broadcast %cst_58 : f32 to vector<16x1xf32>
    %172 = arith.divf %170, %171 : vector<16x1xf32>
    %173 = vector.broadcast %165 : vector<16x1xf32> to vector<16x32xf32>
    %174 = arith.subf %157, %173 : vector<16x32xf32>
    %cst_59 = arith.constant 9.99999974E-6 : f32
    %175 = vector.broadcast %cst_59 : f32 to vector<16x1xf32>
    %176 = arith.addf %172, %175 : vector<16x1xf32>
    %177 = math.rsqrt %176 : vector<16x1xf32>
    %178 = vector.broadcast %177 : vector<16x1xf32> to vector<16x32xf32>
    %179 = arith.mulf %174, %178 : vector<16x32xf32>
    %180 = vector.broadcast %159 : vector<1x32xf32> to vector<16x32xf32>
    %181 = arith.mulf %179, %180 : vector<16x32xf32>
    %182 = vector.broadcast %161 : vector<1x32xf32> to vector<16x32xf32>
    %183 = arith.addf %181, %182 : vector<16x32xf32>
    %184 = arith.truncf %183 : vector<16x32xf32> to vector<16x32xbf16>
    %cst_60 = arith.constant 0.000000e+00 : f32
    %185 = vector.broadcast %cst_60 : f32 to vector<16x32xf32>
    %c0_61 = arith.constant 0 : index
    %c0_62 = arith.constant 0 : index
    %c0_63 = arith.constant 0 : index
    %186 = vector.load %arg12[%c0_61, %c0_62, %c0_63] : memref<4x32x2048xbf16, #tpu.memory_space<vmem>>, vector<1x32x512xbf16>
    %187 = vector.shape_cast %186 : vector<1x32x512xbf16> to vector<32x512xbf16>
    %cst_64 = arith.constant dense<0.000000e+00> : vector<16x512xf32>
    %188 = tpu.matmul %184, %187, %cst_64 {dimension_numbers = #tpu.dot_dimension_numbers<[1], [0], [0], [1], [0, 0, 1, 1], [], []>} : vector<16x32xbf16>, vector<32x512xbf16>, vector<16x512xf32> -> vector<16x512xf32>
    %c0_65 = arith.constant 0 : index
    %c0_66 = arith.constant 0 : index
    %c0_67 = arith.constant 0 : index
    %189 = vector.load %arg13[%c0_65, %c0_66, %c0_67] : memref<4x1x2048xf32, #tpu.memory_space<vmem>>, vector<1x1x512xf32>
    %190 = vector.shape_cast %189 : vector<1x1x512xf32> to vector<1x512xf32>
    %191 = vector.broadcast %190 : vector<1x512xf32> to vector<16x512xf32>
    %192 = arith.addf %188, %191 : vector<16x512xf32>
    %cst_68 = arith.constant 5.000000e-01 : f32
    %193 = vector.broadcast %cst_68 : f32 to vector<16x512xf32>
    %194 = arith.mulf %193, %192 : vector<16x512xf32>
    %cst_69 = arith.constant 0.707106769 : f32
    %195 = vector.broadcast %cst_69 : f32 to vector<16x512xf32>
    %196 = arith.mulf %192, %195 : vector<16x512xf32>
    %197 = math.erf %196 : vector<16x512xf32>
    %cst_70 = arith.constant 1.000000e+00 : f32
    %198 = vector.broadcast %cst_70 : f32 to vector<16x512xf32>
    %199 = arith.addf %198, %197 : vector<16x512xf32>
    %200 = arith.mulf %194, %199 : vector<16x512xf32>
    %201 = arith.truncf %200 : vector<16x512xf32> to vector<16x512xbf16>
    %c0_71 = arith.constant 0 : index
    %c0_72 = arith.constant 0 : index
    %c0_73 = arith.constant 0 : index
    %202 = vector.load %arg14[%c0_71, %c0_72, %c0_73] : memref<4x2048x32xbf16, #tpu.memory_space<vmem>>, vector<1x512x32xbf16>
    %203 = vector.shape_cast %202 : vector<1x512x32xbf16> to vector<512x32xbf16>
    %cst_74 = arith.constant dense<0.000000e+00> : vector<16x32xf32>
    %204 = tpu.matmul %201, %203, %cst_74 {dimension_numbers = #tpu.dot_dimension_numbers<[1], [0], [0], [1], [0, 0, 1, 1], [], []>} : vector<16x512xbf16>, vector<512x32xbf16>, vector<16x32xf32> -> vector<16x32xf32>
    %205 = arith.addf %185, %204 : vector<16x32xf32>
    %c0_75 = arith.constant 0 : index
    %c0_76 = arith.constant 0 : index
    %c512 = arith.constant 512 : index
    %206 = vector.load %arg12[%c0_75, %c0_76, %c512] : memref<4x32x2048xbf16, #tpu.memory_space<vmem>>, vector<1x32x512xbf16>
    %207 = vector.shape_cast %206 : vector<1x32x512xbf16> to vector<32x512xbf16>
    %cst_77 = arith.constant dense<0.000000e+00> : vector<16x512xf32>
    %208 = tpu.matmul %184, %207, %cst_77 {dimension_numbers = #tpu.dot_dimension_numbers<[1], [0], [0], [1], [0, 0, 1, 1], [], []>} : vector<16x32xbf16>, vector<32x512xbf16>, vector<16x512xf32> -> vector<16x512xf32>
    %c0_78 = arith.constant 0 : index
    %c0_79 = arith.constant 0 : index
    %c512_80 = arith.constant 512 : index
    %209 = vector.load %arg13[%c0_78, %c0_79, %c512_80] : memref<4x1x2048xf32, #tpu.memory_space<vmem>>, vector<1x1x512xf32>
    %210 = vector.shape_cast %209 : vector<1x1x512xf32> to vector<1x512xf32>
    %211 = vector.broadcast %210 : vector<1x512xf32> to vector<16x512xf32>
    %212 = arith.addf %208, %211 : vector<16x512xf32>
    %cst_81 = arith.constant 5.000000e-01 : f32
    %213 = vector.broadcast %cst_81 : f32 to vector<16x512xf32>
    %214 = arith.mulf %213, %212 : vector<16x512xf32>
    %cst_82 = arith.constant 0.707106769 : f32
    %215 = vector.broadcast %cst_82 : f32 to vector<16x512xf32>
    %216 = arith.mulf %212, %215 : vector<16x512xf32>
    %217 = math.erf %216 : vector<16x512xf32>
    %cst_83 = arith.constant 1.000000e+00 : f32
    %218 = vector.broadcast %cst_83 : f32 to vector<16x512xf32>
    %219 = arith.addf %218, %217 : vector<16x512xf32>
    %220 = arith.mulf %214, %219 : vector<16x512xf32>
    %221 = arith.truncf %220 : vector<16x512xf32> to vector<16x512xbf16>
    %c0_84 = arith.constant 0 : index
    %c512_85 = arith.constant 512 : index
    %c0_86 = arith.constant 0 : index
    %222 = vector.load %arg14[%c0_84, %c512_85, %c0_86] : memref<4x2048x32xbf16, #tpu.memory_space<vmem>>, vector<1x512x32xbf16>
    %223 = vector.shape_cast %222 : vector<1x512x32xbf16> to vector<512x32xbf16>
    %cst_87 = arith.constant dense<0.000000e+00> : vector<16x32xf32>
    %224 = tpu.matmul %221, %223, %cst_87 {dimension_numbers = #tpu.dot_dimension_numbers<[1], [0], [0], [1], [0, 0, 1, 1], [], []>} : vector<16x512xbf16>, vector<512x32xbf16>, vector<16x32xf32> -> vector<16x32xf32>
    %225 = arith.addf %205, %224 : vector<16x32xf32>
    %c0_88 = arith.constant 0 : index
    %c0_89 = arith.constant 0 : index
    %c1024 = arith.constant 1024 : index
    %226 = vector.load %arg12[%c0_88, %c0_89, %c1024] : memref<4x32x2048xbf16, #tpu.memory_space<vmem>>, vector<1x32x512xbf16>
    %227 = vector.shape_cast %226 : vector<1x32x512xbf16> to vector<32x512xbf16>
    %cst_90 = arith.constant dense<0.000000e+00> : vector<16x512xf32>
    %228 = tpu.matmul %184, %227, %cst_90 {dimension_numbers = #tpu.dot_dimension_numbers<[1], [0], [0], [1], [0, 0, 1, 1], [], []>} : vector<16x32xbf16>, vector<32x512xbf16>, vector<16x512xf32> -> vector<16x512xf32>
    %c0_91 = arith.constant 0 : index
    %c0_92 = arith.constant 0 : index
    %c1024_93 = arith.constant 1024 : index
    %229 = vector.load %arg13[%c0_91, %c0_92, %c1024_93] : memref<4x1x2048xf32, #tpu.memory_space<vmem>>, vector<1x1x512xf32>
    %230 = vector.shape_cast %229 : vector<1x1x512xf32> to vector<1x512xf32>
    %231 = vector.broadcast %230 : vector<1x512xf32> to vector<16x512xf32>
    %232 = arith.addf %228, %231 : vector<16x512xf32>
    %cst_94 = arith.constant 5.000000e-01 : f32
    %233 = vector.broadcast %cst_94 : f32 to vector<16x512xf32>
    %234 = arith.mulf %233, %232 : vector<16x512xf32>
    %cst_95 = arith.constant 0.707106769 : f32
    %235 = vector.broadcast %cst_95 : f32 to vector<16x512xf32>
    %236 = arith.mulf %232, %235 : vector<16x512xf32>
    %237 = math.erf %236 : vector<16x512xf32>
    %cst_96 = arith.constant 1.000000e+00 : f32
    %238 = vector.broadcast %cst_96 : f32 to vector<16x512xf32>
    %239 = arith.addf %238, %237 : vector<16x512xf32>
    %240 = arith.mulf %234, %239 : vector<16x512xf32>
    %241 = arith.truncf %240 : vector<16x512xf32> to vector<16x512xbf16>
    %c0_97 = arith.constant 0 : index
    %c1024_98 = arith.constant 1024 : index
    %c0_99 = arith.constant 0 : index
    %242 = vector.load %arg14[%c0_97, %c1024_98, %c0_99] : memref<4x2048x32xbf16, #tpu.memory_space<vmem>>, vector<1x512x32xbf16>
    %243 = vector.shape_cast %242 : vector<1x512x32xbf16> to vector<512x32xbf16>
    %cst_100 = arith.constant dense<0.000000e+00> : vector<16x32xf32>
    %244 = tpu.matmul %241, %243, %cst_100 {dimension_numbers = #tpu.dot_dimension_numbers<[1], [0], [0], [1], [0, 0, 1, 1], [], []>} : vector<16x512xbf16>, vector<512x32xbf16>, vector<16x32xf32> -> vector<16x32xf32>
    %245 = arith.addf %225, %244 : vector<16x32xf32>
    %c0_101 = arith.constant 0 : index
    %c0_102 = arith.constant 0 : index
    %c1536 = arith.constant 1536 : index
    %246 = vector.load %arg12[%c0_101, %c0_102, %c1536] : memref<4x32x2048xbf16, #tpu.memory_space<vmem>>, vector<1x32x512xbf16>
    %247 = vector.shape_cast %246 : vector<1x32x512xbf16> to vector<32x512xbf16>
    %cst_103 = arith.constant dense<0.000000e+00> : vector<16x512xf32>
    %248 = tpu.matmul %184, %247, %cst_103 {dimension_numbers = #tpu.dot_dimension_numbers<[1], [0], [0], [1], [0, 0, 1, 1], [], []>} : vector<16x32xbf16>, vector<32x512xbf16>, vector<16x512xf32> -> vector<16x512xf32>
    %c0_104 = arith.constant 0 : index
    %c0_105 = arith.constant 0 : index
    %c1536_106 = arith.constant 1536 : index
    %249 = vector.load %arg13[%c0_104, %c0_105, %c1536_106] : memref<4x1x2048xf32, #tpu.memory_space<vmem>>, vector<1x1x512xf32>
    %250 = vector.shape_cast %249 : vector<1x1x512xf32> to vector<1x512xf32>
    %251 = vector.broadcast %250 : vector<1x512xf32> to vector<16x512xf32>
    %252 = arith.addf %248, %251 : vector<16x512xf32>
    %cst_107 = arith.constant 5.000000e-01 : f32
    %253 = vector.broadcast %cst_107 : f32 to vector<16x512xf32>
    %254 = arith.mulf %253, %252 : vector<16x512xf32>
    %cst_108 = arith.constant 0.707106769 : f32
    %255 = vector.broadcast %cst_108 : f32 to vector<16x512xf32>
    %256 = arith.mulf %252, %255 : vector<16x512xf32>
    %257 = math.erf %256 : vector<16x512xf32>
    %cst_109 = arith.constant 1.000000e+00 : f32
    %258 = vector.broadcast %cst_109 : f32 to vector<16x512xf32>
    %259 = arith.addf %258, %257 : vector<16x512xf32>
    %260 = arith.mulf %254, %259 : vector<16x512xf32>
    %261 = arith.truncf %260 : vector<16x512xf32> to vector<16x512xbf16>
    %c0_110 = arith.constant 0 : index
    %c1536_111 = arith.constant 1536 : index
    %c0_112 = arith.constant 0 : index
    %262 = vector.load %arg14[%c0_110, %c1536_111, %c0_112] : memref<4x2048x32xbf16, #tpu.memory_space<vmem>>, vector<1x512x32xbf16>
    %263 = vector.shape_cast %262 : vector<1x512x32xbf16> to vector<512x32xbf16>
    %cst_113 = arith.constant dense<0.000000e+00> : vector<16x32xf32>
    %264 = tpu.matmul %261, %263, %cst_113 {dimension_numbers = #tpu.dot_dimension_numbers<[1], [0], [0], [1], [0, 0, 1, 1], [], []>} : vector<16x512xbf16>, vector<512x32xbf16>, vector<16x32xf32> -> vector<16x32xf32>
    %265 = arith.addf %245, %264 : vector<16x32xf32>
    %c0_114 = arith.constant 0 : index
    %c0_115 = arith.constant 0 : index
    %c0_116 = arith.constant 0 : index
    %266 = vector.load %arg15[%c0_114, %c0_115, %c0_116] : memref<4x1x32xf32, #tpu.memory_space<vmem>>, vector<1x1x32xf32>
    %267 = vector.shape_cast %266 : vector<1x1x32xf32> to vector<1x32xf32>
    %268 = vector.broadcast %267 : vector<1x32xf32> to vector<16x32xf32>
    %269 = arith.addf %265, %268 : vector<16x32xf32>
    %270 = arith.addf %183, %269 : vector<16x32xf32>
    %c0_117 = arith.constant 0 : index
    %c0_118 = arith.constant 0 : index
    %c0_119 = arith.constant 0 : index
    %271 = vector.load %arg16[%c0_117, %c0_118, %c0_119] : memref<4x1x32xf32, #tpu.memory_space<vmem>>, vector<1x1x32xf32>
    %272 = vector.shape_cast %271 : vector<1x1x32xf32> to vector<1x32xf32>
    %c0_120 = arith.constant 0 : index
    %c0_121 = arith.constant 0 : index
    %c0_122 = arith.constant 0 : index
    %273 = vector.load %arg17[%c0_120, %c0_121, %c0_122] : memref<4x1x32xf32, #tpu.memory_space<vmem>>, vector<1x1x32xf32>
    %274 = vector.shape_cast %273 : vector<1x1x32xf32> to vector<1x32xf32>
    %cst_123 = arith.constant dense<0.000000e+00> : vector<16xf32>
    %275 = vector.multi_reduction <add>, %270, %cst_123 [1] : vector<16x32xf32> to vector<16xf32>
    %276 = vector.shape_cast %275 : vector<16xf32> to vector<16x1xf32>
    %cst_124 = arith.constant 3.200000e+01 : f32
    %277 = vector.broadcast %cst_124 : f32 to vector<16x1xf32>
    %278 = arith.divf %276, %277 : vector<16x1xf32>
    %279 = vector.broadcast %278 : vector<16x1xf32> to vector<16x32xf32>
    %280 = arith.subf %270, %279 : vector<16x32xf32>
    %281 = arith.mulf %280, %280 : vector<16x32xf32>
    %cst_125 = arith.constant dense<0.000000e+00> : vector<16xf32>
    %282 = vector.multi_reduction <add>, %281, %cst_125 [1] : vector<16x32xf32> to vector<16xf32>
    %283 = vector.shape_cast %282 : vector<16xf32> to vector<16x1xf32>
    %cst_126 = arith.constant 3.200000e+01 : f32
    %284 = vector.broadcast %cst_126 : f32 to vector<16x1xf32>
    %285 = arith.divf %283, %284 : vector<16x1xf32>
    %286 = vector.broadcast %278 : vector<16x1xf32> to vector<16x32xf32>
    %287 = arith.subf %270, %286 : vector<16x32xf32>
    %cst_127 = arith.constant 9.99999974E-6 : f32
    %288 = vector.broadcast %cst_127 : f32 to vector<16x1xf32>
    %289 = arith.addf %285, %288 : vector<16x1xf32>
    %290 = math.rsqrt %289 : vector<16x1xf32>
    %291 = vector.broadcast %290 : vector<16x1xf32> to vector<16x32xf32>
    %292 = arith.mulf %287, %291 : vector<16x32xf32>
    %293 = vector.broadcast %272 : vector<1x32xf32> to vector<16x32xf32>
    %294 = arith.mulf %292, %293 : vector<16x32xf32>
    %295 = vector.broadcast %274 : vector<1x32xf32> to vector<16x32xf32>
    %296 = arith.addf %294, %295 : vector<16x32xf32>
    %297 = arith.truncf %296 : vector<16x32xf32> to vector<16x32xbf16>
    %c1 = arith.constant 1 : index
    %c0_128 = arith.constant 0 : index
    %c0_129 = arith.constant 0 : index
    %298 = vector.load %arg6[%c1, %c0_128, %c0_129] : memref<4x32x96xbf16, #tpu.memory_space<vmem>>, vector<1x32x96xbf16>
    %299 = vector.shape_cast %298 : vector<1x32x96xbf16> to vector<32x96xbf16>
    %cst_130 = arith.constant dense<0.000000e+00> : vector<16x96xf32>
    %300 = tpu.matmul %297, %299, %cst_130 {dimension_numbers = #tpu.dot_dimension_numbers<[1], [0], [0], [1], [0, 0, 1, 1], [], []>} : vector<16x32xbf16>, vector<32x96xbf16>, vector<16x96xf32> -> vector<16x96xf32>
    %c1_131 = arith.constant 1 : index
    %c0_132 = arith.constant 0 : index
    %c0_133 = arith.constant 0 : index
    %301 = vector.load %arg7[%c1_131, %c0_132, %c0_133] : memref<4x1x96xf32, #tpu.memory_space<vmem>>, vector<1x1x96xf32>
    %302 = vector.shape_cast %301 : vector<1x1x96xf32> to vector<1x96xf32>
    %303 = vector.broadcast %302 : vector<1x96xf32> to vector<16x96xf32>
    %304 = arith.addf %300, %303 : vector<16x96xf32>
    %305 = vector.extract_strided_slice %304 {offsets = [0, 0], sizes = [16, 8], strides = [1, 1]} : vector<16x96xf32> to vector<16x8xf32>
    %306 = vector.shape_cast %305 : vector<16x8xf32> to vector<1x16x8xf32>
    %307 = arith.truncf %306 : vector<1x16x8xf32> to vector<1x16x8xbf16>
    %308 = vector.extract_strided_slice %304 {offsets = [0, 32], sizes = [16, 8], strides = [1, 1]} : vector<16x96xf32> to vector<16x8xf32>
    %309 = vector.shape_cast %308 : vector<16x8xf32> to vector<1x16x8xf32>
    %310 = arith.truncf %309 : vector<1x16x8xf32> to vector<1x16x8xbf16>
    %311 = vector.extract_strided_slice %304 {offsets = [0, 64], sizes = [16, 8], strides = [1, 1]} : vector<16x96xf32> to vector<16x8xf32>
    %312 = vector.shape_cast %311 : vector<16x8xf32> to vector<1x16x8xf32>
    %313 = arith.truncf %312 : vector<1x16x8xf32> to vector<1x16x8xbf16>
    "tpu.trace_start"() <{level = 10 : i32, message = "bqd,bkd->bqk"}> : () -> ()
    %cst_134 = arith.constant dense<0.000000e+00> : vector<1x16x16xf32>
    %314 = tpu.matmul %307, %310, %cst_134 {dimension_numbers = #tpu.dot_dimension_numbers<[2], [2], [1], [1], [0, 0, 0, 1, 1, 1], [0], [0]>} : vector<1x16x8xbf16>, vector<1x16x8xbf16>, vector<1x16x16xf32> -> vector<1x16x16xf32>
    "tpu.trace_stop"() : () -> ()
    %cst_135 = arith.constant 0.353553385 : f32
    %315 = vector.broadcast %cst_135 : f32 to vector<1x16x16xf32>
    %316 = arith.mulf %314, %315 : vector<1x16x16xf32>
    %317 = vector.broadcast %2 : vector<1x1x16xf32> to vector<1x16x16xf32>
    %318 = arith.addf %316, %317 : vector<1x16x16xf32>
    %cst_136 = arith.constant dense<0xFF800000> : vector<1x16xf32>
    %319 = vector.multi_reduction <maximumf>, %318, %cst_136 [2] : vector<1x16x16xf32> to vector<1x16xf32>
    %320 = vector.shape_cast %319 : vector<1x16xf32> to vector<1x16x1xf32>
    %321 = vector.broadcast %320 : vector<1x16x1xf32> to vector<1x16x16xf32>
    %322 = arith.subf %318, %321 : vector<1x16x16xf32>
    %323 = math.exp %322 : vector<1x16x16xf32>
    %cst_137 = arith.constant dense<0.000000e+00> : vector<1x16xf32>
    %324 = vector.multi_reduction <add>, %323, %cst_137 [2] : vector<1x16x16xf32> to vector<1x16xf32>
    %325 = vector.shape_cast %324 : vector<1x16xf32> to vector<1x16x1xf32>
    %326 = tpu.reciprocal %325 {approx = true} : vector<1x16x1xf32> -> vector<1x16x1xf32>
    %327 = vector.broadcast %326 : vector<1x16x1xf32> to vector<1x16x16xf32>
    %328 = arith.mulf %323, %327 : vector<1x16x16xf32>
    %329 = arith.truncf %328 : vector<1x16x16xf32> to vector<1x16x16xbf16>
    "tpu.trace_start"() <{level = 10 : i32, message = "bqk,bkd->bqd"}> : () -> ()
    %cst_138 = arith.constant dense<0.000000e+00> : vector<1x16x8xf32>
    %330 = tpu.matmul %329, %313, %cst_138 {dimension_numbers = #tpu.dot_dimension_numbers<[2], [1], [1], [2], [0, 0, 0, 1, 1, 2], [0], [0]>} : vector<1x16x16xbf16>, vector<1x16x8xbf16>, vector<1x16x8xf32> -> vector<1x16x8xf32>
    "tpu.trace_stop"() : () -> ()
    %331 = vector.shape_cast %330 : vector<1x16x8xf32> to vector<16x8xf32>
    %332 = vector.extract_strided_slice %304 {offsets = [0, 8], sizes = [16, 8], strides = [1, 1]} : vector<16x96xf32> to vector<16x8xf32>
    %333 = vector.shape_cast %332 : vector<16x8xf32> to vector<1x16x8xf32>
    %334 = arith.truncf %333 : vector<1x16x8xf32> to vector<1x16x8xbf16>
    %335 = vector.extract_strided_slice %304 {offsets = [0, 40], sizes = [16, 8], strides = [1, 1]} : vector<16x96xf32> to vector<16x8xf32>
    %336 = vector.shape_cast %335 : vector<16x8xf32> to vector<1x16x8xf32>
    %337 = arith.truncf %336 : vector<1x16x8xf32> to vector<1x16x8xbf16>
    %338 = vector.extract_strided_slice %304 {offsets = [0, 72], sizes = [16, 8], strides = [1, 1]} : vector<16x96xf32> to vector<16x8xf32>
    %339 = vector.shape_cast %338 : vector<16x8xf32> to vector<1x16x8xf32>
    %340 = arith.truncf %339 : vector<1x16x8xf32> to vector<1x16x8xbf16>
    "tpu.trace_start"() <{level = 10 : i32, message = "bqd,bkd->bqk"}> : () -> ()
    %cst_139 = arith.constant dense<0.000000e+00> : vector<1x16x16xf32>
    %341 = tpu.matmul %334, %337, %cst_139 {dimension_numbers = #tpu.dot_dimension_numbers<[2], [2], [1], [1], [0, 0, 0, 1, 1, 1], [0], [0]>} : vector<1x16x8xbf16>, vector<1x16x8xbf16>, vector<1x16x16xf32> -> vector<1x16x16xf32>
    "tpu.trace_stop"() : () -> ()
    %cst_140 = arith.constant 0.353553385 : f32
    %342 = vector.broadcast %cst_140 : f32 to vector<1x16x16xf32>
    %343 = arith.mulf %341, %342 : vector<1x16x16xf32>
    %344 = vector.broadcast %2 : vector<1x1x16xf32> to vector<1x16x16xf32>
    %345 = arith.addf %343, %344 : vector<1x16x16xf32>
    %cst_141 = arith.constant dense<0xFF800000> : vector<1x16xf32>
    %346 = vector.multi_reduction <maximumf>, %345, %cst_141 [2] : vector<1x16x16xf32> to vector<1x16xf32>
    %347 = vector.shape_cast %346 : vector<1x16xf32> to vector<1x16x1xf32>
    %348 = vector.broadcast %347 : vector<1x16x1xf32> to vector<1x16x16xf32>
    %349 = arith.subf %345, %348 : vector<1x16x16xf32>
    %350 = math.exp %349 : vector<1x16x16xf32>
    %cst_142 = arith.constant dense<0.000000e+00> : vector<1x16xf32>
    %351 = vector.multi_reduction <add>, %350, %cst_142 [2] : vector<1x16x16xf32> to vector<1x16xf32>
    %352 = vector.shape_cast %351 : vector<1x16xf32> to vector<1x16x1xf32>
    %353 = tpu.reciprocal %352 {approx = true} : vector<1x16x1xf32> -> vector<1x16x1xf32>
    %354 = vector.broadcast %353 : vector<1x16x1xf32> to vector<1x16x16xf32>
    %355 = arith.mulf %350, %354 : vector<1x16x16xf32>
    %356 = arith.truncf %355 : vector<1x16x16xf32> to vector<1x16x16xbf16>
    "tpu.trace_start"() <{level = 10 : i32, message = "bqk,bkd->bqd"}> : () -> ()
    %cst_143 = arith.constant dense<0.000000e+00> : vector<1x16x8xf32>
    %357 = tpu.matmul %356, %340, %cst_143 {dimension_numbers = #tpu.dot_dimension_numbers<[2], [1], [1], [2], [0, 0, 0, 1, 1, 2], [0], [0]>} : vector<1x16x16xbf16>, vector<1x16x8xbf16>, vector<1x16x8xf32> -> vector<1x16x8xf32>
    "tpu.trace_stop"() : () -> ()
    %358 = vector.shape_cast %357 : vector<1x16x8xf32> to vector<16x8xf32>
    %359 = vector.extract_strided_slice %304 {offsets = [0, 16], sizes = [16, 8], strides = [1, 1]} : vector<16x96xf32> to vector<16x8xf32>
    %360 = vector.shape_cast %359 : vector<16x8xf32> to vector<1x16x8xf32>
    %361 = arith.truncf %360 : vector<1x16x8xf32> to vector<1x16x8xbf16>
    %362 = vector.extract_strided_slice %304 {offsets = [0, 48], sizes = [16, 8], strides = [1, 1]} : vector<16x96xf32> to vector<16x8xf32>
    %363 = vector.shape_cast %362 : vector<16x8xf32> to vector<1x16x8xf32>
    %364 = arith.truncf %363 : vector<1x16x8xf32> to vector<1x16x8xbf16>
    %365 = vector.extract_strided_slice %304 {offsets = [0, 80], sizes = [16, 8], strides = [1, 1]} : vector<16x96xf32> to vector<16x8xf32>
    %366 = vector.shape_cast %365 : vector<16x8xf32> to vector<1x16x8xf32>
    %367 = arith.truncf %366 : vector<1x16x8xf32> to vector<1x16x8xbf16>
    "tpu.trace_start"() <{level = 10 : i32, message = "bqd,bkd->bqk"}> : () -> ()
    %cst_144 = arith.constant dense<0.000000e+00> : vector<1x16x16xf32>
    %368 = tpu.matmul %361, %364, %cst_144 {dimension_numbers = #tpu.dot_dimension_numbers<[2], [2], [1], [1], [0, 0, 0, 1, 1, 1], [0], [0]>} : vector<1x16x8xbf16>, vector<1x16x8xbf16>, vector<1x16x16xf32> -> vector<1x16x16xf32>
    "tpu.trace_stop"() : () -> ()
    %cst_145 = arith.constant 0.353553385 : f32
    %369 = vector.broadcast %cst_145 : f32 to vector<1x16x16xf32>
    %370 = arith.mulf %368, %369 : vector<1x16x16xf32>
    %371 = vector.broadcast %2 : vector<1x1x16xf32> to vector<1x16x16xf32>
    %372 = arith.addf %370, %371 : vector<1x16x16xf32>
    %cst_146 = arith.constant dense<0xFF800000> : vector<1x16xf32>
    %373 = vector.multi_reduction <maximumf>, %372, %cst_146 [2] : vector<1x16x16xf32> to vector<1x16xf32>
    %374 = vector.shape_cast %373 : vector<1x16xf32> to vector<1x16x1xf32>
    %375 = vector.broadcast %374 : vector<1x16x1xf32> to vector<1x16x16xf32>
    %376 = arith.subf %372, %375 : vector<1x16x16xf32>
    %377 = math.exp %376 : vector<1x16x16xf32>
    %cst_147 = arith.constant dense<0.000000e+00> : vector<1x16xf32>
    %378 = vector.multi_reduction <add>, %377, %cst_147 [2] : vector<1x16x16xf32> to vector<1x16xf32>
    %379 = vector.shape_cast %378 : vector<1x16xf32> to vector<1x16x1xf32>
    %380 = tpu.reciprocal %379 {approx = true} : vector<1x16x1xf32> -> vector<1x16x1xf32>
    %381 = vector.broadcast %380 : vector<1x16x1xf32> to vector<1x16x16xf32>
    %382 = arith.mulf %377, %381 : vector<1x16x16xf32>
    %383 = arith.truncf %382 : vector<1x16x16xf32> to vector<1x16x16xbf16>
    "tpu.trace_start"() <{level = 10 : i32, message = "bqk,bkd->bqd"}> : () -> ()
    %cst_148 = arith.constant dense<0.000000e+00> : vector<1x16x8xf32>
    %384 = tpu.matmul %383, %367, %cst_148 {dimension_numbers = #tpu.dot_dimension_numbers<[2], [1], [1], [2], [0, 0, 0, 1, 1, 2], [0], [0]>} : vector<1x16x16xbf16>, vector<1x16x8xbf16>, vector<1x16x8xf32> -> vector<1x16x8xf32>
    "tpu.trace_stop"() : () -> ()
    %385 = vector.shape_cast %384 : vector<1x16x8xf32> to vector<16x8xf32>
    %386 = vector.extract_strided_slice %304 {offsets = [0, 24], sizes = [16, 8], strides = [1, 1]} : vector<16x96xf32> to vector<16x8xf32>
    %387 = vector.shape_cast %386 : vector<16x8xf32> to vector<1x16x8xf32>
    %388 = arith.truncf %387 : vector<1x16x8xf32> to vector<1x16x8xbf16>
    %389 = vector.extract_strided_slice %304 {offsets = [0, 56], sizes = [16, 8], strides = [1, 1]} : vector<16x96xf32> to vector<16x8xf32>
    %390 = vector.shape_cast %389 : vector<16x8xf32> to vector<1x16x8xf32>
    %391 = arith.truncf %390 : vector<1x16x8xf32> to vector<1x16x8xbf16>
    %392 = vector.extract_strided_slice %304 {offsets = [0, 88], sizes = [16, 8], strides = [1, 1]} : vector<16x96xf32> to vector<16x8xf32>
    %393 = vector.shape_cast %392 : vector<16x8xf32> to vector<1x16x8xf32>
    %394 = arith.truncf %393 : vector<1x16x8xf32> to vector<1x16x8xbf16>
    "tpu.trace_start"() <{level = 10 : i32, message = "bqd,bkd->bqk"}> : () -> ()
    %cst_149 = arith.constant dense<0.000000e+00> : vector<1x16x16xf32>
    %395 = tpu.matmul %388, %391, %cst_149 {dimension_numbers = #tpu.dot_dimension_numbers<[2], [2], [1], [1], [0, 0, 0, 1, 1, 1], [0], [0]>} : vector<1x16x8xbf16>, vector<1x16x8xbf16>, vector<1x16x16xf32> -> vector<1x16x16xf32>
    "tpu.trace_stop"() : () -> ()
    %cst_150 = arith.constant 0.353553385 : f32
    %396 = vector.broadcast %cst_150 : f32 to vector<1x16x16xf32>
    %397 = arith.mulf %395, %396 : vector<1x16x16xf32>
    %398 = vector.broadcast %2 : vector<1x1x16xf32> to vector<1x16x16xf32>
    %399 = arith.addf %397, %398 : vector<1x16x16xf32>
    %cst_151 = arith.constant dense<0xFF800000> : vector<1x16xf32>
    %400 = vector.multi_reduction <maximumf>, %399, %cst_151 [2] : vector<1x16x16xf32> to vector<1x16xf32>
    %401 = vector.shape_cast %400 : vector<1x16xf32> to vector<1x16x1xf32>
    %402 = vector.broadcast %401 : vector<1x16x1xf32> to vector<1x16x16xf32>
    %403 = arith.subf %399, %402 : vector<1x16x16xf32>
    %404 = math.exp %403 : vector<1x16x16xf32>
    %cst_152 = arith.constant dense<0.000000e+00> : vector<1x16xf32>
    %405 = vector.multi_reduction <add>, %404, %cst_152 [2] : vector<1x16x16xf32> to vector<1x16xf32>
    %406 = vector.shape_cast %405 : vector<1x16xf32> to vector<1x16x1xf32>
    %407 = tpu.reciprocal %406 {approx = true} : vector<1x16x1xf32> -> vector<1x16x1xf32>
    %408 = vector.broadcast %407 : vector<1x16x1xf32> to vector<1x16x16xf32>
    %409 = arith.mulf %404, %408 : vector<1x16x16xf32>
    %410 = arith.truncf %409 : vector<1x16x16xf32> to vector<1x16x16xbf16>
    "tpu.trace_start"() <{level = 10 : i32, message = "bqk,bkd->bqd"}> : () -> ()
    %cst_153 = arith.constant dense<0.000000e+00> : vector<1x16x8xf32>
    %411 = tpu.matmul %410, %394, %cst_153 {dimension_numbers = #tpu.dot_dimension_numbers<[2], [1], [1], [2], [0, 0, 0, 1, 1, 2], [0], [0]>} : vector<1x16x16xbf16>, vector<1x16x8xbf16>, vector<1x16x8xf32> -> vector<1x16x8xf32>
    "tpu.trace_stop"() : () -> ()
    %412 = vector.shape_cast %411 : vector<1x16x8xf32> to vector<16x8xf32>
    %413 = tpu.concatenate %331, %358, %385, %412 in 1 : vector<16x8xf32>, vector<16x8xf32>, vector<16x8xf32>, vector<16x8xf32> -> vector<16x32xf32>
    %414 = arith.truncf %413 : vector<16x32xf32> to vector<16x32xbf16>
    %c1_154 = arith.constant 1 : index
    %c0_155 = arith.constant 0 : index
    %c0_156 = arith.constant 0 : index
    %415 = vector.load %arg8[%c1_154, %c0_155, %c0_156] : memref<4x32x32xbf16, #tpu.memory_space<vmem>>, vector<1x32x32xbf16>
    %416 = vector.shape_cast %415 : vector<1x32x32xbf16> to vector<32x32xbf16>
    %cst_157 = arith.constant dense<0.000000e+00> : vector<16x32xf32>
    %417 = tpu.matmul %414, %416, %cst_157 {dimension_numbers = #tpu.dot_dimension_numbers<[1], [0], [0], [1], [0, 0, 1, 1], [], []>} : vector<16x32xbf16>, vector<32x32xbf16>, vector<16x32xf32> -> vector<16x32xf32>
    %c1_158 = arith.constant 1 : index
    %c0_159 = arith.constant 0 : index
    %c0_160 = arith.constant 0 : index
    %418 = vector.load %arg9[%c1_158, %c0_159, %c0_160] : memref<4x1x32xf32, #tpu.memory_space<vmem>>, vector<1x1x32xf32>
    %419 = vector.shape_cast %418 : vector<1x1x32xf32> to vector<1x32xf32>
    %420 = vector.broadcast %419 : vector<1x32xf32> to vector<16x32xf32>
    %421 = arith.addf %417, %420 : vector<16x32xf32>
    %422 = arith.addf %296, %421 : vector<16x32xf32>
    %c1_161 = arith.constant 1 : index
    %c0_162 = arith.constant 0 : index
    %c0_163 = arith.constant 0 : index
    %423 = vector.load %arg10[%c1_161, %c0_162, %c0_163] : memref<4x1x32xf32, #tpu.memory_space<vmem>>, vector<1x1x32xf32>
    %424 = vector.shape_cast %423 : vector<1x1x32xf32> to vector<1x32xf32>
    %c1_164 = arith.constant 1 : index
    %c0_165 = arith.constant 0 : index
    %c0_166 = arith.constant 0 : index
    %425 = vector.load %arg11[%c1_164, %c0_165, %c0_166] : memref<4x1x32xf32, #tpu.memory_space<vmem>>, vector<1x1x32xf32>
    %426 = vector.shape_cast %425 : vector<1x1x32xf32> to vector<1x32xf32>
    %cst_167 = arith.constant dense<0.000000e+00> : vector<16xf32>
    %427 = vector.multi_reduction <add>, %422, %cst_167 [1] : vector<16x32xf32> to vector<16xf32>
    %428 = vector.shape_cast %427 : vector<16xf32> to vector<16x1xf32>
    %cst_168 = arith.constant 3.200000e+01 : f32
    %429 = vector.broadcast %cst_168 : f32 to vector<16x1xf32>
    %430 = arith.divf %428, %429 : vector<16x1xf32>
    %431 = vector.broadcast %430 : vector<16x1xf32> to vector<16x32xf32>
    %432 = arith.subf %422, %431 : vector<16x32xf32>
    %433 = arith.mulf %432, %432 : vector<16x32xf32>
    %cst_169 = arith.constant dense<0.000000e+00> : vector<16xf32>
    %434 = vector.multi_reduction <add>, %433, %cst_169 [1] : vector<16x32xf32> to vector<16xf32>
    %435 = vector.shape_cast %434 : vector<16xf32> to vector<16x1xf32>
    %cst_170 = arith.constant 3.200000e+01 : f32
    %436 = vector.broadcast %cst_170 : f32 to vector<16x1xf32>
    %437 = arith.divf %435, %436 : vector<16x1xf32>
    %438 = vector.broadcast %430 : vector<16x1xf32> to vector<16x32xf32>
    %439 = arith.subf %422, %438 : vector<16x32xf32>
    %cst_171 = arith.constant 9.99999974E-6 : f32
    %440 = vector.broadcast %cst_171 : f32 to vector<16x1xf32>
    %441 = arith.addf %437, %440 : vector<16x1xf32>
    %442 = math.rsqrt %441 : vector<16x1xf32>
    %443 = vector.broadcast %442 : vector<16x1xf32> to vector<16x32xf32>
    %444 = arith.mulf %439, %443 : vector<16x32xf32>
    %445 = vector.broadcast %424 : vector<1x32xf32> to vector<16x32xf32>
    %446 = arith.mulf %444, %445 : vector<16x32xf32>
    %447 = vector.broadcast %426 : vector<1x32xf32> to vector<16x32xf32>
    %448 = arith.addf %446, %447 : vector<16x32xf32>
    %449 = arith.truncf %448 : vector<16x32xf32> to vector<16x32xbf16>
    %cst_172 = arith.constant 0.000000e+00 : f32
    %450 = vector.broadcast %cst_172 : f32 to vector<16x32xf32>
    %c1_173 = arith.constant 1 : index
    %c0_174 = arith.constant 0 : index
    %c0_175 = arith.constant 0 : index
    %451 = vector.load %arg12[%c1_173, %c0_174, %c0_175] : memref<4x32x2048xbf16, #tpu.memory_space<vmem>>, vector<1x32x512xbf16>
    %452 = vector.shape_cast %451 : vector<1x32x512xbf16> to vector<32x512xbf16>
    %cst_176 = arith.constant dense<0.000000e+00> : vector<16x512xf32>
    %453 = tpu.matmul %449, %452, %cst_176 {dimension_numbers = #tpu.dot_dimension_numbers<[1], [0], [0], [1], [0, 0, 1, 1], [], []>} : vector<16x32xbf16>, vector<32x512xbf16>, vector<16x512xf32> -> vector<16x512xf32>
    %c1_177 = arith.constant 1 : index
    %c0_178 = arith.constant 0 : index
    %c0_179 = arith.constant 0 : index
    %454 = vector.load %arg13[%c1_177, %c0_178, %c0_179] : memref<4x1x2048xf32, #tpu.memory_space<vmem>>, vector<1x1x512xf32>
    %455 = vector.shape_cast %454 : vector<1x1x512xf32> to vector<1x512xf32>
    %456 = vector.broadcast %455 : vector<1x512xf32> to vector<16x512xf32>
    %457 = arith.addf %453, %456 : vector<16x512xf32>
    %cst_180 = arith.constant 5.000000e-01 : f32
    %458 = vector.broadcast %cst_180 : f32 to vector<16x512xf32>
    %459 = arith.mulf %458, %457 : vector<16x512xf32>
    %cst_181 = arith.constant 0.707106769 : f32
    %460 = vector.broadcast %cst_181 : f32 to vector<16x512xf32>
    %461 = arith.mulf %457, %460 : vector<16x512xf32>
    %462 = math.erf %461 : vector<16x512xf32>
    %cst_182 = arith.constant 1.000000e+00 : f32
    %463 = vector.broadcast %cst_182 : f32 to vector<16x512xf32>
    %464 = arith.addf %463, %462 : vector<16x512xf32>
    %465 = arith.mulf %459, %464 : vector<16x512xf32>
    %466 = arith.truncf %465 : vector<16x512xf32> to vector<16x512xbf16>
    %c1_183 = arith.constant 1 : index
    %c0_184 = arith.constant 0 : index
    %c0_185 = arith.constant 0 : index
    %467 = vector.load %arg14[%c1_183, %c0_184, %c0_185] : memref<4x2048x32xbf16, #tpu.memory_space<vmem>>, vector<1x512x32xbf16>
    %468 = vector.shape_cast %467 : vector<1x512x32xbf16> to vector<512x32xbf16>
    %cst_186 = arith.constant dense<0.000000e+00> : vector<16x32xf32>
    %469 = tpu.matmul %466, %468, %cst_186 {dimension_numbers = #tpu.dot_dimension_numbers<[1], [0], [0], [1], [0, 0, 1, 1], [], []>} : vector<16x512xbf16>, vector<512x32xbf16>, vector<16x32xf32> -> vector<16x32xf32>
    %470 = arith.addf %450, %469 : vector<16x32xf32>
    %c1_187 = arith.constant 1 : index
    %c0_188 = arith.constant 0 : index
    %c512_189 = arith.constant 512 : index
    %471 = vector.load %arg12[%c1_187, %c0_188, %c512_189] : memref<4x32x2048xbf16, #tpu.memory_space<vmem>>, vector<1x32x512xbf16>
    %472 = vector.shape_cast %471 : vector<1x32x512xbf16> to vector<32x512xbf16>
    %cst_190 = arith.constant dense<0.000000e+00> : vector<16x512xf32>
    %473 = tpu.matmul %449, %472, %cst_190 {dimension_numbers = #tpu.dot_dimension_numbers<[1], [0], [0], [1], [0, 0, 1, 1], [], []>} : vector<16x32xbf16>, vector<32x512xbf16>, vector<16x512xf32> -> vector<16x512xf32>
    %c1_191 = arith.constant 1 : index
    %c0_192 = arith.constant 0 : index
    %c512_193 = arith.constant 512 : index
    %474 = vector.load %arg13[%c1_191, %c0_192, %c512_193] : memref<4x1x2048xf32, #tpu.memory_space<vmem>>, vector<1x1x512xf32>
    %475 = vector.shape_cast %474 : vector<1x1x512xf32> to vector<1x512xf32>
    %476 = vector.broadcast %475 : vector<1x512xf32> to vector<16x512xf32>
    %477 = arith.addf %473, %476 : vector<16x512xf32>
    %cst_194 = arith.constant 5.000000e-01 : f32
    %478 = vector.broadcast %cst_194 : f32 to vector<16x512xf32>
    %479 = arith.mulf %478, %477 : vector<16x512xf32>
    %cst_195 = arith.constant 0.707106769 : f32
    %480 = vector.broadcast %cst_195 : f32 to vector<16x512xf32>
    %481 = arith.mulf %477, %480 : vector<16x512xf32>
    %482 = math.erf %481 : vector<16x512xf32>
    %cst_196 = arith.constant 1.000000e+00 : f32
    %483 = vector.broadcast %cst_196 : f32 to vector<16x512xf32>
    %484 = arith.addf %483, %482 : vector<16x512xf32>
    %485 = arith.mulf %479, %484 : vector<16x512xf32>
    %486 = arith.truncf %485 : vector<16x512xf32> to vector<16x512xbf16>
    %c1_197 = arith.constant 1 : index
    %c512_198 = arith.constant 512 : index
    %c0_199 = arith.constant 0 : index
    %487 = vector.load %arg14[%c1_197, %c512_198, %c0_199] : memref<4x2048x32xbf16, #tpu.memory_space<vmem>>, vector<1x512x32xbf16>
    %488 = vector.shape_cast %487 : vector<1x512x32xbf16> to vector<512x32xbf16>
    %cst_200 = arith.constant dense<0.000000e+00> : vector<16x32xf32>
    %489 = tpu.matmul %486, %488, %cst_200 {dimension_numbers = #tpu.dot_dimension_numbers<[1], [0], [0], [1], [0, 0, 1, 1], [], []>} : vector<16x512xbf16>, vector<512x32xbf16>, vector<16x32xf32> -> vector<16x32xf32>
    %490 = arith.addf %470, %489 : vector<16x32xf32>
    %c1_201 = arith.constant 1 : index
    %c0_202 = arith.constant 0 : index
    %c1024_203 = arith.constant 1024 : index
    %491 = vector.load %arg12[%c1_201, %c0_202, %c1024_203] : memref<4x32x2048xbf16, #tpu.memory_space<vmem>>, vector<1x32x512xbf16>
    %492 = vector.shape_cast %491 : vector<1x32x512xbf16> to vector<32x512xbf16>
    %cst_204 = arith.constant dense<0.000000e+00> : vector<16x512xf32>
    %493 = tpu.matmul %449, %492, %cst_204 {dimension_numbers = #tpu.dot_dimension_numbers<[1], [0], [0], [1], [0, 0, 1, 1], [], []>} : vector<16x32xbf16>, vector<32x512xbf16>, vector<16x512xf32> -> vector<16x512xf32>
    %c1_205 = arith.constant 1 : index
    %c0_206 = arith.constant 0 : index
    %c1024_207 = arith.constant 1024 : index
    %494 = vector.load %arg13[%c1_205, %c0_206, %c1024_207] : memref<4x1x2048xf32, #tpu.memory_space<vmem>>, vector<1x1x512xf32>
    %495 = vector.shape_cast %494 : vector<1x1x512xf32> to vector<1x512xf32>
    %496 = vector.broadcast %495 : vector<1x512xf32> to vector<16x512xf32>
    %497 = arith.addf %493, %496 : vector<16x512xf32>
    %cst_208 = arith.constant 5.000000e-01 : f32
    %498 = vector.broadcast %cst_208 : f32 to vector<16x512xf32>
    %499 = arith.mulf %498, %497 : vector<16x512xf32>
    %cst_209 = arith.constant 0.707106769 : f32
    %500 = vector.broadcast %cst_209 : f32 to vector<16x512xf32>
    %501 = arith.mulf %497, %500 : vector<16x512xf32>
    %502 = math.erf %501 : vector<16x512xf32>
    %cst_210 = arith.constant 1.000000e+00 : f32
    %503 = vector.broadcast %cst_210 : f32 to vector<16x512xf32>
    %504 = arith.addf %503, %502 : vector<16x512xf32>
    %505 = arith.mulf %499, %504 : vector<16x512xf32>
    %506 = arith.truncf %505 : vector<16x512xf32> to vector<16x512xbf16>
    %c1_211 = arith.constant 1 : index
    %c1024_212 = arith.constant 1024 : index
    %c0_213 = arith.constant 0 : index
    %507 = vector.load %arg14[%c1_211, %c1024_212, %c0_213] : memref<4x2048x32xbf16, #tpu.memory_space<vmem>>, vector<1x512x32xbf16>
    %508 = vector.shape_cast %507 : vector<1x512x32xbf16> to vector<512x32xbf16>
    %cst_214 = arith.constant dense<0.000000e+00> : vector<16x32xf32>
    %509 = tpu.matmul %506, %508, %cst_214 {dimension_numbers = #tpu.dot_dimension_numbers<[1], [0], [0], [1], [0, 0, 1, 1], [], []>} : vector<16x512xbf16>, vector<512x32xbf16>, vector<16x32xf32> -> vector<16x32xf32>
    %510 = arith.addf %490, %509 : vector<16x32xf32>
    %c1_215 = arith.constant 1 : index
    %c0_216 = arith.constant 0 : index
    %c1536_217 = arith.constant 1536 : index
    %511 = vector.load %arg12[%c1_215, %c0_216, %c1536_217] : memref<4x32x2048xbf16, #tpu.memory_space<vmem>>, vector<1x32x512xbf16>
    %512 = vector.shape_cast %511 : vector<1x32x512xbf16> to vector<32x512xbf16>
    %cst_218 = arith.constant dense<0.000000e+00> : vector<16x512xf32>
    %513 = tpu.matmul %449, %512, %cst_218 {dimension_numbers = #tpu.dot_dimension_numbers<[1], [0], [0], [1], [0, 0, 1, 1], [], []>} : vector<16x32xbf16>, vector<32x512xbf16>, vector<16x512xf32> -> vector<16x512xf32>
    %c1_219 = arith.constant 1 : index
    %c0_220 = arith.constant 0 : index
    %c1536_221 = arith.constant 1536 : index
    %514 = vector.load %arg13[%c1_219, %c0_220, %c1536_221] : memref<4x1x2048xf32, #tpu.memory_space<vmem>>, vector<1x1x512xf32>
    %515 = vector.shape_cast %514 : vector<1x1x512xf32> to vector<1x512xf32>
    %516 = vector.broadcast %515 : vector<1x512xf32> to vector<16x512xf32>
    %517 = arith.addf %513, %516 : vector<16x512xf32>
    %cst_222 = arith.constant 5.000000e-01 : f32
    %518 = vector.broadcast %cst_222 : f32 to vector<16x512xf32>
    %519 = arith.mulf %518, %517 : vector<16x512xf32>
    %cst_223 = arith.constant 0.707106769 : f32
    %520 = vector.broadcast %cst_223 : f32 to vector<16x512xf32>
    %521 = arith.mulf %517, %520 : vector<16x512xf32>
    %522 = math.erf %521 : vector<16x512xf32>
    %cst_224 = arith.constant 1.000000e+00 : f32
    %523 = vector.broadcast %cst_224 : f32 to vector<16x512xf32>
    %524 = arith.addf %523, %522 : vector<16x512xf32>
    %525 = arith.mulf %519, %524 : vector<16x512xf32>
    %526 = arith.truncf %525 : vector<16x512xf32> to vector<16x512xbf16>
    %c1_225 = arith.constant 1 : index
    %c1536_226 = arith.constant 1536 : index
    %c0_227 = arith.constant 0 : index
    %527 = vector.load %arg14[%c1_225, %c1536_226, %c0_227] : memref<4x2048x32xbf16, #tpu.memory_space<vmem>>, vector<1x512x32xbf16>
    %528 = vector.shape_cast %527 : vector<1x512x32xbf16> to vector<512x32xbf16>
    %cst_228 = arith.constant dense<0.000000e+00> : vector<16x32xf32>
    %529 = tpu.matmul %526, %528, %cst_228 {dimension_numbers = #tpu.dot_dimension_numbers<[1], [0], [0], [1], [0, 0, 1, 1], [], []>} : vector<16x512xbf16>, vector<512x32xbf16>, vector<16x32xf32> -> vector<16x32xf32>
    %530 = arith.addf %510, %529 : vector<16x32xf32>
    %c1_229 = arith.constant 1 : index
    %c0_230 = arith.constant 0 : index
    %c0_231 = arith.constant 0 : index
    %531 = vector.load %arg15[%c1_229, %c0_230, %c0_231] : memref<4x1x32xf32, #tpu.memory_space<vmem>>, vector<1x1x32xf32>
    %532 = vector.shape_cast %531 : vector<1x1x32xf32> to vector<1x32xf32>
    %533 = vector.broadcast %532 : vector<1x32xf32> to vector<16x32xf32>
    %534 = arith.addf %530, %533 : vector<16x32xf32>
    %535 = arith.addf %448, %534 : vector<16x32xf32>
    %c1_232 = arith.constant 1 : index
    %c0_233 = arith.constant 0 : index
    %c0_234 = arith.constant 0 : index
    %536 = vector.load %arg16[%c1_232, %c0_233, %c0_234] : memref<4x1x32xf32, #tpu.memory_space<vmem>>, vector<1x1x32xf32>
    %537 = vector.shape_cast %536 : vector<1x1x32xf32> to vector<1x32xf32>
    %c1_235 = arith.constant 1 : index
    %c0_236 = arith.constant 0 : index
    %c0_237 = arith.constant 0 : index
    %538 = vector.load %arg17[%c1_235, %c0_236, %c0_237] : memref<4x1x32xf32, #tpu.memory_space<vmem>>, vector<1x1x32xf32>
    %539 = vector.shape_cast %538 : vector<1x1x32xf32> to vector<1x32xf32>
    %cst_238 = arith.constant dense<0.000000e+00> : vector<16xf32>
    %540 = vector.multi_reduction <add>, %535, %cst_238 [1] : vector<16x32xf32> to vector<16xf32>
    %541 = vector.shape_cast %540 : vector<16xf32> to vector<16x1xf32>
    %cst_239 = arith.constant 3.200000e+01 : f32
    %542 = vector.broadcast %cst_239 : f32 to vector<16x1xf32>
    %543 = arith.divf %541, %542 : vector<16x1xf32>
    %544 = vector.broadcast %543 : vector<16x1xf32> to vector<16x32xf32>
    %545 = arith.subf %535, %544 : vector<16x32xf32>
    %546 = arith.mulf %545, %545 : vector<16x32xf32>
    %cst_240 = arith.constant dense<0.000000e+00> : vector<16xf32>
    %547 = vector.multi_reduction <add>, %546, %cst_240 [1] : vector<16x32xf32> to vector<16xf32>
    %548 = vector.shape_cast %547 : vector<16xf32> to vector<16x1xf32>
    %cst_241 = arith.constant 3.200000e+01 : f32
    %549 = vector.broadcast %cst_241 : f32 to vector<16x1xf32>
    %550 = arith.divf %548, %549 : vector<16x1xf32>
    %551 = vector.broadcast %543 : vector<16x1xf32> to vector<16x32xf32>
    %552 = arith.subf %535, %551 : vector<16x32xf32>
    %cst_242 = arith.constant 9.99999974E-6 : f32
    %553 = vector.broadcast %cst_242 : f32 to vector<16x1xf32>
    %554 = arith.addf %550, %553 : vector<16x1xf32>
    %555 = math.rsqrt %554 : vector<16x1xf32>
    %556 = vector.broadcast %555 : vector<16x1xf32> to vector<16x32xf32>
    %557 = arith.mulf %552, %556 : vector<16x32xf32>
    %558 = vector.broadcast %537 : vector<1x32xf32> to vector<16x32xf32>
    %559 = arith.mulf %557, %558 : vector<16x32xf32>
    %560 = vector.broadcast %539 : vector<1x32xf32> to vector<16x32xf32>
    %561 = arith.addf %559, %560 : vector<16x32xf32>
    %562 = arith.truncf %561 : vector<16x32xf32> to vector<16x32xbf16>
    %c2 = arith.constant 2 : index
    %c0_243 = arith.constant 0 : index
    %c0_244 = arith.constant 0 : index
    %563 = vector.load %arg6[%c2, %c0_243, %c0_244] : memref<4x32x96xbf16, #tpu.memory_space<vmem>>, vector<1x32x96xbf16>
    %564 = vector.shape_cast %563 : vector<1x32x96xbf16> to vector<32x96xbf16>
    %cst_245 = arith.constant dense<0.000000e+00> : vector<16x96xf32>
    %565 = tpu.matmul %562, %564, %cst_245 {dimension_numbers = #tpu.dot_dimension_numbers<[1], [0], [0], [1], [0, 0, 1, 1], [], []>} : vector<16x32xbf16>, vector<32x96xbf16>, vector<16x96xf32> -> vector<16x96xf32>
    %c2_246 = arith.constant 2 : index
    %c0_247 = arith.constant 0 : index
    %c0_248 = arith.constant 0 : index
    %566 = vector.load %arg7[%c2_246, %c0_247, %c0_248] : memref<4x1x96xf32, #tpu.memory_space<vmem>>, vector<1x1x96xf32>
    %567 = vector.shape_cast %566 : vector<1x1x96xf32> to vector<1x96xf32>
    %568 = vector.broadcast %567 : vector<1x96xf32> to vector<16x96xf32>
    %569 = arith.addf %565, %568 : vector<16x96xf32>
    %570 = vector.extract_strided_slice %569 {offsets = [0, 0], sizes = [16, 8], strides = [1, 1]} : vector<16x96xf32> to vector<16x8xf32>
    %571 = vector.shape_cast %570 : vector<16x8xf32> to vector<1x16x8xf32>
    %572 = arith.truncf %571 : vector<1x16x8xf32> to vector<1x16x8xbf16>
    %573 = vector.extract_strided_slice %569 {offsets = [0, 32], sizes = [16, 8], strides = [1, 1]} : vector<16x96xf32> to vector<16x8xf32>
    %574 = vector.shape_cast %573 : vector<16x8xf32> to vector<1x16x8xf32>
    %575 = arith.truncf %574 : vector<1x16x8xf32> to vector<1x16x8xbf16>
    %576 = vector.extract_strided_slice %569 {offsets = [0, 64], sizes = [16, 8], strides = [1, 1]} : vector<16x96xf32> to vector<16x8xf32>
    %577 = vector.shape_cast %576 : vector<16x8xf32> to vector<1x16x8xf32>
    %578 = arith.truncf %577 : vector<1x16x8xf32> to vector<1x16x8xbf16>
    "tpu.trace_start"() <{level = 10 : i32, message = "bqd,bkd->bqk"}> : () -> ()
    %cst_249 = arith.constant dense<0.000000e+00> : vector<1x16x16xf32>
    %579 = tpu.matmul %572, %575, %cst_249 {dimension_numbers = #tpu.dot_dimension_numbers<[2], [2], [1], [1], [0, 0, 0, 1, 1, 1], [0], [0]>} : vector<1x16x8xbf16>, vector<1x16x8xbf16>, vector<1x16x16xf32> -> vector<1x16x16xf32>
    "tpu.trace_stop"() : () -> ()
    %cst_250 = arith.constant 0.353553385 : f32
    %580 = vector.broadcast %cst_250 : f32 to vector<1x16x16xf32>
    %581 = arith.mulf %579, %580 : vector<1x16x16xf32>
    %582 = vector.broadcast %2 : vector<1x1x16xf32> to vector<1x16x16xf32>
    %583 = arith.addf %581, %582 : vector<1x16x16xf32>
    %cst_251 = arith.constant dense<0xFF800000> : vector<1x16xf32>
    %584 = vector.multi_reduction <maximumf>, %583, %cst_251 [2] : vector<1x16x16xf32> to vector<1x16xf32>
    %585 = vector.shape_cast %584 : vector<1x16xf32> to vector<1x16x1xf32>
    %586 = vector.broadcast %585 : vector<1x16x1xf32> to vector<1x16x16xf32>
    %587 = arith.subf %583, %586 : vector<1x16x16xf32>
    %588 = math.exp %587 : vector<1x16x16xf32>
    %cst_252 = arith.constant dense<0.000000e+00> : vector<1x16xf32>
    %589 = vector.multi_reduction <add>, %588, %cst_252 [2] : vector<1x16x16xf32> to vector<1x16xf32>
    %590 = vector.shape_cast %589 : vector<1x16xf32> to vector<1x16x1xf32>
    %591 = tpu.reciprocal %590 {approx = true} : vector<1x16x1xf32> -> vector<1x16x1xf32>
    %592 = vector.broadcast %591 : vector<1x16x1xf32> to vector<1x16x16xf32>
    %593 = arith.mulf %588, %592 : vector<1x16x16xf32>
    %594 = arith.truncf %593 : vector<1x16x16xf32> to vector<1x16x16xbf16>
    "tpu.trace_start"() <{level = 10 : i32, message = "bqk,bkd->bqd"}> : () -> ()
    %cst_253 = arith.constant dense<0.000000e+00> : vector<1x16x8xf32>
    %595 = tpu.matmul %594, %578, %cst_253 {dimension_numbers = #tpu.dot_dimension_numbers<[2], [1], [1], [2], [0, 0, 0, 1, 1, 2], [0], [0]>} : vector<1x16x16xbf16>, vector<1x16x8xbf16>, vector<1x16x8xf32> -> vector<1x16x8xf32>
    "tpu.trace_stop"() : () -> ()
    %596 = vector.shape_cast %595 : vector<1x16x8xf32> to vector<16x8xf32>
    %597 = vector.extract_strided_slice %569 {offsets = [0, 8], sizes = [16, 8], strides = [1, 1]} : vector<16x96xf32> to vector<16x8xf32>
    %598 = vector.shape_cast %597 : vector<16x8xf32> to vector<1x16x8xf32>
    %599 = arith.truncf %598 : vector<1x16x8xf32> to vector<1x16x8xbf16>
    %600 = vector.extract_strided_slice %569 {offsets = [0, 40], sizes = [16, 8], strides = [1, 1]} : vector<16x96xf32> to vector<16x8xf32>
    %601 = vector.shape_cast %600 : vector<16x8xf32> to vector<1x16x8xf32>
    %602 = arith.truncf %601 : vector<1x16x8xf32> to vector<1x16x8xbf16>
    %603 = vector.extract_strided_slice %569 {offsets = [0, 72], sizes = [16, 8], strides = [1, 1]} : vector<16x96xf32> to vector<16x8xf32>
    %604 = vector.shape_cast %603 : vector<16x8xf32> to vector<1x16x8xf32>
    %605 = arith.truncf %604 : vector<1x16x8xf32> to vector<1x16x8xbf16>
    "tpu.trace_start"() <{level = 10 : i32, message = "bqd,bkd->bqk"}> : () -> ()
    %cst_254 = arith.constant dense<0.000000e+00> : vector<1x16x16xf32>
    %606 = tpu.matmul %599, %602, %cst_254 {dimension_numbers = #tpu.dot_dimension_numbers<[2], [2], [1], [1], [0, 0, 0, 1, 1, 1], [0], [0]>} : vector<1x16x8xbf16>, vector<1x16x8xbf16>, vector<1x16x16xf32> -> vector<1x16x16xf32>
    "tpu.trace_stop"() : () -> ()
    %cst_255 = arith.constant 0.353553385 : f32
    %607 = vector.broadcast %cst_255 : f32 to vector<1x16x16xf32>
    %608 = arith.mulf %606, %607 : vector<1x16x16xf32>
    %609 = vector.broadcast %2 : vector<1x1x16xf32> to vector<1x16x16xf32>
    %610 = arith.addf %608, %609 : vector<1x16x16xf32>
    %cst_256 = arith.constant dense<0xFF800000> : vector<1x16xf32>
    %611 = vector.multi_reduction <maximumf>, %610, %cst_256 [2] : vector<1x16x16xf32> to vector<1x16xf32>
    %612 = vector.shape_cast %611 : vector<1x16xf32> to vector<1x16x1xf32>
    %613 = vector.broadcast %612 : vector<1x16x1xf32> to vector<1x16x16xf32>
    %614 = arith.subf %610, %613 : vector<1x16x16xf32>
    %615 = math.exp %614 : vector<1x16x16xf32>
    %cst_257 = arith.constant dense<0.000000e+00> : vector<1x16xf32>
    %616 = vector.multi_reduction <add>, %615, %cst_257 [2] : vector<1x16x16xf32> to vector<1x16xf32>
    %617 = vector.shape_cast %616 : vector<1x16xf32> to vector<1x16x1xf32>
    %618 = tpu.reciprocal %617 {approx = true} : vector<1x16x1xf32> -> vector<1x16x1xf32>
    %619 = vector.broadcast %618 : vector<1x16x1xf32> to vector<1x16x16xf32>
    %620 = arith.mulf %615, %619 : vector<1x16x16xf32>
    %621 = arith.truncf %620 : vector<1x16x16xf32> to vector<1x16x16xbf16>
    "tpu.trace_start"() <{level = 10 : i32, message = "bqk,bkd->bqd"}> : () -> ()
    %cst_258 = arith.constant dense<0.000000e+00> : vector<1x16x8xf32>
    %622 = tpu.matmul %621, %605, %cst_258 {dimension_numbers = #tpu.dot_dimension_numbers<[2], [1], [1], [2], [0, 0, 0, 1, 1, 2], [0], [0]>} : vector<1x16x16xbf16>, vector<1x16x8xbf16>, vector<1x16x8xf32> -> vector<1x16x8xf32>
    "tpu.trace_stop"() : () -> ()
    %623 = vector.shape_cast %622 : vector<1x16x8xf32> to vector<16x8xf32>
    %624 = vector.extract_strided_slice %569 {offsets = [0, 16], sizes = [16, 8], strides = [1, 1]} : vector<16x96xf32> to vector<16x8xf32>
    %625 = vector.shape_cast %624 : vector<16x8xf32> to vector<1x16x8xf32>
    %626 = arith.truncf %625 : vector<1x16x8xf32> to vector<1x16x8xbf16>
    %627 = vector.extract_strided_slice %569 {offsets = [0, 48], sizes = [16, 8], strides = [1, 1]} : vector<16x96xf32> to vector<16x8xf32>
    %628 = vector.shape_cast %627 : vector<16x8xf32> to vector<1x16x8xf32>
    %629 = arith.truncf %628 : vector<1x16x8xf32> to vector<1x16x8xbf16>
    %630 = vector.extract_strided_slice %569 {offsets = [0, 80], sizes = [16, 8], strides = [1, 1]} : vector<16x96xf32> to vector<16x8xf32>
    %631 = vector.shape_cast %630 : vector<16x8xf32> to vector<1x16x8xf32>
    %632 = arith.truncf %631 : vector<1x16x8xf32> to vector<1x16x8xbf16>
    "tpu.trace_start"() <{level = 10 : i32, message = "bqd,bkd->bqk"}> : () -> ()
    %cst_259 = arith.constant dense<0.000000e+00> : vector<1x16x16xf32>
    %633 = tpu.matmul %626, %629, %cst_259 {dimension_numbers = #tpu.dot_dimension_numbers<[2], [2], [1], [1], [0, 0, 0, 1, 1, 1], [0], [0]>} : vector<1x16x8xbf16>, vector<1x16x8xbf16>, vector<1x16x16xf32> -> vector<1x16x16xf32>
    "tpu.trace_stop"() : () -> ()
    %cst_260 = arith.constant 0.353553385 : f32
    %634 = vector.broadcast %cst_260 : f32 to vector<1x16x16xf32>
    %635 = arith.mulf %633, %634 : vector<1x16x16xf32>
    %636 = vector.broadcast %2 : vector<1x1x16xf32> to vector<1x16x16xf32>
    %637 = arith.addf %635, %636 : vector<1x16x16xf32>
    %cst_261 = arith.constant dense<0xFF800000> : vector<1x16xf32>
    %638 = vector.multi_reduction <maximumf>, %637, %cst_261 [2] : vector<1x16x16xf32> to vector<1x16xf32>
    %639 = vector.shape_cast %638 : vector<1x16xf32> to vector<1x16x1xf32>
    %640 = vector.broadcast %639 : vector<1x16x1xf32> to vector<1x16x16xf32>
    %641 = arith.subf %637, %640 : vector<1x16x16xf32>
    %642 = math.exp %641 : vector<1x16x16xf32>
    %cst_262 = arith.constant dense<0.000000e+00> : vector<1x16xf32>
    %643 = vector.multi_reduction <add>, %642, %cst_262 [2] : vector<1x16x16xf32> to vector<1x16xf32>
    %644 = vector.shape_cast %643 : vector<1x16xf32> to vector<1x16x1xf32>
    %645 = tpu.reciprocal %644 {approx = true} : vector<1x16x1xf32> -> vector<1x16x1xf32>
    %646 = vector.broadcast %645 : vector<1x16x1xf32> to vector<1x16x16xf32>
    %647 = arith.mulf %642, %646 : vector<1x16x16xf32>
    %648 = arith.truncf %647 : vector<1x16x16xf32> to vector<1x16x16xbf16>
    "tpu.trace_start"() <{level = 10 : i32, message = "bqk,bkd->bqd"}> : () -> ()
    %cst_263 = arith.constant dense<0.000000e+00> : vector<1x16x8xf32>
    %649 = tpu.matmul %648, %632, %cst_263 {dimension_numbers = #tpu.dot_dimension_numbers<[2], [1], [1], [2], [0, 0, 0, 1, 1, 2], [0], [0]>} : vector<1x16x16xbf16>, vector<1x16x8xbf16>, vector<1x16x8xf32> -> vector<1x16x8xf32>
    "tpu.trace_stop"() : () -> ()
    %650 = vector.shape_cast %649 : vector<1x16x8xf32> to vector<16x8xf32>
    %651 = vector.extract_strided_slice %569 {offsets = [0, 24], sizes = [16, 8], strides = [1, 1]} : vector<16x96xf32> to vector<16x8xf32>
    %652 = vector.shape_cast %651 : vector<16x8xf32> to vector<1x16x8xf32>
    %653 = arith.truncf %652 : vector<1x16x8xf32> to vector<1x16x8xbf16>
    %654 = vector.extract_strided_slice %569 {offsets = [0, 56], sizes = [16, 8], strides = [1, 1]} : vector<16x96xf32> to vector<16x8xf32>
    %655 = vector.shape_cast %654 : vector<16x8xf32> to vector<1x16x8xf32>
    %656 = arith.truncf %655 : vector<1x16x8xf32> to vector<1x16x8xbf16>
    %657 = vector.extract_strided_slice %569 {offsets = [0, 88], sizes = [16, 8], strides = [1, 1]} : vector<16x96xf32> to vector<16x8xf32>
    %658 = vector.shape_cast %657 : vector<16x8xf32> to vector<1x16x8xf32>
    %659 = arith.truncf %658 : vector<1x16x8xf32> to vector<1x16x8xbf16>
    "tpu.trace_start"() <{level = 10 : i32, message = "bqd,bkd->bqk"}> : () -> ()
    %cst_264 = arith.constant dense<0.000000e+00> : vector<1x16x16xf32>
    %660 = tpu.matmul %653, %656, %cst_264 {dimension_numbers = #tpu.dot_dimension_numbers<[2], [2], [1], [1], [0, 0, 0, 1, 1, 1], [0], [0]>} : vector<1x16x8xbf16>, vector<1x16x8xbf16>, vector<1x16x16xf32> -> vector<1x16x16xf32>
    "tpu.trace_stop"() : () -> ()
    %cst_265 = arith.constant 0.353553385 : f32
    %661 = vector.broadcast %cst_265 : f32 to vector<1x16x16xf32>
    %662 = arith.mulf %660, %661 : vector<1x16x16xf32>
    %663 = vector.broadcast %2 : vector<1x1x16xf32> to vector<1x16x16xf32>
    %664 = arith.addf %662, %663 : vector<1x16x16xf32>
    %cst_266 = arith.constant dense<0xFF800000> : vector<1x16xf32>
    %665 = vector.multi_reduction <maximumf>, %664, %cst_266 [2] : vector<1x16x16xf32> to vector<1x16xf32>
    %666 = vector.shape_cast %665 : vector<1x16xf32> to vector<1x16x1xf32>
    %667 = vector.broadcast %666 : vector<1x16x1xf32> to vector<1x16x16xf32>
    %668 = arith.subf %664, %667 : vector<1x16x16xf32>
    %669 = math.exp %668 : vector<1x16x16xf32>
    %cst_267 = arith.constant dense<0.000000e+00> : vector<1x16xf32>
    %670 = vector.multi_reduction <add>, %669, %cst_267 [2] : vector<1x16x16xf32> to vector<1x16xf32>
    %671 = vector.shape_cast %670 : vector<1x16xf32> to vector<1x16x1xf32>
    %672 = tpu.reciprocal %671 {approx = true} : vector<1x16x1xf32> -> vector<1x16x1xf32>
    %673 = vector.broadcast %672 : vector<1x16x1xf32> to vector<1x16x16xf32>
    %674 = arith.mulf %669, %673 : vector<1x16x16xf32>
    %675 = arith.truncf %674 : vector<1x16x16xf32> to vector<1x16x16xbf16>
    "tpu.trace_start"() <{level = 10 : i32, message = "bqk,bkd->bqd"}> : () -> ()
    %cst_268 = arith.constant dense<0.000000e+00> : vector<1x16x8xf32>
    %676 = tpu.matmul %675, %659, %cst_268 {dimension_numbers = #tpu.dot_dimension_numbers<[2], [1], [1], [2], [0, 0, 0, 1, 1, 2], [0], [0]>} : vector<1x16x16xbf16>, vector<1x16x8xbf16>, vector<1x16x8xf32> -> vector<1x16x8xf32>
    "tpu.trace_stop"() : () -> ()
    %677 = vector.shape_cast %676 : vector<1x16x8xf32> to vector<16x8xf32>
    %678 = tpu.concatenate %596, %623, %650, %677 in 1 : vector<16x8xf32>, vector<16x8xf32>, vector<16x8xf32>, vector<16x8xf32> -> vector<16x32xf32>
    %679 = arith.truncf %678 : vector<16x32xf32> to vector<16x32xbf16>
    %c2_269 = arith.constant 2 : index
    %c0_270 = arith.constant 0 : index
    %c0_271 = arith.constant 0 : index
    %680 = vector.load %arg8[%c2_269, %c0_270, %c0_271] : memref<4x32x32xbf16, #tpu.memory_space<vmem>>, vector<1x32x32xbf16>
    %681 = vector.shape_cast %680 : vector<1x32x32xbf16> to vector<32x32xbf16>
    %cst_272 = arith.constant dense<0.000000e+00> : vector<16x32xf32>
    %682 = tpu.matmul %679, %681, %cst_272 {dimension_numbers = #tpu.dot_dimension_numbers<[1], [0], [0], [1], [0, 0, 1, 1], [], []>} : vector<16x32xbf16>, vector<32x32xbf16>, vector<16x32xf32> -> vector<16x32xf32>
    %c2_273 = arith.constant 2 : index
    %c0_274 = arith.constant 0 : index
    %c0_275 = arith.constant 0 : index
    %683 = vector.load %arg9[%c2_273, %c0_274, %c0_275] : memref<4x1x32xf32, #tpu.memory_space<vmem>>, vector<1x1x32xf32>
    %684 = vector.shape_cast %683 : vector<1x1x32xf32> to vector<1x32xf32>
    %685 = vector.broadcast %684 : vector<1x32xf32> to vector<16x32xf32>
    %686 = arith.addf %682, %685 : vector<16x32xf32>
    %687 = arith.addf %561, %686 : vector<16x32xf32>
    %c2_276 = arith.constant 2 : index
    %c0_277 = arith.constant 0 : index
    %c0_278 = arith.constant 0 : index
    %688 = vector.load %arg10[%c2_276, %c0_277, %c0_278] : memref<4x1x32xf32, #tpu.memory_space<vmem>>, vector<1x1x32xf32>
    %689 = vector.shape_cast %688 : vector<1x1x32xf32> to vector<1x32xf32>
    %c2_279 = arith.constant 2 : index
    %c0_280 = arith.constant 0 : index
    %c0_281 = arith.constant 0 : index
    %690 = vector.load %arg11[%c2_279, %c0_280, %c0_281] : memref<4x1x32xf32, #tpu.memory_space<vmem>>, vector<1x1x32xf32>
    %691 = vector.shape_cast %690 : vector<1x1x32xf32> to vector<1x32xf32>
    %cst_282 = arith.constant dense<0.000000e+00> : vector<16xf32>
    %692 = vector.multi_reduction <add>, %687, %cst_282 [1] : vector<16x32xf32> to vector<16xf32>
    %693 = vector.shape_cast %692 : vector<16xf32> to vector<16x1xf32>
    %cst_283 = arith.constant 3.200000e+01 : f32
    %694 = vector.broadcast %cst_283 : f32 to vector<16x1xf32>
    %695 = arith.divf %693, %694 : vector<16x1xf32>
    %696 = vector.broadcast %695 : vector<16x1xf32> to vector<16x32xf32>
    %697 = arith.subf %687, %696 : vector<16x32xf32>
    %698 = arith.mulf %697, %697 : vector<16x32xf32>
    %cst_284 = arith.constant dense<0.000000e+00> : vector<16xf32>
    %699 = vector.multi_reduction <add>, %698, %cst_284 [1] : vector<16x32xf32> to vector<16xf32>
    %700 = vector.shape_cast %699 : vector<16xf32> to vector<16x1xf32>
    %cst_285 = arith.constant 3.200000e+01 : f32
    %701 = vector.broadcast %cst_285 : f32 to vector<16x1xf32>
    %702 = arith.divf %700, %701 : vector<16x1xf32>
    %703 = vector.broadcast %695 : vector<16x1xf32> to vector<16x32xf32>
    %704 = arith.subf %687, %703 : vector<16x32xf32>
    %cst_286 = arith.constant 9.99999974E-6 : f32
    %705 = vector.broadcast %cst_286 : f32 to vector<16x1xf32>
    %706 = arith.addf %702, %705 : vector<16x1xf32>
    %707 = math.rsqrt %706 : vector<16x1xf32>
    %708 = vector.broadcast %707 : vector<16x1xf32> to vector<16x32xf32>
    %709 = arith.mulf %704, %708 : vector<16x32xf32>
    %710 = vector.broadcast %689 : vector<1x32xf32> to vector<16x32xf32>
    %711 = arith.mulf %709, %710 : vector<16x32xf32>
    %712 = vector.broadcast %691 : vector<1x32xf32> to vector<16x32xf32>
    %713 = arith.addf %711, %712 : vector<16x32xf32>
    %714 = arith.truncf %713 : vector<16x32xf32> to vector<16x32xbf16>
    %cst_287 = arith.constant 0.000000e+00 : f32
    %715 = vector.broadcast %cst_287 : f32 to vector<16x32xf32>
    %c2_288 = arith.constant 2 : index
    %c0_289 = arith.constant 0 : index
    %c0_290 = arith.constant 0 : index
    %716 = vector.load %arg12[%c2_288, %c0_289, %c0_290] : memref<4x32x2048xbf16, #tpu.memory_space<vmem>>, vector<1x32x512xbf16>
    %717 = vector.shape_cast %716 : vector<1x32x512xbf16> to vector<32x512xbf16>
    %cst_291 = arith.constant dense<0.000000e+00> : vector<16x512xf32>
    %718 = tpu.matmul %714, %717, %cst_291 {dimension_numbers = #tpu.dot_dimension_numbers<[1], [0], [0], [1], [0, 0, 1, 1], [], []>} : vector<16x32xbf16>, vector<32x512xbf16>, vector<16x512xf32> -> vector<16x512xf32>
    %c2_292 = arith.constant 2 : index
    %c0_293 = arith.constant 0 : index
    %c0_294 = arith.constant 0 : index
    %719 = vector.load %arg13[%c2_292, %c0_293, %c0_294] : memref<4x1x2048xf32, #tpu.memory_space<vmem>>, vector<1x1x512xf32>
    %720 = vector.shape_cast %719 : vector<1x1x512xf32> to vector<1x512xf32>
    %721 = vector.broadcast %720 : vector<1x512xf32> to vector<16x512xf32>
    %722 = arith.addf %718, %721 : vector<16x512xf32>
    %cst_295 = arith.constant 5.000000e-01 : f32
    %723 = vector.broadcast %cst_295 : f32 to vector<16x512xf32>
    %724 = arith.mulf %723, %722 : vector<16x512xf32>
    %cst_296 = arith.constant 0.707106769 : f32
    %725 = vector.broadcast %cst_296 : f32 to vector<16x512xf32>
    %726 = arith.mulf %722, %725 : vector<16x512xf32>
    %727 = math.erf %726 : vector<16x512xf32>
    %cst_297 = arith.constant 1.000000e+00 : f32
    %728 = vector.broadcast %cst_297 : f32 to vector<16x512xf32>
    %729 = arith.addf %728, %727 : vector<16x512xf32>
    %730 = arith.mulf %724, %729 : vector<16x512xf32>
    %731 = arith.truncf %730 : vector<16x512xf32> to vector<16x512xbf16>
    %c2_298 = arith.constant 2 : index
    %c0_299 = arith.constant 0 : index
    %c0_300 = arith.constant 0 : index
    %732 = vector.load %arg14[%c2_298, %c0_299, %c0_300] : memref<4x2048x32xbf16, #tpu.memory_space<vmem>>, vector<1x512x32xbf16>
    %733 = vector.shape_cast %732 : vector<1x512x32xbf16> to vector<512x32xbf16>
    %cst_301 = arith.constant dense<0.000000e+00> : vector<16x32xf32>
    %734 = tpu.matmul %731, %733, %cst_301 {dimension_numbers = #tpu.dot_dimension_numbers<[1], [0], [0], [1], [0, 0, 1, 1], [], []>} : vector<16x512xbf16>, vector<512x32xbf16>, vector<16x32xf32> -> vector<16x32xf32>
    %735 = arith.addf %715, %734 : vector<16x32xf32>
    %c2_302 = arith.constant 2 : index
    %c0_303 = arith.constant 0 : index
    %c512_304 = arith.constant 512 : index
    %736 = vector.load %arg12[%c2_302, %c0_303, %c512_304] : memref<4x32x2048xbf16, #tpu.memory_space<vmem>>, vector<1x32x512xbf16>
    %737 = vector.shape_cast %736 : vector<1x32x512xbf16> to vector<32x512xbf16>
    %cst_305 = arith.constant dense<0.000000e+00> : vector<16x512xf32>
    %738 = tpu.matmul %714, %737, %cst_305 {dimension_numbers = #tpu.dot_dimension_numbers<[1], [0], [0], [1], [0, 0, 1, 1], [], []>} : vector<16x32xbf16>, vector<32x512xbf16>, vector<16x512xf32> -> vector<16x512xf32>
    %c2_306 = arith.constant 2 : index
    %c0_307 = arith.constant 0 : index
    %c512_308 = arith.constant 512 : index
    %739 = vector.load %arg13[%c2_306, %c0_307, %c512_308] : memref<4x1x2048xf32, #tpu.memory_space<vmem>>, vector<1x1x512xf32>
    %740 = vector.shape_cast %739 : vector<1x1x512xf32> to vector<1x512xf32>
    %741 = vector.broadcast %740 : vector<1x512xf32> to vector<16x512xf32>
    %742 = arith.addf %738, %741 : vector<16x512xf32>
    %cst_309 = arith.constant 5.000000e-01 : f32
    %743 = vector.broadcast %cst_309 : f32 to vector<16x512xf32>
    %744 = arith.mulf %743, %742 : vector<16x512xf32>
    %cst_310 = arith.constant 0.707106769 : f32
    %745 = vector.broadcast %cst_310 : f32 to vector<16x512xf32>
    %746 = arith.mulf %742, %745 : vector<16x512xf32>
    %747 = math.erf %746 : vector<16x512xf32>
    %cst_311 = arith.constant 1.000000e+00 : f32
    %748 = vector.broadcast %cst_311 : f32 to vector<16x512xf32>
    %749 = arith.addf %748, %747 : vector<16x512xf32>
    %750 = arith.mulf %744, %749 : vector<16x512xf32>
    %751 = arith.truncf %750 : vector<16x512xf32> to vector<16x512xbf16>
    %c2_312 = arith.constant 2 : index
    %c512_313 = arith.constant 512 : index
    %c0_314 = arith.constant 0 : index
    %752 = vector.load %arg14[%c2_312, %c512_313, %c0_314] : memref<4x2048x32xbf16, #tpu.memory_space<vmem>>, vector<1x512x32xbf16>
    %753 = vector.shape_cast %752 : vector<1x512x32xbf16> to vector<512x32xbf16>
    %cst_315 = arith.constant dense<0.000000e+00> : vector<16x32xf32>
    %754 = tpu.matmul %751, %753, %cst_315 {dimension_numbers = #tpu.dot_dimension_numbers<[1], [0], [0], [1], [0, 0, 1, 1], [], []>} : vector<16x512xbf16>, vector<512x32xbf16>, vector<16x32xf32> -> vector<16x32xf32>
    %755 = arith.addf %735, %754 : vector<16x32xf32>
    %c2_316 = arith.constant 2 : index
    %c0_317 = arith.constant 0 : index
    %c1024_318 = arith.constant 1024 : index
    %756 = vector.load %arg12[%c2_316, %c0_317, %c1024_318] : memref<4x32x2048xbf16, #tpu.memory_space<vmem>>, vector<1x32x512xbf16>
    %757 = vector.shape_cast %756 : vector<1x32x512xbf16> to vector<32x512xbf16>
    %cst_319 = arith.constant dense<0.000000e+00> : vector<16x512xf32>
    %758 = tpu.matmul %714, %757, %cst_319 {dimension_numbers = #tpu.dot_dimension_numbers<[1], [0], [0], [1], [0, 0, 1, 1], [], []>} : vector<16x32xbf16>, vector<32x512xbf16>, vector<16x512xf32> -> vector<16x512xf32>
    %c2_320 = arith.constant 2 : index
    %c0_321 = arith.constant 0 : index
    %c1024_322 = arith.constant 1024 : index
    %759 = vector.load %arg13[%c2_320, %c0_321, %c1024_322] : memref<4x1x2048xf32, #tpu.memory_space<vmem>>, vector<1x1x512xf32>
    %760 = vector.shape_cast %759 : vector<1x1x512xf32> to vector<1x512xf32>
    %761 = vector.broadcast %760 : vector<1x512xf32> to vector<16x512xf32>
    %762 = arith.addf %758, %761 : vector<16x512xf32>
    %cst_323 = arith.constant 5.000000e-01 : f32
    %763 = vector.broadcast %cst_323 : f32 to vector<16x512xf32>
    %764 = arith.mulf %763, %762 : vector<16x512xf32>
    %cst_324 = arith.constant 0.707106769 : f32
    %765 = vector.broadcast %cst_324 : f32 to vector<16x512xf32>
    %766 = arith.mulf %762, %765 : vector<16x512xf32>
    %767 = math.erf %766 : vector<16x512xf32>
    %cst_325 = arith.constant 1.000000e+00 : f32
    %768 = vector.broadcast %cst_325 : f32 to vector<16x512xf32>
    %769 = arith.addf %768, %767 : vector<16x512xf32>
    %770 = arith.mulf %764, %769 : vector<16x512xf32>
    %771 = arith.truncf %770 : vector<16x512xf32> to vector<16x512xbf16>
    %c2_326 = arith.constant 2 : index
    %c1024_327 = arith.constant 1024 : index
    %c0_328 = arith.constant 0 : index
    %772 = vector.load %arg14[%c2_326, %c1024_327, %c0_328] : memref<4x2048x32xbf16, #tpu.memory_space<vmem>>, vector<1x512x32xbf16>
    %773 = vector.shape_cast %772 : vector<1x512x32xbf16> to vector<512x32xbf16>
    %cst_329 = arith.constant dense<0.000000e+00> : vector<16x32xf32>
    %774 = tpu.matmul %771, %773, %cst_329 {dimension_numbers = #tpu.dot_dimension_numbers<[1], [0], [0], [1], [0, 0, 1, 1], [], []>} : vector<16x512xbf16>, vector<512x32xbf16>, vector<16x32xf32> -> vector<16x32xf32>
    %775 = arith.addf %755, %774 : vector<16x32xf32>
    %c2_330 = arith.constant 2 : index
    %c0_331 = arith.constant 0 : index
    %c1536_332 = arith.constant 1536 : index
    %776 = vector.load %arg12[%c2_330, %c0_331, %c1536_332] : memref<4x32x2048xbf16, #tpu.memory_space<vmem>>, vector<1x32x512xbf16>
    %777 = vector.shape_cast %776 : vector<1x32x512xbf16> to vector<32x512xbf16>
    %cst_333 = arith.constant dense<0.000000e+00> : vector<16x512xf32>
    %778 = tpu.matmul %714, %777, %cst_333 {dimension_numbers = #tpu.dot_dimension_numbers<[1], [0], [0], [1], [0, 0, 1, 1], [], []>} : vector<16x32xbf16>, vector<32x512xbf16>, vector<16x512xf32> -> vector<16x512xf32>
    %c2_334 = arith.constant 2 : index
    %c0_335 = arith.constant 0 : index
    %c1536_336 = arith.constant 1536 : index
    %779 = vector.load %arg13[%c2_334, %c0_335, %c1536_336] : memref<4x1x2048xf32, #tpu.memory_space<vmem>>, vector<1x1x512xf32>
    %780 = vector.shape_cast %779 : vector<1x1x512xf32> to vector<1x512xf32>
    %781 = vector.broadcast %780 : vector<1x512xf32> to vector<16x512xf32>
    %782 = arith.addf %778, %781 : vector<16x512xf32>
    %cst_337 = arith.constant 5.000000e-01 : f32
    %783 = vector.broadcast %cst_337 : f32 to vector<16x512xf32>
    %784 = arith.mulf %783, %782 : vector<16x512xf32>
    %cst_338 = arith.constant 0.707106769 : f32
    %785 = vector.broadcast %cst_338 : f32 to vector<16x512xf32>
    %786 = arith.mulf %782, %785 : vector<16x512xf32>
    %787 = math.erf %786 : vector<16x512xf32>
    %cst_339 = arith.constant 1.000000e+00 : f32
    %788 = vector.broadcast %cst_339 : f32 to vector<16x512xf32>
    %789 = arith.addf %788, %787 : vector<16x512xf32>
    %790 = arith.mulf %784, %789 : vector<16x512xf32>
    %791 = arith.truncf %790 : vector<16x512xf32> to vector<16x512xbf16>
    %c2_340 = arith.constant 2 : index
    %c1536_341 = arith.constant 1536 : index
    %c0_342 = arith.constant 0 : index
    %792 = vector.load %arg14[%c2_340, %c1536_341, %c0_342] : memref<4x2048x32xbf16, #tpu.memory_space<vmem>>, vector<1x512x32xbf16>
    %793 = vector.shape_cast %792 : vector<1x512x32xbf16> to vector<512x32xbf16>
    %cst_343 = arith.constant dense<0.000000e+00> : vector<16x32xf32>
    %794 = tpu.matmul %791, %793, %cst_343 {dimension_numbers = #tpu.dot_dimension_numbers<[1], [0], [0], [1], [0, 0, 1, 1], [], []>} : vector<16x512xbf16>, vector<512x32xbf16>, vector<16x32xf32> -> vector<16x32xf32>
    %795 = arith.addf %775, %794 : vector<16x32xf32>
    %c2_344 = arith.constant 2 : index
    %c0_345 = arith.constant 0 : index
    %c0_346 = arith.constant 0 : index
    %796 = vector.load %arg15[%c2_344, %c0_345, %c0_346] : memref<4x1x32xf32, #tpu.memory_space<vmem>>, vector<1x1x32xf32>
    %797 = vector.shape_cast %796 : vector<1x1x32xf32> to vector<1x32xf32>
    %798 = vector.broadcast %797 : vector<1x32xf32> to vector<16x32xf32>
    %799 = arith.addf %795, %798 : vector<16x32xf32>
    %800 = arith.addf %713, %799 : vector<16x32xf32>
    %c2_347 = arith.constant 2 : index
    %c0_348 = arith.constant 0 : index
    %c0_349 = arith.constant 0 : index
    %801 = vector.load %arg16[%c2_347, %c0_348, %c0_349] : memref<4x1x32xf32, #tpu.memory_space<vmem>>, vector<1x1x32xf32>
    %802 = vector.shape_cast %801 : vector<1x1x32xf32> to vector<1x32xf32>
    %c2_350 = arith.constant 2 : index
    %c0_351 = arith.constant 0 : index
    %c0_352 = arith.constant 0 : index
    %803 = vector.load %arg17[%c2_350, %c0_351, %c0_352] : memref<4x1x32xf32, #tpu.memory_space<vmem>>, vector<1x1x32xf32>
    %804 = vector.shape_cast %803 : vector<1x1x32xf32> to vector<1x32xf32>
    %cst_353 = arith.constant dense<0.000000e+00> : vector<16xf32>
    %805 = vector.multi_reduction <add>, %800, %cst_353 [1] : vector<16x32xf32> to vector<16xf32>
    %806 = vector.shape_cast %805 : vector<16xf32> to vector<16x1xf32>
    %cst_354 = arith.constant 3.200000e+01 : f32
    %807 = vector.broadcast %cst_354 : f32 to vector<16x1xf32>
    %808 = arith.divf %806, %807 : vector<16x1xf32>
    %809 = vector.broadcast %808 : vector<16x1xf32> to vector<16x32xf32>
    %810 = arith.subf %800, %809 : vector<16x32xf32>
    %811 = arith.mulf %810, %810 : vector<16x32xf32>
    %cst_355 = arith.constant dense<0.000000e+00> : vector<16xf32>
    %812 = vector.multi_reduction <add>, %811, %cst_355 [1] : vector<16x32xf32> to vector<16xf32>
    %813 = vector.shape_cast %812 : vector<16xf32> to vector<16x1xf32>
    %cst_356 = arith.constant 3.200000e+01 : f32
    %814 = vector.broadcast %cst_356 : f32 to vector<16x1xf32>
    %815 = arith.divf %813, %814 : vector<16x1xf32>
    %816 = vector.broadcast %808 : vector<16x1xf32> to vector<16x32xf32>
    %817 = arith.subf %800, %816 : vector<16x32xf32>
    %cst_357 = arith.constant 9.99999974E-6 : f32
    %818 = vector.broadcast %cst_357 : f32 to vector<16x1xf32>
    %819 = arith.addf %815, %818 : vector<16x1xf32>
    %820 = math.rsqrt %819 : vector<16x1xf32>
    %821 = vector.broadcast %820 : vector<16x1xf32> to vector<16x32xf32>
    %822 = arith.mulf %817, %821 : vector<16x32xf32>
    %823 = vector.broadcast %802 : vector<1x32xf32> to vector<16x32xf32>
    %824 = arith.mulf %822, %823 : vector<16x32xf32>
    %825 = vector.broadcast %804 : vector<1x32xf32> to vector<16x32xf32>
    %826 = arith.addf %824, %825 : vector<16x32xf32>
    %827 = arith.truncf %826 : vector<16x32xf32> to vector<16x32xbf16>
    %c3 = arith.constant 3 : index
    %c0_358 = arith.constant 0 : index
    %c0_359 = arith.constant 0 : index
    %828 = vector.load %arg6[%c3, %c0_358, %c0_359] : memref<4x32x96xbf16, #tpu.memory_space<vmem>>, vector<1x32x96xbf16>
    %829 = vector.shape_cast %828 : vector<1x32x96xbf16> to vector<32x96xbf16>
    %cst_360 = arith.constant dense<0.000000e+00> : vector<16x96xf32>
    %830 = tpu.matmul %827, %829, %cst_360 {dimension_numbers = #tpu.dot_dimension_numbers<[1], [0], [0], [1], [0, 0, 1, 1], [], []>} : vector<16x32xbf16>, vector<32x96xbf16>, vector<16x96xf32> -> vector<16x96xf32>
    %c3_361 = arith.constant 3 : index
    %c0_362 = arith.constant 0 : index
    %c0_363 = arith.constant 0 : index
    %831 = vector.load %arg7[%c3_361, %c0_362, %c0_363] : memref<4x1x96xf32, #tpu.memory_space<vmem>>, vector<1x1x96xf32>
    %832 = vector.shape_cast %831 : vector<1x1x96xf32> to vector<1x96xf32>
    %833 = vector.broadcast %832 : vector<1x96xf32> to vector<16x96xf32>
    %834 = arith.addf %830, %833 : vector<16x96xf32>
    %835 = vector.extract_strided_slice %834 {offsets = [0, 0], sizes = [16, 8], strides = [1, 1]} : vector<16x96xf32> to vector<16x8xf32>
    %836 = vector.shape_cast %835 : vector<16x8xf32> to vector<1x16x8xf32>
    %837 = arith.truncf %836 : vector<1x16x8xf32> to vector<1x16x8xbf16>
    %838 = vector.extract_strided_slice %834 {offsets = [0, 32], sizes = [16, 8], strides = [1, 1]} : vector<16x96xf32> to vector<16x8xf32>
    %839 = vector.shape_cast %838 : vector<16x8xf32> to vector<1x16x8xf32>
    %840 = arith.truncf %839 : vector<1x16x8xf32> to vector<1x16x8xbf16>
    %841 = vector.extract_strided_slice %834 {offsets = [0, 64], sizes = [16, 8], strides = [1, 1]} : vector<16x96xf32> to vector<16x8xf32>
    %842 = vector.shape_cast %841 : vector<16x8xf32> to vector<1x16x8xf32>
    %843 = arith.truncf %842 : vector<1x16x8xf32> to vector<1x16x8xbf16>
    "tpu.trace_start"() <{level = 10 : i32, message = "bqd,bkd->bqk"}> : () -> ()
    %cst_364 = arith.constant dense<0.000000e+00> : vector<1x16x16xf32>
    %844 = tpu.matmul %837, %840, %cst_364 {dimension_numbers = #tpu.dot_dimension_numbers<[2], [2], [1], [1], [0, 0, 0, 1, 1, 1], [0], [0]>} : vector<1x16x8xbf16>, vector<1x16x8xbf16>, vector<1x16x16xf32> -> vector<1x16x16xf32>
    "tpu.trace_stop"() : () -> ()
    %cst_365 = arith.constant 0.353553385 : f32
    %845 = vector.broadcast %cst_365 : f32 to vector<1x16x16xf32>
    %846 = arith.mulf %844, %845 : vector<1x16x16xf32>
    %847 = vector.broadcast %2 : vector<1x1x16xf32> to vector<1x16x16xf32>
    %848 = arith.addf %846, %847 : vector<1x16x16xf32>
    %cst_366 = arith.constant dense<0xFF800000> : vector<1x16xf32>
    %849 = vector.multi_reduction <maximumf>, %848, %cst_366 [2] : vector<1x16x16xf32> to vector<1x16xf32>
    %850 = vector.shape_cast %849 : vector<1x16xf32> to vector<1x16x1xf32>
    %851 = vector.broadcast %850 : vector<1x16x1xf32> to vector<1x16x16xf32>
    %852 = arith.subf %848, %851 : vector<1x16x16xf32>
    %853 = math.exp %852 : vector<1x16x16xf32>
    %cst_367 = arith.constant dense<0.000000e+00> : vector<1x16xf32>
    %854 = vector.multi_reduction <add>, %853, %cst_367 [2] : vector<1x16x16xf32> to vector<1x16xf32>
    %855 = vector.shape_cast %854 : vector<1x16xf32> to vector<1x16x1xf32>
    %856 = tpu.reciprocal %855 {approx = true} : vector<1x16x1xf32> -> vector<1x16x1xf32>
    %857 = vector.broadcast %856 : vector<1x16x1xf32> to vector<1x16x16xf32>
    %858 = arith.mulf %853, %857 : vector<1x16x16xf32>
    %859 = arith.truncf %858 : vector<1x16x16xf32> to vector<1x16x16xbf16>
    "tpu.trace_start"() <{level = 10 : i32, message = "bqk,bkd->bqd"}> : () -> ()
    %cst_368 = arith.constant dense<0.000000e+00> : vector<1x16x8xf32>
    %860 = tpu.matmul %859, %843, %cst_368 {dimension_numbers = #tpu.dot_dimension_numbers<[2], [1], [1], [2], [0, 0, 0, 1, 1, 2], [0], [0]>} : vector<1x16x16xbf16>, vector<1x16x8xbf16>, vector<1x16x8xf32> -> vector<1x16x8xf32>
    "tpu.trace_stop"() : () -> ()
    %861 = vector.shape_cast %860 : vector<1x16x8xf32> to vector<16x8xf32>
    %862 = vector.extract_strided_slice %834 {offsets = [0, 8], sizes = [16, 8], strides = [1, 1]} : vector<16x96xf32> to vector<16x8xf32>
    %863 = vector.shape_cast %862 : vector<16x8xf32> to vector<1x16x8xf32>
    %864 = arith.truncf %863 : vector<1x16x8xf32> to vector<1x16x8xbf16>
    %865 = vector.extract_strided_slice %834 {offsets = [0, 40], sizes = [16, 8], strides = [1, 1]} : vector<16x96xf32> to vector<16x8xf32>
    %866 = vector.shape_cast %865 : vector<16x8xf32> to vector<1x16x8xf32>
    %867 = arith.truncf %866 : vector<1x16x8xf32> to vector<1x16x8xbf16>
    %868 = vector.extract_strided_slice %834 {offsets = [0, 72], sizes = [16, 8], strides = [1, 1]} : vector<16x96xf32> to vector<16x8xf32>
    %869 = vector.shape_cast %868 : vector<16x8xf32> to vector<1x16x8xf32>
    %870 = arith.truncf %869 : vector<1x16x8xf32> to vector<1x16x8xbf16>
    "tpu.trace_start"() <{level = 10 : i32, message = "bqd,bkd->bqk"}> : () -> ()
    %cst_369 = arith.constant dense<0.000000e+00> : vector<1x16x16xf32>
    %871 = tpu.matmul %864, %867, %cst_369 {dimension_numbers = #tpu.dot_dimension_numbers<[2], [2], [1], [1], [0, 0, 0, 1, 1, 1], [0], [0]>} : vector<1x16x8xbf16>, vector<1x16x8xbf16>, vector<1x16x16xf32> -> vector<1x16x16xf32>
    "tpu.trace_stop"() : () -> ()
    %cst_370 = arith.constant 0.353553385 : f32
    %872 = vector.broadcast %cst_370 : f32 to vector<1x16x16xf32>
    %873 = arith.mulf %871, %872 : vector<1x16x16xf32>
    %874 = vector.broadcast %2 : vector<1x1x16xf32> to vector<1x16x16xf32>
    %875 = arith.addf %873, %874 : vector<1x16x16xf32>
    %cst_371 = arith.constant dense<0xFF800000> : vector<1x16xf32>
    %876 = vector.multi_reduction <maximumf>, %875, %cst_371 [2] : vector<1x16x16xf32> to vector<1x16xf32>
    %877 = vector.shape_cast %876 : vector<1x16xf32> to vector<1x16x1xf32>
    %878 = vector.broadcast %877 : vector<1x16x1xf32> to vector<1x16x16xf32>
    %879 = arith.subf %875, %878 : vector<1x16x16xf32>
    %880 = math.exp %879 : vector<1x16x16xf32>
    %cst_372 = arith.constant dense<0.000000e+00> : vector<1x16xf32>
    %881 = vector.multi_reduction <add>, %880, %cst_372 [2] : vector<1x16x16xf32> to vector<1x16xf32>
    %882 = vector.shape_cast %881 : vector<1x16xf32> to vector<1x16x1xf32>
    %883 = tpu.reciprocal %882 {approx = true} : vector<1x16x1xf32> -> vector<1x16x1xf32>
    %884 = vector.broadcast %883 : vector<1x16x1xf32> to vector<1x16x16xf32>
    %885 = arith.mulf %880, %884 : vector<1x16x16xf32>
    %886 = arith.truncf %885 : vector<1x16x16xf32> to vector<1x16x16xbf16>
    "tpu.trace_start"() <{level = 10 : i32, message = "bqk,bkd->bqd"}> : () -> ()
    %cst_373 = arith.constant dense<0.000000e+00> : vector<1x16x8xf32>
    %887 = tpu.matmul %886, %870, %cst_373 {dimension_numbers = #tpu.dot_dimension_numbers<[2], [1], [1], [2], [0, 0, 0, 1, 1, 2], [0], [0]>} : vector<1x16x16xbf16>, vector<1x16x8xbf16>, vector<1x16x8xf32> -> vector<1x16x8xf32>
    "tpu.trace_stop"() : () -> ()
    %888 = vector.shape_cast %887 : vector<1x16x8xf32> to vector<16x8xf32>
    %889 = vector.extract_strided_slice %834 {offsets = [0, 16], sizes = [16, 8], strides = [1, 1]} : vector<16x96xf32> to vector<16x8xf32>
    %890 = vector.shape_cast %889 : vector<16x8xf32> to vector<1x16x8xf32>
    %891 = arith.truncf %890 : vector<1x16x8xf32> to vector<1x16x8xbf16>
    %892 = vector.extract_strided_slice %834 {offsets = [0, 48], sizes = [16, 8], strides = [1, 1]} : vector<16x96xf32> to vector<16x8xf32>
    %893 = vector.shape_cast %892 : vector<16x8xf32> to vector<1x16x8xf32>
    %894 = arith.truncf %893 : vector<1x16x8xf32> to vector<1x16x8xbf16>
    %895 = vector.extract_strided_slice %834 {offsets = [0, 80], sizes = [16, 8], strides = [1, 1]} : vector<16x96xf32> to vector<16x8xf32>
    %896 = vector.shape_cast %895 : vector<16x8xf32> to vector<1x16x8xf32>
    %897 = arith.truncf %896 : vector<1x16x8xf32> to vector<1x16x8xbf16>
    "tpu.trace_start"() <{level = 10 : i32, message = "bqd,bkd->bqk"}> : () -> ()
    %cst_374 = arith.constant dense<0.000000e+00> : vector<1x16x16xf32>
    %898 = tpu.matmul %891, %894, %cst_374 {dimension_numbers = #tpu.dot_dimension_numbers<[2], [2], [1], [1], [0, 0, 0, 1, 1, 1], [0], [0]>} : vector<1x16x8xbf16>, vector<1x16x8xbf16>, vector<1x16x16xf32> -> vector<1x16x16xf32>
    "tpu.trace_stop"() : () -> ()
    %cst_375 = arith.constant 0.353553385 : f32
    %899 = vector.broadcast %cst_375 : f32 to vector<1x16x16xf32>
    %900 = arith.mulf %898, %899 : vector<1x16x16xf32>
    %901 = vector.broadcast %2 : vector<1x1x16xf32> to vector<1x16x16xf32>
    %902 = arith.addf %900, %901 : vector<1x16x16xf32>
    %cst_376 = arith.constant dense<0xFF800000> : vector<1x16xf32>
    %903 = vector.multi_reduction <maximumf>, %902, %cst_376 [2] : vector<1x16x16xf32> to vector<1x16xf32>
    %904 = vector.shape_cast %903 : vector<1x16xf32> to vector<1x16x1xf32>
    %905 = vector.broadcast %904 : vector<1x16x1xf32> to vector<1x16x16xf32>
    %906 = arith.subf %902, %905 : vector<1x16x16xf32>
    %907 = math.exp %906 : vector<1x16x16xf32>
    %cst_377 = arith.constant dense<0.000000e+00> : vector<1x16xf32>
    %908 = vector.multi_reduction <add>, %907, %cst_377 [2] : vector<1x16x16xf32> to vector<1x16xf32>
    %909 = vector.shape_cast %908 : vector<1x16xf32> to vector<1x16x1xf32>
    %910 = tpu.reciprocal %909 {approx = true} : vector<1x16x1xf32> -> vector<1x16x1xf32>
    %911 = vector.broadcast %910 : vector<1x16x1xf32> to vector<1x16x16xf32>
    %912 = arith.mulf %907, %911 : vector<1x16x16xf32>
    %913 = arith.truncf %912 : vector<1x16x16xf32> to vector<1x16x16xbf16>
    "tpu.trace_start"() <{level = 10 : i32, message = "bqk,bkd->bqd"}> : () -> ()
    %cst_378 = arith.constant dense<0.000000e+00> : vector<1x16x8xf32>
    %914 = tpu.matmul %913, %897, %cst_378 {dimension_numbers = #tpu.dot_dimension_numbers<[2], [1], [1], [2], [0, 0, 0, 1, 1, 2], [0], [0]>} : vector<1x16x16xbf16>, vector<1x16x8xbf16>, vector<1x16x8xf32> -> vector<1x16x8xf32>
    "tpu.trace_stop"() : () -> ()
    %915 = vector.shape_cast %914 : vector<1x16x8xf32> to vector<16x8xf32>
    %916 = vector.extract_strided_slice %834 {offsets = [0, 24], sizes = [16, 8], strides = [1, 1]} : vector<16x96xf32> to vector<16x8xf32>
    %917 = vector.shape_cast %916 : vector<16x8xf32> to vector<1x16x8xf32>
    %918 = arith.truncf %917 : vector<1x16x8xf32> to vector<1x16x8xbf16>
    %919 = vector.extract_strided_slice %834 {offsets = [0, 56], sizes = [16, 8], strides = [1, 1]} : vector<16x96xf32> to vector<16x8xf32>
    %920 = vector.shape_cast %919 : vector<16x8xf32> to vector<1x16x8xf32>
    %921 = arith.truncf %920 : vector<1x16x8xf32> to vector<1x16x8xbf16>
    %922 = vector.extract_strided_slice %834 {offsets = [0, 88], sizes = [16, 8], strides = [1, 1]} : vector<16x96xf32> to vector<16x8xf32>
    %923 = vector.shape_cast %922 : vector<16x8xf32> to vector<1x16x8xf32>
    %924 = arith.truncf %923 : vector<1x16x8xf32> to vector<1x16x8xbf16>
    "tpu.trace_start"() <{level = 10 : i32, message = "bqd,bkd->bqk"}> : () -> ()
    %cst_379 = arith.constant dense<0.000000e+00> : vector<1x16x16xf32>
    %925 = tpu.matmul %918, %921, %cst_379 {dimension_numbers = #tpu.dot_dimension_numbers<[2], [2], [1], [1], [0, 0, 0, 1, 1, 1], [0], [0]>} : vector<1x16x8xbf16>, vector<1x16x8xbf16>, vector<1x16x16xf32> -> vector<1x16x16xf32>
    "tpu.trace_stop"() : () -> ()
    %cst_380 = arith.constant 0.353553385 : f32
    %926 = vector.broadcast %cst_380 : f32 to vector<1x16x16xf32>
    %927 = arith.mulf %925, %926 : vector<1x16x16xf32>
    %928 = vector.broadcast %2 : vector<1x1x16xf32> to vector<1x16x16xf32>
    %929 = arith.addf %927, %928 : vector<1x16x16xf32>
    %cst_381 = arith.constant dense<0xFF800000> : vector<1x16xf32>
    %930 = vector.multi_reduction <maximumf>, %929, %cst_381 [2] : vector<1x16x16xf32> to vector<1x16xf32>
    %931 = vector.shape_cast %930 : vector<1x16xf32> to vector<1x16x1xf32>
    %932 = vector.broadcast %931 : vector<1x16x1xf32> to vector<1x16x16xf32>
    %933 = arith.subf %929, %932 : vector<1x16x16xf32>
    %934 = math.exp %933 : vector<1x16x16xf32>
    %cst_382 = arith.constant dense<0.000000e+00> : vector<1x16xf32>
    %935 = vector.multi_reduction <add>, %934, %cst_382 [2] : vector<1x16x16xf32> to vector<1x16xf32>
    %936 = vector.shape_cast %935 : vector<1x16xf32> to vector<1x16x1xf32>
    %937 = tpu.reciprocal %936 {approx = true} : vector<1x16x1xf32> -> vector<1x16x1xf32>
    %938 = vector.broadcast %937 : vector<1x16x1xf32> to vector<1x16x16xf32>
    %939 = arith.mulf %934, %938 : vector<1x16x16xf32>
    %940 = arith.truncf %939 : vector<1x16x16xf32> to vector<1x16x16xbf16>
    "tpu.trace_start"() <{level = 10 : i32, message = "bqk,bkd->bqd"}> : () -> ()
    %cst_383 = arith.constant dense<0.000000e+00> : vector<1x16x8xf32>
    %941 = tpu.matmul %940, %924, %cst_383 {dimension_numbers = #tpu.dot_dimension_numbers<[2], [1], [1], [2], [0, 0, 0, 1, 1, 2], [0], [0]>} : vector<1x16x16xbf16>, vector<1x16x8xbf16>, vector<1x16x8xf32> -> vector<1x16x8xf32>
    "tpu.trace_stop"() : () -> ()
    %942 = vector.shape_cast %941 : vector<1x16x8xf32> to vector<16x8xf32>
    %943 = tpu.concatenate %861, %888, %915, %942 in 1 : vector<16x8xf32>, vector<16x8xf32>, vector<16x8xf32>, vector<16x8xf32> -> vector<16x32xf32>
    %944 = arith.truncf %943 : vector<16x32xf32> to vector<16x32xbf16>
    %c3_384 = arith.constant 3 : index
    %c0_385 = arith.constant 0 : index
    %c0_386 = arith.constant 0 : index
    %945 = vector.load %arg8[%c3_384, %c0_385, %c0_386] : memref<4x32x32xbf16, #tpu.memory_space<vmem>>, vector<1x32x32xbf16>
    %946 = vector.shape_cast %945 : vector<1x32x32xbf16> to vector<32x32xbf16>
    %cst_387 = arith.constant dense<0.000000e+00> : vector<16x32xf32>
    %947 = tpu.matmul %944, %946, %cst_387 {dimension_numbers = #tpu.dot_dimension_numbers<[1], [0], [0], [1], [0, 0, 1, 1], [], []>} : vector<16x32xbf16>, vector<32x32xbf16>, vector<16x32xf32> -> vector<16x32xf32>
    %c3_388 = arith.constant 3 : index
    %c0_389 = arith.constant 0 : index
    %c0_390 = arith.constant 0 : index
    %948 = vector.load %arg9[%c3_388, %c0_389, %c0_390] : memref<4x1x32xf32, #tpu.memory_space<vmem>>, vector<1x1x32xf32>
    %949 = vector.shape_cast %948 : vector<1x1x32xf32> to vector<1x32xf32>
    %950 = vector.broadcast %949 : vector<1x32xf32> to vector<16x32xf32>
    %951 = arith.addf %947, %950 : vector<16x32xf32>
    %952 = arith.addf %826, %951 : vector<16x32xf32>
    %c3_391 = arith.constant 3 : index
    %c0_392 = arith.constant 0 : index
    %c0_393 = arith.constant 0 : index
    %953 = vector.load %arg10[%c3_391, %c0_392, %c0_393] : memref<4x1x32xf32, #tpu.memory_space<vmem>>, vector<1x1x32xf32>
    %954 = vector.shape_cast %953 : vector<1x1x32xf32> to vector<1x32xf32>
    %c3_394 = arith.constant 3 : index
    %c0_395 = arith.constant 0 : index
    %c0_396 = arith.constant 0 : index
    %955 = vector.load %arg11[%c3_394, %c0_395, %c0_396] : memref<4x1x32xf32, #tpu.memory_space<vmem>>, vector<1x1x32xf32>
    %956 = vector.shape_cast %955 : vector<1x1x32xf32> to vector<1x32xf32>
    %cst_397 = arith.constant dense<0.000000e+00> : vector<16xf32>
    %957 = vector.multi_reduction <add>, %952, %cst_397 [1] : vector<16x32xf32> to vector<16xf32>
    %958 = vector.shape_cast %957 : vector<16xf32> to vector<16x1xf32>
    %cst_398 = arith.constant 3.200000e+01 : f32
    %959 = vector.broadcast %cst_398 : f32 to vector<16x1xf32>
    %960 = arith.divf %958, %959 : vector<16x1xf32>
    %961 = vector.broadcast %960 : vector<16x1xf32> to vector<16x32xf32>
    %962 = arith.subf %952, %961 : vector<16x32xf32>
    %963 = arith.mulf %962, %962 : vector<16x32xf32>
    %cst_399 = arith.constant dense<0.000000e+00> : vector<16xf32>
    %964 = vector.multi_reduction <add>, %963, %cst_399 [1] : vector<16x32xf32> to vector<16xf32>
    %965 = vector.shape_cast %964 : vector<16xf32> to vector<16x1xf32>
    %cst_400 = arith.constant 3.200000e+01 : f32
    %966 = vector.broadcast %cst_400 : f32 to vector<16x1xf32>
    %967 = arith.divf %965, %966 : vector<16x1xf32>
    %968 = vector.broadcast %960 : vector<16x1xf32> to vector<16x32xf32>
    %969 = arith.subf %952, %968 : vector<16x32xf32>
    %cst_401 = arith.constant 9.99999974E-6 : f32
    %970 = vector.broadcast %cst_401 : f32 to vector<16x1xf32>
    %971 = arith.addf %967, %970 : vector<16x1xf32>
    %972 = math.rsqrt %971 : vector<16x1xf32>
    %973 = vector.broadcast %972 : vector<16x1xf32> to vector<16x32xf32>
    %974 = arith.mulf %969, %973 : vector<16x32xf32>
    %975 = vector.broadcast %954 : vector<1x32xf32> to vector<16x32xf32>
    %976 = arith.mulf %974, %975 : vector<16x32xf32>
    %977 = vector.broadcast %956 : vector<1x32xf32> to vector<16x32xf32>
    %978 = arith.addf %976, %977 : vector<16x32xf32>
    %979 = arith.truncf %978 : vector<16x32xf32> to vector<16x32xbf16>
    %cst_402 = arith.constant 0.000000e+00 : f32
    %980 = vector.broadcast %cst_402 : f32 to vector<16x32xf32>
    %c3_403 = arith.constant 3 : index
    %c0_404 = arith.constant 0 : index
    %c0_405 = arith.constant 0 : index
    %981 = vector.load %arg12[%c3_403, %c0_404, %c0_405] : memref<4x32x2048xbf16, #tpu.memory_space<vmem>>, vector<1x32x512xbf16>
    %982 = vector.shape_cast %981 : vector<1x32x512xbf16> to vector<32x512xbf16>
    %cst_406 = arith.constant dense<0.000000e+00> : vector<16x512xf32>
    %983 = tpu.matmul %979, %982, %cst_406 {dimension_numbers = #tpu.dot_dimension_numbers<[1], [0], [0], [1], [0, 0, 1, 1], [], []>} : vector<16x32xbf16>, vector<32x512xbf16>, vector<16x512xf32> -> vector<16x512xf32>
    %c3_407 = arith.constant 3 : index
    %c0_408 = arith.constant 0 : index
    %c0_409 = arith.constant 0 : index
    %984 = vector.load %arg13[%c3_407, %c0_408, %c0_409] : memref<4x1x2048xf32, #tpu.memory_space<vmem>>, vector<1x1x512xf32>
    %985 = vector.shape_cast %984 : vector<1x1x512xf32> to vector<1x512xf32>
    %986 = vector.broadcast %985 : vector<1x512xf32> to vector<16x512xf32>
    %987 = arith.addf %983, %986 : vector<16x512xf32>
    %cst_410 = arith.constant 5.000000e-01 : f32
    %988 = vector.broadcast %cst_410 : f32 to vector<16x512xf32>
    %989 = arith.mulf %988, %987 : vector<16x512xf32>
    %cst_411 = arith.constant 0.707106769 : f32
    %990 = vector.broadcast %cst_411 : f32 to vector<16x512xf32>
    %991 = arith.mulf %987, %990 : vector<16x512xf32>
    %992 = math.erf %991 : vector<16x512xf32>
    %cst_412 = arith.constant 1.000000e+00 : f32
    %993 = vector.broadcast %cst_412 : f32 to vector<16x512xf32>
    %994 = arith.addf %993, %992 : vector<16x512xf32>
    %995 = arith.mulf %989, %994 : vector<16x512xf32>
    %996 = arith.truncf %995 : vector<16x512xf32> to vector<16x512xbf16>
    %c3_413 = arith.constant 3 : index
    %c0_414 = arith.constant 0 : index
    %c0_415 = arith.constant 0 : index
    %997 = vector.load %arg14[%c3_413, %c0_414, %c0_415] : memref<4x2048x32xbf16, #tpu.memory_space<vmem>>, vector<1x512x32xbf16>
    %998 = vector.shape_cast %997 : vector<1x512x32xbf16> to vector<512x32xbf16>
    %cst_416 = arith.constant dense<0.000000e+00> : vector<16x32xf32>
    %999 = tpu.matmul %996, %998, %cst_416 {dimension_numbers = #tpu.dot_dimension_numbers<[1], [0], [0], [1], [0, 0, 1, 1], [], []>} : vector<16x512xbf16>, vector<512x32xbf16>, vector<16x32xf32> -> vector<16x32xf32>
    %1000 = arith.addf %980, %999 : vector<16x32xf32>
    %c3_417 = arith.constant 3 : index
    %c0_418 = arith.constant 0 : index
    %c512_419 = arith.constant 512 : index
    %1001 = vector.load %arg12[%c3_417, %c0_418, %c512_419] : memref<4x32x2048xbf16, #tpu.memory_space<vmem>>, vector<1x32x512xbf16>
    %1002 = vector.shape_cast %1001 : vector<1x32x512xbf16> to vector<32x512xbf16>
    %cst_420 = arith.constant dense<0.000000e+00> : vector<16x512xf32>
    %1003 = tpu.matmul %979, %1002, %cst_420 {dimension_numbers = #tpu.dot_dimension_numbers<[1], [0], [0], [1], [0, 0, 1, 1], [], []>} : vector<16x32xbf16>, vector<32x512xbf16>, vector<16x512xf32> -> vector<16x512xf32>
    %c3_421 = arith.constant 3 : index
    %c0_422 = arith.constant 0 : index
    %c512_423 = arith.constant 512 : index
    %1004 = vector.load %arg13[%c3_421, %c0_422, %c512_423] : memref<4x1x2048xf32, #tpu.memory_space<vmem>>, vector<1x1x512xf32>
    %1005 = vector.shape_cast %1004 : vector<1x1x512xf32> to vector<1x512xf32>
    %1006 = vector.broadcast %1005 : vector<1x512xf32> to vector<16x512xf32>
    %1007 = arith.addf %1003, %1006 : vector<16x512xf32>
    %cst_424 = arith.constant 5.000000e-01 : f32
    %1008 = vector.broadcast %cst_424 : f32 to vector<16x512xf32>
    %1009 = arith.mulf %1008, %1007 : vector<16x512xf32>
    %cst_425 = arith.constant 0.707106769 : f32
    %1010 = vector.broadcast %cst_425 : f32 to vector<16x512xf32>
    %1011 = arith.mulf %1007, %1010 : vector<16x512xf32>
    %1012 = math.erf %1011 : vector<16x512xf32>
    %cst_426 = arith.constant 1.000000e+00 : f32
    %1013 = vector.broadcast %cst_426 : f32 to vector<16x512xf32>
    %1014 = arith.addf %1013, %1012 : vector<16x512xf32>
    %1015 = arith.mulf %1009, %1014 : vector<16x512xf32>
    %1016 = arith.truncf %1015 : vector<16x512xf32> to vector<16x512xbf16>
    %c3_427 = arith.constant 3 : index
    %c512_428 = arith.constant 512 : index
    %c0_429 = arith.constant 0 : index
    %1017 = vector.load %arg14[%c3_427, %c512_428, %c0_429] : memref<4x2048x32xbf16, #tpu.memory_space<vmem>>, vector<1x512x32xbf16>
    %1018 = vector.shape_cast %1017 : vector<1x512x32xbf16> to vector<512x32xbf16>
    %cst_430 = arith.constant dense<0.000000e+00> : vector<16x32xf32>
    %1019 = tpu.matmul %1016, %1018, %cst_430 {dimension_numbers = #tpu.dot_dimension_numbers<[1], [0], [0], [1], [0, 0, 1, 1], [], []>} : vector<16x512xbf16>, vector<512x32xbf16>, vector<16x32xf32> -> vector<16x32xf32>
    %1020 = arith.addf %1000, %1019 : vector<16x32xf32>
    %c3_431 = arith.constant 3 : index
    %c0_432 = arith.constant 0 : index
    %c1024_433 = arith.constant 1024 : index
    %1021 = vector.load %arg12[%c3_431, %c0_432, %c1024_433] : memref<4x32x2048xbf16, #tpu.memory_space<vmem>>, vector<1x32x512xbf16>
    %1022 = vector.shape_cast %1021 : vector<1x32x512xbf16> to vector<32x512xbf16>
    %cst_434 = arith.constant dense<0.000000e+00> : vector<16x512xf32>
    %1023 = tpu.matmul %979, %1022, %cst_434 {dimension_numbers = #tpu.dot_dimension_numbers<[1], [0], [0], [1], [0, 0, 1, 1], [], []>} : vector<16x32xbf16>, vector<32x512xbf16>, vector<16x512xf32> -> vector<16x512xf32>
    %c3_435 = arith.constant 3 : index
    %c0_436 = arith.constant 0 : index
    %c1024_437 = arith.constant 1024 : index
    %1024 = vector.load %arg13[%c3_435, %c0_436, %c1024_437] : memref<4x1x2048xf32, #tpu.memory_space<vmem>>, vector<1x1x512xf32>
    %1025 = vector.shape_cast %1024 : vector<1x1x512xf32> to vector<1x512xf32>
    %1026 = vector.broadcast %1025 : vector<1x512xf32> to vector<16x512xf32>
    %1027 = arith.addf %1023, %1026 : vector<16x512xf32>
    %cst_438 = arith.constant 5.000000e-01 : f32
    %1028 = vector.broadcast %cst_438 : f32 to vector<16x512xf32>
    %1029 = arith.mulf %1028, %1027 : vector<16x512xf32>
    %cst_439 = arith.constant 0.707106769 : f32
    %1030 = vector.broadcast %cst_439 : f32 to vector<16x512xf32>
    %1031 = arith.mulf %1027, %1030 : vector<16x512xf32>
    %1032 = math.erf %1031 : vector<16x512xf32>
    %cst_440 = arith.constant 1.000000e+00 : f32
    %1033 = vector.broadcast %cst_440 : f32 to vector<16x512xf32>
    %1034 = arith.addf %1033, %1032 : vector<16x512xf32>
    %1035 = arith.mulf %1029, %1034 : vector<16x512xf32>
    %1036 = arith.truncf %1035 : vector<16x512xf32> to vector<16x512xbf16>
    %c3_441 = arith.constant 3 : index
    %c1024_442 = arith.constant 1024 : index
    %c0_443 = arith.constant 0 : index
    %1037 = vector.load %arg14[%c3_441, %c1024_442, %c0_443] : memref<4x2048x32xbf16, #tpu.memory_space<vmem>>, vector<1x512x32xbf16>
    %1038 = vector.shape_cast %1037 : vector<1x512x32xbf16> to vector<512x32xbf16>
    %cst_444 = arith.constant dense<0.000000e+00> : vector<16x32xf32>
    %1039 = tpu.matmul %1036, %1038, %cst_444 {dimension_numbers = #tpu.dot_dimension_numbers<[1], [0], [0], [1], [0, 0, 1, 1], [], []>} : vector<16x512xbf16>, vector<512x32xbf16>, vector<16x32xf32> -> vector<16x32xf32>
    %1040 = arith.addf %1020, %1039 : vector<16x32xf32>
    %c3_445 = arith.constant 3 : index
    %c0_446 = arith.constant 0 : index
    %c1536_447 = arith.constant 1536 : index
    %1041 = vector.load %arg12[%c3_445, %c0_446, %c1536_447] : memref<4x32x2048xbf16, #tpu.memory_space<vmem>>, vector<1x32x512xbf16>
    %1042 = vector.shape_cast %1041 : vector<1x32x512xbf16> to vector<32x512xbf16>
    %cst_448 = arith.constant dense<0.000000e+00> : vector<16x512xf32>
    %1043 = tpu.matmul %979, %1042, %cst_448 {dimension_numbers = #tpu.dot_dimension_numbers<[1], [0], [0], [1], [0, 0, 1, 1], [], []>} : vector<16x32xbf16>, vector<32x512xbf16>, vector<16x512xf32> -> vector<16x512xf32>
    %c3_449 = arith.constant 3 : index
    %c0_450 = arith.constant 0 : index
    %c1536_451 = arith.constant 1536 : index
    %1044 = vector.load %arg13[%c3_449, %c0_450, %c1536_451] : memref<4x1x2048xf32, #tpu.memory_space<vmem>>, vector<1x1x512xf32>
    %1045 = vector.shape_cast %1044 : vector<1x1x512xf32> to vector<1x512xf32>
    %1046 = vector.broadcast %1045 : vector<1x512xf32> to vector<16x512xf32>
    %1047 = arith.addf %1043, %1046 : vector<16x512xf32>
    %cst_452 = arith.constant 5.000000e-01 : f32
    %1048 = vector.broadcast %cst_452 : f32 to vector<16x512xf32>
    %1049 = arith.mulf %1048, %1047 : vector<16x512xf32>
    %cst_453 = arith.constant 0.707106769 : f32
    %1050 = vector.broadcast %cst_453 : f32 to vector<16x512xf32>
    %1051 = arith.mulf %1047, %1050 : vector<16x512xf32>
    %1052 = math.erf %1051 : vector<16x512xf32>
    %cst_454 = arith.constant 1.000000e+00 : f32
    %1053 = vector.broadcast %cst_454 : f32 to vector<16x512xf32>
    %1054 = arith.addf %1053, %1052 : vector<16x512xf32>
    %1055 = arith.mulf %1049, %1054 : vector<16x512xf32>
    %1056 = arith.truncf %1055 : vector<16x512xf32> to vector<16x512xbf16>
    %c3_455 = arith.constant 3 : index
    %c1536_456 = arith.constant 1536 : index
    %c0_457 = arith.constant 0 : index
    %1057 = vector.load %arg14[%c3_455, %c1536_456, %c0_457] : memref<4x2048x32xbf16, #tpu.memory_space<vmem>>, vector<1x512x32xbf16>
    %1058 = vector.shape_cast %1057 : vector<1x512x32xbf16> to vector<512x32xbf16>
    %cst_458 = arith.constant dense<0.000000e+00> : vector<16x32xf32>
    %1059 = tpu.matmul %1056, %1058, %cst_458 {dimension_numbers = #tpu.dot_dimension_numbers<[1], [0], [0], [1], [0, 0, 1, 1], [], []>} : vector<16x512xbf16>, vector<512x32xbf16>, vector<16x32xf32> -> vector<16x32xf32>
    %1060 = arith.addf %1040, %1059 : vector<16x32xf32>
    %c3_459 = arith.constant 3 : index
    %c0_460 = arith.constant 0 : index
    %c0_461 = arith.constant 0 : index
    %1061 = vector.load %arg15[%c3_459, %c0_460, %c0_461] : memref<4x1x32xf32, #tpu.memory_space<vmem>>, vector<1x1x32xf32>
    %1062 = vector.shape_cast %1061 : vector<1x1x32xf32> to vector<1x32xf32>
    %1063 = vector.broadcast %1062 : vector<1x32xf32> to vector<16x32xf32>
    %1064 = arith.addf %1060, %1063 : vector<16x32xf32>
    %1065 = arith.addf %978, %1064 : vector<16x32xf32>
    %c3_462 = arith.constant 3 : index
    %c0_463 = arith.constant 0 : index
    %c0_464 = arith.constant 0 : index
    %1066 = vector.load %arg16[%c3_462, %c0_463, %c0_464] : memref<4x1x32xf32, #tpu.memory_space<vmem>>, vector<1x1x32xf32>
    %1067 = vector.shape_cast %1066 : vector<1x1x32xf32> to vector<1x32xf32>
    %c3_465 = arith.constant 3 : index
    %c0_466 = arith.constant 0 : index
    %c0_467 = arith.constant 0 : index
    %1068 = vector.load %arg17[%c3_465, %c0_466, %c0_467] : memref<4x1x32xf32, #tpu.memory_space<vmem>>, vector<1x1x32xf32>
    %1069 = vector.shape_cast %1068 : vector<1x1x32xf32> to vector<1x32xf32>
    %cst_468 = arith.constant dense<0.000000e+00> : vector<16xf32>
    %1070 = vector.multi_reduction <add>, %1065, %cst_468 [1] : vector<16x32xf32> to vector<16xf32>
    %1071 = vector.shape_cast %1070 : vector<16xf32> to vector<16x1xf32>
    %cst_469 = arith.constant 3.200000e+01 : f32
    %1072 = vector.broadcast %cst_469 : f32 to vector<16x1xf32>
    %1073 = arith.divf %1071, %1072 : vector<16x1xf32>
    %1074 = vector.broadcast %1073 : vector<16x1xf32> to vector<16x32xf32>
    %1075 = arith.subf %1065, %1074 : vector<16x32xf32>
    %1076 = arith.mulf %1075, %1075 : vector<16x32xf32>
    %cst_470 = arith.constant dense<0.000000e+00> : vector<16xf32>
    %1077 = vector.multi_reduction <add>, %1076, %cst_470 [1] : vector<16x32xf32> to vector<16xf32>
    %1078 = vector.shape_cast %1077 : vector<16xf32> to vector<16x1xf32>
    %cst_471 = arith.constant 3.200000e+01 : f32
    %1079 = vector.broadcast %cst_471 : f32 to vector<16x1xf32>
    %1080 = arith.divf %1078, %1079 : vector<16x1xf32>
    %1081 = vector.broadcast %1073 : vector<16x1xf32> to vector<16x32xf32>
    %1082 = arith.subf %1065, %1081 : vector<16x32xf32>
    %cst_472 = arith.constant 9.99999974E-6 : f32
    %1083 = vector.broadcast %cst_472 : f32 to vector<16x1xf32>
    %1084 = arith.addf %1080, %1083 : vector<16x1xf32>
    %1085 = math.rsqrt %1084 : vector<16x1xf32>
    %1086 = vector.broadcast %1085 : vector<16x1xf32> to vector<16x32xf32>
    %1087 = arith.mulf %1082, %1086 : vector<16x32xf32>
    %1088 = vector.broadcast %1067 : vector<1x32xf32> to vector<16x32xf32>
    %1089 = arith.mulf %1087, %1088 : vector<16x32xf32>
    %1090 = vector.broadcast %1069 : vector<1x32xf32> to vector<16x32xf32>
    %1091 = arith.addf %1089, %1090 : vector<16x32xf32>
    %1092 = vector.shape_cast %1091 : vector<16x32xf32> to vector<1x16x32xf32>
    %1093 = vector.extract_strided_slice %1092 {offsets = [0, 0, 0], sizes = [1, 1, 32], strides = [1, 1, 1]} : vector<1x16x32xf32> to vector<1x1x32xf32>
    %1094 = vector.shape_cast %1093 : vector<1x1x32xf32> to vector<1x32xf32>
    %c0_473 = arith.constant 0 : index
    %c0_474 = arith.constant 0 : index
    %1095 = vector.load %arg18[%c0_473, %c0_474] : memref<32x128xf32, #tpu.memory_space<vmem>>, vector<32x128xf32>
    %cst_475 = arith.constant dense<0.000000e+00> : vector<1x128xf32>
    %1096 = tpu.matmul %1094, %1095, %cst_475 {dimension_numbers = #tpu.dot_dimension_numbers<[1], [0], [0], [1], [0, 0, 1, 1], [], []>} : vector<1x32xf32>, vector<32x128xf32>, vector<1x128xf32> -> vector<1x128xf32>
    %c0_476 = arith.constant 0 : index
    %c0_477 = arith.constant 0 : index
    %1097 = vector.load %arg19[%c0_476, %c0_477] : memref<1x128xf32, #tpu.memory_space<vmem>>, vector<1x128xf32>
    %1098 = arith.addf %1096, %1097 : vector<1x128xf32>
    %1099 = vector.shape_cast %1098 : vector<1x128xf32> to vector<1x1x128xf32>
    %c0_478 = arith.constant 0 : index
    %c0_479 = arith.constant 0 : index
    %c0_480 = arith.constant 0 : index
    %1100 = vector.load %arg20[%c0_478, %c0_479, %c0_480] : memref<1x1x128xf32, #tpu.memory_space<vmem>>, vector<1x1x128xf32>
    tpu.vector_store %arg20[%c0_478, %c0_479, %c0_480], %1099 {strides = array<i32>} : memref<1x1x128xf32, #tpu.memory_space<vmem>>, vector<1x1x128xf32>,
    return
  }
  func.func @transform_0(%arg0: i32) -> (i32, i32, i32) {
    %c0_i32 = arith.constant 0 : i32
    %c0_i32_0 = arith.constant 0 : i32
    %c0_i32_1 = arith.constant 0 : i32
    return %arg0, %c0_i32, %c0_i32_0 : i32, i32, i32
  }
  func.func @transform_1(%arg0: i32) -> (i32, i32, i32) {
    %c0_i32 = arith.constant 0 : i32
    %c0_i32_0 = arith.constant 0 : i32
    %c0_i32_1 = arith.constant 0 : i32
    return %arg0, %c0_i32, %c0_i32_0 : i32, i32, i32
  }
  func.func @transform_2(%arg0: i32) -> (i32, i32) {
    %c0_i32 = arith.constant 0 : i32
    %c0_i32_0 = arith.constant 0 : i32
    %c0_i32_1 = arith.constant 0 : i32
    return %c0_i32, %c0_i32_0 : i32, i32
  }
  func.func @transform_3(%arg0: i32) -> (i32, i32) {
    %c0_i32 = arith.constant 0 : i32
    %c0_i32_0 = arith.constant 0 : i32
    %c0_i32_1 = arith.constant 0 : i32
    return %c0_i32, %c0_i32_0 : i32, i32
  }
  func.func @transform_4(%arg0: i32) -> (i32, i32) {
    %c0_i32 = arith.constant 0 : i32
    %c0_i32_0 = arith.constant 0 : i32
    %c0_i32_1 = arith.constant 0 : i32
    return %c0_i32, %c0_i32_0 : i32, i32
  }
  func.func @transform_5(%arg0: i32) -> (i32, i32, i32) {
    %c0_i32 = arith.constant 0 : i32
    %c0_i32_0 = arith.constant 0 : i32
    %c0_i32_1 = arith.constant 0 : i32
    %c0_i32_2 = arith.constant 0 : i32
    return %c0_i32, %c0_i32_0, %c0_i32_1 : i32, i32, i32
  }
  func.func @transform_6(%arg0: i32) -> (i32, i32, i32) {
    %c0_i32 = arith.constant 0 : i32
    %c0_i32_0 = arith.constant 0 : i32
    %c0_i32_1 = arith.constant 0 : i32
    %c0_i32_2 = arith.constant 0 : i32
    return %c0_i32, %c0_i32_0, %c0_i32_1 : i32, i32, i32
  }
  func.func @transform_7(%arg0: i32) -> (i32, i32, i32) {
    %c0_i32 = arith.constant 0 : i32
    %c0_i32_0 = arith.constant 0 : i32
    %c0_i32_1 = arith.constant 0 : i32
    %c0_i32_2 = arith.constant 0 : i32
    return %c0_i32, %c0_i32_0, %c0_i32_1 : i32, i32, i32
  }
  func.func @transform_8(%arg0: i32) -> (i32, i32, i32) {
    %c0_i32 = arith.constant 0 : i32
    %c0_i32_0 = arith.constant 0 : i32
    %c0_i32_1 = arith.constant 0 : i32
    %c0_i32_2 = arith.constant 0 : i32
    return %c0_i32, %c0_i32_0, %c0_i32_1 : i32, i32, i32
  }
  func.func @transform_9(%arg0: i32) -> (i32, i32, i32) {
    %c0_i32 = arith.constant 0 : i32
    %c0_i32_0 = arith.constant 0 : i32
    %c0_i32_1 = arith.constant 0 : i32
    %c0_i32_2 = arith.constant 0 : i32
    return %c0_i32, %c0_i32_0, %c0_i32_1 : i32, i32, i32
  }
  func.func @transform_10(%arg0: i32) -> (i32, i32, i32) {
    %c0_i32 = arith.constant 0 : i32
    %c0_i32_0 = arith.constant 0 : i32
    %c0_i32_1 = arith.constant 0 : i32
    %c0_i32_2 = arith.constant 0 : i32
    return %c0_i32, %c0_i32_0, %c0_i32_1 : i32, i32, i32
  }
  func.func @transform_11(%arg0: i32) -> (i32, i32, i32) {
    %c0_i32 = arith.constant 0 : i32
    %c0_i32_0 = arith.constant 0 : i32
    %c0_i32_1 = arith.constant 0 : i32
    %c0_i32_2 = arith.constant 0 : i32
    return %c0_i32, %c0_i32_0, %c0_i32_1 : i32, i32, i32
  }
  func.func @transform_12(%arg0: i32) -> (i32, i32, i32) {
    %c0_i32 = arith.constant 0 : i32
    %c0_i32_0 = arith.constant 0 : i32
    %c0_i32_1 = arith.constant 0 : i32
    %c0_i32_2 = arith.constant 0 : i32
    return %c0_i32, %c0_i32_0, %c0_i32_1 : i32, i32, i32
  }
  func.func @transform_13(%arg0: i32) -> (i32, i32, i32) {
    %c0_i32 = arith.constant 0 : i32
    %c0_i32_0 = arith.constant 0 : i32
    %c0_i32_1 = arith.constant 0 : i32
    %c0_i32_2 = arith.constant 0 : i32
    return %c0_i32, %c0_i32_0, %c0_i32_1 : i32, i32, i32
  }
  func.func @transform_14(%arg0: i32) -> (i32, i32, i32) {
    %c0_i32 = arith.constant 0 : i32
    %c0_i32_0 = arith.constant 0 : i32
    %c0_i32_1 = arith.constant 0 : i32
    %c0_i32_2 = arith.constant 0 : i32
    return %c0_i32, %c0_i32_0, %c0_i32_1 : i32, i32, i32
  }
  func.func @transform_15(%arg0: i32) -> (i32, i32, i32) {
    %c0_i32 = arith.constant 0 : i32
    %c0_i32_0 = arith.constant 0 : i32
    %c0_i32_1 = arith.constant 0 : i32
    %c0_i32_2 = arith.constant 0 : i32
    return %c0_i32, %c0_i32_0, %c0_i32_1 : i32, i32, i32
  }
  func.func @transform_16(%arg0: i32) -> (i32, i32, i32) {
    %c0_i32 = arith.constant 0 : i32
    %c0_i32_0 = arith.constant 0 : i32
    %c0_i32_1 = arith.constant 0 : i32
    %c0_i32_2 = arith.constant 0 : i32
    return %c0_i32, %c0_i32_0, %c0_i32_1 : i32, i32, i32
  }
  func.func @transform_17(%arg0: i32) -> (i32, i32) {
    %c0_i32 = arith.constant 0 : i32
    %c0_i32_0 = arith.constant 0 : i32
    %c0_i32_1 = arith.constant 0 : i32
    return %c0_i32, %c0_i32_0 : i32, i32
  }
  func.func @transform_18(%arg0: i32) -> (i32, i32) {
    %c0_i32 = arith.constant 0 : i32
    %c0_i32_0 = arith.constant 0 : i32
    %c0_i32_1 = arith.constant 0 : i32
    return %c0_i32, %c0_i32_0 : i32, i32
  }
  func.func @transform_19(%arg0: i32) -> (i32, i32, i32) {
    %c0_i32 = arith.constant 0 : i32
    %c0_i32_0 = arith.constant 0 : i32
    %c0_i32_1 = arith.constant 0 : i32
    return %arg0, %c0_i32, %c0_i32_0 : i32, i32, i32
  }
}

</mosaic_0001>

<bundles_post_ra>
// kernel: tpu_custom_call.1
= control target key start
LH: loop header
LB: loop body
LE: loop exit
PB: predicated region body
PF: predicated region fallthrough
CT: control target
= control target key end

     0   :  { %s19919_s0 = inlined_call_operand.vmem [shape: f32[2,16,12], index: 0, kind: input, shape index: {}]   ;;  %s19920_s1 = inlined_call_operand.vmem [shape: f32[2,1,16], index: 1, kind: input, shape index: {}]   ;;  %s19921_s2 = inlined_call_operand.vmem [shape: f32[1,32], index: 2, kind: input, shape index: {}]   ;;  %s19922_s3 = inlined_call_operand.vmem [shape: bf16[12,32], index: 3, kind: input, shape index: {}]   ;;  %s19923_s4 = inlined_call_operand.vmem [shape: f32[1,32], index: 4, kind: input, shape index: {}]   ;;  %s19924_s5 = inlined_call_operand.vmem [shape: bf16[4,32,96], index: 5, kind: input, shape index: {}]   ;;  %s19925_s6 = inlined_call_operand.vmem [shape: f32[4,1,96], index: 6, kind: input, shape index: {}]   ;;  %s19926_s7 = inlined_call_operand.vmem [shape: bf16[4,32,32], index: 7, kind: input, shape index: {}]   ;;  %s19927_s8 = inlined_call_operand.vmem [shape: f32[4,1,32], index: 8, kind: input, shape index: {}]   ;;  %s19928_s9 = inlined_call_operand.vmem [shape: f32[4,1,32], index: 9, kind: input, shape index: {}]   ;;  %s19929_s10 = inlined_call_operand.vmem [shape: f32[4,1,32], index: 10, kind: input, shape index: {}]   ;;  %s19930_s11 = inlined_call_operand.vmem [shape: bf16[4,32,2048], index: 11, kind: input, shape index: {}]   ;;  %s19931_s12 = inlined_call_operand.vmem [shape: f32[4,1,2048], index: 12, kind: input, shape index: {}]   ;;  %s19932_s13 = inlined_call_operand.vmem [shape: bf16[4,2048,32], index: 13, kind: input, shape index: {}]   ;;  %s19933_s14 = inlined_call_operand.vmem [shape: f32[4,1,32], index: 14, kind: input, shape index: {}]   ;;  %s19934_s15 = inlined_call_operand.vmem [shape: f32[4,1,32], index: 15, kind: input, shape index: {}]   ;;  %s19935_s16 = inlined_call_operand.vmem [shape: f32[4,1,32], index: 16, kind: input, shape index: {}]   ;;  %s19936_s17 = inlined_call_operand.vmem [shape: f32[32,128], index: 17, kind: input, shape index: {}]   ;;  %s19937_s18 = inlined_call_operand.vmem [shape: f32[1,128], index: 18, kind: input, shape index: {}]   ;;  %s19938_s19 = inlined_call_operand.hbm [shape: f32[2,1,128], index: 19, kind: output, shape index: {}]  }
   0x1   :  { %19982 = sst [smem:[#allocation14_spill]] %s19919_s0 }
   0x2   :  { %19983 = sst [smem:[#allocation15_spill]] %s19920_s1 }
   0x3   :  { %19984 = sst [smem:[#allocation16_spill]] %s19921_s2 }
   0x4   :  { %19985 = sst [smem:[#allocation17_spill]] %s19922_s3 }
   0x5   :  { %19986 = sst [smem:[#allocation18_spill]] %s19923_s4 }
   0x6   :  { %19987 = sst [smem:[#allocation19_spill]] %s19926_s7 }
   0x7   :  { %19988 = sst [smem:[#allocation20_spill]] %s19927_s8 }
   0x8   :  { %19989 = sst [smem:[#allocation21_spill]] %s19936_s17 }
   0x9   :  { %19990 = sst [smem:[#allocation22_spill]] %s19937_s18 }
   0xa   :  { %19991 = sst [smem:[#allocation23_spill]] %s19938_s19 }
   0xb   :  { %24 = vsyncpa [#allocation3], 0 }
   0xc   :  { %26 = vsyncpa [#allocation3 + $0x1], 0  ;;  %s16621_s0 = smov 0   ;;  %s16623_s30 = smov 0  }
   0xd   :  { %s16625_s20 = smov 0   ;;  %s16627_s21 = smov 0  }
   0xe LB: > { %19992 = sst [smem:[#allocation5_spill]] %s16488_s0  ;;  %s16642_s1 = sadd.s32 4294967295, %s16500_s21   ;;  %s16500_s21 = sphi %s16627_s21, %s20046_s21   ;;  %s16496_s20 = sphi %s16625_s20, %s20049_s20   ;;  %s16492_s30 = sphi %s16623_s30, %s20048_s30   ;;  %s16488_s0 = sphi %s16621_s0, %s20047_s0  }
   0xf   : > { %19993 = sst [smem:[#allocation6_spill]] %s16492_s30  ;;  %s12604_s22 = sadd.s32 4294967294, %s16500_s21  }
  0x10   : > { %19994 = sst [smem:[#allocation7_spill]] %s16496_s20  ;;  %s16646_s2 = sadd.s32 1, %s16500_s21  }
  0x11   : > { %19995 = sst [smem:[#allocation8_spill]] %s16500_s21  ;;  %s448_s23 = sadd.s32 1, %s16496_s20 }
  0x12   : > { %19996 = sst [smem:[#allocation9_spill]] %s16642_s1  ;;  %s445_s24 = ssub.s32 %s16500_s21, %s16646_s2 }
  0x13   : > { %19997 = sst [smem:[#allocation10_spill]] %s16646_s2  ;;  %p458_p0 = scmp.ne.s32.totalorder %s16496_s20, %s16492_s30 }
  0x14   : > { %p446_p1 = scmp.eq.s32.totalorder %s445_s24, 0  ;;  %p459_p2 = scmp.eq.s32.totalorder %s16642_s1, 1 }
  0x15   : > { %p464_p3 = scmp.ne.s32.totalorder %s16492_s30, %s16488_s0  ;;  %p465_p4 = scmp.eq.s32.totalorder %s12604_s22, 1 }
  0x16   : > { %s16657_s25 = scalar_select %p446_p1, %s16496_s20, %s448_s23  }
  0x17   : > { %p16659_p5 = por %p459_p2, %p458_p0  ;;  %p16663_p6 = por %p465_p4, %p464_p3 }
  0x18   : > { %19998 = sst [smem:[#allocation11_spill]] %s16657_s25  ;;  %p12607_p7 = scmp.ge.s32.totalorder %s16500_s21, 1 }
  0x19   : > { %s19999_s3 = scalar_select %p16659_p5, 1, 0 }
  0x1a   : > { %s20001_s26 = scalar_select %p16663_p6, 1, 0 }
  0x1b   : > { %20000 = sst [smem:[#allocation12_spill]] %s19999_s3  ;;  %p548_p8 = scmp.lt.s32.totalorder %s16500_s21, 3 }
  0x1c   : > { %20002 = sst [smem:[#allocation13_spill]] %s20001_s26 }
  0x1d   : > { %p549_p9 = pnand %p12607_p7, %p548_p8 }
  0x1e   : > { %vm637_vm0 = vcmask (!%p549_p9), 1045504   ;;  %v16502_v0 = vmov (!%p549_p9), 0.0   ;;  %s20003_s29 = sld [smem:[#allocation17_spill]] (!%p549_p9)  ;;  %p606_p10 = scmp.lt.s32.totalorder (!%p549_p9), %s16642_s1, 1  ;;  %vm16503_vm1 = vmmov (!%p549_p9), 0   ;;  %vm633_vm2 = vcmask (!%p549_p9), 97280  }
  0x1f   : > { %552 = sbr.rel (%p549_p9) target bundleno = 13011 (0x32d3), region = 96  ;;  %15096 = vmatprep.subr.bf16.mxu0 (!%p549_p9), %v16502_v0  ;;  %15102 = vmatprep.subr.bf16.mxu1 (!%p549_p9), %v16502_v0  ;;  %s20004_s28 = sld [smem:[#allocation14_spill]] (!%p549_p9)  ;;  %v15493_v6 = vld [vmem:[%s19924_s5] sm:$0xff] (!%p549_p9)   ;;  %v682_v7 = vlaneseq (!%p549_p9)  ;;  %v15494_v9 = vld [vmem:[%s19924_s5 + $0x8] sm:$0xff] (!%p549_p9)   ;;  %vm744_vm4 = vcmask (!%p549_p9), 261120   ;;  %vm793_vm5 = vcmask (!%p549_p9), 64512  }
  0x20   : > { %15098 = vmatprep.mubr.msk.bf16.mxu0 (!%p549_p9), %vm16503_vm1, %v16502_v0  ;;  %15106 = vmatprep.mubr.msk.bf16.mxu1 (!%p549_p9), %vm16503_vm1, %v16502_v0  ;;  %s20005_s4 = sld [smem:[#allocation18_spill]] (!%p549_p9)  ;;  %v12614_v21 = vld [vmem:[%s19925_s6] ss:$0 sm:$0xff] (!%p549_p9)  ;;  %s19946_s27 = smov (!%p549_p9), 120   ;;  %vm851_vm6 = vcmask (!%p549_p9), 130048   ;;  %vm1325_vm7 = vcmask (!%p549_p9), 195584  }
  0x21   : > { %15103 = vmatpush3.bf16.msra.mxu1 (!%p549_p9), %v15493_v6  ;;  %v16693_v8 = vshrl.u32 (!%p549_p9), %v682_v7, 7  ;;  %s19942_s20 = smov (!%p549_p9), 80   ;;  %s19966_s25 = smov (!%p549_p9), 88  }
  0x22   : > { %15104 = vmatprep.subr.bf16.mxu1 (!%p549_p9), %v16502_v0  ;;  %s19956_s24 = smov (!%p549_p9), 112   ;;  %s20008_s7 = sld [smem:[#allocation19_spill]] (!%p549_p9) }
  0x23   : > { %v689_v10 = vand.u32 (!%p549_p9), 15, %v16693_v8  ;;  %s20009_s8 = sld [smem:[#allocation20_spill]] (!%p549_p9)  ;;  %s20012_s2 = smov (!%p549_p9), 112  }
  0x24   : > { %v15492_v1 = vld [vmem:[%s20003_s29] sm:$0x3f] (!%p549_p9)   ;;  %s20013_s26 = smov (!%p549_p9), 120   ;;  %s20020_s0 = smov (!%p549_p9), 40  }
  0x25   : > { %v639_v2 = vsel (!%p549_p9), %vm637_vm0, %v15492_v1, 0  ;;  %15105 = vmatpush3.bf16.msra.mxu1 (!%p549_p9), %v15494_v9  ;;  %vm709_vm3 = vcmp.eq.s32.totalorder (!%p549_p9), %v689_v10, 0  ;;  %s20021_s18 = smov (!%p549_p9), 8   ;;  %s20022_s30 = smov (!%p549_p9), 16  }
  0x26   : > { %s16680_s22 = scalar_select %p606_p10, %s16642_s1, 1  ;;  %15097 = vmatpush3.bf16.msra.mxu0 %v639_v2  ;;  %15116 = vmatprep.subr.bf16.mxu1 %v16502_v0  ;;  %v12610_v11 = vld [vmem:[%s20005_s4] ss:$0 sm:$0xff] }
  0x27   : > { %15110 = vmatprep.subr.bf16.mxu0 %v16502_v0  ;;  %s20018_s4 = smov 64   ;;  %s20023_s19 = smov 24  }
  0x28   : > { %s14296_s23 = sshll.u32 %s16680_s22, 4  ;;  %s20024_s3 = smov 40  }
  0x29   : > { %s610_s29 = scalar_lea.vmem %s20004_s28, %s14296_s23  ;;  %s19964_s28 = smov 96  }
  0x2a   : > { %v615_v3 = vld [vmem:[%s610_s29] sm:$0xff]  ;;  %v616_v4 = vld [vmem:[%s610_s29 + $0x8] sm:$0xff]  ;;  %s20006_s29 = sld [smem:[#allocation16_spill]]  ;;  %s19944_s23 = smov 104  }
  0x2b   : > { %v618_v5 = vpack.c.bf16 %v616_v4, %v615_v3  ;;  %s20026_s17 = smov 8   ;;  %s20035_s1 = sld [smem:[#allocation20_spill]] }
  0x2d   : > { %15099 = vmatmul.mubr.msk.bf16.vlgmr.msra.gmra.mrb[0].mxu0 %vm633_vm2, %v618_v5 }
  0x2e   : > { %15112 = vmatprep.mubr.msk.bf16.mxu0 %vm16503_vm1, %v16502_v0 }
  0x30   : > { %v12613_v12 = vld [vmem:[%s20006_s29] ss:$0 sm:$0xff]  ;;  %s19940_s29 = smov 72  }
 0x100   : > { %v675_v13 = vpop.f32.mrb[0].mxu0 }
 0x101   : > { %v676_v14 = vadd.f32 %v12610_v11, %v675_v13  ;;  %v15100_v15 = vpop.f32.mrb[1].mxu0 }
 0x102   : > { %v678_v16 = vpop.f32.mrb[2].mxu0 }
 0x103   : > { %v16706_v17 = vadd.f32 %v12610_v11, %v678_v16  ;;  %v16708_v18 = vsel %vm709_vm3, %v12613_v12, %v676_v14  ;;  %v15101_v19 = vpop.f32.mrb[3].mxu0 }
 0x105   : > { %v720_v20 = vpack.c.bf16 %v16706_v17, %v16708_v18 }
 0x107   : > { %15107 = vmatmul.mubr.msk.bf16.vlgmr.msra.gmra.mrb[0].mxu1 %vm744_vm4, %v720_v20 }
 0x108   : > { %15118 = vmatprep.mubr.msk.bf16.mxu1 %vm16503_vm1, %v16502_v0 }
 0x1da   : > { %v782_v22 = vpop.f32.mrb[0].mxu1 }
 0x1db   : > { %v15108_v23 = vpop.f32.mrb[1].mxu1  ;;  %v783_v25 = vadd.f32 %v12614_v21, %v782_v22 }
 0x1dc   : > { %v785_v24 = vpop.f32.mrb[2].mxu1 }
 0x1dd   : > { %v786_v26 = vadd.f32 %v12614_v21, %v785_v24  ;;  %v15109_v27 = vpop.f32.mrb[3].mxu1 }
 0x1df   : > { %v16718_v28 = vpack.c.bf16 %v786_v26, %v783_v25 }
 0x1e1   : > { %922 = vrot.lane.b32.xlu1 %v16718_v28, %s19946_s27  ;;  %791 = vrot.lane.b32.xlu0 %v16718_v28, %s19964_s28  ;;  %s20016_s28 = smov 72  }
 0x1e5   : > { %1049 = vrot.lane.b32.xlu1 %v16718_v28, %s19942_s20  ;;  %924 = vrot.lane.b32.xlu0 %v16718_v28, %s19966_s25  ;;  %s19952_s20 = smov 64   ;;  %s20019_s25 = smov 48  }
 0x1e9   : > { %1174 = vrot.lane.b32.xlu1 %v16718_v28, %s19940_s29  ;;  %1047 = vrot.lane.b32.xlu0 %v16718_v28, %s19956_s24  ;;  %s19950_s29 = smov 48   ;;  %s20010_s24 = smov 88  }
 0x1ed   : > { %1172 = vrot.lane.b32.xlu0 %v16718_v28, %s19944_s23  ;;  %s20007_s23 = sld [smem:[#allocation15_spill]] }
 0x1f3   : > { %s16759_s27 = scalar_lea.vmem %s20007_s23, %s16680_s22  ;;  %s19954_s22 = smov 56  }
 0x1f4   : > { %v12619_v40 = vld [vmem:[%s16759_s27] ss:$0 sm:$0xff]  ;;  %s19948_s23 = smov 40  }
 0x253   : > { %v792_v29 = vpop.permute.xlu0 %791  ;;  %v923_v32 = vpop.permute.xlu1 %922 }
 0x254   : > { %v798_v30 = vsel %vm793_vm5, %v792_v29, 0 }
 0x255   : > { %15111 = vmatpush3.bf16.xpose.msra.mxu0 %v798_v30 }
 0x256   : > { %15122 = vmatprep.subr.bf16.mxu0 %v16502_v0 }
 0x257   : > { %v925_v31 = vpop.permute.xlu0 %924  ;;  %v1050_v34 = vpop.permute.xlu1 %1049 }
 0x258   : > { %v930_v33 = vsel %vm793_vm5, %v925_v31, 0  ;;  %v1055_v35 = vsel %vm793_vm5, %v1050_v34, 0 }
 0x25b   : > { %v1175_v36 = vpop.permute.xlu1 %1174  ;;  %v1048_v37 = vpop.permute.xlu0 %1047 }
 0x25c   : > { %15113 = vmatmul.mubr.msk.bf16.vlgmr.msra.gmra.mrb[4].mxu0 %vm793_vm5, %v16718_v28  ;;  %v1180_v38 = vsel %vm793_vm5, %v1175_v36, 0 }
 0x25d   : > { %15123 = vmatpush3.bf16.xpose.msra.mxu0 %v930_v33  ;;  %15124 = vmatprep.mubr.msk.bf16.mxu0 %vm16503_vm1, %v16502_v0 }
 0x25e   : > { %15134 = vmatprep.subr.bf16.mxu0 %v16502_v0 }
 0x25f   : > { %v1173_v39 = vpop.permute.xlu0 %1172 }
 0x264   : > { %15125 = vmatmul.mubr.msk.bf16.vlgmr.msra.gmra.mrb[8].mxu0 %vm793_vm5, %v923_v32 }
 0x265   : > { %15135 = vmatpush3.bf16.xpose.msra.mxu0 %v1055_v35  ;;  %15136 = vmatprep.mubr.msk.bf16.mxu0 %vm16503_vm1, %v16502_v0 }
 0x266   : > { %15146 = vmatprep.subr.bf16.mxu0 %v16502_v0 }
 0x26c   : > { %15137 = vmatmul.mubr.msk.bf16.vlgmr.msra.gmra.mrb[12].mxu0 %vm793_vm5, %v1048_v37 }
 0x26d   : > { %15147 = vmatpush3.bf16.xpose.msra.mxu0 %v1180_v38  ;;  %15148 = vmatprep.mubr.msk.bf16.mxu0 %vm16503_vm1, %v16502_v0 }
 0x26e   : > { %15158 = vmatprep.subr.bf16.mxu0 %v16502_v0 }
 0x274   : > { %15149 = vmatmul.mubr.msk.bf16.vlgmr.msra.gmra.mrb[16].mxu0 %vm793_vm5, %v1173_v39 }
 0x275   : > { %15162 = vmatprep.mubr.msk.bf16.mxu0 %vm16503_vm1, %v16502_v0 }
 0x32f   : > { %v834_v41 = vpop.f32.mrb[4].mxu0 }
 0x330   : > { %v841_v42 = vmul.f32 0.35355338, %v834_v41  ;;  %v15114_v43 = vpop.f32.mrb[5].mxu0 }
 0x331   : > { %v837_v44 = vpop.f32.mrb[6].mxu0 }
 0x332   : > { %v842_v45 = vmul.f32 0.35355338, %v837_v44  ;;  %v15115_v46 = vpop.f32.mrb[7].mxu0  ;;  %v849_v47 = vadd.f32 %v12619_v40, %v841_v42 }
 0x334   : > { %v852_v48 = vsel %vm851_vm6, %v849_v47, -inf  ;;  %v850_v49 = vadd.f32 %v12619_v40, %v842_v45 }
 0x335   : > { %853 = vmax.xlane.f32.xlu1 %v852_v48 }
 0x336   : > { %v855_v50 = vsel %vm851_vm6, %v850_v49, -inf }
 0x337   : > { %856 = vmax.xlane.f32.xlu0 %v855_v50  ;;  %v966_v51 = vpop.f32.mrb[8].mxu0 }
 0x338   : > { %v973_v52 = vmul.f32 0.35355338, %v966_v51  ;;  %v15126_v53 = vpop.f32.mrb[9].mxu0 }
 0x339   : > { %v969_v54 = vpop.f32.mrb[10].mxu0 }
 0x33a   : > { %v974_v55 = vmul.f32 0.35355338, %v969_v54  ;;  %v15127_v56 = vpop.f32.mrb[11].mxu0  ;;  %v975_v57 = vadd.f32 %v12619_v40, %v973_v52 }
 0x33c   : > { %v977_v58 = vsel %vm851_vm6, %v975_v57, -inf  ;;  %v976_v59 = vadd.f32 %v12619_v40, %v974_v55 }
 0x33d   : > { %978 = vmax.xlane.f32.xlu0 %v977_v58 }
 0x33e   : > { %v980_v60 = vsel %vm851_vm6, %v976_v59, -inf }
 0x33f   : > { %981 = vmax.xlane.f32.xlu1 %v980_v60  ;;  %v1091_v61 = vpop.f32.mrb[12].mxu0 }
 0x340   : > { %v1098_v62 = vmul.f32 0.35355338, %v1091_v61  ;;  %v15138_v63 = vpop.f32.mrb[13].mxu0 }
 0x341   : > { %v1094_v1 = vpop.f32.mrb[14].mxu0 }
 0x342   : > { %v1099_v2 = vmul.f32 0.35355338, %v1094_v1  ;;  %v15139_v3 = vpop.f32.mrb[15].mxu0  ;;  %v1100_v4 = vadd.f32 %v12619_v40, %v1098_v62 }
 0x344   : > { %v1102_v5 = vsel %vm851_vm6, %v1100_v4, -inf  ;;  %v1101_v6 = vadd.f32 %v12619_v40, %v1099_v2 }
 0x345   : > { %1103 = vmax.xlane.f32.xlu0 %v1102_v5 }
 0x346   : > { %v1105_v7 = vsel %vm851_vm6, %v1101_v6, -inf }
 0x347   : > { %1106 = vmax.xlane.f32.xlu1 %v1105_v7  ;;  %v1216_v9 = vpop.f32.mrb[16].mxu0 }
 0x348   : > { %v1223_v10 = vmul.f32 0.35355338, %v1216_v9  ;;  %v15150_v11 = vpop.f32.mrb[17].mxu0 }
 0x349   : > { %v1219_v12 = vpop.f32.mrb[18].mxu0 }
 0x34a   : > { %v1224_v13 = vmul.f32 0.35355338, %v1219_v12  ;;  %v15151_v14 = vpop.f32.mrb[19].mxu0  ;;  %v1225_v15 = vadd.f32 %v12619_v40, %v1223_v10 }
 0x34c   : > { %v1227_v16 = vsel %vm851_vm6, %v1225_v15, -inf  ;;  %v1226_v19 = vadd.f32 %v12619_v40, %v1224_v13 }
 0x34d   : > { %1228 = vmax.xlane.f32.xlu0 %v1227_v16 }
 0x34e   : > { %v1230_v20 = vsel %vm851_vm6, %v1226_v19, -inf }
 0x34f   : > { %1231 = vmax.xlane.f32.xlu1 %v1230_v20 }
 0x3c2   : > { %v854_v21 = vpop.xlane.xlu1 %853 }
 0x3c3   : > { %v858_v22 = vsub.f32 %v849_v47, %v854_v21 }
 0x3c4   : > { %v857_v23 = vpop.xlane.xlu0 %856 }
 0x3c5   : > { %v860_v24 = vmul.f32 1.442695, %v858_v22  ;;  %v859_v25 = vsub.f32 %v850_v49, %v857_v23 }
 0x3c7   : > { %16021 = vpow2.f32 %v860_v24  ;;  %v862_v26 = vmul.f32 1.442695, %v859_v25 }
 0x3c9   : > { %16023 = vpow2.f32 %v862_v26 }
 0x3ca   : > { %v979_v27 = vpop.xlane.xlu0 %978 }
 0x3cb   : > { %v983_v29 = vsub.f32 %v975_v57, %v979_v27 }
 0x3cc   : > { %v982_v37 = vpop.xlane.xlu1 %981 }
 0x3cd   : > { %v985_v30 = vmul.f32 1.442695, %v983_v29  ;;  %v984_v38 = vsub.f32 %v976_v59, %v982_v37 }
 0x3cf   : > { %16025 = vpow2.f32 %v985_v30  ;;  %v987_v41 = vmul.f32 1.442695, %v984_v38 }
 0x3d1   : > { %v16022_v31 = vpop.eup %16021  ;;  %16027 = vpow2.f32 %v987_v41  ;;  %v15495_v41 = vld [vmem:[%s20008_s7] sm:$0xff]  }
 0x3d2   : > { %v864_v32 = vsel %vm851_vm6, %v16022_v31, 0.0  ;;  %v1104_v40 = vpop.xlane.xlu0 %1103  ;;  %15159 = vmatpush3.bf16.msra.mxu0 %v15495_v41 }
 0x3d3   : > { %v16024_v33 = vpop.eup %16023  ;;  %865 = vadd.xlane.f32.xlu0 %v864_v32  ;;  %v1108_v44 = vsub.f32 %v1100_v4, %v1104_v40  ;;  %15160 = vmatprep.subr.bf16.mxu0 %v16502_v0 }
 0x3d4   : > { %v867_v34 = vsel %vm851_vm6, %v16024_v33, 0.0  ;;  %v1107_v39 = vpop.xlane.xlu1 %1106 }
 0x3d5   : > { %868 = vadd.xlane.f32.xlu1 %v867_v34  ;;  %v1109_v42 = vsub.f32 %v1101_v6, %v1107_v39  ;;  %v1110_v48 = vmul.f32 1.442695, %v1108_v44 }
 0x3d7   : > { %v1112_v46 = vmul.f32 1.442695, %v1109_v42 }
 0x3d9   : > { %v16772_v35 = vpop.eup %16025  ;;  %16029 = vpow2.f32 %v1112_v46  ;;  %v15496_v46 = vld [vmem:[%s20008_s7 + $0x8] sm:$0xff]  }
 0x3da   : > { %v989_v36 = vsel %vm851_vm6, %v16772_v35, 0.0  ;;  %v1229_v45 = vpop.xlane.xlu0 %1228  ;;  %16031 = vpow2.f32 %v1110_v48  ;;  %15161 = vmatpush3.bf16.msra.mxu0 %v15496_v46  ;;  %v1711_v46 = vld [vmem:[%s19930_s11 + $0x10] sm:$0xff] }
 0x3db   : > { %990 = vadd.xlane.f32.xlu0 %v989_v36  ;;  %v1233_v49 = vsub.f32 %v1225_v15, %v1229_v45  ;;  %v16028_v52 = vpop.eup %16027 }
 0x3dc   : > { %v1232_v43 = vpop.xlane.xlu1 %1231  ;;  %v992_v53 = vsel %vm851_vm6, %v16028_v52, 0.0 }
 0x3dd   : > { %v1234_v47 = vsub.f32 %v1226_v19, %v1232_v43  ;;  %v1235_v51 = vmul.f32 1.442695, %v1233_v49 }
 0x3df   : > { %v1237_v50 = vmul.f32 1.442695, %v1234_v47 }
 0x3e1   : > { %16033 = vpow2.f32 %v1237_v50 }
 0x3e2   : > { %16035 = vpow2.f32 %v1235_v51 }
 0x3e3   : > { %v16030_v54 = vpop.eup %16029 }
 0x3e4   : > { %v16032_v55 = vpop.eup %16031  ;;  %v1117_v56 = vsel %vm851_vm6, %v16030_v54, 0.0 }
 0x3e5   : > { %v1114_v58 = vsel %vm851_vm6, %v16032_v55, 0.0 }
 0x3e6   : > { %1000 = vrot.lane.b32.xlu1 %v16718_v28, %s19954_s22  ;;  %s20011_s22 = smov 96  }
 0x3eb   : > { %v16782_v57 = vpop.eup %16033 }
 0x3ec   : > { %v16036_v59 = vpop.eup %16035  ;;  %v1242_v60 = vsel %vm851_vm6, %v16782_v57, 0.0 }
 0x3ed   : > { %v1239_v61 = vsel %vm851_vm6, %v16036_v59, 0.0 }
 0x3f1   : > { %875 = vrot.lane.b32.xlu0 %v16718_v28, %s19952_s20  ;;  %s19962_s20 = smov 8  }
 0x40a   : > { %993 = vadd.xlane.f32.xlu1 %v992_v53 }
 0x40e   : > { %1118 = vadd.xlane.f32.xlu1 %v1117_v56 }
 0x410   : > { %1115 = vadd.xlane.f32.xlu0 %v1114_v58 }
 0x412   : > { %1243 = vadd.xlane.f32.xlu1 %v1242_v60 }
 0x414   : > { %1240 = vadd.xlane.f32.xlu0 %v1239_v61 }
 0x423   : > { %1125 = vrot.lane.b32.xlu1 %v16718_v28, %s19950_s29  ;;  %s19960_s29 = smov 16  }
 0x42a   : > { %1250 = vrot.lane.b32.xlu0 %v16718_v28, %s19948_s23  ;;  %s19958_s23 = smov 24  }
 0x460   : > { %v866_v62 = vpop.xlane.xlu0 %865 }
 0x461   : > { %16037 = vrcp.f32 %v866_v62 }
 0x462   : > { %v869_v63 = vpop.xlane.xlu1 %868 }
 0x463   : > { %16039 = vrcp.f32 %v869_v63 }
 0x466   : > { %v1001_v9 = vpop.permute.xlu1 %1000 }
 0x468   : > { %v991_v1 = vpop.xlane.xlu0 %990 }
 0x469   : > { %16041 = vrcp.f32 %v991_v1 }
 0x46b   : > { %v16038_v2 = vpop.eup %16037 }
 0x46c   : > { %v876_v3 = vpop.permute.xlu0 %875  ;;  %v872_v5 = vmul.f32 %v16038_v2, %v16022_v31 }
 0x46d   : > { %v16040_v4 = vpop.eup %16039  ;;  %15117 = vmatpush3.bf16.msra.mxu1 %v876_v3 }
 0x46e   : > { %v873_v6 = vmul.f32 %v16040_v4, %v16024_v33  ;;  %15128 = vmatprep.subr.bf16.mxu1 %v16502_v0 }
 0x470   : > { %v874_v7 = vpack.c.bf16 %v873_v6, %v872_v5 }
 0x472   : > { %15119 = vmatmul.mubr.msk.bf16.vlgmr.msra.gmra.mrb[4].mxu1 %vm851_vm6, %v874_v7 }
 0x473   : > { %15129 = vmatpush3.bf16.msra.mxu1 %v1001_v9  ;;  %15130 = vmatprep.mubr.msk.bf16.mxu1 %vm16503_vm1, %v16502_v0  ;;  %v16042_v12 = vpop.eup %16041  ;;  %v12627_v9 = vld [vmem:[%s20009_s8] ss:$0 sm:$0xff] }
 0x474   : > { %15140 = vmatprep.subr.bf16.mxu1 %v16502_v0  ;;  %v997_v16 = vmul.f32 %v16042_v12, %v16772_v35 }
 0x497   : > { %v994_v28 = vpop.xlane.xlu1 %993 }
 0x498   : > { %16043 = vrcp.f32 %v994_v28 }
 0x49b   : > { %v1119_v10 = vpop.xlane.xlu1 %1118 }
 0x49c   : > { %16045 = vrcp.f32 %v1119_v10 }
 0x49d   : > { %v1116_v11 = vpop.xlane.xlu0 %1115 }
 0x49e   : > { %16047 = vrcp.f32 %v1116_v11 }
 0x49f   : > { %v1244_v13 = vpop.xlane.xlu1 %1243 }
 0x4a1   : > { %v1241_v14 = vpop.xlane.xlu0 %1240 }
 0x4a2   : > { %v16044_v15 = vpop.eup %16043  ;;  %16049 = vrcp.f32 %v1241_v14 }
 0x4a3   : > { %v998_v19 = vmul.f32 %v16044_v15, %v16028_v52  ;;  %16051 = vrcp.f32 %v1244_v13  ;;  %v1126_v22 = vpop.permute.xlu1 %1125 }
 0x4a5   : > { %v999_v20 = vpack.c.bf16 %v998_v19, %v997_v16  ;;  %v1251_v29 = vpop.permute.xlu0 %1250 }
 0x4a6   : > { %v16046_v21 = vpop.eup %16045 }
 0x4a7   : > { %15131 = vmatmul.mubr.msk.bf16.vlgmr.msra.gmra.mrb[8].mxu1 %vm851_vm6, %v999_v20  ;;  %v1123_v25 = vmul.f32 %v16046_v21, %v16030_v54 }
 0x4a8   : > { %v16048_v23 = vpop.eup %16047  ;;  %15141 = vmatpush3.bf16.msra.mxu1 %v1126_v22  ;;  %15142 = vmatprep.mubr.msk.bf16.mxu1 %vm16503_vm1, %v16502_v0 }
 0x4a9   : > { %v1122_v24 = vmul.f32 %v16048_v23, %v16032_v55  ;;  %15152 = vmatprep.subr.bf16.mxu1 %v16502_v0 }
 0x4ab   : > { %v1124_v26 = vpack.c.bf16 %v1123_v25, %v1122_v24 }
 0x4ac   : > { %v16050_v27 = vpop.eup %16049 }
 0x4ad   : > { %v16052_v30 = vpop.eup %16051  ;;  %v1247_v31 = vmul.f32 %v16050_v27, %v16036_v59 }
 0x4ae   : > { %v1248_v32 = vmul.f32 %v16052_v30, %v16782_v57 }
 0x4af   : > { %15143 = vmatmul.mubr.msk.bf16.vlgmr.msra.gmra.mrb[12].mxu1 %vm851_vm6, %v1124_v26 }
 0x4b0   : > { %15153 = vmatpush3.bf16.msra.mxu1 %v1251_v29  ;;  %15154 = vmatprep.mubr.msk.bf16.mxu1 %vm16503_vm1, %v16502_v0  ;;  %v1249_v33 = vpack.c.bf16 %v1248_v32, %v1247_v31  ;;  %v1446_v31 = vld [vmem:[%s19930_s11 + $0x40] sm:$0xff]  ;;  %v1445_v32 = vld [vmem:[%s19930_s11 + $0x8] sm:$0xff] }
 0x4b7   : > { %15155 = vmatmul.mubr.msk.bf16.vlgmr.msra.gmra.mrb[16].mxu1 %vm851_vm6, %v1249_v33 }
 0x545   : > { %v915_v34 = vpop.f32.mrb[4].mxu1 }
 0x546   : > { %v15120_v35 = vpop.f32.mrb[5].mxu1 }
 0x547   : > { %v918_v36 = vpop.f32.mrb[6].mxu1 }
 0x548   : > { %v15121_v37 = vpop.f32.mrb[7].mxu1 }
 0x57a   : > { %v1040_v38 = vpop.f32.mrb[8].mxu1 }
 0x57b   : > { %v15132_v39 = vpop.f32.mrb[9].mxu1 }
 0x57c   : > { %v1043_v40 = vpop.f32.mrb[10].mxu1  ;;  %v1450_v39 = vld [vmem:[%s19930_s11 + $0xc0] sm:$0xff] }
 0x57d   : > { %v15432_v42 = vpack.i.bf16 %v1043_v40, %v1040_v38  ;;  %v15133_v43 = vpop.f32.mrb[11].mxu1  ;;  %v1448_v38 = vld [vmem:[%s19930_s11 + $0x80] sm:$0xff]  ;;  %v1449_v40 = vld [vmem:[%s19930_s11 + $0x88] sm:$0xff] }
 0x57e   : > { %v12638_v41 = vcombine.high %v1448_v38, %v1450_v39  ;;  %v12637_v43 = vcombine.low %v1448_v38, %v1450_v39  ;;  %v15517_v38 = vld [vmem:[%s19932_s13 + $0x168] sm:$0xff]  }
 0x57f   : > { %15433 = vrot.lane.b32.xlu1 %v15432_v42, %s19962_s20  ;;  %v1451_v42 = vld [vmem:[%s19930_s11 + $0xc8] sm:$0xff]  ;;  %s20017_s20 = smov 56  }
 0x580   : > { %v15518_v39 = vld [vmem:[%s19932_s13 + $0x1e8] sm:$0xff]  }
 0x582   : > { %v1165_v44 = vpop.f32.mrb[12].mxu1 }
 0x583   : > { %v15144_v45 = vpop.f32.mrb[13].mxu1 }
 0x584   : > { %v1168_v47 = vpop.f32.mrb[14].mxu1  ;;  %v12640_v45 = vcombine.high %v1449_v40, %v1451_v42 }
 0x585   : > { %v15437_v48 = vpack.i.bf16 %v1168_v47, %v1165_v44  ;;  %v15145_v49 = vpop.f32.mrb[15].mxu1  ;;  %v12639_v44 = vcombine.low %v1449_v40, %v1451_v42  ;;  %v1713_v47 = vld [vmem:[%s19930_s11 + $0x50] sm:$0xff]  ;;  %v15519_v40 = vld [vmem:[%s19932_s13 + $0x128] sm:$0xff]  }
 0x586   : > { %v16518_v49 = vmov 0   ;;  %v15521_v42 = vld [vmem:[%s19932_s13 + $0x170] sm:$0xff]  }
 0x587   : > { %15438 = vrot.lane.b32.xlu0 %v15437_v48, %s19960_s29  ;;  %v1712_v48 = vld [vmem:[%s19930_s11 + $0x18] sm:$0xff]  ;;  %1549 = vmatprep.mubr.bf16.mxu1 %v16518_v49  ;;  %s20014_s29 = smov 104  }
 0x58a   : > { %v1290_v50 = vpop.f32.mrb[16].mxu1 }
 0x58b   : > { %v15156_v51 = vpop.f32.mrb[17].mxu1 }
 0x58c   : > { %v1293_v52 = vpop.f32.mrb[18].mxu1  ;;  %v1714_v51 = vld [vmem:[%s19930_s11 + $0x58] sm:$0xff] }
 0x58d   : > { %v15442_v53 = vpack.i.bf16 %v1293_v52, %v1290_v50  ;;  %v15157_v54 = vpop.f32.mrb[19].mxu1  ;;  %v12644_v50 = vcombine.high %v1711_v46, %v1713_v47  ;;  %v12643_v52 = vcombine.low %v1711_v46, %v1713_v47  ;;  %v15525_v46 = vld [vmem:[%s19932_s13 + $0x178] sm:$0xff]  }
 0x58e   : > { %v12646_v54 = vcombine.high %v1712_v48, %v1714_v51  ;;  %v15526_v47 = vld [vmem:[%s19932_s13 + $0x1f8] sm:$0xff]  }
 0x58f   : > { %15443 = vrot.lane.b32.xlu1 %v15442_v53, %s19958_s23  ;;  %v12645_v53 = vcombine.low %v1712_v48, %v1714_v51  ;;  %v15527_v48 = vld [vmem:[%s19932_s13 + $0x138] sm:$0xff]   ;;  %v15529_v51 = vld [vmem:[%s19932_s13 + $0x40] sm:$0xff]   ;;  %s20015_s23 = smov 80  }
 0x5f1   : > { %v15434_v55 = vpop.permute.xlu1 %15433 }
 0x5f2   : > { %v15436_v57 = vunpack.i.h.bf16 %v15434_v55  ;;  %v15435_v58 = vunpack.i.l.bf16 %v15434_v55 }
 0x5f4   : > { %v1322_v62 = vsel %vm793_vm5, %v918_v36, %v15436_v57  ;;  %v1321_v63 = vsel %vm793_vm5, %v915_v34, %v15435_v58  ;;  %v1447_v34 = vld [vmem:[%s19930_s11 + $0x48] sm:$0xff] }
 0x5f5   : > { %v12635_v36 = vcombine.low %v1445_v32, %v1447_v34  ;;  %v12636_v37 = vcombine.high %v1445_v32, %v1447_v34  ;;  %v15511_v32 = vld [vmem:[%s19932_s13 + $0x118] sm:$0xff]   ;;  %v15513_v34 = vld [vmem:[%s19932_s13 + $0x160] sm:$0xff]  }
 0x5f7   : > { %1560 = vmatprep.subr.bf16.mxu0 %v12636_v37  ;;  %v15516_v37 = vld [vmem:[%s19932_s13 + $0x1a0] sm:$0xff]  }
 0x5f9   : > { %v15439_v56 = vpop.permute.xlu0 %15438 }
 0x5fa   : > { %v15441_v59 = vunpack.i.h.bf16 %v15439_v56  ;;  %v15440_v60 = vunpack.i.l.bf16 %v15439_v56 }
 0x5fc   : > { %v1323_v3 = vsel %vm851_vm6, %v1321_v63, %v15440_v60  ;;  %v1324_v4 = vsel %vm851_vm6, %v1322_v62, %v15441_v59  ;;  %v12631_v63 = vld [vmem:[%s19928_s9] ss:$0 sm:$0xff] }
 0x601   : > { %v15444_v61 = vpop.permute.xlu1 %15443 }
 0x602   : > { %v15446_v1 = vunpack.i.h.bf16 %v15444_v61  ;;  %v15445_v2 = vunpack.i.l.bf16 %v15444_v61 }
 0x604   : > { %v1326_v5 = vsel %vm1325_vm7, %v1323_v3, %v15445_v2  ;;  %v1327_v6 = vsel %vm1325_vm7, %v1324_v4, %v15446_v1  ;;  %v12632_v4 = vld [vmem:[%s19929_s10] ss:$0 sm:$0xff] }
 0x605   : > { %v1328_v7 = vpack.c.bf16 %v1327_v6, %v1326_v5  ;;  %v1715_v6 = vld [vmem:[%s19930_s11 + $0x90] sm:$0xff] }
 0x607   : > { %15163 = vmatmul.mubr.msk.bf16.vlgmr.msra.gmra.mrb[20].mxu0 %vm744_vm4, %v1328_v7  ;;  %v1717_v7 = vld [vmem:[%s19930_s11 + $0xd0] sm:$0xff] }
 0x608   : > { %1561 = vmatpush1.bf16.msra.mxu0 %v12635_v36  ;;  %1592 = vmatprep.mubr.bf16.mxu0 %v16518_v49  ;;  %v15515_v36 = vld [vmem:[%s19932_s13 + $0x120] sm:$0xff]  }
 0x609   : > { %1562 = vmatprep.subr.bf16.mxu0 %v12640_v45  ;;  %v15524_v45 = vld [vmem:[%s19932_s13 + $0x1b0] sm:$0xff]  }
 0x60c   : > { %1563 = vmatpush1.bf16.msra.mxu0 %v12639_v44  ;;  %v15523_v44 = vld [vmem:[%s19932_s13 + $0x130] sm:$0xff]  }
 0x60d   : > { %1824 = vmatprep.subr.bf16.mxu0 %v12646_v54  ;;  %v17013_v54 = vsub.s32 2, %v16693_v8 }
 0x6da   : > { %v1389_v28 = vpop.f32.mrb[20].mxu0 }
 0x6db   : > { %v1390_v10 = vadd.f32 %v12627_v9, %v1389_v28  ;;  %v15164_v11 = vpop.f32.mrb[21].mxu0  ;;  %v1718_v28 = vld [vmem:[%s19930_s11 + $0xd8] sm:$0xff] }
 0x6dc   : > { %v1392_v12 = vpop.f32.mrb[22].mxu0 }
 0x6dd   : > { %v1393_v13 = vadd.f32 %v12627_v9, %v1392_v12  ;;  %v15165_v14 = vpop.f32.mrb[23].mxu0  ;;  %v1396_v15 = vadd.f32 %v1390_v10, %v16708_v18  ;;  %v1716_v9 = vld [vmem:[%s19930_s11 + $0x98] sm:$0xff] }
 0x6de   : > { %v12650_v14 = vcombine.high %v1716_v9, %v1718_v28 }
 0x6df   : > { %v1400_v16 = vsel %vm744_vm4, %v1396_v15, 0.0  ;;  %v1397_v19 = vadd.f32 %v1393_v13, %v16706_v17  ;;  %v1444_v17 = vld [vmem:[%s19930_s11] sm:$0xff]  ;;  %v12648_v13 = vcombine.high %v1715_v6, %v1717_v7 }
 0x6e0   : > { %1401 = vadd.xlane.f32.xlu0 %v1400_v16  ;;  %v12634_v33 = vcombine.high %v1444_v17, %v1446_v31  ;;  %v12633_v35 = vcombine.low %v1444_v17, %v1446_v31  ;;  %v12649_v16 = vcombine.low %v1716_v9, %v1718_v28  ;;  %v15509_v17 = vld [vmem:[%s19932_s13 + $0x158] sm:$0xff]  }
 0x6e1   : > { %v1403_v20 = vsel %vm744_vm4, %v1397_v19, 0.0  ;;  %v15510_v31 = vld [vmem:[%s19932_s13 + $0x1d8] sm:$0xff]  }
 0x6e2   : > { %1404 = vadd.xlane.f32.xlu1 %v1403_v20  ;;  %1517 = vmatprep.subr.bf16.mxu1 %v12634_v33  ;;  %v15498_v20 = vld [vmem:[%s19932_s13 + $0x1c0] sm:$0xff]   ;;  %v15512_v33 = vld [vmem:[%s19932_s13 + $0x198] sm:$0xff]  }
 0x6e3   : > { %1518 = vmatpush1.bf16.msra.mxu1 %v12633_v35  ;;  %v15514_v35 = vld [vmem:[%s19932_s13 + $0x1e0] sm:$0xff]  }
 0x6e4   : > { %1519 = vmatprep.subr.bf16.mxu1 %v12638_v41  ;;  %v15520_v41 = vld [vmem:[%s19932_s13 + $0x1a8] sm:$0xff]  }
 0x6e7   : > { %1520 = vmatpush1.bf16.msra.mxu1 %v12637_v43  ;;  %v15522_v43 = vld [vmem:[%s19932_s13 + $0x1f0] sm:$0xff]  }
 0x6e8   : > { %1781 = vmatprep.subr.bf16.mxu1 %v12644_v50  ;;  %v15528_v50 = vld [vmem:[%s19932_s13 + $0x1b8] sm:$0xff]  }
 0x76d   : > { %v1402_v21 = vpop.xlane.xlu0 %1401 }
 0x76e   : > { %v1407_v22 = vmul.f32 0.03125, %v1402_v21  ;;  %v15499_v21 = vld [vmem:[%s19932_s13 + $0x100] sm:$0xff]  }
 0x76f   : > { %v1405_v23 = vpop.xlane.xlu1 %1404 }
 0x770   : > { %v1409_v24 = vsub.f32 %v1396_v15, %v1407_v22  ;;  %v1408_v25 = vmul.f32 0.03125, %v1405_v23  ;;  %v12647_v15 = vcombine.low %v1715_v6, %v1717_v7  ;;  %v15500_v22 = vld [vmem:[%s19932_s13 + $0x180] sm:$0xff]   ;;  %v15501_v23 = vld [vmem:[%s19932_s13 + $0x148] sm:$0xff]  }
 0x772   : > { %v1410_v26 = vsub.f32 %v1397_v19, %v1408_v25  ;;  %v1411_v27 = vmul.f32 %v1409_v24, %v1409_v24  ;;  %v15497_v19 = vld [vmem:[%s19932_s13 + $0x140] sm:$0xff]   ;;  %v15503_v25 = vld [vmem:[%s19932_s13 + $0x108] sm:$0xff]  }
 0x774   : > { %v1413_v29 = vsel %vm744_vm4, %v1411_v27, 0.0  ;;  %v1412_v30 = vmul.f32 %v1410_v26, %v1410_v26  ;;  %v15505_v27 = vld [vmem:[%s19932_s13 + $0x150] sm:$0xff]  }
 0x775   : > { %1414 = vadd.xlane.f32.xlu0 %v1413_v29  ;;  %v15506_v29 = vld [vmem:[%s19932_s13 + $0x1d0] sm:$0xff]  }
 0x776   : > { %v1416_v18 = vsel %vm744_vm4, %v1412_v30, 0.0  ;;  %v15507_v30 = vld [vmem:[%s19932_s13 + $0x110] sm:$0xff]  }
 0x779   : > { %1417 = vadd.xlane.f32.xlu0 %v1416_v18  ;;  %v15508_v18 = vld [vmem:[%s19932_s13 + $0x190] sm:$0xff]  }
 0x802   : > { %v1415_v55 = vpop.xlane.xlu0 %1414 }
 0x803   : > { %v1419_v56 = vmul.f32 0.03125, %v1415_v55  ;;  %v17016_v55 = vsub.s32 1, %v16693_v8 }
 0x805   : > { %v1421_v57 = vadd.f32 1e-05, %v1419_v56  ;;  %v17019_v56 = vsub.s32 3, %v16693_v8 }
 0x806   : > { %v1418_v58 = vpop.xlane.xlu0 %1417 }
 0x807   : > { %16053 = vrsqrt.f32 %v1421_v57  ;;  %v1420_v59 = vmul.f32 0.03125, %v1418_v58  ;;  %v1452_v57 = vld [vmem:[%s19931_s12] sm:$0xf] }
 0x809   : > { %v1422_v60 = vadd.f32 1e-05, %v1420_v59  ;;  %v1465_v59 = vrot.slane %v1452_v57, %v17013_v54 }
 0x80b   : > { %16055 = vrsqrt.f32 %v1422_v60  ;;  %v1461_v60 = vrot.slane %v1452_v57, %v17016_v55 }
 0x811   : > { %v16054_v61 = vpop.eup %16053 }
 0x812   : > { %v1425_v62 = vmul.f32 %v16054_v61, %v1409_v24  ;;  %v15502_v24 = vld [vmem:[%s19932_s13 + $0x1c8] sm:$0xff]   ;;  %v1469_v61 = vrot.slane %v1452_v57, %v17019_v56 }
 0x814   : > { %v1433_v2 = vmul.f32 %v12631_v63, %v1425_v62 }
 0x815   : > { %v16056_v1 = vpop.eup %16055 }
 0x816   : > { %v1426_v3 = vmul.f32 %v16056_v1, %v1410_v26  ;;  %v16889_v10 = vadd.f32 %v12632_v4, %v1433_v2  ;;  %v15504_v26 = vld [vmem:[%s19932_s13 + $0x188] sm:$0xff]  }
 0x818   : > { %v1434_v5 = vmul.f32 %v12631_v63, %v1426_v3 }
 0x81a   : > { %v16891_v11 = vadd.f32 %v12632_v4, %v1434_v5 }
 0x81c   : > { %v16895_v12 = vpack.c.bf16 %v16891_v11, %v16889_v10 }
 0x81e   : > { %12641 = vmatmul.mubr.msk.bf16.vlgmr.msra.gmra.mrb[20].mxu1 %vm744_vm4, %v16895_v12  ;;  %12642 = vmatmul.mubr.msk.bf16.vlgmr.msra.gmra.mrb[24].mxu0 %vm744_vm4, %v16895_v12 }
 0x81f   : > { %1782 = vmatpush1.bf16.msra.mxu1 %v12643_v52  ;;  %1825 = vmatpush1.bf16.msra.mxu0 %v12645_v53  ;;  %v15530_v52 = vld [vmem:[%s19932_s13 + $0xc0] sm:$0xff]   ;;  %v17010_v53 = vsub.s32 0, %v16693_v8 }
 0x820   : > { %1783 = vmatprep.subr.bf16.mxu1 %v12648_v13  ;;  %1826 = vmatprep.subr.bf16.mxu0 %v12650_v14  ;;  %v1719_v8 = vld [vmem:[%s19931_s12 + $0x4] sm:$0xf] }
 0x821   : > { %1813 = vmatprep.mubr.bf16.mxu1 %v16518_v49  ;;  %1856 = vmatprep.mubr.bf16.mxu0 %v16518_v49  ;;  %v1457_v58 = vrot.slane %v1452_v57, %v17010_v53 }
 0x823   : > { %1784 = vmatpush1.bf16.msra.mxu1 %v12647_v15  ;;  %1827 = vmatpush1.bf16.msra.mxu0 %v12649_v16  ;;  %v1724_v16 = vrot.slane %v1719_v8, %v17010_v53 }
 0x824   : > { %14321 = vmatprep.subr.bf16.mxu1 %v15497_v19  ;;  %14343 = vmatprep.subr.bf16.mxu0 %v15498_v20 }
 0x826   : > { %12651 = vmatmul.mubr.msk.bf16.vlgmr.msra.gmra.mrb[24].mxu1 %vm744_vm4, %v16895_v12  ;;  %12652 = vmatmul.mubr.msk.bf16.vlgmr.msra.gmra.mrb[28].mxu0 %vm744_vm4, %v16895_v12 }
 0x827   : > { %14322 = vmatpush3.bf16.msra.mxu1 %v15499_v21  ;;  %14344 = vmatpush3.bf16.msra.mxu0 %v15500_v22 }
 0x828   : > { %14323 = vmatprep.subr.bf16.mxu1 %v15501_v23  ;;  %14345 = vmatprep.subr.bf16.mxu0 %v15502_v24  ;;  %v1732_v23 = vrot.slane %v1719_v8, %v17013_v54 }
 0x82b   : > { %14324 = vmatpush3.bf16.msra.mxu1 %v15503_v25  ;;  %14346 = vmatpush3.bf16.msra.mxu0 %v15504_v26  ;;  %v1728_v26 = vrot.slane %v1719_v8, %v17016_v55 }
 0x82c   : > { %14325 = vmatprep.subr.bf16.mxu1 %v15505_v27  ;;  %14347 = vmatprep.subr.bf16.mxu0 %v15506_v29  ;;  %v1736_v29 = vrot.slane %v1719_v8, %v17019_v56 }
 0x82f   : > { %14326 = vmatpush3.bf16.msra.mxu1 %v15507_v30  ;;  %14348 = vmatpush3.bf16.msra.mxu0 %v15508_v18 }
 0x830   : > { %14327 = vmatprep.subr.bf16.mxu1 %v15509_v17  ;;  %14349 = vmatprep.subr.bf16.mxu0 %v15510_v31 }
 0x833   : > { %14328 = vmatpush3.bf16.msra.mxu1 %v15511_v32  ;;  %14350 = vmatpush3.bf16.msra.mxu0 %v15512_v33 }
 0x834   : > { %14329 = vmatprep.subr.bf16.mxu1 %v15513_v34  ;;  %14351 = vmatprep.subr.bf16.mxu0 %v15514_v35 }
 0x837   : > { %14330 = vmatpush3.bf16.msra.mxu1 %v15515_v36  ;;  %14352 = vmatpush3.bf16.msra.mxu0 %v15516_v37 }
 0x838   : > { %14331 = vmatprep.subr.bf16.mxu1 %v15517_v38  ;;  %14353 = vmatprep.subr.bf16.mxu0 %v15518_v39 }
 0x83b   : > { %14332 = vmatpush3.bf16.msra.mxu1 %v15519_v40  ;;  %14354 = vmatpush3.bf16.msra.mxu0 %v15520_v41 }
 0x83c   : > { %14333 = vmatprep.subr.bf16.mxu1 %v15521_v42  ;;  %14355 = vmatprep.subr.bf16.mxu0 %v15522_v43 }
 0x83f   : > { %14334 = vmatpush3.bf16.msra.mxu1 %v15523_v44  ;;  %14356 = vmatpush3.bf16.msra.mxu0 %v15524_v45 }
 0x840   : > { %14335 = vmatprep.subr.bf16.mxu1 %v15525_v46  ;;  %14357 = vmatprep.subr.bf16.mxu0 %v15526_v47 }
 0x843   : > { %14336 = vmatpush3.bf16.msra.mxu1 %v15527_v48  ;;  %14358 = vmatpush3.bf16.msra.mxu0 %v15528_v50 }
 0x844   : > { %14365 = vmatprep.subr.bf16.mxu1 %v15529_v51  ;;  %14387 = vmatprep.subr.bf16.mxu0 %v15530_v52 }
 0x8f1   : > { %v1551_v62 = vpop.f32.mrb[20].mxu1  ;;  %v1594_v63 = vpop.f32.mrb[24].mxu0 }
 0x8f2   : > { %v1552_v1 = vadd.f32 %v1551_v62, %v1457_v58  ;;  %v1595_v2 = vadd.f32 %v1594_v63, %v1465_v59  ;;  %v1553_v3 = vpop.f32.mrb[21].mxu1  ;;  %v1596_v4 = vpop.f32.mrb[25].mxu0 }
 0x8f3   : > { %v1554_v5 = vadd.f32 %v1553_v3, %v1461_v60  ;;  %v17031_v6 = vadd.f32 %v1596_v4, %v1469_v61  ;;  %v1555_v7 = vpop.f32.mrb[22].mxu1  ;;  %v1598_v9 = vpop.f32.mrb[26].mxu0 }
 0x8f4   : > { %v1611_v28 = vmul.f32 0.70710677, %v1552_v1  ;;  %v1613_v13 = vmul.f32 0.70710677, %v1595_v2  ;;  %v1556_v19 = vadd.f32 %v1555_v7, %v1457_v58  ;;  %v17035_v20 = vadd.f32 %v1598_v9, %v1465_v59  ;;  %v1557_v21 = vpop.f32.mrb[23].mxu1  ;;  %v1600_v22 = vpop.f32.mrb[27].mxu0 }
 0x8f5   : > { %v1612_v14 = vmul.f32 0.70710677, %v1554_v5  ;;  %v1614_v15 = vmul.f32 0.70710677, %v17031_v6  ;;  %v17038_v24 = vadd.f32 %v1557_v21, %v1461_v60  ;;  %v17040_v25 = vadd.f32 %v1600_v22, %v1469_v61 }
 0x8f6   : > { %16057 = verf.f32 %v1611_v28  ;;  %v1615_v27 = vmul.f32 0.70710677, %v1556_v19  ;;  %v1617_v30 = vmul.f32 0.70710677, %v17035_v20  ;;  %v1603_v60 = vmul.f32 0.5, %v1552_v1 }
 0x8f7   : > { %16059 = verf.f32 %v1613_v13  ;;  %v1616_v18 = vmul.f32 0.70710677, %v17038_v24  ;;  %v1618_v31 = vmul.f32 0.70710677, %v17040_v25  ;;  %v1605_v61 = vmul.f32 0.5, %v1595_v2 }
 0x8f8   : > { %16061 = verf.f32 %v1612_v14  ;;  %v1604_v4 = vmul.f32 0.5, %v1554_v5  ;;  %v1606_v28 = vmul.f32 0.5, %v17031_v6  ;;  %v1607_v13 = vmul.f32 0.5, %v1556_v19 }
 0x8f9   : > { %16063 = verf.f32 %v1614_v15  ;;  %v1815_v17 = vpop.f32.mrb[24].mxu1  ;;  %v1858_v33 = vpop.f32.mrb[28].mxu0  ;;  %v1609_v22 = vmul.f32 0.5, %v17035_v20 }
 0x8fa   : > { %16065 = verf.f32 %v1615_v27  ;;  %v17047_v32 = vadd.f32 %v1815_v17, %v1724_v16  ;;  %v1817_v34 = vpop.f32.mrb[25].mxu1  ;;  %v17049_v35 = vadd.f32 %v1858_v33, %v1732_v23  ;;  %v1860_v37 = vpop.f32.mrb[29].mxu0 }
 0x8fb   : > { %16067 = verf.f32 %v1617_v30  ;;  %v17051_v36 = vadd.f32 %v1817_v34, %v1728_v26  ;;  %v1819_v38 = vpop.f32.mrb[26].mxu1  ;;  %v17054_v40 = vadd.f32 %v1860_v37, %v1736_v29  ;;  %v1862_v41 = vpop.f32.mrb[30].mxu0 }
 0x8fc   : > { %16069 = verf.f32 %v1616_v18  ;;  %v1875_v39 = vmul.f32 0.70710677, %v17047_v32  ;;  %v1821_v42 = vpop.f32.mrb[27].mxu1  ;;  %v1877_v43 = vmul.f32 0.70710677, %v17049_v35  ;;  %v1864_v44 = vpop.f32.mrb[31].mxu0  ;;  %v1820_v47 = vadd.f32 %v1819_v38, %v1724_v16 }
 0x8fd   : > { %16071 = verf.f32 %v1618_v31  ;;  %v1876_v45 = vmul.f32 0.70710677, %v17051_v36  ;;  %v1878_v46 = vmul.f32 0.70710677, %v17054_v40  ;;  %v17059_v48 = vadd.f32 %v1862_v41, %v1732_v23 }
 0x8fe   : > { %16073 = verf.f32 %v1875_v39  ;;  %v17061_v50 = vadd.f32 %v1821_v42, %v1728_v26  ;;  %v1879_v57 = vmul.f32 0.70710677, %v1820_v47  ;;  %v17063_v58 = vadd.f32 %v1864_v44, %v1736_v29 }
 0x8ff   : > { %16075 = verf.f32 %v1877_v43  ;;  %v1881_v62 = vmul.f32 0.70710677, %v17059_v48  ;;  %v1608_v23 = vmul.f32 0.5, %v17038_v24  ;;  %v1610_v18 = vmul.f32 0.5, %v17040_v25 }
 0x900   : > { %v16058_v51 = vpop.eup %16057  ;;  %16077 = verf.f32 %v1876_v45  ;;  %v1880_v8 = vmul.f32 0.70710677, %v17061_v50  ;;  %v1882_v1 = vmul.f32 0.70710677, %v17063_v58  ;;  %v1867_v25 = vmul.f32 0.5, %v17047_v32 }
 0x901   : > { %v16060_v52 = vpop.eup %16059  ;;  %16079 = verf.f32 %v1878_v46  ;;  %v1627_v3 = vadd.f32 1.0, %v16058_v51 }
 0x902   : > { %v16062_v59 = vpop.eup %16061  ;;  %16081 = verf.f32 %v1879_v57  ;;  %v1629_v9 = vadd.f32 1.0, %v16060_v52  ;;  %v1869_v57 = vmul.f32 0.5, %v17049_v35 }
 0x903   : > { %v16064_v63 = vpop.eup %16063  ;;  %16083 = verf.f32 %v1881_v62  ;;  %v1628_v15 = vadd.f32 1.0, %v16062_v59  ;;  %v17071_v27 = vmul.f32 %v1627_v3, %v1603_v60  ;;  %v1871_v60 = vmul.f32 0.5, %v1820_v47 }
 0x904   : > { %v16066_v7 = vpop.eup %16065  ;;  %16085 = verf.f32 %v1880_v8  ;;  %v1630_v21 = vadd.f32 1.0, %v16064_v63  ;;  %v17075_v19 = vmul.f32 %v1629_v9, %v1605_v61  ;;  %v1868_v63 = vmul.f32 0.5, %v17051_v36 }
 0x905   : > { %v16068_v14 = vpop.eup %16067  ;;  %v1631_v16 = vadd.f32 1.0, %v16066_v7  ;;  %16087 = verf.f32 %v1882_v1  ;;  %v1636_v33 = vmul.f32 %v1628_v15, %v1604_v4  ;;  %v1873_v3 = vmul.f32 0.5, %v17059_v48 }
 0x906   : > { %v16070_v2 = vpop.eup %16069  ;;  %v1633_v5 = vadd.f32 1.0, %v16068_v14  ;;  %v1638_v37 = vmul.f32 %v1630_v21, %v1606_v28  ;;  %v1872_v8 = vmul.f32 0.5, %v17061_v50  ;;  %v1870_v15 = vmul.f32 0.5, %v17054_v40  ;;  %v15531_v50 = vld [vmem:[%s19932_s13] sm:$0xff]  }
 0x907   : > { %v16072_v26 = vpop.eup %16071  ;;  %v17073_v29 = vmul.f32 %v1631_v16, %v1607_v13  ;;  %v1632_v6 = vadd.f32 1.0, %v16070_v2  ;;  %v1874_v47 = vmul.f32 0.5, %v17063_v58  ;;  %v15532_v40 = vld [vmem:[%s19932_s13 + $0x80] sm:$0xff]   ;;  %v15533_v58 = vld [vmem:[%s19932_s13 + $0x48] sm:$0xff]  }
 0x908   : > { %v17077_v30 = vmul.f32 %v1633_v5, %v1609_v22  ;;  %v1634_v17 = vadd.f32 1.0, %v16072_v26  ;;  %v16074_v31 = vpop.eup %16073  ;;  %v15534_v26 = vld [vmem:[%s19932_s13 + $0xc8] sm:$0xff]  }
 0x909   : > { %v1643_v20 = vpack.c.bf16 %v17073_v29, %v17071_v27  ;;  %v1640_v24 = vmul.f32 %v1632_v6, %v1608_v23  ;;  %v16076_v34 = vpop.eup %16075  ;;  %v1891_v44 = vadd.f32 1.0, %v16074_v31  ;;  %v15535_v6 = vld [vmem:[%s19932_s13 + $0x8] sm:$0xff]   ;;  %v15538_v31 = vld [vmem:[%s19932_s13 + $0xd0] sm:$0xff]   ;;  %v15561_v27 = vld [vmem:[%s19932_s13 + $0x240] sm:$0xff]  }
 0x90a   : > { %v1645_v38 = vpack.c.bf16 %v17077_v30, %v17075_v19  ;;  %v1642_v39 = vmul.f32 %v1634_v17, %v1610_v18  ;;  %v16078_v41 = vpop.eup %16077  ;;  %v1893_v51 = vadd.f32 1.0, %v16076_v34  ;;  %v15537_v18 = vld [vmem:[%s19932_s13 + $0x50] sm:$0xff]   ;;  %v15536_v17 = vld [vmem:[%s19932_s13 + $0x88] sm:$0xff]   ;;  %v15562_v29 = vld [vmem:[%s19932_s13 + $0x2c0] sm:$0xff]  }
 0x90b   : > { %v1644_v42 = vpack.c.bf16 %v1640_v24, %v1636_v33  ;;  %v16080_v43 = vpop.eup %16079  ;;  %v1892_v59 = vadd.f32 1.0, %v16078_v41  ;;  %v1899_v7 = vmul.f32 %v1891_v44, %v1867_v25  ;;  %v15539_v33 = vld [vmem:[%s19932_s13 + $0x10] sm:$0xff]   ;;  %v15541_v24 = vld [vmem:[%s19932_s13 + $0x58] sm:$0xff]   ;;  %v15545_v41 = vld [vmem:[%s19932_s13 + $0x60] sm:$0xff]  }
 0x90c   : > { %v1646_v45 = vpack.c.bf16 %v1642_v39, %v1638_v37  ;;  %v16082_v46 = vpop.eup %16081  ;;  %v1894_v9 = vadd.f32 1.0, %v16080_v43  ;;  %v1901_v14 = vmul.f32 %v1893_v51, %v1869_v57  ;;  %v15540_v34 = vld [vmem:[%s19932_s13 + $0x90] sm:$0xff]   ;;  %v15542_v37 = vld [vmem:[%s19932_s13 + $0xd8] sm:$0xff]   ;;  %v15546_v43 = vld [vmem:[%s19932_s13 + $0xe0] sm:$0xff]  }
 0x90d   : > { %v16084_v52 = vpop.eup %16083  ;;  %v1895_v61 = vadd.f32 1.0, %v16082_v46  ;;  %v1900_v16 = vmul.f32 %v1892_v59, %v1868_v63  ;;  %v15543_v39 = vld [vmem:[%s19932_s13 + $0x18] sm:$0xff]   ;;  %v15547_v44 = vld [vmem:[%s19932_s13 + $0x20] sm:$0xff]   ;;  %v15550_v25 = vld [vmem:[%s19932_s13 + $0xe8] sm:$0xff]  }
 0x90e   : > { %v16086_v62 = vpop.eup %16085  ;;  %v1897_v4 = vadd.f32 1.0, %v16084_v52  ;;  %v1902_v48 = vmul.f32 %v1894_v9, %v1870_v15  ;;  %v15548_v46 = vld [vmem:[%s19932_s13 + $0xa0] sm:$0xff]   ;;  %v15551_v51 = vld [vmem:[%s19932_s13 + $0x28] sm:$0xff]   ;;  %v15553_v52 = vld [vmem:[%s19932_s13 + $0x70] sm:$0xff]  }
 0x90f   : > { %v1903_v28 = vmul.f32 %v1895_v61, %v1871_v60  ;;  %v1896_v13 = vadd.f32 1.0, %v16086_v62  ;;  %v16088_v32 = vpop.eup %16087  ;;  %v15552_v57 = vld [vmem:[%s19932_s13 + $0xa8] sm:$0xff]   ;;  %v15554_v59 = vld [vmem:[%s19932_s13 + $0xf0] sm:$0xff]   ;;  %v15557_v61 = vld [vmem:[%s19932_s13 + $0x78] sm:$0xff]  }
 0x910   : > { %v1905_v35 = vmul.f32 %v1897_v4, %v1873_v3  ;;  %v1898_v36 = vadd.f32 1.0, %v16088_v32  ;;  %v15555_v60 = vld [vmem:[%s19932_s13 + $0x30] sm:$0xff]   ;;  %v2523_v63 = vld [vmem:[%s19930_s11 + $0x20] sm:$0xff]  ;;  %v15558_v4 = vld [vmem:[%s19932_s13 + $0xf8] sm:$0xff]  }
 0x911   : > { %v1907_v1 = vpack.c.bf16 %v1903_v28, %v1899_v7  ;;  %v1904_v2 = vmul.f32 %v1896_v13, %v1872_v8  ;;  %v15556_v62 = vld [vmem:[%s19932_s13 + $0xb0] sm:$0xff]   ;;  %v2525_v3 = vld [vmem:[%s19930_s11 + $0x60] sm:$0xff]  ;;  %v15559_v8 = vld [vmem:[%s19932_s13 + $0x38] sm:$0xff]  }
 0x912   : > { %v1909_v21 = vpack.c.bf16 %v1905_v35, %v1901_v14  ;;  %v1906_v22 = vmul.f32 %v1898_v36, %v1874_v47  ;;  %v2524_v7 = vld [vmem:[%s19930_s11 + $0x28] sm:$0xff]  ;;  %v12718_v28 = vcombine.high %v2523_v63, %v2525_v3  ;;  %v15560_v13 = vld [vmem:[%s19932_s13 + $0xb8] sm:$0xff]   ;;  %v2527_v32 = vld [vmem:[%s19930_s11 + $0xa0] sm:$0xff]  ;;  %v12717_v35 = vcombine.low %v2523_v63, %v2525_v3 }
 0x913   : > { %v1908_v5 = vpack.c.bf16 %v1904_v2, %v1900_v16  ;;  %v2526_v9 = vld [vmem:[%s19930_s11 + $0x68] sm:$0xff]  ;;  %v2529_v14 = vld [vmem:[%s19930_s11 + $0xe0] sm:$0xff]  ;;  %v17333_v63 = vld [vmem:[%s19930_s11 + $0x78] sm:$0xff] }
 0x914   : > { %v1910_v23 = vpack.c.bf16 %v1906_v22, %v1902_v48  ;;  %v12720_v15 = vcombine.high %v2524_v7, %v2526_v9  ;;  %v2528_v47 = vld [vmem:[%s19930_s11 + $0xa8] sm:$0xff]  ;;  %v12719_v2 = vcombine.low %v2524_v7, %v2526_v9  ;;  %v15563_v19 = vld [vmem:[%s19932_s13 + $0x200] sm:$0xff]  }
 0x915   : > { %2199 = vmatprep.mubr.bf16.mxu1 %v1908_v5  ;;  %v2530_v16 = vld [vmem:[%s19930_s11 + $0xe8] sm:$0xff]  ;;  %v15564_v30 = vld [vmem:[%s19932_s13 + $0x280] sm:$0xff]  }
 0x916   : > { %2200 = vmatmul.mubr.bf16.vlgmr.msra.gmra.mrb[28].mxu1 %v1907_v1  ;;  %2240 = vmatprep.mubr.bf16.mxu0 %v1910_v23  ;;  %v12722_v1 = vcombine.high %v2527_v32, %v2529_v14  ;;  %v12724_v36 = vcombine.high %v2528_v47, %v2530_v16  ;;  %v12723_v48 = vcombine.low %v2528_v47, %v2530_v16  ;;  %v15567_v22 = vld [vmem:[%s19932_s13 + $0x208] sm:$0xff]   ;;  %v15570_v23 = vld [vmem:[%s19932_s13 + $0x2d0] sm:$0xff]  }
 0x917   : > { %14366 = vmatpush3.bf16.msra.mxu1 %v15531_v50  ;;  %2241 = vmatmul.mubr.bf16.vlgmr.msra.gmra.mrb[32].mxu0 %v1909_v21  ;;  %v12721_v21 = vcombine.low %v2527_v32, %v2529_v14  ;;  %v15568_v5 = vld [vmem:[%s19932_s13 + $0x288] sm:$0xff]   ;;  %v15569_v50 = vld [vmem:[%s19932_s13 + $0x250] sm:$0xff]  }
 0x918   : > { %2473 = vmatprep.mubr.bf16.mxu1 %v1644_v42  ;;  %14388 = vmatpush3.bf16.msra.mxu0 %v15532_v40  ;;  %v15544_v42 = vld [vmem:[%s19932_s13 + $0x98] sm:$0xff]   ;;  %v15571_v40 = vld [vmem:[%s19932_s13 + $0x210] sm:$0xff]  }
 0x919   : > { %2514 = vmatprep.mubr.bf16.mxu0 %v1646_v45  ;;  %14367 = vmatprep.subr.bf16.mxu1 %v15533_v58  ;;  %v15549_v45 = vld [vmem:[%s19932_s13 + $0x68] sm:$0xff]   ;;  %v15572_v58 = vld [vmem:[%s19932_s13 + $0x290] sm:$0xff]  }
 0x91a   : > { %14389 = vmatprep.subr.bf16.mxu0 %v15534_v26  ;;  %v15573_v26 = vld [vmem:[%s19932_s13 + $0x258] sm:$0xff]  }
 0x91b   : > { %14368 = vmatpush3.bf16.msra.mxu1 %v15535_v6  ;;  %v15574_v6 = vld [vmem:[%s19932_s13 + $0x2d8] sm:$0xff]  }
 0x91c   : > { %14369 = vmatprep.subr.bf16.mxu1 %v15537_v18  ;;  %14390 = vmatpush3.bf16.msra.mxu0 %v15536_v17  ;;  %v15575_v18 = vld [vmem:[%s19932_s13 + $0x218] sm:$0xff]  }
 0x91d   : > { %14391 = vmatprep.subr.bf16.mxu0 %v15538_v31  ;;  %v15576_v17 = vld [vmem:[%s19932_s13 + $0x298] sm:$0xff]   ;;  %v15577_v31 = vld [vmem:[%s19932_s13 + $0x260] sm:$0xff]  }
 0x91f   : > { %14370 = vmatpush3.bf16.msra.mxu1 %v15539_v33  ;;  %v15578_v33 = vld [vmem:[%s19932_s13 + $0x2e0] sm:$0xff]  }
 0x920   : > { %14371 = vmatprep.subr.bf16.mxu1 %v15541_v24  ;;  %14392 = vmatpush3.bf16.msra.mxu0 %v15540_v34  ;;  %v15579_v24 = vld [vmem:[%s19932_s13 + $0x220] sm:$0xff]  }
 0x921   : > { %14393 = vmatprep.subr.bf16.mxu0 %v15542_v37  ;;  %v15580_v34 = vld [vmem:[%s19932_s13 + $0x2a0] sm:$0xff]   ;;  %v15581_v37 = vld [vmem:[%s19932_s13 + $0x268] sm:$0xff]  }
 0x923   : > { %14372 = vmatpush3.bf16.msra.mxu1 %v15543_v39  ;;  %v15582_v39 = vld [vmem:[%s19932_s13 + $0x2e8] sm:$0xff]  }
 0x924   : > { %14373 = vmatprep.subr.bf16.mxu1 %v15545_v41  ;;  %14394 = vmatpush3.bf16.msra.mxu0 %v15544_v42  ;;  %v15583_v41 = vld [vmem:[%s19932_s13 + $0x228] sm:$0xff]  }
 0x925   : > { %14395 = vmatprep.subr.bf16.mxu0 %v15546_v43  ;;  %v15584_v42 = vld [vmem:[%s19932_s13 + $0x2a8] sm:$0xff]   ;;  %v15585_v43 = vld [vmem:[%s19932_s13 + $0x270] sm:$0xff]  }
 0x927   : > { %14374 = vmatpush3.bf16.msra.mxu1 %v15547_v44  ;;  %v15586_v44 = vld [vmem:[%s19932_s13 + $0x2f0] sm:$0xff]  }
 0x928   : > { %14375 = vmatprep.subr.bf16.mxu1 %v15549_v45  ;;  %14396 = vmatpush3.bf16.msra.mxu0 %v15548_v46  ;;  %v15587_v45 = vld [vmem:[%s19932_s13 + $0x230] sm:$0xff]  }
 0x929   : > { %14397 = vmatprep.subr.bf16.mxu0 %v15550_v25  ;;  %v15588_v46 = vld [vmem:[%s19932_s13 + $0x2b0] sm:$0xff]   ;;  %v15589_v25 = vld [vmem:[%s19932_s13 + $0x278] sm:$0xff]  }
 0x92b   : > { %14376 = vmatpush3.bf16.msra.mxu1 %v15551_v51  ;;  %v15590_v51 = vld [vmem:[%s19932_s13 + $0x2f8] sm:$0xff]  }
 0x92c   : > { %14377 = vmatprep.subr.bf16.mxu1 %v15553_v52  ;;  %14398 = vmatpush3.bf16.msra.mxu0 %v15552_v57  ;;  %v15591_v52 = vld [vmem:[%s19932_s13 + $0x238] sm:$0xff]  }
 0x92d   : > { %14399 = vmatprep.subr.bf16.mxu0 %v15554_v59  ;;  %v15592_v57 = vld [vmem:[%s19932_s13 + $0x2b8] sm:$0xff]   ;;  %v17316_v59 = vld [vmem:[%s19930_s11 + $0x30] sm:$0xff] }
 0x92f   : > { %14378 = vmatpush3.bf16.msra.mxu1 %v15555_v60  ;;  %v17321_v60 = vld [vmem:[%s19930_s11 + $0x70] sm:$0xff] }
 0x930   : > { %14379 = vmatprep.subr.bf16.mxu1 %v15557_v61  ;;  %14400 = vmatpush3.bf16.msra.mxu0 %v15556_v62  ;;  %v17326_v61 = vld [vmem:[%s19930_s11 + $0x38] sm:$0xff]  ;;  %v12760_v62 = vcombine.high %v17316_v59, %v17321_v60  ;;  %v12759_v3 = vcombine.low %v17316_v59, %v17321_v60  ;;  %v15593_v59 = vld [vmem:[%s19932_s13 + $0x340] sm:$0xff]  }
 0x931   : > { %14401 = vmatprep.subr.bf16.mxu0 %v15558_v4  ;;  %v12761_v4 = vcombine.low %v17326_v61, %v17333_v63  ;;  %v15594_v60 = vld [vmem:[%s19932_s13 + $0x3c0] sm:$0xff]  }
 0x933   : > { %14380 = vmatpush3.bf16.msra.mxu1 %v15559_v8  ;;  %v12762_v8 = vcombine.high %v17326_v61, %v17333_v63  ;;  %v15595_v61 = vld [vmem:[%s19932_s13 + $0x300] sm:$0xff]  }
 0x934   : > { %2593 = vmatprep.subr.bf16.mxu1 %v12718_v28  ;;  %14402 = vmatpush3.bf16.msra.mxu0 %v15560_v13  ;;  %v15596_v63 = vld [vmem:[%s19932_s13 + $0x380] sm:$0xff]  }
 0x935   : > { %2636 = vmatprep.subr.bf16.mxu0 %v12720_v15 }
 0x936   : > { %2474 = vmatmul.mubr.bf16.vlgmr.msra.gmra.mrb[32].mxu1 %v1643_v20  ;;  %v15565_v20 = vld [vmem:[%s19932_s13 + $0x248] sm:$0xff]  }
 0x937   : > { %2594 = vmatpush1.bf16.msra.mxu1 %v12717_v35  ;;  %2625 = vmatprep.mubr.bf16.mxu1 %v16518_v49 }
 0x938   : > { %2515 = vmatmul.mubr.bf16.vlgmr.msra.gmra.mrb[36].mxu0 %v1645_v38  ;;  %2595 = vmatprep.subr.bf16.mxu1 %v12722_v1  ;;  %v15566_v38 = vld [vmem:[%s19932_s13 + $0x2c8] sm:$0xff]  }
 0x939   : > { %2637 = vmatpush1.bf16.msra.mxu0 %v12719_v2  ;;  %2668 = vmatprep.mubr.bf16.mxu0 %v16518_v49 }
 0x93a   : > { %2638 = vmatprep.subr.bf16.mxu0 %v12724_v36 }
 0x93b   : > { %2596 = vmatpush1.bf16.msra.mxu1 %v12721_v21 }
 0x93c   : > { %14409 = vmatprep.subr.bf16.mxu1 %v15561_v27 }
 0x93d   : > { %2639 = vmatpush1.bf16.msra.mxu0 %v12723_v48 }
 0x93e   : > { %12725 = vmatmul.mubr.msk.bf16.vlgmr.msra.gmra.mrb[36].mxu1 %vm744_vm4, %v16895_v12  ;;  %14431 = vmatprep.subr.bf16.mxu0 %v15562_v29 }
 0x93f   : > { %14410 = vmatpush3.bf16.msra.mxu1 %v15563_v19 }
 0x940   : > { %12726 = vmatmul.mubr.msk.bf16.vlgmr.msra.gmra.mrb[40].mxu0 %vm744_vm4, %v16895_v12  ;;  %14411 = vmatprep.subr.bf16.mxu1 %v15565_v20  ;;  %v2531_v20 = vld [vmem:[%s19931_s12 + $0x8] sm:$0xf] }
 0x941   : > { %14432 = vmatpush3.bf16.msra.mxu0 %v15564_v30 }
 0x942   : > { %14433 = vmatprep.subr.bf16.mxu0 %v15566_v38 }
 0x943   : > { %14412 = vmatpush3.bf16.msra.mxu1 %v15567_v22 }
 0x944   : > { %14413 = vmatprep.subr.bf16.mxu1 %v15569_v50 }
 0x945   : > { %14434 = vmatpush3.bf16.msra.mxu0 %v15568_v5 }
 0x946   : > { %14435 = vmatprep.subr.bf16.mxu0 %v15570_v23 }
 0x947   : > { %14414 = vmatpush3.bf16.msra.mxu1 %v15571_v40 }
 0x948   : > { %14415 = vmatprep.subr.bf16.mxu1 %v15573_v26  ;;  %v2536_v26 = vrot.slane %v2531_v20, %v17010_v53 }
 0x949   : > { %14436 = vmatpush3.bf16.msra.mxu0 %v15572_v58 }
 0x94a   : > { %14437 = vmatprep.subr.bf16.mxu0 %v15574_v6 }
 0x94b   : > { %14416 = vmatpush3.bf16.msra.mxu1 %v15575_v18 }
 0x94c   : > { %14417 = vmatprep.subr.bf16.mxu1 %v15577_v31  ;;  %v2540_v31 = vrot.slane %v2531_v20, %v17016_v55 }
 0x94d   : > { %14438 = vmatpush3.bf16.msra.mxu0 %v15576_v17 }
 0x94e   : > { %14439 = vmatprep.subr.bf16.mxu0 %v15578_v33  ;;  %v2544_v33 = vrot.slane %v2531_v20, %v17013_v54 }
 0x94f   : > { %14418 = vmatpush3.bf16.msra.mxu1 %v15579_v24 }
 0x950   : > { %14419 = vmatprep.subr.bf16.mxu1 %v15581_v37  ;;  %v2548_v37 = vrot.slane %v2531_v20, %v17019_v56 }
 0x951   : > { %14440 = vmatpush3.bf16.msra.mxu0 %v15580_v34 }
 0x952   : > { %14441 = vmatprep.subr.bf16.mxu0 %v15582_v39 }
 0x953   : > { %14420 = vmatpush3.bf16.msra.mxu1 %v15583_v41 }
 0x954   : > { %14421 = vmatprep.subr.bf16.mxu1 %v15585_v43 }
 0x955   : > { %14442 = vmatpush3.bf16.msra.mxu0 %v15584_v42 }
 0x956   : > { %14443 = vmatprep.subr.bf16.mxu0 %v15586_v44 }
 0x957   : > { %14422 = vmatpush3.bf16.msra.mxu1 %v15587_v45 }
 0x958   : > { %14423 = vmatprep.subr.bf16.mxu1 %v15589_v25 }
 0x959   : > { %14444 = vmatpush3.bf16.msra.mxu0 %v15588_v46 }
 0x95a   : > { %14445 = vmatprep.subr.bf16.mxu0 %v15590_v51 }
 0x95b   : > { %14424 = vmatpush3.bf16.msra.mxu1 %v15591_v52 }
 0x95c   : > { %3133 = vmatprep.subr.bf16.mxu1 %v12760_v62 }
 0x95d   : > { %14446 = vmatpush3.bf16.msra.mxu0 %v15592_v57 }
 0x95e   : > { %3176 = vmatprep.subr.bf16.mxu0 %v12762_v8 }
 0x9e9   : > { %v14337_v7 = vpop.f32.mrb[28].mxu1 }
 0x9ea   : > { %v14338_v9 = vpop.f32.mrb[29].mxu1  ;;  %v14359_v28 = vpop.f32.mrb[32].mxu0 }
 0x9eb   : > { %v14339_v13 = vadd.f32 %v14338_v9, %v14337_v7  ;;  %v14340_v32 = vpop.f32.mrb[30].mxu1  ;;  %v14360_v14 = vpop.f32.mrb[33].mxu0 }
 0x9ec   : > { %v14341_v15 = vpop.f32.mrb[31].mxu1  ;;  %v14361_v35 = vadd.f32 %v14360_v14, %v14359_v28  ;;  %v14362_v47 = vpop.f32.mrb[34].mxu0 }
 0x9ed   : > { %v14342_v16 = vadd.f32 %v14341_v15, %v14340_v32  ;;  %v14363_v1 = vpop.f32.mrb[35].mxu0 }
 0x9ee   : > { %v2243_v2 = vadd.f32 %v14361_v35, %v14339_v13  ;;  %v14364_v36 = vadd.f32 %v14363_v1, %v14362_v47 }
 0x9f0   : > { %v2246_v21 = vadd.f32 %v14364_v36, %v14342_v16 }
 0xa09   : > { %v14381_v48 = vpop.f32.mrb[32].mxu1 }
 0xa0a   : > { %v14382_v27 = vpop.f32.mrb[33].mxu1 }
 0xa0b   : > { %v14403_v29 = vpop.f32.mrb[36].mxu0  ;;  %v14383_v19 = vadd.f32 %v14382_v27, %v14381_v48  ;;  %v14384_v30 = vpop.f32.mrb[34].mxu1 }
 0xa0c   : > { %v14404_v38 = vpop.f32.mrb[37].mxu0  ;;  %v14385_v22 = vpop.f32.mrb[35].mxu1 }
 0xa0d   : > { %v2476_v5 = vadd.f32 %v14383_v19, %v2243_v2  ;;  %v14405_v50 = vadd.f32 %v14404_v38, %v14403_v29  ;;  %v14406_v23 = vpop.f32.mrb[38].mxu0  ;;  %v14386_v40 = vadd.f32 %v14385_v22, %v14384_v30 }
 0xa0e   : > { %v14407_v58 = vpop.f32.mrb[39].mxu0 }
 0xa0f   : > { %v17345_v6 = vadd.f32 %v14405_v50, %v2476_v5  ;;  %v2479_v18 = vadd.f32 %v14386_v40, %v2246_v21  ;;  %v14408_v17 = vadd.f32 %v14407_v58, %v14406_v23 }
 0xa11   : > { %v17349_v24 = vadd.f32 %v14408_v17, %v2479_v18  ;;  %v2627_v34 = vpop.f32.mrb[36].mxu1 }
 0xa12   : > { %v2628_v39 = vadd.f32 %v2627_v34, %v2536_v26  ;;  %v2629_v41 = vpop.f32.mrb[37].mxu1 }
 0xa13   : > { %v2670_v42 = vpop.f32.mrb[40].mxu0  ;;  %v2630_v43 = vadd.f32 %v2629_v41, %v2540_v31  ;;  %v2631_v44 = vpop.f32.mrb[38].mxu1 }
 0xa14   : > { %v2687_v45 = vmul.f32 0.70710677, %v2628_v39  ;;  %v2671_v46 = vadd.f32 %v2670_v42, %v2544_v33  ;;  %v2672_v25 = vpop.f32.mrb[41].mxu0  ;;  %v2632_v51 = vadd.f32 %v2631_v44, %v2536_v26  ;;  %v2633_v52 = vpop.f32.mrb[39].mxu1  ;;  %v2679_v29 = vmul.f32 0.5, %v2628_v39  ;;  %v3067_v44 = vld [vmem:[%s19930_s11 + $0xb0] sm:$0xff] }
 0xa15   : > { %v2688_v57 = vmul.f32 0.70710677, %v2630_v43  ;;  %v2673_v62 = vadd.f32 %v2672_v25, %v2548_v37  ;;  %v2674_v8 = vpop.f32.mrb[42].mxu0  ;;  %v2634_v7 = vadd.f32 %v2633_v52, %v2540_v31  ;;  %v2680_v19 = vmul.f32 0.5, %v2630_v43 }
 0xa16   : > { %16089 = verf.f32 %v2687_v45  ;;  %v2689_v9 = vmul.f32 0.70710677, %v2671_v46  ;;  %v2676_v28 = vpop.f32.mrb[43].mxu0  ;;  %v2691_v32 = vmul.f32 0.70710677, %v2632_v51  ;;  %v2675_v14 = vadd.f32 %v2674_v8, %v2544_v33  ;;  %v3069_v45 = vld [vmem:[%s19930_s11 + $0xf0] sm:$0xff] }
 0xa17   : > { %16091 = verf.f32 %v2688_v57  ;;  %v2690_v13 = vmul.f32 0.70710677, %v2673_v62  ;;  %v2692_v15 = vmul.f32 0.70710677, %v2634_v7  ;;  %v2677_v35 = vadd.f32 %v2676_v28, %v2548_v37  ;;  %v3068_v8 = vld [vmem:[%s19930_s11 + $0xb8] sm:$0xff] }
 0xa18   : > { %16093 = verf.f32 %v2689_v9  ;;  %v2693_v47 = vmul.f32 0.70710677, %v2675_v14  ;;  %v2681_v38 = vmul.f32 0.5, %v2671_v46  ;;  %v2683_v5 = vmul.f32 0.5, %v2632_v51 }
 0xa19   : > { %16095 = verf.f32 %v2690_v13  ;;  %v2694_v16 = vmul.f32 0.70710677, %v2677_v35  ;;  %v2682_v40 = vmul.f32 0.5, %v2673_v62  ;;  %v2684_v26 = vmul.f32 0.5, %v2634_v7  ;;  %v3070_v7 = vld [vmem:[%s19930_s11 + $0xf8] sm:$0xff] }
 0xa1a   : > { %16097 = verf.f32 %v2691_v32  ;;  %v2685_v34 = vmul.f32 0.5, %v2675_v14  ;;  %v2686_v39 = vmul.f32 0.5, %v2677_v35  ;;  %v12764_v28 = vcombine.high %v3067_v44, %v3069_v45  ;;  %v15600_v35 = vld [vmem:[%s19932_s13 + $0x388] sm:$0xff]  }
 0xa1b   : > { %16099 = verf.f32 %v2692_v15  ;;  %v12766_v32 = vcombine.high %v3068_v8, %v3070_v7  ;;  %v12763_v14 = vcombine.low %v3067_v44, %v3069_v45  ;;  %v12765_v15 = vcombine.low %v3068_v8, %v3070_v7 }
 0xa1c   : > { %16101 = verf.f32 %v2693_v47  ;;  %v15601_v47 = vld [vmem:[%s19932_s13 + $0x350] sm:$0xff]  }
 0xa1d   : > { %16103 = verf.f32 %v2694_v16  ;;  %v15602_v16 = vld [vmem:[%s19932_s13 + $0x3d0] sm:$0xff]  }
 0xa20   : > { %v16090_v1 = vpop.eup %16089 }
 0xa21   : > { %v16092_v2 = vpop.eup %16091  ;;  %v2703_v48 = vadd.f32 1.0, %v16090_v1  ;;  %v15603_v1 = vld [vmem:[%s19932_s13 + $0x310] sm:$0xff]  }
 0xa22   : > { %v16094_v36 = vpop.eup %16093  ;;  %v2704_v30 = vadd.f32 1.0, %v16092_v2  ;;  %v15604_v2 = vld [vmem:[%s19932_s13 + $0x390] sm:$0xff]  }
 0xa23   : > { %v16096_v21 = vpop.eup %16095  ;;  %v2705_v22 = vadd.f32 1.0, %v16094_v36  ;;  %v2711_v31 = vmul.f32 %v2703_v48, %v2679_v29  ;;  %v15605_v36 = vld [vmem:[%s19932_s13 + $0x358] sm:$0xff]   ;;  %v15609_v29 = vld [vmem:[%s19932_s13 + $0x360] sm:$0xff]  }
 0xa24   : > { %v16098_v27 = vpop.eup %16097  ;;  %v2706_v58 = vadd.f32 1.0, %v16096_v21  ;;  %v2712_v41 = vmul.f32 %v2704_v30, %v2680_v19  ;;  %v15606_v21 = vld [vmem:[%s19932_s13 + $0x3d8] sm:$0xff]   ;;  %v15610_v19 = vld [vmem:[%s19932_s13 + $0x3e0] sm:$0xff]  }
 0xa25   : > { %v16100_v20 = vpop.eup %16099  ;;  %v2707_v50 = vadd.f32 1.0, %v16098_v27  ;;  %v2713_v46 = vmul.f32 %v2705_v22, %v2681_v38  ;;  %v15607_v48 = vld [vmem:[%s19932_s13 + $0x318] sm:$0xff]   ;;  %v15611_v30 = vld [vmem:[%s19932_s13 + $0x320] sm:$0xff]   ;;  %v15613_v38 = vld [vmem:[%s19932_s13 + $0x368] sm:$0xff]  }
 0xa26   : > { %v16102_v23 = vpop.eup %16101  ;;  %v2708_v18 = vadd.f32 1.0, %v16100_v20  ;;  %v2714_v52 = vmul.f32 %v2706_v58, %v2682_v40  ;;  %v15608_v27 = vld [vmem:[%s19932_s13 + $0x398] sm:$0xff]   ;;  %v15612_v20 = vld [vmem:[%s19932_s13 + $0x3a0] sm:$0xff]   ;;  %v15614_v22 = vld [vmem:[%s19932_s13 + $0x3e8] sm:$0xff]  }
 0xa27   : > { %v16104_v17 = vpop.eup %16103  ;;  %v2715_v33 = vmul.f32 %v2707_v50, %v2683_v5  ;;  %v2709_v37 = vadd.f32 1.0, %v16102_v23  ;;  %v15615_v5 = vld [vmem:[%s19932_s13 + $0x328] sm:$0xff]   ;;  %v15617_v23 = vld [vmem:[%s19932_s13 + $0x370] sm:$0xff]  }
 0xa28   : > { %v2716_v42 = vmul.f32 %v2708_v18, %v2684_v26  ;;  %v2710_v43 = vadd.f32 1.0, %v16104_v17  ;;  %v15616_v50 = vld [vmem:[%s19932_s13 + $0x3a8] sm:$0xff]   ;;  %v15618_v40 = vld [vmem:[%s19932_s13 + $0x3f0] sm:$0xff]   ;;  %v15621_v18 = vld [vmem:[%s19932_s13 + $0x378] sm:$0xff]  }
 0xa29   : > { %v2719_v25 = vpack.c.bf16 %v2715_v33, %v2711_v31  ;;  %v2717_v51 = vmul.f32 %v2709_v37, %v2685_v34  ;;  %v15619_v58 = vld [vmem:[%s19932_s13 + $0x330] sm:$0xff]   ;;  %v15622_v17 = vld [vmem:[%s19932_s13 + $0x3f8] sm:$0xff]  }
 0xa2a   : > { %v2718_v57 = vmul.f32 %v2710_v43, %v2686_v39  ;;  %v2720_v62 = vpack.c.bf16 %v2716_v42, %v2712_v41  ;;  %v15620_v26 = vld [vmem:[%s19932_s13 + $0x3b0] sm:$0xff]   ;;  %v15623_v31 = vld [vmem:[%s19932_s13 + $0x338] sm:$0xff]   ;;  %v3071_v43 = vld [vmem:[%s19931_s12 + $0xc] sm:$0xf] }
 0xa2b   : > { %v2721_v9 = vpack.c.bf16 %v2717_v51, %v2713_v46  ;;  %v15624_v33 = vld [vmem:[%s19932_s13 + $0x3b8] sm:$0xff]   ;;  %v3080_v7 = vrot.slane %v3071_v43, %v17016_v55 }
 0xa2c   : > { %3011 = vmatprep.mubr.bf16.mxu1 %v2720_v62  ;;  %v2722_v13 = vpack.c.bf16 %v2718_v57, %v2714_v52  ;;  %v3076_v57 = vrot.slane %v3071_v43, %v17010_v53 }
 0xa2d   : > { %3012 = vmatmul.mubr.bf16.vlgmr.msra.gmra.mrb[40].mxu1 %v2719_v25 }
 0xa2e   : > { %3052 = vmatprep.mubr.bf16.mxu0 %v2722_v13  ;;  %3134 = vmatpush1.bf16.msra.mxu1 %v12759_v3  ;;  %v15598_v3 = vld [vmem:[%s19932_s13 + $0x3c8] sm:$0xff]  }
 0xa2f   : > { %3053 = vmatmul.mubr.bf16.vlgmr.msra.gmra.mrb[44].mxu0 %v2721_v9  ;;  %3135 = vmatprep.subr.bf16.mxu1 %v12764_v28  ;;  %v3084_v9 = vrot.slane %v3071_v43, %v17013_v54 }
 0xa30   : > { %3177 = vmatpush1.bf16.msra.mxu0 %v12761_v4  ;;  %3165 = vmatprep.mubr.bf16.mxu1 %v16518_v49  ;;  %v15599_v4 = vld [vmem:[%s19932_s13 + $0x308] sm:$0xff]  }
 0xa31   : > { %3178 = vmatprep.subr.bf16.mxu0 %v12766_v32  ;;  %3208 = vmatprep.mubr.bf16.mxu0 %v16518_v49 }
 0xa32   : > { %3136 = vmatpush1.bf16.msra.mxu1 %v12763_v14  ;;  %v3088_v14 = vrot.slane %v3071_v43, %v17019_v56 }
 0xa33   : > { %14453 = vmatprep.subr.bf16.mxu1 %v15593_v59 }
 0xa34   : > { %3179 = vmatpush1.bf16.msra.mxu0 %v12765_v15 }
 0xa35   : > { %12767 = vmatmul.mubr.msk.bf16.vlgmr.msra.gmra.mrb[44].mxu1 %vm744_vm4, %v16895_v12  ;;  %14475 = vmatprep.subr.bf16.mxu0 %v15594_v60 }
 0xa36   : > { %14454 = vmatpush3.bf16.msra.mxu1 %v15595_v61 }
 0xa37   : > { %12768 = vmatmul.mubr.msk.bf16.vlgmr.msra.gmra.mrb[48].mxu0 %vm744_vm4, %v16895_v12  ;;  %v15597_v12 = vld [vmem:[%s19932_s13 + $0x348] sm:$0xff]  }
 0xa38   : > { %14476 = vmatpush3.bf16.msra.mxu0 %v15596_v63  ;;  %14455 = vmatprep.subr.bf16.mxu1 %v15597_v12 }
 0xa39   : > { %14477 = vmatprep.subr.bf16.mxu0 %v15598_v3 }
 0xa3a   : > { %14456 = vmatpush3.bf16.msra.mxu1 %v15599_v4 }
 0xa3b   : > { %14457 = vmatprep.subr.bf16.mxu1 %v15601_v47 }
 0xa3c   : > { %14478 = vmatpush3.bf16.msra.mxu0 %v15600_v35 }
 0xa3d   : > { %14479 = vmatprep.subr.bf16.mxu0 %v15602_v16 }
 0xa3e   : > { %14458 = vmatpush3.bf16.msra.mxu1 %v15603_v1 }
 0xa3f   : > { %14459 = vmatprep.subr.bf16.mxu1 %v15605_v36 }
 0xa40   : > { %14480 = vmatpush3.bf16.msra.mxu0 %v15604_v2 }
 0xa41   : > { %14481 = vmatprep.subr.bf16.mxu0 %v15606_v21 }
 0xa42   : > { %14460 = vmatpush3.bf16.msra.mxu1 %v15607_v48 }
 0xa43   : > { %14461 = vmatprep.subr.bf16.mxu1 %v15609_v29 }
 0xa44   : > { %14482 = vmatpush3.bf16.msra.mxu0 %v15608_v27 }
 0xa45   : > { %14483 = vmatprep.subr.bf16.mxu0 %v15610_v19 }
 0xa46   : > { %14462 = vmatpush3.bf16.msra.mxu1 %v15611_v30 }
 0xa47   : > { %14463 = vmatprep.subr.bf16.mxu1 %v15613_v38 }
 0xa48   : > { %14484 = vmatpush3.bf16.msra.mxu0 %v15612_v20 }
 0xa49   : > { %14485 = vmatprep.subr.bf16.mxu0 %v15614_v22 }
 0xa4a   : > { %14464 = vmatpush3.bf16.msra.mxu1 %v15615_v5 }
 0xa4b   : > { %14465 = vmatprep.subr.bf16.mxu1 %v15617_v23 }
 0xa4c   : > { %14486 = vmatpush3.bf16.msra.mxu0 %v15616_v50 }
 0xa4d   : > { %14487 = vmatprep.subr.bf16.mxu0 %v15618_v40 }
 0xa4e   : > { %14466 = vmatpush3.bf16.msra.mxu1 %v15619_v58 }
 0xa4f   : > { %14467 = vmatprep.subr.bf16.mxu1 %v15621_v18 }
 0xa50   : > { %14488 = vmatpush3.bf16.msra.mxu0 %v15620_v26 }
 0xa51   : > { %14489 = vmatprep.subr.bf16.mxu0 %v15622_v17 }
 0xa52   : > { %14468 = vmatpush3.bf16.msra.mxu1 %v15623_v31 }
 0xa53   : > { %15166 = vmatprep.subr.bf16.mxu1 %v16502_v0 }
 0xa54   : > { %14490 = vmatpush3.bf16.msra.mxu0 %v15624_v33 }
 0xa55   : > { %15174 = vmatprep.subr.bf16.mxu0 %v16502_v0 }
 0xb00   : > { %v14425_v34 = vpop.f32.mrb[40].mxu1 }
 0xb01   : > { %v14426_v37 = vpop.f32.mrb[41].mxu1 }
 0xb02   : > { %v14447_v41 = vpop.f32.mrb[44].mxu0  ;;  %v14427_v42 = vadd.f32 %v14426_v37, %v14425_v34  ;;  %v14428_v39 = vpop.f32.mrb[42].mxu1 }
 0xb03   : > { %v14448_v44 = vpop.f32.mrb[45].mxu0  ;;  %v14429_v45 = vpop.f32.mrb[43].mxu1 }
 0xb04   : > { %v14449_v46 = vadd.f32 %v14448_v44, %v14447_v41  ;;  %v14450_v25 = vpop.f32.mrb[46].mxu0  ;;  %v14430_v51 = vadd.f32 %v14429_v45, %v14428_v39 }
 0xb05   : > { %v14451_v52 = vpop.f32.mrb[47].mxu0 }
 0xb06   : > { %v3055_v62 = vadd.f32 %v14449_v46, %v14427_v42  ;;  %v14452_v8 = vadd.f32 %v14451_v52, %v14450_v25 }
 0xb08   : > { %v17481_v28 = vadd.f32 %v3055_v62, %v17345_v6  ;;  %v3058_v13 = vadd.f32 %v14452_v8, %v14430_v51  ;;  %v3167_v32 = vpop.f32.mrb[44].mxu1 }
 0xb09   : > { %v3168_v15 = vadd.f32 %v3167_v32, %v3076_v57  ;;  %v3169_v59 = vpop.f32.mrb[45].mxu1 }
 0xb0a   : > { %v17485_v60 = vadd.f32 %v3058_v13, %v17349_v24  ;;  %v3210_v61 = vpop.f32.mrb[48].mxu0  ;;  %v3170_v63 = vadd.f32 %v3169_v59, %v3080_v7  ;;  %v3171_v12 = vpop.f32.mrb[46].mxu1 }
 0xb0b   : > { %v3227_v3 = vmul.f32 0.70710677, %v3168_v15  ;;  %v3211_v4 = vadd.f32 %v3210_v61, %v3084_v9  ;;  %v3212_v35 = vpop.f32.mrb[49].mxu0  ;;  %v3172_v47 = vadd.f32 %v3171_v12, %v3076_v57  ;;  %v3173_v16 = vpop.f32.mrb[47].mxu1  ;;  %v3219_v26 = vmul.f32 0.5, %v3168_v15 }
 0xb0c   : > { %v3228_v1 = vmul.f32 0.70710677, %v3170_v63  ;;  %v3213_v6 = vadd.f32 %v3212_v35, %v3088_v14  ;;  %v3214_v2 = vpop.f32.mrb[50].mxu0  ;;  %v3174_v36 = vadd.f32 %v3173_v16, %v3080_v7  ;;  %v3220_v18 = vmul.f32 0.5, %v3170_v63 }
 0xb0d   : > { %16105 = verf.f32 %v3227_v3  ;;  %v3229_v21 = vmul.f32 0.70710677, %v3211_v4  ;;  %v3216_v48 = vpop.f32.mrb[51].mxu0  ;;  %v3231_v29 = vmul.f32 0.70710677, %v3172_v47  ;;  %v3215_v24 = vadd.f32 %v3214_v2, %v3084_v9 }
 0xb0e   : > { %16107 = verf.f32 %v3228_v1  ;;  %v3230_v27 = vmul.f32 0.70710677, %v3213_v6  ;;  %v3232_v19 = vmul.f32 0.70710677, %v3174_v36  ;;  %v3217_v30 = vadd.f32 %v3216_v48, %v3088_v14 }
 0xb0f   : > { %16109 = verf.f32 %v3229_v21  ;;  %v3233_v20 = vmul.f32 0.70710677, %v3215_v24  ;;  %v3221_v33 = vmul.f32 0.5, %v3211_v4  ;;  %v3223_v37 = vmul.f32 0.5, %v3172_v47 }
 0xb10   : > { %16111 = verf.f32 %v3230_v27  ;;  %v3234_v38 = vmul.f32 0.70710677, %v3217_v30  ;;  %v3222_v39 = vmul.f32 0.5, %v3213_v6  ;;  %v3224_v44 = vmul.f32 0.5, %v3174_v36 }
 0xb11   : > { %16113 = verf.f32 %v3231_v29  ;;  %v3225_v52 = vmul.f32 0.5, %v3215_v24  ;;  %v3226_v7 = vmul.f32 0.5, %v3217_v30  ;;  %v12801_v24 = vld [vmem:[%s19933_s14] ss:$0 sm:$0xff] }
 0xb12   : > { %16115 = verf.f32 %v3232_v19 }
 0xb13   : > { %16117 = verf.f32 %v3233_v20 }
 0xb14   : > { %16119 = verf.f32 %v3234_v38 }
 0xb17   : > { %v16106_v22 = vpop.eup %16105 }
 0xb18   : > { %v16108_v5 = vpop.eup %16107  ;;  %v3243_v40 = vadd.f32 1.0, %v16106_v22 }
 0xb19   : > { %v16110_v50 = vpop.eup %16109  ;;  %v3244_v17 = vadd.f32 1.0, %v16108_v5 }
 0xb1a   : > { %v16112_v23 = vpop.eup %16111  ;;  %v3245_v34 = vadd.f32 1.0, %v16110_v50  ;;  %v3251_v25 = vmul.f32 %v3243_v40, %v3219_v26 }
 0xb1b   : > { %v16114_v58 = vpop.eup %16113  ;;  %v3246_v43 = vadd.f32 1.0, %v16112_v23  ;;  %v3252_v62 = vmul.f32 %v3244_v17, %v3220_v18 }
 0xb1c   : > { %v16116_v31 = vpop.eup %16115  ;;  %v3247_v41 = vadd.f32 1.0, %v16114_v58  ;;  %v3253_v13 = vmul.f32 %v3245_v34, %v3221_v33 }
 0xb1d   : > { %v16118_v42 = vpop.eup %16117  ;;  %v3248_v45 = vadd.f32 1.0, %v16116_v31  ;;  %v3254_v15 = vmul.f32 %v3246_v43, %v3222_v39 }
 0xb1e   : > { %v16120_v46 = vpop.eup %16119  ;;  %v3255_v51 = vmul.f32 %v3247_v41, %v3223_v37  ;;  %v3249_v57 = vadd.f32 1.0, %v16118_v42  ;;  %v15626_v37 = vld [vmem:[%s19924_s5 + $0x18] sm:$0xff]  }
 0xb1f   : > { %v3256_v8 = vmul.f32 %v3248_v45, %v3224_v44  ;;  %v3250_v9 = vadd.f32 1.0, %v16120_v46 }
 0xb20   : > { %v3259_v32 = vpack.c.bf16 %v3255_v51, %v3251_v25  ;;  %v3257_v14 = vmul.f32 %v3249_v57, %v3225_v52  ;;  %v12802_v25 = vld [vmem:[%s19934_s15] ss:$0 sm:$0xff] }
 0xb21   : > { %v3258_v59 = vmul.f32 %v3250_v9, %v3226_v7  ;;  %v3260_v61 = vpack.c.bf16 %v3256_v8, %v3252_v62  ;;  %v12803_v8 = vld [vmem:[%s19935_s16] ss:$0 sm:$0xff] }
 0xb22   : > { %v3261_v63 = vpack.c.bf16 %v3257_v14, %v3253_v13  ;;  %v12809_v14 = vld [vmem:[%s19925_s6 + $0x1] ss:$0 sm:$0xff] }
 0xb23   : > { %3551 = vmatprep.mubr.bf16.mxu1 %v3260_v61  ;;  %v3262_v12 = vpack.c.bf16 %v3258_v59, %v3254_v15 }
 0xb24   : > { %3552 = vmatmul.mubr.bf16.vlgmr.msra.gmra.mrb[48].mxu1 %v3259_v32 }
 0xb25   : > { %3592 = vmatprep.mubr.bf16.mxu0 %v3262_v12  ;;  %15170 = vmatprep.mubr.msk.bf16.mxu1 %vm16503_vm1, %v16502_v0 }
 0xb26   : > { %3593 = vmatmul.mubr.bf16.vlgmr.msra.gmra.mrb[52].mxu0 %v3261_v63 }
 0xb27   : > { %15176 = vmatprep.mubr.msk.bf16.mxu0 %vm16503_vm1, %v16502_v0 }
 0xbf7   : > { %v14469_v3 = vpop.f32.mrb[48].mxu1 }
 0xbf8   : > { %v14470_v4 = vpop.f32.mrb[49].mxu1 }
 0xbf9   : > { %v14491_v35 = vpop.f32.mrb[52].mxu0  ;;  %v14471_v47 = vadd.f32 %v14470_v4, %v14469_v3  ;;  %v14472_v16 = vpop.f32.mrb[50].mxu1 }
 0xbfa   : > { %v14492_v1 = vpop.f32.mrb[53].mxu0  ;;  %v14473_v6 = vpop.f32.mrb[51].mxu1 }
 0xbfb   : > { %v14493_v2 = vadd.f32 %v14492_v1, %v14491_v35  ;;  %v14494_v36 = vpop.f32.mrb[54].mxu0  ;;  %v14474_v21 = vadd.f32 %v14473_v6, %v14472_v16 }
 0xbfc   : > { %v14495_v48 = vpop.f32.mrb[55].mxu0 }
 0xbfd   : > { %v3595_v27 = vadd.f32 %v14493_v2, %v14471_v47  ;;  %v14496_v29 = vadd.f32 %v14495_v48, %v14494_v36 }
 0xbff   : > { %v3601_v19 = vadd.f32 %v3595_v27, %v17481_v28  ;;  %v3598_v30 = vadd.f32 %v14496_v29, %v14474_v21 }
 0xc01   : > { %v3602_v20 = vadd.f32 %v3598_v30, %v17485_v60  ;;  %v3610_v38 = vadd.f32 %v12801_v24, %v3601_v19 }
 0xc03   : > { %v3612_v22 = vadd.f32 %v3610_v38, %v16889_v10  ;;  %v3611_v5 = vadd.f32 %v12801_v24, %v3602_v20 }
 0xc05   : > { %v3616_v50 = vsel %vm744_vm4, %v3612_v22, 0.0  ;;  %v3613_v23 = vadd.f32 %v3611_v5, %v16891_v11  ;;  %v15625_v11 = vld [vmem:[%s19924_s5 + $0x10] sm:$0xff]   ;;  %v16435_v5 = vld [vmem:[%s16759_s27] ss:$0 sm:$0xff] }
 0xc06   : > { %3617 = vadd.xlane.f32.xlu1 %v3616_v50  ;;  %15167 = vmatpush3.bf16.msra.mxu1 %v15625_v11 }
 0xc07   : > { %v3619_v40 = vsel %vm744_vm4, %v3613_v23, 0.0  ;;  %15168 = vmatprep.subr.bf16.mxu1 %v16502_v0 }
 0xc08   : > { %3620 = vadd.xlane.f32.xlu0 %v3619_v40 }
 0xc0a   : > { %15169 = vmatpush3.bf16.msra.mxu1 %v15626_v37 }
 0xc0b   : > { %15180 = vmatprep.subr.bf16.mxu1 %v16502_v0 }
 0xc93   : > { %v3618_v58 = vpop.xlane.xlu1 %3617 }
 0xc94   : > { %v3622_v26 = vmul.f32 0.03125, %v3618_v58 }
 0xc95   : > { %v3621_v18 = vpop.xlane.xlu0 %3620 }
 0xc96   : > { %v3624_v17 = vsub.f32 %v3612_v22, %v3622_v26  ;;  %v3623_v28 = vmul.f32 0.03125, %v3621_v18 }
 0xc98   : > { %v3625_v31 = vsub.f32 %v3613_v23, %v3623_v28  ;;  %v3626_v33 = vmul.f32 %v3624_v17, %v3624_v17 }
 0xc9a   : > { %v3628_v60 = vsel %vm744_vm4, %v3626_v33, 0.0  ;;  %v3627_v34 = vmul.f32 %v3625_v31, %v3625_v31 }
 0xc9b   : > { %3629 = vadd.xlane.f32.xlu1 %v3628_v60 }
 0xc9c   : > { %v3631_v10 = vsel %vm744_vm4, %v3627_v34, 0.0 }
 0xc9d   : > { %3632 = vadd.xlane.f32.xlu0 %v3631_v10 }
 0xd28   : > { %v3630_v41 = vpop.xlane.xlu1 %3629 }
 0xd29   : > { %v3634_v42 = vmul.f32 0.03125, %v3630_v41 }
 0xd2a   : > { %v3633_v39 = vpop.xlane.xlu0 %3632 }
 0xd2b   : > { %v3636_v43 = vadd.f32 1e-05, %v3634_v42  ;;  %v3635_v44 = vmul.f32 0.03125, %v3633_v39 }
 0xd2d   : > { %16121 = vrsqrt.f32 %v3636_v43  ;;  %v3637_v45 = vadd.f32 1e-05, %v3635_v44 }
 0xd2f   : > { %16123 = vrsqrt.f32 %v3637_v45 }
 0xd37   : > { %v16122_v46 = vpop.eup %16121 }
 0xd38   : > { %v3640_v51 = vmul.f32 %v16122_v46, %v3624_v17 }
 0xd39   : > { %v16124_v52 = vpop.eup %16123 }
 0xd3a   : > { %v3648_v57 = vmul.f32 %v12802_v25, %v3640_v51  ;;  %v3641_v62 = vmul.f32 %v16124_v52, %v3625_v31 }
 0xd3c   : > { %v3649_v7 = vmul.f32 %v12802_v25, %v3641_v62  ;;  %v17516_v9 = vadd.f32 %v12803_v8, %v3648_v57 }
 0xd3e   : > { %v17518_v13 = vadd.f32 %v12803_v8, %v3649_v7 }
 0xd40   : > { %v3658_v32 = vpack.c.bf16 %v17518_v13, %v17516_v9 }
 0xd42   : > { %15171 = vmatmul.mubr.msk.bf16.vlgmr.msra.gmra.mrb[52].mxu1 %vm744_vm4, %v3658_v32 }
 0xd43   : > { %15182 = vmatprep.mubr.msk.bf16.mxu1 %vm16503_vm1, %v16502_v0 }
 0xe15   : > { %v3721_v15 = vpop.f32.mrb[52].mxu1 }
 0xe16   : > { %v15172_v59 = vpop.f32.mrb[53].mxu1  ;;  %v3722_v63 = vadd.f32 %v12809_v14, %v3721_v15 }
 0xe17   : > { %v3724_v61 = vpop.f32.mrb[54].mxu1 }
 0xe18   : > { %v3725_v12 = vadd.f32 %v12809_v14, %v3724_v61  ;;  %v15173_v3 = vpop.f32.mrb[55].mxu1 }
 0xe1a   : > { %v17528_v4 = vpack.c.bf16 %v3725_v12, %v3722_v63 }
 0xe1c   : > { %3855 = vrot.lane.b32.xlu0 %v17528_v4, %s20010_s24  ;;  %3730 = vrot.lane.b32.xlu1 %v17528_v4, %s20011_s22 }
 0xe20   : > { %3978 = vrot.lane.b32.xlu0 %v17528_v4, %s20012_s2  ;;  %3853 = vrot.lane.b32.xlu1 %v17528_v4, %s20013_s26 }
 0xe24   : > { %4103 = vrot.lane.b32.xlu0 %v17528_v4, %s20014_s29  ;;  %3980 = vrot.lane.b32.xlu1 %v17528_v4, %s20015_s23 }
 0xe28   : > { %4105 = vrot.lane.b32.xlu1 %v17528_v4, %s20016_s28 }
 0xe8e   : > { %v3731_v35 = vpop.permute.xlu1 %3730  ;;  %v3856_v16 = vpop.permute.xlu0 %3855 }
 0xe8f   : > { %v3736_v47 = vsel %vm793_vm5, %v3731_v35, 0  ;;  %v3861_v6 = vsel %vm793_vm5, %v3856_v16, 0 }
 0xe90   : > { %15175 = vmatpush3.bf16.xpose.msra.mxu0 %v3736_v47 }
 0xe91   : > { %15186 = vmatprep.subr.bf16.mxu0 %v16502_v0 }
 0xe92   : > { %v3854_v1 = vpop.permute.xlu1 %3853  ;;  %v3979_v48 = vpop.permute.xlu0 %3978 }
 0xe96   : > { %v3981_v2 = vpop.permute.xlu1 %3980  ;;  %v4104_v29 = vpop.permute.xlu0 %4103 }
 0xe97   : > { %15177 = vmatmul.mubr.msk.bf16.vlgmr.msra.gmra.mrb[56].mxu0 %vm793_vm5, %v17528_v4  ;;  %v3986_v36 = vsel %vm793_vm5, %v3981_v2, 0 }
 0xe98   : > { %15187 = vmatpush3.bf16.xpose.msra.mxu0 %v3861_v6  ;;  %15188 = vmatprep.mubr.msk.bf16.mxu0 %vm16503_vm1, %v16502_v0 }
 0xe99   : > { %15198 = vmatprep.subr.bf16.mxu0 %v16502_v0 }
 0xe9a   : > { %v4106_v21 = vpop.permute.xlu1 %4105 }
 0xe9b   : > { %v4111_v27 = vsel %vm793_vm5, %v4106_v21, 0 }
 0xe9f   : > { %15189 = vmatmul.mubr.msk.bf16.vlgmr.msra.gmra.mrb[60].mxu0 %vm793_vm5, %v3854_v1 }
 0xea0   : > { %15199 = vmatpush3.bf16.xpose.msra.mxu0 %v3986_v36  ;;  %15200 = vmatprep.mubr.msk.bf16.mxu0 %vm16503_vm1, %v16502_v0 }
 0xea1   : > { %15210 = vmatprep.subr.bf16.mxu0 %v16502_v0 }
 0xea7   : > { %15201 = vmatmul.mubr.msk.bf16.vlgmr.msra.gmra.mrb[64].mxu0 %vm793_vm5, %v3979_v48 }
 0xea8   : > { %15211 = vmatpush3.bf16.xpose.msra.mxu0 %v4111_v27  ;;  %15212 = vmatprep.mubr.msk.bf16.mxu0 %vm16503_vm1, %v16502_v0 }
 0xea9   : > { %15222 = vmatprep.subr.bf16.mxu0 %v16502_v0 }
 0xeaf   : > { %15213 = vmatmul.mubr.msk.bf16.vlgmr.msra.gmra.mrb[68].mxu0 %vm793_vm5, %v4104_v29 }
 0xeb0   : > { %15226 = vmatprep.mubr.msk.bf16.mxu0 %vm16503_vm1, %v16502_v0 }
 0xf6a   : > { %v3772_v24 = vpop.f32.mrb[56].mxu0 }
 0xf6b   : > { %v3779_v19 = vmul.f32 0.35355338, %v3772_v24  ;;  %v15178_v30 = vpop.f32.mrb[57].mxu0 }
 0xf6c   : > { %v3775_v20 = vpop.f32.mrb[58].mxu0 }
 0xf6d   : > { %v3780_v38 = vmul.f32 0.35355338, %v3775_v20  ;;  %v15179_v22 = vpop.f32.mrb[59].mxu0  ;;  %v3781_v50 = vadd.f32 %v16435_v5, %v3779_v19 }
 0xf6f   : > { %v3783_v23 = vsel %vm851_vm6, %v3781_v50, -inf  ;;  %v3782_v40 = vadd.f32 %v16435_v5, %v3780_v38 }
 0xf70   : > { %3784 = vmax.xlane.f32.xlu1 %v3783_v23 }
 0xf71   : > { %v3786_v58 = vsel %vm851_vm6, %v3782_v40, -inf }
 0xf72   : > { %3787 = vmax.xlane.f32.xlu0 %v3786_v58  ;;  %v3897_v26 = vpop.f32.mrb[60].mxu0 }
 0xf73   : > { %v3904_v18 = vmul.f32 0.35355338, %v3897_v26  ;;  %v15190_v17 = vpop.f32.mrb[61].mxu0 }
 0xf74   : > { %v3900_v28 = vpop.f32.mrb[62].mxu0 }
 0xf75   : > { %v3905_v31 = vmul.f32 0.35355338, %v3900_v28  ;;  %v15191_v33 = vpop.f32.mrb[63].mxu0  ;;  %v3906_v60 = vadd.f32 %v16435_v5, %v3904_v18 }
 0xf77   : > { %v3908_v34 = vsel %vm851_vm6, %v3906_v60, -inf  ;;  %v3907_v10 = vadd.f32 %v16435_v5, %v3905_v31 }
 0xf78   : > { %3909 = vmax.xlane.f32.xlu0 %v3908_v34 }
 0xf79   : > { %v3911_v11 = vsel %vm851_vm6, %v3907_v10, -inf }
 0xf7a   : > { %3912 = vmax.xlane.f32.xlu1 %v3911_v11  ;;  %v4022_v37 = vpop.f32.mrb[64].mxu0 }
 0xf7b   : > { %v4029_v41 = vmul.f32 0.35355338, %v4022_v37  ;;  %v15202_v42 = vpop.f32.mrb[65].mxu0 }
 0xf7c   : > { %v4025_v39 = vpop.f32.mrb[66].mxu0 }
 0xf7d   : > { %v4030_v43 = vmul.f32 0.35355338, %v4025_v39  ;;  %v15203_v44 = vpop.f32.mrb[67].mxu0  ;;  %v4031_v45 = vadd.f32 %v16435_v5, %v4029_v41 }
 0xf7f   : > { %v4033_v46 = vsel %vm851_vm6, %v4031_v45, -inf  ;;  %v4032_v25 = vadd.f32 %v16435_v5, %v4030_v43 }
 0xf80   : > { %4034 = vmax.xlane.f32.xlu0 %v4033_v46 }
 0xf81   : > { %v4036_v51 = vsel %vm851_vm6, %v4032_v25, -inf }
 0xf82   : > { %4037 = vmax.xlane.f32.xlu1 %v4036_v51  ;;  %v4147_v52 = vpop.f32.mrb[68].mxu0 }
 0xf83   : > { %v4154_v57 = vmul.f32 0.35355338, %v4147_v52  ;;  %v15214_v62 = vpop.f32.mrb[69].mxu0 }
 0xf84   : > { %v4150_v8 = vpop.f32.mrb[70].mxu0 }
 0xf85   : > { %v4155_v7 = vmul.f32 0.35355338, %v4150_v8  ;;  %v15215_v32 = vpop.f32.mrb[71].mxu0  ;;  %v4156_v14 = vadd.f32 %v16435_v5, %v4154_v57 }
 0xf87   : > { %v4158_v15 = vsel %vm851_vm6, %v4156_v14, -inf  ;;  %v4157_v59 = vadd.f32 %v16435_v5, %v4155_v7 }
 0xf88   : > { %4159 = vmax.xlane.f32.xlu0 %v4158_v15 }
 0xf89   : > { %v4161_v61 = vsel %vm851_vm6, %v4157_v59, -inf }
 0xf8a   : > { %4162 = vmax.xlane.f32.xlu1 %v4161_v61 }
 0xffd   : > { %v3785_v63 = vpop.xlane.xlu1 %3784 }
 0xffe   : > { %v3789_v12 = vsub.f32 %v3781_v50, %v3785_v63 }
 0xfff   : > { %v3788_v3 = vpop.xlane.xlu0 %3787 }
0x1000   : > { %v3791_v35 = vmul.f32 1.442695, %v3789_v12  ;;  %v3790_v47 = vsub.f32 %v3782_v40, %v3788_v3 }
0x1002   : > { %16125 = vpow2.f32 %v3791_v35  ;;  %v3793_v16 = vmul.f32 1.442695, %v3790_v47 }
0x1004   : > { %16127 = vpow2.f32 %v3793_v16 }
0x1005   : > { %v3910_v1 = vpop.xlane.xlu0 %3909 }
0x1006   : > { %v3914_v6 = vsub.f32 %v3906_v60, %v3910_v1 }
0x1007   : > { %v3913_v19 = vpop.xlane.xlu1 %3912 }
0x1008   : > { %v3916_v2 = vmul.f32 1.442695, %v3914_v6  ;;  %v3915_v30 = vsub.f32 %v3907_v10, %v3913_v19 }
0x100a   : > { %16129 = vpow2.f32 %v3916_v2  ;;  %v3918_v22 = vmul.f32 1.442695, %v3915_v30 }
0x100c   : > { %v16126_v36 = vpop.eup %16125  ;;  %16131 = vpow2.f32 %v3918_v22 }
0x100d   : > { %v3795_v21 = vsel %vm851_vm6, %v16126_v36, 0.0  ;;  %v4035_v38 = vpop.xlane.xlu0 %4034 }
0x100e   : > { %v16128_v48 = vpop.eup %16127  ;;  %3796 = vadd.xlane.f32.xlu0 %v3795_v21  ;;  %v4039_v23 = vsub.f32 %v4031_v45, %v4035_v38 }
0x100f   : > { %v3798_v27 = vsel %vm851_vm6, %v16128_v48, 0.0  ;;  %v4038_v20 = vpop.xlane.xlu1 %4037 }
0x1010   : > { %3799 = vadd.xlane.f32.xlu1 %v3798_v27  ;;  %v4040_v5 = vsub.f32 %v4032_v25, %v4038_v20  ;;  %v4041_v18 = vmul.f32 1.442695, %v4039_v23 }
0x1012   : > { %v4043_v58 = vmul.f32 1.442695, %v4040_v5 }
0x1014   : > { %v17576_v29 = vpop.eup %16129  ;;  %16133 = vpow2.f32 %v4043_v58 }
0x1015   : > { %v3920_v24 = vsel %vm851_vm6, %v17576_v29, 0.0  ;;  %v4160_v40 = vpop.xlane.xlu0 %4159  ;;  %16135 = vpow2.f32 %v4041_v18 }
0x1016   : > { %3921 = vadd.xlane.f32.xlu0 %v3920_v24  ;;  %v4164_v17 = vsub.f32 %v4156_v14, %v4160_v40  ;;  %v16132_v33 = vpop.eup %16131  ;;  %v15627_v40 = vld [vmem:[%s20008_s7 + $0x10] sm:$0xff]  }
0x1017   : > { %v4163_v50 = vpop.xlane.xlu1 %4162  ;;  %v3923_v60 = vsel %vm851_vm6, %v16132_v33, 0.0  ;;  %15223 = vmatpush3.bf16.msra.mxu0 %v15627_v40 }
0x1018   : > { %v4165_v26 = vsub.f32 %v4157_v59, %v4163_v50  ;;  %v4166_v31 = vmul.f32 1.442695, %v4164_v17  ;;  %15224 = vmatprep.subr.bf16.mxu0 %v16502_v0 }
0x101a   : > { %v4168_v28 = vmul.f32 1.442695, %v4165_v26 }
0x101c   : > { %16137 = vpow2.f32 %v4168_v28  ;;  %v15628_v28 = vld [vmem:[%s20008_s7 + $0x18] sm:$0xff]   ;;  %s20029_s7 = sld [smem:[#allocation20_spill]] }
0x101d   : > { %16139 = vpow2.f32 %v4166_v31  ;;  %15225 = vmatpush3.bf16.msra.mxu0 %v15628_v28  ;;  %v12841_v28 = vld [vmem:[%s19930_s11 + $0x1c8] sm:$0xff] }
0x101e   : > { %v16134_v34 = vpop.eup %16133 }
0x101f   : > { %v16136_v10 = vpop.eup %16135  ;;  %v4048_v11 = vsel %vm851_vm6, %v16134_v34, 0.0 }
0x1020   : > { %v4045_v41 = vsel %vm851_vm6, %v16136_v10, 0.0 }
0x1021   : > { %3931 = vrot.lane.b32.xlu1 %v17528_v4, %s20017_s20 }
0x1026   : > { %v16138_v37 = vpop.eup %16137 }
0x1027   : > { %v16140_v42 = vpop.eup %16139  ;;  %v4173_v39 = vsel %vm851_vm6, %v16138_v37, 0.0 }
0x1028   : > { %v4170_v43 = vsel %vm851_vm6, %v16140_v42, 0.0 }
0x102c   : > { %3806 = vrot.lane.b32.xlu0 %v17528_v4, %s20018_s4 }
0x1045   : > { %3924 = vadd.xlane.f32.xlu1 %v3923_v60 }
0x1049   : > { %4049 = vadd.xlane.f32.xlu1 %v4048_v11 }
0x104b   : > { %4046 = vadd.xlane.f32.xlu0 %v4045_v41 }
0x104d   : > { %4174 = vadd.xlane.f32.xlu1 %v4173_v39 }
0x104f   : > { %4171 = vadd.xlane.f32.xlu0 %v4170_v43 }
0x105e   : > { %4056 = vrot.lane.b32.xlu1 %v17528_v4, %s20019_s25 }
0x1065   : > { %4181 = vrot.lane.b32.xlu0 %v17528_v4, %s20020_s0  ;;  %s20025_s0 = sld [smem:[#allocation19_spill]] }
0x109b   : > { %v3797_v44 = vpop.xlane.xlu0 %3796 }
0x109c   : > { %16141 = vrcp.f32 %v3797_v44 }
0x109d   : > { %v3800_v45 = vpop.xlane.xlu1 %3799 }
0x109e   : > { %16143 = vrcp.f32 %v3800_v45 }
0x10a1   : > { %v3932_v7 = vpop.permute.xlu1 %3931 }
0x10a3   : > { %v3922_v46 = vpop.xlane.xlu0 %3921 }
0x10a4   : > { %16145 = vrcp.f32 %v3922_v46 }
0x10a6   : > { %v16142_v25 = vpop.eup %16141 }
0x10a7   : > { %v3807_v51 = vpop.permute.xlu0 %3806  ;;  %v3803_v57 = vmul.f32 %v16142_v25, %v16126_v36 }
0x10a8   : > { %v16144_v52 = vpop.eup %16143  ;;  %15181 = vmatpush3.bf16.msra.mxu1 %v3807_v51 }
0x10a9   : > { %v3804_v62 = vmul.f32 %v16144_v52, %v16128_v48  ;;  %15192 = vmatprep.subr.bf16.mxu1 %v16502_v0 }
0x10ab   : > { %v3805_v8 = vpack.c.bf16 %v3804_v62, %v3803_v57 }
0x10ad   : > { %15183 = vmatmul.mubr.msk.bf16.vlgmr.msra.gmra.mrb[56].mxu1 %vm851_vm6, %v3805_v8 }
0x10ae   : > { %15193 = vmatpush3.bf16.msra.mxu1 %v3932_v7  ;;  %15194 = vmatprep.mubr.msk.bf16.mxu1 %vm16503_vm1, %v16502_v0  ;;  %v16146_v15 = vpop.eup %16145 }
0x10af   : > { %15204 = vmatprep.subr.bf16.mxu1 %v16502_v0  ;;  %v3928_v12 = vmul.f32 %v16146_v15, %v17576_v29  ;;  %v12826_v15 = vld [vmem:[%s20009_s8 + $0x1] ss:$0 sm:$0xff]  ;;  %s20036_s8 = sld [smem:[#allocation21_spill]] }
0x10d2   : > { %v3925_v4 = vpop.xlane.xlu1 %3924 }
0x10d3   : > { %16147 = vrcp.f32 %v3925_v4 }
0x10d6   : > { %v4050_v32 = vpop.xlane.xlu1 %4049 }
0x10d7   : > { %16149 = vrcp.f32 %v4050_v32 }
0x10d8   : > { %v4047_v14 = vpop.xlane.xlu0 %4046 }
0x10d9   : > { %16151 = vrcp.f32 %v4047_v14 }
0x10da   : > { %v4175_v59 = vpop.xlane.xlu1 %4174 }
0x10dc   : > { %v4172_v61 = vpop.xlane.xlu0 %4171 }
0x10dd   : > { %v16148_v63 = vpop.eup %16147  ;;  %16153 = vrcp.f32 %v4172_v61 }
0x10de   : > { %v3929_v3 = vmul.f32 %v16148_v63, %v16132_v33  ;;  %16155 = vrcp.f32 %v4175_v59  ;;  %v4057_v16 = vpop.permute.xlu1 %4056 }
0x10e0   : > { %v3930_v35 = vpack.c.bf16 %v3929_v3, %v3928_v12  ;;  %v4182_v48 = vpop.permute.xlu0 %4181 }
0x10e1   : > { %v16150_v47 = vpop.eup %16149 }
0x10e2   : > { %15195 = vmatmul.mubr.msk.bf16.vlgmr.msra.gmra.mrb[60].mxu1 %vm851_vm6, %v3930_v35  ;;  %v4054_v2 = vmul.f32 %v16150_v47, %v16134_v34 }
0x10e3   : > { %v16152_v1 = vpop.eup %16151  ;;  %15205 = vmatpush3.bf16.msra.mxu1 %v4057_v16  ;;  %15206 = vmatprep.mubr.msk.bf16.mxu1 %vm16503_vm1, %v16502_v0 }
0x10e4   : > { %v4053_v6 = vmul.f32 %v16152_v1, %v16136_v10  ;;  %15216 = vmatprep.subr.bf16.mxu1 %v16502_v0 }
0x10e6   : > { %v4055_v36 = vpack.c.bf16 %v4054_v2, %v4053_v6 }
0x10e7   : > { %v16154_v21 = vpop.eup %16153 }
0x10e8   : > { %v16156_v27 = vpop.eup %16155  ;;  %v4178_v29 = vmul.f32 %v16154_v21, %v16140_v42 }
0x10e9   : > { %v4179_v24 = vmul.f32 %v16156_v27, %v16138_v37 }
0x10ea   : > { %15207 = vmatmul.mubr.msk.bf16.vlgmr.msra.gmra.mrb[64].mxu1 %vm851_vm6, %v4055_v36 }
0x10eb   : > { %15217 = vmatpush3.bf16.msra.mxu1 %v4182_v48  ;;  %15218 = vmatprep.mubr.msk.bf16.mxu1 %vm16503_vm1, %v16502_v0  ;;  %v4180_v19 = vpack.c.bf16 %v4179_v24, %v4178_v29 }
0x10f2   : > { %15219 = vmatmul.mubr.msk.bf16.vlgmr.msra.gmra.mrb[68].mxu1 %vm851_vm6, %v4180_v19 }
0x10f3   : > { %4484 = vmatprep.mubr.bf16.mxu1 %v16518_v49 }
0x1180   : > { %v3846_v30 = vpop.f32.mrb[56].mxu1 }
0x1181   : > { %v15184_v20 = vpop.f32.mrb[57].mxu1 }
0x1182   : > { %v3849_v38 = vpop.f32.mrb[58].mxu1  ;;  %v12836_v20 = vld [vmem:[%s19930_s11 + $0x140] sm:$0xff] }
0x1183   : > { %v15185_v22 = vpop.f32.mrb[59].mxu1 }
0x11b5   : > { %v3971_v5 = vpop.f32.mrb[60].mxu1 }
0x11b6   : > { %v15196_v50 = vpop.f32.mrb[61].mxu1 }
0x11b7   : > { %v3974_v23 = vpop.f32.mrb[62].mxu1 }
0x11b8   : > { %v15447_v58 = vpack.i.bf16 %v3974_v23, %v3971_v5  ;;  %v15197_v26 = vpop.f32.mrb[63].mxu1  ;;  %v12837_v5 = vld [vmem:[%s19930_s11 + $0x148] sm:$0xff] }
0x11b9   : > { %v12840_v26 = vld [vmem:[%s19930_s11 + $0x1c0] sm:$0xff] }
0x11ba   : > { %15448 = vrot.lane.b32.xlu1 %v15447_v58, %s20021_s18  ;;  %v12838_v58 = vld [vmem:[%s19930_s11 + $0x180] sm:$0xff]  ;;  %s20028_s18 = smov 24  }
0x11bd   : > { %v4096_v18 = vpop.f32.mrb[64].mxu1 }
0x11be   : > { %v15208_v17 = vpop.f32.mrb[65].mxu1 }
0x11bf   : > { %v4099_v31 = vpop.f32.mrb[66].mxu1  ;;  %v12848_v17 = vcombine.high %v12838_v58, %v12840_v26 }
0x11c0   : > { %v15452_v33 = vpack.i.bf16 %v4099_v31, %v4096_v18  ;;  %v15209_v60 = vpop.f32.mrb[67].mxu1  ;;  %v12839_v18 = vld [vmem:[%s19930_s11 + $0x188] sm:$0xff]  ;;  %v12847_v31 = vcombine.low %v12838_v58, %v12840_v26  ;;  %v15646_v58 = vld [vmem:[%s19932_s13 + $0x5e0] sm:$0xff]  }
0x11c1   : > { %v12850_v60 = vcombine.high %v12839_v18, %v12841_v28  ;;  %v15647_v26 = vld [vmem:[%s19932_s13 + $0x520] sm:$0xff]  }
0x11c2   : > { %15453 = vrot.lane.b32.xlu0 %v15452_v33, %s20022_s30  ;;  %v12849_v33 = vcombine.low %v12839_v18, %v12841_v28  ;;  %v15648_v18 = vld [vmem:[%s19932_s13 + $0x5a0] sm:$0xff]   ;;  %v15650_v28 = vld [vmem:[%s19932_s13 + $0x5e8] sm:$0xff]   ;;  %s20041_s30 = sld [smem:[#allocation23_spill]] }
0x11c5   : > { %v4221_v34 = vpop.f32.mrb[68].mxu1 }
0x11c6   : > { %v15220_v10 = vpop.f32.mrb[69].mxu1 }
0x11c7   : > { %v4224_v11 = vpop.f32.mrb[70].mxu1  ;;  %v12919_v10 = vld [vmem:[%s19930_s11 + $0x150] sm:$0xff] }
0x11c8   : > { %v15457_v37 = vpack.i.bf16 %v4224_v11, %v4221_v34  ;;  %v15221_v41 = vpop.f32.mrb[71].mxu1  ;;  %v12917_v34 = vld [vmem:[%s19930_s11 + $0x110] sm:$0xff]  ;;  %v12918_v11 = vld [vmem:[%s19930_s11 + $0x118] sm:$0xff] }
0x11c9   : > { %v12920_v41 = vld [vmem:[%s19930_s11 + $0x158] sm:$0xff] }
0x11ca   : > { %15458 = vrot.lane.b32.xlu1 %v15457_v37, %s20023_s19  ;;  %v12927_v37 = vcombine.high %v12917_v34, %v12919_v10  ;;  %s20027_s19 = smov 16  }
0x122c   : > { %v15449_v42 = vpop.permute.xlu1 %15448 }
0x122d   : > { %v15451_v43 = vunpack.i.h.bf16 %v15449_v42  ;;  %v15450_v44 = vunpack.i.l.bf16 %v15449_v42  ;;  %v12926_v42 = vcombine.low %v12917_v34, %v12919_v10  ;;  %v15654_v34 = vld [vmem:[%s19932_s13 + $0x5f0] sm:$0xff]  }
0x122e   : > { %v15655_v10 = vld [vmem:[%s19932_s13 + $0x530] sm:$0xff]  }
0x122f   : > { %v4253_v51 = vsel %vm793_vm5, %v3849_v38, %v15451_v43  ;;  %v4252_v52 = vsel %vm793_vm5, %v3846_v30, %v15450_v44  ;;  %v12835_v38 = vld [vmem:[%s19930_s11 + $0x108] sm:$0xff]  ;;  %v12929_v43 = vcombine.high %v12918_v11, %v12920_v41 }
0x1230   : > { %v12845_v23 = vcombine.low %v12835_v38, %v12837_v5  ;;  %v12846_v40 = vcombine.high %v12835_v38, %v12837_v5  ;;  %v15640_v38 = vld [vmem:[%s19932_s13 + $0x590] sm:$0xff]   ;;  %v15642_v5 = vld [vmem:[%s19932_s13 + $0x5d8] sm:$0xff]  }
0x1232   : > { %4495 = vmatprep.subr.bf16.mxu0 %v12846_v40  ;;  %v15645_v40 = vld [vmem:[%s19932_s13 + $0x560] sm:$0xff]  }
0x1234   : > { %v15454_v39 = vpop.permute.xlu0 %15453 }
0x1235   : > { %v15456_v45 = vunpack.i.h.bf16 %v15454_v39  ;;  %v15455_v46 = vunpack.i.l.bf16 %v15454_v39  ;;  %v12928_v39 = vcombine.low %v12918_v11, %v12920_v41  ;;  %v15656_v11 = vld [vmem:[%s19932_s13 + $0x5b0] sm:$0xff]   ;;  %v15658_v41 = vld [vmem:[%s19932_s13 + $0x5f8] sm:$0xff]  }
0x1237   : > { %v4255_v8 = vsel %vm851_vm6, %v4253_v51, %v15456_v45  ;;  %v4254_v7 = vsel %vm851_vm6, %v4252_v52, %v15455_v46 }
0x123c   : > { %v15459_v25 = vpop.permute.xlu1 %15458 }
0x123d   : > { %v15461_v57 = vunpack.i.h.bf16 %v15459_v25  ;;  %v15460_v62 = vunpack.i.l.bf16 %v15459_v25 }
0x123f   : > { %v4257_v4 = vsel %vm1325_vm7, %v4255_v8, %v15461_v57  ;;  %v4256_v32 = vsel %vm1325_vm7, %v4254_v7, %v15460_v62  ;;  %v12832_v8 = vld [vmem:[%s19928_s9 + $0x1] ss:$0 sm:$0xff] }
0x1240   : > { %v4258_v14 = vpack.c.bf16 %v4257_v4, %v4256_v32 }
0x1242   : > { %15227 = vmatmul.mubr.msk.bf16.vlgmr.msra.gmra.mrb[72].mxu0 %vm744_vm4, %v4258_v14  ;;  %v12833_v14 = vld [vmem:[%s19929_s10 + $0x1] ss:$0 sm:$0xff] }
0x1243   : > { %4527 = vmatprep.mubr.bf16.mxu0 %v16518_v49  ;;  %4496 = vmatpush1.bf16.msra.mxu0 %v12845_v23  ;;  %v15644_v23 = vld [vmem:[%s19932_s13 + $0x598] sm:$0xff]  }
0x1244   : > { %4497 = vmatprep.subr.bf16.mxu0 %v12850_v60  ;;  %v15653_v60 = vld [vmem:[%s19932_s13 + $0x570] sm:$0xff]  }
0x1247   : > { %4498 = vmatpush1.bf16.msra.mxu0 %v12849_v33  ;;  %v15652_v33 = vld [vmem:[%s19932_s13 + $0x5a8] sm:$0xff]  }
0x1248   : > { %4760 = vmatprep.subr.bf16.mxu0 %v12929_v43  ;;  %v15661_v43 = vld [vmem:[%s19932_s13 + $0x440] sm:$0xff]  }
0x1315   : > { %v4321_v59 = vpop.f32.mrb[72].mxu0 }
0x1316   : > { %v4322_v61 = vadd.f32 %v12826_v15, %v4321_v59  ;;  %v15228_v63 = vpop.f32.mrb[73].mxu0  ;;  %v12921_v59 = vld [vmem:[%s19930_s11 + $0x190] sm:$0xff] }
0x1317   : > { %v4324_v12 = vpop.f32.mrb[74].mxu0  ;;  %v12922_v63 = vld [vmem:[%s19930_s11 + $0x198] sm:$0xff] }
0x1318   : > { %v4325_v3 = vadd.f32 %v12826_v15, %v4324_v12  ;;  %v15229_v35 = vpop.f32.mrb[75].mxu0  ;;  %v4328_v47 = vadd.f32 %v4322_v61, %v17516_v9  ;;  %v12923_v61 = vld [vmem:[%s19930_s11 + $0x1d0] sm:$0xff]  ;;  %v12924_v12 = vld [vmem:[%s19930_s11 + $0x1d8] sm:$0xff] }
0x131a   : > { %v4334_v16 = vsel %vm744_vm4, %v4328_v47, 0.0  ;;  %v4329_v1 = vadd.f32 %v4325_v3, %v17518_v13  ;;  %v12834_v13 = vld [vmem:[%s19930_s11 + $0x100] sm:$0xff] }
0x131b   : > { %4335 = vadd.xlane.f32.xlu0 %v4334_v16  ;;  %v12844_v22 = vcombine.high %v12834_v13, %v12836_v20  ;;  %v12843_v50 = vcombine.low %v12834_v13, %v12836_v20  ;;  %v12931_v16 = vcombine.high %v12921_v59, %v12923_v61  ;;  %v15638_v13 = vld [vmem:[%s19932_s13 + $0x5d0] sm:$0xff]  }
0x131c   : > { %v4337_v6 = vsel %vm744_vm4, %v4329_v1, 0.0  ;;  %v15639_v20 = vld [vmem:[%s19932_s13 + $0x510] sm:$0xff]  }
0x131d   : > { %4338 = vadd.xlane.f32.xlu1 %v4337_v6  ;;  %4452 = vmatprep.subr.bf16.mxu1 %v12844_v22  ;;  %v12930_v6 = vcombine.low %v12921_v59, %v12923_v61  ;;  %v15641_v22 = vld [vmem:[%s19932_s13 + $0x558] sm:$0xff]  }
0x131e   : > { %4453 = vmatpush1.bf16.msra.mxu1 %v12843_v50  ;;  %v15643_v50 = vld [vmem:[%s19932_s13 + $0x518] sm:$0xff]  }
0x131f   : > { %4454 = vmatprep.subr.bf16.mxu1 %v12848_v17  ;;  %v15649_v17 = vld [vmem:[%s19932_s13 + $0x568] sm:$0xff]  }
0x1322   : > { %4455 = vmatpush1.bf16.msra.mxu1 %v12847_v31  ;;  %v15651_v31 = vld [vmem:[%s19932_s13 + $0x528] sm:$0xff]  }
0x1323   : > { %4717 = vmatprep.subr.bf16.mxu1 %v12927_v37  ;;  %v15657_v37 = vld [vmem:[%s19932_s13 + $0x578] sm:$0xff]  }
0x13a8   : > { %v4336_v2 = vpop.xlane.xlu0 %4335 }
0x13a9   : > { %v4340_v36 = vmul.f32 0.03125, %v4336_v2  ;;  %v12932_v2 = vcombine.low %v12922_v63, %v12924_v12 }
0x13aa   : > { %v4339_v21 = vpop.xlane.xlu1 %4338 }
0x13ab   : > { %v4342_v48 = vsub.f32 %v4328_v47, %v4340_v36  ;;  %v4341_v27 = vmul.f32 0.03125, %v4339_v21  ;;  %v15629_v36 = vld [vmem:[%s19932_s13 + $0x540] sm:$0xff]  }
0x13ac   : > { %v15630_v21 = vld [vmem:[%s19932_s13 + $0x5c0] sm:$0xff]  }
0x13ad   : > { %v4343_v29 = vsub.f32 %v4329_v1, %v4341_v27  ;;  %v4344_v24 = vmul.f32 %v4342_v48, %v4342_v48  ;;  %v12933_v1 = vcombine.high %v12922_v63, %v12924_v12  ;;  %v15632_v27 = vld [vmem:[%s19932_s13 + $0x580] sm:$0xff]  }
0x13af   : > { %v4346_v19 = vsel %vm744_vm4, %v4344_v24, 0.0  ;;  %v4345_v30 = vmul.f32 %v4343_v29, %v4343_v29  ;;  %v15634_v24 = vld [vmem:[%s19932_s13 + $0x5c8] sm:$0xff]  }
0x13b0   : > { %4347 = vadd.xlane.f32.xlu0 %v4346_v19  ;;  %v15635_v19 = vld [vmem:[%s19932_s13 + $0x508] sm:$0xff]  }
0x13b1   : > { %v4349_v9 = vsel %vm744_vm4, %v4345_v30, 0.0  ;;  %v15636_v30 = vld [vmem:[%s19932_s13 + $0x588] sm:$0xff]  }
0x13b4   : > { %4350 = vadd.xlane.f32.xlu0 %v4349_v9  ;;  %v15637_v9 = vld [vmem:[%s19932_s13 + $0x550] sm:$0xff]  }
0x143d   : > { %v4348_v44 = vpop.xlane.xlu0 %4347 }
0x143e   : > { %v4352_v45 = vmul.f32 0.03125, %v4348_v44  ;;  %v15662_v44 = vld [vmem:[%s19932_s13 + $0x4c0] sm:$0xff]  }
0x1440   : > { %v4354_v46 = vadd.f32 1e-05, %v4352_v45  ;;  %v12842_v45 = vld [vmem:[%s19931_s12 + $0x10] sm:$0xf] }
0x1441   : > { %v4351_v25 = vpop.xlane.xlu0 %4350 }
0x1442   : > { %16157 = vrsqrt.f32 %v4354_v46  ;;  %v4353_v51 = vmul.f32 0.03125, %v4351_v25  ;;  %v4392_v46 = vrot.slane %v12842_v45, %v17010_v53  ;;  %v4400_v25 = vrot.slane %v12842_v45, %v17013_v54 }
0x1444   : > { %v4355_v52 = vadd.f32 1e-05, %v4353_v51  ;;  %v4396_v51 = vrot.slane %v12842_v45, %v17016_v55 }
0x1446   : > { %16159 = vrsqrt.f32 %v4355_v52  ;;  %v4404_v52 = vrot.slane %v12842_v45, %v17019_v56 }
0x144c   : > { %v16158_v57 = vpop.eup %16157 }
0x144d   : > { %v4358_v62 = vmul.f32 %v16158_v57, %v4342_v48  ;;  %v15631_v48 = vld [vmem:[%s19932_s13 + $0x500] sm:$0xff]  }
0x144f   : > { %v4366_v4 = vmul.f32 %v12832_v8, %v4358_v62 }
0x1450   : > { %v16160_v7 = vpop.eup %16159 }
0x1451   : > { %v4359_v32 = vmul.f32 %v16160_v7, %v4343_v29  ;;  %v17689_v3 = vadd.f32 %v12833_v14, %v4366_v4  ;;  %v15633_v29 = vld [vmem:[%s19932_s13 + $0x548] sm:$0xff]  }
0x1453   : > { %v4367_v15 = vmul.f32 %v12832_v8, %v4359_v32 }
0x1455   : > { %v17691_v35 = vadd.f32 %v12833_v14, %v4367_v15  ;;  %v12925_v14 = vld [vmem:[%s19931_s12 + $0x14] sm:$0xf] }
0x1457   : > { %v17695_v47 = vpack.c.bf16 %v17691_v35, %v17689_v3 }
0x1459   : > { %12851 = vmatmul.mubr.msk.bf16.vlgmr.msra.gmra.mrb[72].mxu1 %vm744_vm4, %v17695_v47  ;;  %12852 = vmatmul.mubr.msk.bf16.vlgmr.msra.gmra.mrb[76].mxu0 %vm744_vm4, %v17695_v47 }
0x145a   : > { %4718 = vmatpush1.bf16.msra.mxu1 %v12926_v42  ;;  %4761 = vmatpush1.bf16.msra.mxu0 %v12928_v39  ;;  %v15659_v42 = vld [vmem:[%s19932_s13 + $0x538] sm:$0xff]  }
0x145b   : > { %4719 = vmatprep.subr.bf16.mxu1 %v12931_v16  ;;  %4762 = vmatprep.subr.bf16.mxu0 %v12933_v1  ;;  %v15660_v39 = vld [vmem:[%s19932_s13 + $0x5b8] sm:$0xff]  }
0x145c   : > { %4749 = vmatprep.mubr.bf16.mxu1 %v16518_v49  ;;  %4792 = vmatprep.mubr.bf16.mxu0 %v16518_v49 }
0x145e   : > { %4720 = vmatpush1.bf16.msra.mxu1 %v12930_v6  ;;  %4763 = vmatpush1.bf16.msra.mxu0 %v12932_v2  ;;  %v4660_v2 = vrot.slane %v12925_v14, %v17010_v53 }
0x145f   : > { %14519 = vmatprep.subr.bf16.mxu1 %v15629_v36  ;;  %14541 = vmatprep.subr.bf16.mxu0 %v15630_v21 }
0x1461   : > { %12934 = vmatmul.mubr.msk.bf16.vlgmr.msra.gmra.mrb[76].mxu1 %vm744_vm4, %v17695_v47  ;;  %12935 = vmatmul.mubr.msk.bf16.vlgmr.msra.gmra.mrb[80].mxu0 %vm744_vm4, %v17695_v47 }
0x1462   : > { %14520 = vmatpush3.bf16.msra.mxu1 %v15631_v48  ;;  %14542 = vmatpush3.bf16.msra.mxu0 %v15632_v27 }
0x1463   : > { %14521 = vmatprep.subr.bf16.mxu1 %v15633_v29  ;;  %14543 = vmatprep.subr.bf16.mxu0 %v15634_v24  ;;  %v4668_v29 = vrot.slane %v12925_v14, %v17013_v54 }
0x1466   : > { %14522 = vmatpush3.bf16.msra.mxu1 %v15635_v19  ;;  %14544 = vmatpush3.bf16.msra.mxu0 %v15636_v30  ;;  %v4664_v30 = vrot.slane %v12925_v14, %v17016_v55 }
0x1467   : > { %14523 = vmatprep.subr.bf16.mxu1 %v15637_v9  ;;  %14545 = vmatprep.subr.bf16.mxu0 %v15638_v13  ;;  %v4672_v13 = vrot.slane %v12925_v14, %v17019_v56 }
0x146a   : > { %14524 = vmatpush3.bf16.msra.mxu1 %v15639_v20  ;;  %14546 = vmatpush3.bf16.msra.mxu0 %v15640_v38 }
0x146b   : > { %14525 = vmatprep.subr.bf16.mxu1 %v15641_v22  ;;  %14547 = vmatprep.subr.bf16.mxu0 %v15642_v5 }
0x146e   : > { %14526 = vmatpush3.bf16.msra.mxu1 %v15643_v50  ;;  %14548 = vmatpush3.bf16.msra.mxu0 %v15644_v23 }
0x146f   : > { %14527 = vmatprep.subr.bf16.mxu1 %v15645_v40  ;;  %14549 = vmatprep.subr.bf16.mxu0 %v15646_v58 }
0x1472   : > { %14528 = vmatpush3.bf16.msra.mxu1 %v15647_v26  ;;  %14550 = vmatpush3.bf16.msra.mxu0 %v15648_v18 }
0x1473   : > { %14529 = vmatprep.subr.bf16.mxu1 %v15649_v17  ;;  %14551 = vmatprep.subr.bf16.mxu0 %v15650_v28 }
0x1476   : > { %14530 = vmatpush3.bf16.msra.mxu1 %v15651_v31  ;;  %14552 = vmatpush3.bf16.msra.mxu0 %v15652_v33 }
0x1477   : > { %14531 = vmatprep.subr.bf16.mxu1 %v15653_v60  ;;  %14553 = vmatprep.subr.bf16.mxu0 %v15654_v34 }
0x147a   : > { %14532 = vmatpush3.bf16.msra.mxu1 %v15655_v10  ;;  %14554 = vmatpush3.bf16.msra.mxu0 %v15656_v11 }
0x147b   : > { %14533 = vmatprep.subr.bf16.mxu1 %v15657_v37  ;;  %14555 = vmatprep.subr.bf16.mxu0 %v15658_v41 }
0x147e   : > { %14534 = vmatpush3.bf16.msra.mxu1 %v15659_v42  ;;  %14556 = vmatpush3.bf16.msra.mxu0 %v15660_v39 }
0x147f   : > { %14563 = vmatprep.subr.bf16.mxu1 %v15661_v43  ;;  %14585 = vmatprep.subr.bf16.mxu0 %v15662_v44 }
0x152c   : > { %v4486_v57 = vpop.f32.mrb[72].mxu1  ;;  %v4529_v62 = vpop.f32.mrb[76].mxu0 }
0x152d   : > { %v4487_v8 = vadd.f32 %v4486_v57, %v4392_v46  ;;  %v4530_v7 = vadd.f32 %v4529_v62, %v4400_v25  ;;  %v4488_v4 = vpop.f32.mrb[73].mxu1  ;;  %v4531_v32 = vpop.f32.mrb[77].mxu0 }
0x152e   : > { %v4489_v15 = vadd.f32 %v4488_v4, %v4396_v51  ;;  %v17819_v59 = vadd.f32 %v4531_v32, %v4404_v52  ;;  %v4490_v61 = vpop.f32.mrb[74].mxu1  ;;  %v4533_v63 = vpop.f32.mrb[78].mxu0 }
0x152f   : > { %v4546_v12 = vmul.f32 0.70710677, %v4487_v8  ;;  %v4548_v16 = vmul.f32 0.70710677, %v4530_v7  ;;  %v4491_v36 = vadd.f32 %v4490_v61, %v4392_v46  ;;  %v17823_v21 = vadd.f32 %v4533_v63, %v4400_v25  ;;  %v4492_v48 = vpop.f32.mrb[75].mxu1  ;;  %v4535_v27 = vpop.f32.mrb[79].mxu0 }
0x1530   : > { %v4547_v1 = vmul.f32 0.70710677, %v4489_v15  ;;  %v4549_v6 = vmul.f32 0.70710677, %v17819_v59  ;;  %v17826_v24 = vadd.f32 %v4492_v48, %v4396_v51  ;;  %v17828_v19 = vadd.f32 %v4535_v27, %v4404_v52 }
0x1531   : > { %16161 = verf.f32 %v4546_v12  ;;  %v4550_v9 = vmul.f32 0.70710677, %v4491_v36  ;;  %v4552_v20 = vmul.f32 0.70710677, %v17823_v21  ;;  %v4538_v51 = vmul.f32 0.5, %v4487_v8 }
0x1532   : > { %16163 = verf.f32 %v4548_v16  ;;  %v4551_v38 = vmul.f32 0.70710677, %v17826_v24  ;;  %v4553_v5 = vmul.f32 0.70710677, %v17828_v19  ;;  %v4540_v52 = vmul.f32 0.5, %v4530_v7 }
0x1533   : > { %16165 = verf.f32 %v4547_v1  ;;  %v4539_v32 = vmul.f32 0.5, %v4489_v15  ;;  %v4541_v12 = vmul.f32 0.5, %v17819_v59  ;;  %v4542_v16 = vmul.f32 0.5, %v4491_v36 }
0x1534   : > { %16167 = verf.f32 %v4549_v6  ;;  %v4751_v22 = vpop.f32.mrb[76].mxu1  ;;  %v4794_v23 = vpop.f32.mrb[80].mxu0  ;;  %v4544_v27 = vmul.f32 0.5, %v17823_v21 }
0x1535   : > { %16169 = verf.f32 %v4550_v9  ;;  %v17835_v50 = vadd.f32 %v4751_v22, %v4660_v2  ;;  %v4753_v40 = vpop.f32.mrb[77].mxu1  ;;  %v17837_v58 = vadd.f32 %v4794_v23, %v4668_v29  ;;  %v4796_v18 = vpop.f32.mrb[81].mxu0 }
0x1536   : > { %16171 = verf.f32 %v4552_v20  ;;  %v17839_v26 = vadd.f32 %v4753_v40, %v4664_v30  ;;  %v4755_v17 = vpop.f32.mrb[78].mxu1  ;;  %v17842_v31 = vadd.f32 %v4796_v18, %v4672_v13  ;;  %v4798_v33 = vpop.f32.mrb[82].mxu0 }
0x1537   : > { %16173 = verf.f32 %v4551_v38  ;;  %v4811_v28 = vmul.f32 0.70710677, %v17835_v50  ;;  %v4757_v60 = vpop.f32.mrb[79].mxu1  ;;  %v4813_v34 = vmul.f32 0.70710677, %v17837_v58  ;;  %v4800_v10 = vpop.f32.mrb[83].mxu0  ;;  %v4756_v41 = vadd.f32 %v4755_v17, %v4660_v2 }
0x1538   : > { %16175 = verf.f32 %v4553_v5  ;;  %v4812_v11 = vmul.f32 0.70710677, %v17839_v26  ;;  %v4814_v37 = vmul.f32 0.70710677, %v17842_v31  ;;  %v17847_v42 = vadd.f32 %v4798_v33, %v4668_v29 }
0x1539   : > { %16177 = verf.f32 %v4811_v28  ;;  %v17849_v39 = vadd.f32 %v4757_v60, %v4664_v30  ;;  %v4815_v45 = vmul.f32 0.70710677, %v4756_v41  ;;  %v17851_v46 = vadd.f32 %v4800_v10, %v4672_v13 }
0x153a   : > { %16179 = verf.f32 %v4813_v34  ;;  %v4817_v57 = vmul.f32 0.70710677, %v17847_v42  ;;  %v4543_v29 = vmul.f32 0.5, %v17826_v24  ;;  %v4545_v38 = vmul.f32 0.5, %v17828_v19 }
0x153b   : > { %v16162_v43 = vpop.eup %16161  ;;  %16181 = verf.f32 %v4812_v11  ;;  %v4816_v14 = vmul.f32 0.70710677, %v17849_v39  ;;  %v4818_v8 = vmul.f32 0.70710677, %v17851_v46  ;;  %v4803_v19 = vmul.f32 0.5, %v17835_v50 }
0x153c   : > { %v16164_v44 = vpop.eup %16163  ;;  %16183 = verf.f32 %v4814_v37  ;;  %v4562_v4 = vadd.f32 1.0, %v16162_v43 }
0x153d   : > { %v16166_v25 = vpop.eup %16165  ;;  %16185 = verf.f32 %v4815_v45  ;;  %v4564_v63 = vadd.f32 1.0, %v16164_v44  ;;  %v4805_v45 = vmul.f32 0.5, %v17837_v58 }
0x153e   : > { %v16168_v62 = vpop.eup %16167  ;;  %16187 = verf.f32 %v4817_v57  ;;  %v4563_v6 = vadd.f32 1.0, %v16166_v25  ;;  %v17859_v9 = vmul.f32 %v4562_v4, %v4538_v51  ;;  %v4807_v51 = vmul.f32 0.5, %v4756_v41 }
0x153f   : > { %v16170_v61 = vpop.eup %16169  ;;  %16189 = verf.f32 %v4816_v14  ;;  %v4565_v48 = vadd.f32 1.0, %v16168_v62  ;;  %v17863_v36 = vmul.f32 %v4564_v63, %v4540_v52  ;;  %v4804_v62 = vmul.f32 0.5, %v17839_v26 }
0x1540   : > { %v16172_v1 = vpop.eup %16171  ;;  %v4566_v2 = vadd.f32 1.0, %v16170_v61  ;;  %16191 = verf.f32 %v4818_v8  ;;  %v4571_v23 = vmul.f32 %v4563_v6, %v4539_v32  ;;  %v4809_v4 = vmul.f32 0.5, %v17847_v42 }
0x1541   : > { %v16174_v7 = vpop.eup %16173  ;;  %v4568_v15 = vadd.f32 1.0, %v16172_v1  ;;  %v4573_v18 = vmul.f32 %v4565_v48, %v4541_v12  ;;  %v4808_v14 = vmul.f32 0.5, %v17849_v39  ;;  %v4806_v6 = vmul.f32 0.5, %v17842_v31  ;;  %v15663_v39 = vld [vmem:[%s19932_s13 + $0x400] sm:$0xff]  }
0x1542   : > { %v16176_v30 = vpop.eup %16175  ;;  %v17861_v13 = vmul.f32 %v4566_v2, %v4542_v16  ;;  %v4567_v59 = vadd.f32 1.0, %v16174_v7  ;;  %v4810_v41 = vmul.f32 0.5, %v17851_v46  ;;  %v15664_v31 = vld [vmem:[%s19932_s13 + $0x480] sm:$0xff]   ;;  %v15665_v46 = vld [vmem:[%s19932_s13 + $0x448] sm:$0xff]  }
0x1543   : > { %v17865_v20 = vmul.f32 %v4568_v15, %v4544_v27  ;;  %v4569_v22 = vadd.f32 1.0, %v16176_v30  ;;  %v16178_v5 = vpop.eup %16177  ;;  %v15666_v30 = vld [vmem:[%s19932_s13 + $0x4c8] sm:$0xff]  }
0x1544   : > { %v4578_v21 = vpack.c.bf16 %v17861_v13, %v17859_v9  ;;  %v4575_v24 = vmul.f32 %v4567_v59, %v4543_v29  ;;  %v16180_v40 = vpop.eup %16179  ;;  %v4827_v10 = vadd.f32 1.0, %v16178_v5  ;;  %v15667_v59 = vld [vmem:[%s19932_s13 + $0x408] sm:$0xff]   ;;  %v15670_v5 = vld [vmem:[%s19932_s13 + $0x4d0] sm:$0xff]   ;;  %v15693_v9 = vld [vmem:[%s19932_s13 + $0x640] sm:$0xff]  }
0x1545   : > { %v4580_v17 = vpack.c.bf16 %v17865_v20, %v17863_v36  ;;  %v4577_v28 = vmul.f32 %v4569_v22, %v4545_v38  ;;  %v16182_v33 = vpop.eup %16181  ;;  %v4829_v43 = vadd.f32 1.0, %v16180_v40  ;;  %v15669_v38 = vld [vmem:[%s19932_s13 + $0x450] sm:$0xff]   ;;  %v15668_v22 = vld [vmem:[%s19932_s13 + $0x488] sm:$0xff]   ;;  %v15694_v13 = vld [vmem:[%s19932_s13 + $0x6c0] sm:$0xff]  }
0x1546   : > { %v4579_v60 = vpack.c.bf16 %v4575_v24, %v4571_v23  ;;  %v16184_v34 = vpop.eup %16183  ;;  %v4828_v25 = vadd.f32 1.0, %v16182_v33  ;;  %v4835_v61 = vmul.f32 %v4827_v10, %v4803_v19  ;;  %v15671_v23 = vld [vmem:[%s19932_s13 + $0x410] sm:$0xff]   ;;  %v15673_v24 = vld [vmem:[%s19932_s13 + $0x458] sm:$0xff]   ;;  %v15677_v33 = vld [vmem:[%s19932_s13 + $0x460] sm:$0xff]  }
0x1547   : > { %v4581_v11 = vpack.c.bf16 %v4577_v28, %v4573_v18  ;;  %v16186_v37 = vpop.eup %16185  ;;  %v4830_v63 = vadd.f32 1.0, %v16184_v34  ;;  %v4837_v1 = vmul.f32 %v4829_v43, %v4805_v45  ;;  %v15672_v40 = vld [vmem:[%s19932_s13 + $0x490] sm:$0xff]   ;;  %v15674_v18 = vld [vmem:[%s19932_s13 + $0x4d8] sm:$0xff]   ;;  %v15678_v34 = vld [vmem:[%s19932_s13 + $0x4e0] sm:$0xff]  }
0x1548   : > { %v16188_v44 = vpop.eup %16187  ;;  %v4831_v52 = vadd.f32 1.0, %v16186_v37  ;;  %v4836_v2 = vmul.f32 %v4828_v25, %v4804_v62  ;;  %v15675_v28 = vld [vmem:[%s19932_s13 + $0x418] sm:$0xff]   ;;  %v15679_v10 = vld [vmem:[%s19932_s13 + $0x420] sm:$0xff]   ;;  %v15682_v19 = vld [vmem:[%s19932_s13 + $0x4e8] sm:$0xff]  }
0x1549   : > { %v16190_v57 = vpop.eup %16189  ;;  %v4833_v32 = vadd.f32 1.0, %v16188_v44  ;;  %v4838_v42 = vmul.f32 %v4830_v63, %v4806_v6  ;;  %v15680_v37 = vld [vmem:[%s19932_s13 + $0x4a0] sm:$0xff]   ;;  %v15683_v43 = vld [vmem:[%s19932_s13 + $0x428] sm:$0xff]   ;;  %v15685_v44 = vld [vmem:[%s19932_s13 + $0x470] sm:$0xff]  }
0x154a   : > { %v4839_v12 = vmul.f32 %v4831_v52, %v4807_v51  ;;  %v4832_v16 = vadd.f32 1.0, %v16190_v57  ;;  %v16192_v50 = vpop.eup %16191  ;;  %v15684_v45 = vld [vmem:[%s19932_s13 + $0x4a8] sm:$0xff]   ;;  %v15686_v25 = vld [vmem:[%s19932_s13 + $0x4f0] sm:$0xff]   ;;  %v15689_v52 = vld [vmem:[%s19932_s13 + $0x478] sm:$0xff]  }
0x154b   : > { %v4841_v58 = vmul.f32 %v4833_v32, %v4809_v4  ;;  %v4834_v26 = vadd.f32 1.0, %v16192_v50  ;;  %v15687_v51 = vld [vmem:[%s19932_s13 + $0x430] sm:$0xff]   ;;  %v13064_v62 = vld [vmem:[%s19930_s11 + $0x120] sm:$0xff]  ;;  %v15690_v32 = vld [vmem:[%s19932_s13 + $0x4f8] sm:$0xff]  }
0x154c   : > { %v4843_v8 = vpack.c.bf16 %v4839_v12, %v4835_v61  ;;  %v4840_v7 = vmul.f32 %v4832_v16, %v4808_v14  ;;  %v15688_v57 = vld [vmem:[%s19932_s13 + $0x4b0] sm:$0xff]   ;;  %v13066_v4 = vld [vmem:[%s19930_s11 + $0x160] sm:$0xff]  ;;  %v15691_v14 = vld [vmem:[%s19932_s13 + $0x438] sm:$0xff]  }
0x154d   : > { %v4845_v48 = vpack.c.bf16 %v4841_v58, %v4837_v1  ;;  %v4842_v27 = vmul.f32 %v4834_v26, %v4810_v41  ;;  %v13065_v61 = vld [vmem:[%s19930_s11 + $0x128] sm:$0xff]  ;;  %v13074_v12 = vcombine.high %v13064_v62, %v13066_v4  ;;  %v15692_v16 = vld [vmem:[%s19932_s13 + $0x4b8] sm:$0xff]   ;;  %v13068_v50 = vld [vmem:[%s19930_s11 + $0x1a0] sm:$0xff]  ;;  %v13073_v58 = vcombine.low %v13064_v62, %v13066_v4 }
0x154e   : > { %v4844_v15 = vpack.c.bf16 %v4840_v7, %v4836_v2  ;;  %v13067_v63 = vld [vmem:[%s19930_s11 + $0x168] sm:$0xff]  ;;  %v13070_v1 = vld [vmem:[%s19930_s11 + $0x1e0] sm:$0xff]  ;;  %v18121_v62 = vld [vmem:[%s19930_s11 + $0x178] sm:$0xff] }
0x154f   : > { %v4846_v29 = vpack.c.bf16 %v4842_v27, %v4838_v42  ;;  %v13076_v6 = vcombine.high %v13065_v61, %v13067_v63  ;;  %v13069_v41 = vld [vmem:[%s19930_s11 + $0x1a8] sm:$0xff]  ;;  %v13075_v7 = vcombine.low %v13065_v61, %v13067_v63  ;;  %v15695_v36 = vld [vmem:[%s19932_s13 + $0x600] sm:$0xff]  }
0x1550   : > { %5135 = vmatprep.mubr.bf16.mxu1 %v4844_v15  ;;  %v13071_v2 = vld [vmem:[%s19930_s11 + $0x1e8] sm:$0xff]  ;;  %v15696_v20 = vld [vmem:[%s19932_s13 + $0x680] sm:$0xff]  }
0x1551   : > { %5136 = vmatmul.mubr.bf16.vlgmr.msra.gmra.mrb[80].mxu1 %v4843_v8  ;;  %5176 = vmatprep.mubr.bf16.mxu0 %v4846_v29  ;;  %v13078_v8 = vcombine.high %v13068_v50, %v13070_v1  ;;  %v13080_v26 = vcombine.high %v13069_v41, %v13071_v2  ;;  %v13079_v42 = vcombine.low %v13069_v41, %v13071_v2  ;;  %v15699_v27 = vld [vmem:[%s19932_s13 + $0x608] sm:$0xff]   ;;  %v15702_v29 = vld [vmem:[%s19932_s13 + $0x6d0] sm:$0xff]  }
0x1552   : > { %14564 = vmatpush3.bf16.msra.mxu1 %v15663_v39  ;;  %5177 = vmatmul.mubr.bf16.vlgmr.msra.gmra.mrb[84].mxu0 %v4845_v48  ;;  %v13077_v48 = vcombine.low %v13068_v50, %v13070_v1  ;;  %v15700_v15 = vld [vmem:[%s19932_s13 + $0x688] sm:$0xff]   ;;  %v15701_v39 = vld [vmem:[%s19932_s13 + $0x650] sm:$0xff]  }
0x1553   : > { %5409 = vmatprep.mubr.bf16.mxu1 %v4579_v60  ;;  %14586 = vmatpush3.bf16.msra.mxu0 %v15664_v31  ;;  %v15676_v60 = vld [vmem:[%s19932_s13 + $0x498] sm:$0xff]   ;;  %v15703_v31 = vld [vmem:[%s19932_s13 + $0x610] sm:$0xff]  }
0x1554   : > { %5450 = vmatprep.mubr.bf16.mxu0 %v4581_v11  ;;  %14565 = vmatprep.subr.bf16.mxu1 %v15665_v46  ;;  %v15681_v11 = vld [vmem:[%s19932_s13 + $0x468] sm:$0xff]   ;;  %v15704_v46 = vld [vmem:[%s19932_s13 + $0x690] sm:$0xff]  }
0x1555   : > { %14587 = vmatprep.subr.bf16.mxu0 %v15666_v30  ;;  %v15705_v30 = vld [vmem:[%s19932_s13 + $0x658] sm:$0xff]  }
0x1556   : > { %14566 = vmatpush3.bf16.msra.mxu1 %v15667_v59  ;;  %v15706_v59 = vld [vmem:[%s19932_s13 + $0x6d8] sm:$0xff]  }
0x1557   : > { %14567 = vmatprep.subr.bf16.mxu1 %v15669_v38  ;;  %14588 = vmatpush3.bf16.msra.mxu0 %v15668_v22  ;;  %v15707_v38 = vld [vmem:[%s19932_s13 + $0x618] sm:$0xff]  }
0x1558   : > { %14589 = vmatprep.subr.bf16.mxu0 %v15670_v5  ;;  %v15708_v22 = vld [vmem:[%s19932_s13 + $0x698] sm:$0xff]   ;;  %v15709_v5 = vld [vmem:[%s19932_s13 + $0x660] sm:$0xff]  }
0x155a   : > { %14568 = vmatpush3.bf16.msra.mxu1 %v15671_v23  ;;  %v15710_v23 = vld [vmem:[%s19932_s13 + $0x6e0] sm:$0xff]  }
0x155b   : > { %14569 = vmatprep.subr.bf16.mxu1 %v15673_v24  ;;  %14590 = vmatpush3.bf16.msra.mxu0 %v15672_v40  ;;  %v15711_v24 = vld [vmem:[%s19932_s13 + $0x620] sm:$0xff]  }
0x155c   : > { %14591 = vmatprep.subr.bf16.mxu0 %v15674_v18  ;;  %v15712_v40 = vld [vmem:[%s19932_s13 + $0x6a0] sm:$0xff]   ;;  %v15713_v18 = vld [vmem:[%s19932_s13 + $0x668] sm:$0xff]  }
0x155e   : > { %14570 = vmatpush3.bf16.msra.mxu1 %v15675_v28  ;;  %v15714_v28 = vld [vmem:[%s19932_s13 + $0x6e8] sm:$0xff]  }
0x155f   : > { %14571 = vmatprep.subr.bf16.mxu1 %v15677_v33  ;;  %14592 = vmatpush3.bf16.msra.mxu0 %v15676_v60  ;;  %v15715_v33 = vld [vmem:[%s19932_s13 + $0x628] sm:$0xff]  }
0x1560   : > { %14593 = vmatprep.subr.bf16.mxu0 %v15678_v34  ;;  %v15716_v60 = vld [vmem:[%s19932_s13 + $0x6a8] sm:$0xff]   ;;  %v15717_v34 = vld [vmem:[%s19932_s13 + $0x670] sm:$0xff]  }
0x1562   : > { %14572 = vmatpush3.bf16.msra.mxu1 %v15679_v10  ;;  %v15718_v10 = vld [vmem:[%s19932_s13 + $0x6f0] sm:$0xff]  }
0x1563   : > { %14573 = vmatprep.subr.bf16.mxu1 %v15681_v11  ;;  %14594 = vmatpush3.bf16.msra.mxu0 %v15680_v37  ;;  %v15719_v11 = vld [vmem:[%s19932_s13 + $0x630] sm:$0xff]  }
0x1564   : > { %14595 = vmatprep.subr.bf16.mxu0 %v15682_v19  ;;  %v15720_v37 = vld [vmem:[%s19932_s13 + $0x6b0] sm:$0xff]   ;;  %v15721_v19 = vld [vmem:[%s19932_s13 + $0x678] sm:$0xff]  }
0x1566   : > { %14574 = vmatpush3.bf16.msra.mxu1 %v15683_v43  ;;  %v15722_v43 = vld [vmem:[%s19932_s13 + $0x6f8] sm:$0xff]  }
0x1567   : > { %14575 = vmatprep.subr.bf16.mxu1 %v15685_v44  ;;  %14596 = vmatpush3.bf16.msra.mxu0 %v15684_v45  ;;  %v15723_v44 = vld [vmem:[%s19932_s13 + $0x638] sm:$0xff]  }
0x1568   : > { %14597 = vmatprep.subr.bf16.mxu0 %v15686_v25  ;;  %v15724_v45 = vld [vmem:[%s19932_s13 + $0x6b8] sm:$0xff]   ;;  %v18104_v25 = vld [vmem:[%s19930_s11 + $0x130] sm:$0xff] }
0x156a   : > { %14576 = vmatpush3.bf16.msra.mxu1 %v15687_v51  ;;  %v18109_v51 = vld [vmem:[%s19930_s11 + $0x170] sm:$0xff] }
0x156b   : > { %14577 = vmatprep.subr.bf16.mxu1 %v15689_v52  ;;  %14598 = vmatpush3.bf16.msra.mxu0 %v15688_v57  ;;  %v18114_v52 = vld [vmem:[%s19930_s11 + $0x138] sm:$0xff]  ;;  %v13189_v57 = vcombine.high %v18104_v25, %v18109_v51  ;;  %v13188_v4 = vcombine.low %v18104_v25, %v18109_v51  ;;  %v15725_v25 = vld [vmem:[%s19932_s13 + $0x740] sm:$0xff]  }
0x156c   : > { %14599 = vmatprep.subr.bf16.mxu0 %v15690_v32  ;;  %v13190_v32 = vcombine.low %v18114_v52, %v18121_v62  ;;  %v15726_v51 = vld [vmem:[%s19932_s13 + $0x7c0] sm:$0xff]  }
0x156e   : > { %14578 = vmatpush3.bf16.msra.mxu1 %v15691_v14  ;;  %v13191_v14 = vcombine.high %v18114_v52, %v18121_v62  ;;  %v15727_v52 = vld [vmem:[%s19932_s13 + $0x700] sm:$0xff]  }
0x156f   : > { %5529 = vmatprep.subr.bf16.mxu1 %v13074_v12  ;;  %14600 = vmatpush3.bf16.msra.mxu0 %v15692_v16  ;;  %v15728_v62 = vld [vmem:[%s19932_s13 + $0x780] sm:$0xff]  }
0x1570   : > { %5572 = vmatprep.subr.bf16.mxu0 %v13076_v6 }
0x1571   : > { %5410 = vmatmul.mubr.bf16.vlgmr.msra.gmra.mrb[84].mxu1 %v4578_v21  ;;  %v15697_v21 = vld [vmem:[%s19932_s13 + $0x648] sm:$0xff]  }
0x1572   : > { %5530 = vmatpush1.bf16.msra.mxu1 %v13073_v58  ;;  %5561 = vmatprep.mubr.bf16.mxu1 %v16518_v49 }
0x1573   : > { %5451 = vmatmul.mubr.bf16.vlgmr.msra.gmra.mrb[88].mxu0 %v4580_v17  ;;  %5531 = vmatprep.subr.bf16.mxu1 %v13078_v8  ;;  %v15698_v17 = vld [vmem:[%s19932_s13 + $0x6c8] sm:$0xff]  }
0x1574   : > { %5573 = vmatpush1.bf16.msra.mxu0 %v13075_v7  ;;  %5604 = vmatprep.mubr.bf16.mxu0 %v16518_v49 }
0x1575   : > { %5574 = vmatprep.subr.bf16.mxu0 %v13080_v26 }
0x1576   : > { %5532 = vmatpush1.bf16.msra.mxu1 %v13077_v48 }
0x1577   : > { %14607 = vmatprep.subr.bf16.mxu1 %v15693_v9 }
0x1578   : > { %5575 = vmatpush1.bf16.msra.mxu0 %v13079_v42 }
0x1579   : > { %13081 = vmatmul.mubr.msk.bf16.vlgmr.msra.gmra.mrb[88].mxu1 %vm744_vm4, %v17695_v47  ;;  %14629 = vmatprep.subr.bf16.mxu0 %v15694_v13 }
0x157a   : > { %14608 = vmatpush3.bf16.msra.mxu1 %v15695_v36 }
0x157b   : > { %13082 = vmatmul.mubr.msk.bf16.vlgmr.msra.gmra.mrb[92].mxu0 %vm744_vm4, %v17695_v47  ;;  %14609 = vmatprep.subr.bf16.mxu1 %v15697_v21  ;;  %v13072_v21 = vld [vmem:[%s19931_s12 + $0x18] sm:$0xf] }
0x157c   : > { %14630 = vmatpush3.bf16.msra.mxu0 %v15696_v20 }
0x157d   : > { %14631 = vmatprep.subr.bf16.mxu0 %v15698_v17 }
0x157e   : > { %14610 = vmatpush3.bf16.msra.mxu1 %v15699_v27 }
0x157f   : > { %14611 = vmatprep.subr.bf16.mxu1 %v15701_v39 }
0x1580   : > { %14632 = vmatpush3.bf16.msra.mxu0 %v15700_v15 }
0x1581   : > { %14633 = vmatprep.subr.bf16.mxu0 %v15702_v29 }
0x1582   : > { %14612 = vmatpush3.bf16.msra.mxu1 %v15703_v31 }
0x1583   : > { %14613 = vmatprep.subr.bf16.mxu1 %v15705_v30  ;;  %v5472_v30 = vrot.slane %v13072_v21, %v17010_v53 }
0x1584   : > { %14634 = vmatpush3.bf16.msra.mxu0 %v15704_v46 }
0x1585   : > { %14635 = vmatprep.subr.bf16.mxu0 %v15706_v59 }
0x1586   : > { %14614 = vmatpush3.bf16.msra.mxu1 %v15707_v38 }
0x1587   : > { %14615 = vmatprep.subr.bf16.mxu1 %v15709_v5  ;;  %v5476_v5 = vrot.slane %v13072_v21, %v17016_v55 }
0x1588   : > { %14636 = vmatpush3.bf16.msra.mxu0 %v15708_v22 }
0x1589   : > { %14637 = vmatprep.subr.bf16.mxu0 %v15710_v23  ;;  %v5480_v23 = vrot.slane %v13072_v21, %v17013_v54 }
0x158a   : > { %14616 = vmatpush3.bf16.msra.mxu1 %v15711_v24 }
0x158b   : > { %14617 = vmatprep.subr.bf16.mxu1 %v15713_v18  ;;  %v5484_v18 = vrot.slane %v13072_v21, %v17019_v56 }
0x158c   : > { %14638 = vmatpush3.bf16.msra.mxu0 %v15712_v40 }
0x158d   : > { %14639 = vmatprep.subr.bf16.mxu0 %v15714_v28 }
0x158e   : > { %14618 = vmatpush3.bf16.msra.mxu1 %v15715_v33 }
0x158f   : > { %14619 = vmatprep.subr.bf16.mxu1 %v15717_v34 }
0x1590   : > { %14640 = vmatpush3.bf16.msra.mxu0 %v15716_v60 }
0x1591   : > { %14641 = vmatprep.subr.bf16.mxu0 %v15718_v10 }
0x1592   : > { %14620 = vmatpush3.bf16.msra.mxu1 %v15719_v11 }
0x1593   : > { %14621 = vmatprep.subr.bf16.mxu1 %v15721_v19 }
0x1594   : > { %14642 = vmatpush3.bf16.msra.mxu0 %v15720_v37 }
0x1595   : > { %14643 = vmatprep.subr.bf16.mxu0 %v15722_v43 }
0x1596   : > { %14622 = vmatpush3.bf16.msra.mxu1 %v15723_v44 }
0x1597   : > { %6069 = vmatprep.subr.bf16.mxu1 %v13189_v57 }
0x1598   : > { %14644 = vmatpush3.bf16.msra.mxu0 %v15724_v45 }
0x1599   : > { %6112 = vmatprep.subr.bf16.mxu0 %v13191_v14 }
0x1624   : > { %v14535_v61 = vpop.f32.mrb[80].mxu1 }
0x1625   : > { %v14536_v63 = vpop.f32.mrb[81].mxu1  ;;  %v14557_v12 = vpop.f32.mrb[84].mxu0 }
0x1626   : > { %v14537_v16 = vadd.f32 %v14536_v63, %v14535_v61  ;;  %v14538_v50 = vpop.f32.mrb[82].mxu1  ;;  %v14558_v1 = vpop.f32.mrb[85].mxu0 }
0x1627   : > { %v14539_v6 = vpop.f32.mrb[83].mxu1  ;;  %v14559_v58 = vadd.f32 %v14558_v1, %v14557_v12  ;;  %v14560_v41 = vpop.f32.mrb[86].mxu0 }
0x1628   : > { %v14540_v2 = vadd.f32 %v14539_v6, %v14538_v50  ;;  %v14561_v8 = vpop.f32.mrb[87].mxu0 }
0x1629   : > { %v5179_v7 = vadd.f32 %v14559_v58, %v14537_v16  ;;  %v14562_v26 = vadd.f32 %v14561_v8, %v14560_v41 }
0x162b   : > { %v5182_v48 = vadd.f32 %v14562_v26, %v14540_v2 }
0x1644   : > { %v14579_v42 = vpop.f32.mrb[84].mxu1 }
0x1645   : > { %v14580_v9 = vpop.f32.mrb[85].mxu1 }
0x1646   : > { %v14601_v13 = vpop.f32.mrb[88].mxu0  ;;  %v14581_v36 = vadd.f32 %v14580_v9, %v14579_v42  ;;  %v14582_v20 = vpop.f32.mrb[86].mxu1 }
0x1647   : > { %v14602_v17 = vpop.f32.mrb[89].mxu0  ;;  %v14583_v27 = vpop.f32.mrb[87].mxu1 }
0x1648   : > { %v5412_v15 = vadd.f32 %v14581_v36, %v5179_v7  ;;  %v14603_v39 = vadd.f32 %v14602_v17, %v14601_v13  ;;  %v14604_v29 = vpop.f32.mrb[90].mxu0  ;;  %v14584_v31 = vadd.f32 %v14583_v27, %v14582_v20 }
0x1649   : > { %v14605_v46 = vpop.f32.mrb[91].mxu0 }
0x164a   : > { %v18133_v59 = vadd.f32 %v14603_v39, %v5412_v15  ;;  %v5415_v38 = vadd.f32 %v14584_v31, %v5182_v48  ;;  %v14606_v22 = vadd.f32 %v14605_v46, %v14604_v29 }
0x164c   : > { %v18137_v24 = vadd.f32 %v14606_v22, %v5415_v38  ;;  %v5563_v40 = vpop.f32.mrb[88].mxu1 }
0x164d   : > { %v5564_v28 = vadd.f32 %v5563_v40, %v5472_v30  ;;  %v5565_v33 = vpop.f32.mrb[89].mxu1 }
0x164e   : > { %v5606_v60 = vpop.f32.mrb[92].mxu0  ;;  %v5566_v34 = vadd.f32 %v5565_v33, %v5476_v5  ;;  %v5567_v10 = vpop.f32.mrb[90].mxu1 }
0x164f   : > { %v5623_v11 = vmul.f32 0.70710677, %v5564_v28  ;;  %v5607_v37 = vadd.f32 %v5606_v60, %v5480_v23  ;;  %v5608_v19 = vpop.f32.mrb[93].mxu0  ;;  %v5568_v43 = vadd.f32 %v5567_v10, %v5472_v30  ;;  %v5569_v44 = vpop.f32.mrb[91].mxu1  ;;  %v5615_v13 = vmul.f32 0.5, %v5564_v28  ;;  %v13183_v10 = vld [vmem:[%s19930_s11 + $0x1b0] sm:$0xff] }
0x1650   : > { %v5624_v45 = vmul.f32 0.70710677, %v5566_v34  ;;  %v5609_v57 = vadd.f32 %v5608_v19, %v5484_v18  ;;  %v5610_v14 = vpop.f32.mrb[94].mxu0  ;;  %v5570_v61 = vadd.f32 %v5569_v44, %v5476_v5  ;;  %v5616_v36 = vmul.f32 0.5, %v5566_v34 }
0x1651   : > { %16193 = verf.f32 %v5623_v11  ;;  %v5625_v63 = vmul.f32 0.70710677, %v5607_v37  ;;  %v5612_v12 = vpop.f32.mrb[95].mxu0  ;;  %v5627_v50 = vmul.f32 0.70710677, %v5568_v43  ;;  %v5611_v1 = vadd.f32 %v5610_v14, %v5480_v23  ;;  %v13185_v11 = vld [vmem:[%s19930_s11 + $0x1f0] sm:$0xff] }
0x1652   : > { %16195 = verf.f32 %v5624_v45  ;;  %v5626_v16 = vmul.f32 0.70710677, %v5609_v57  ;;  %v5628_v6 = vmul.f32 0.70710677, %v5570_v61  ;;  %v5613_v58 = vadd.f32 %v5612_v12, %v5484_v18  ;;  %v13184_v14 = vld [vmem:[%s19930_s11 + $0x1b8] sm:$0xff] }
0x1653   : > { %16197 = verf.f32 %v5625_v63  ;;  %v5629_v41 = vmul.f32 0.70710677, %v5611_v1  ;;  %v5617_v17 = vmul.f32 0.5, %v5607_v37  ;;  %v5619_v15 = vmul.f32 0.5, %v5568_v43 }
0x1654   : > { %16199 = verf.f32 %v5626_v16  ;;  %v5630_v2 = vmul.f32 0.70710677, %v5613_v58  ;;  %v5618_v31 = vmul.f32 0.5, %v5609_v57  ;;  %v5620_v30 = vmul.f32 0.5, %v5570_v61  ;;  %v13186_v61 = vld [vmem:[%s19930_s11 + $0x1f8] sm:$0xff] }
0x1655   : > { %16201 = verf.f32 %v5627_v50  ;;  %v5621_v40 = vmul.f32 0.5, %v5611_v1  ;;  %v5622_v28 = vmul.f32 0.5, %v5613_v58  ;;  %v13193_v12 = vcombine.high %v13183_v10, %v13185_v11  ;;  %v15732_v58 = vld [vmem:[%s19932_s13 + $0x788] sm:$0xff]  }
0x1656   : > { %16203 = verf.f32 %v5628_v6  ;;  %v13195_v50 = vcombine.high %v13184_v14, %v13186_v61  ;;  %v13192_v1 = vcombine.low %v13183_v10, %v13185_v11  ;;  %v13194_v6 = vcombine.low %v13184_v14, %v13186_v61 }
0x1657   : > { %16205 = verf.f32 %v5629_v41  ;;  %v15733_v41 = vld [vmem:[%s19932_s13 + $0x750] sm:$0xff]  }
0x1658   : > { %16207 = verf.f32 %v5630_v2  ;;  %v15734_v2 = vld [vmem:[%s19932_s13 + $0x7d0] sm:$0xff]  }
0x165b   : > { %v16194_v8 = vpop.eup %16193 }
0x165c   : > { %v16196_v7 = vpop.eup %16195  ;;  %v5639_v42 = vadd.f32 1.0, %v16194_v8  ;;  %v15735_v8 = vld [vmem:[%s19932_s13 + $0x710] sm:$0xff]  }
0x165d   : > { %v16198_v26 = vpop.eup %16197  ;;  %v5640_v20 = vadd.f32 1.0, %v16196_v7  ;;  %v15736_v7 = vld [vmem:[%s19932_s13 + $0x790] sm:$0xff]  }
0x165e   : > { %v16200_v48 = vpop.eup %16199  ;;  %v5641_v27 = vadd.f32 1.0, %v16198_v26  ;;  %v5647_v5 = vmul.f32 %v5639_v42, %v5615_v13  ;;  %v15737_v26 = vld [vmem:[%s19932_s13 + $0x758] sm:$0xff]   ;;  %v15741_v13 = vld [vmem:[%s19932_s13 + $0x760] sm:$0xff]  }
0x165f   : > { %v16202_v9 = vpop.eup %16201  ;;  %v5642_v46 = vadd.f32 1.0, %v16200_v48  ;;  %v5648_v33 = vmul.f32 %v5640_v20, %v5616_v36  ;;  %v15738_v48 = vld [vmem:[%s19932_s13 + $0x7d8] sm:$0xff]   ;;  %v15742_v36 = vld [vmem:[%s19932_s13 + $0x7e0] sm:$0xff]  }
0x1660   : > { %v16204_v21 = vpop.eup %16203  ;;  %v5643_v39 = vadd.f32 1.0, %v16202_v9  ;;  %v5649_v37 = vmul.f32 %v5641_v27, %v5617_v17  ;;  %v15739_v42 = vld [vmem:[%s19932_s13 + $0x718] sm:$0xff]   ;;  %v15743_v20 = vld [vmem:[%s19932_s13 + $0x720] sm:$0xff]   ;;  %v15745_v17 = vld [vmem:[%s19932_s13 + $0x768] sm:$0xff]  }
0x1661   : > { %v16206_v29 = vpop.eup %16205  ;;  %v5644_v38 = vadd.f32 1.0, %v16204_v21  ;;  %v5650_v44 = vmul.f32 %v5642_v46, %v5618_v31  ;;  %v15740_v9 = vld [vmem:[%s19932_s13 + $0x798] sm:$0xff]   ;;  %v15744_v21 = vld [vmem:[%s19932_s13 + $0x7a0] sm:$0xff]   ;;  %v15746_v27 = vld [vmem:[%s19932_s13 + $0x7e8] sm:$0xff]  }
0x1662   : > { %v16208_v22 = vpop.eup %16207  ;;  %v5651_v23 = vmul.f32 %v5643_v39, %v5619_v15  ;;  %v5645_v18 = vadd.f32 1.0, %v16206_v29  ;;  %v15747_v15 = vld [vmem:[%s19932_s13 + $0x728] sm:$0xff]   ;;  %v15749_v29 = vld [vmem:[%s19932_s13 + $0x770] sm:$0xff]  }
0x1663   : > { %v5652_v60 = vmul.f32 %v5644_v38, %v5620_v30  ;;  %v5646_v34 = vadd.f32 1.0, %v16208_v22  ;;  %v15748_v39 = vld [vmem:[%s19932_s13 + $0x7a8] sm:$0xff]   ;;  %v15750_v31 = vld [vmem:[%s19932_s13 + $0x7f0] sm:$0xff]   ;;  %v15753_v38 = vld [vmem:[%s19932_s13 + $0x778] sm:$0xff]  }
0x1664   : > { %v5655_v19 = vpack.c.bf16 %v5651_v23, %v5647_v5  ;;  %v5653_v43 = vmul.f32 %v5645_v18, %v5621_v40  ;;  %v15751_v46 = vld [vmem:[%s19932_s13 + $0x730] sm:$0xff]   ;;  %v15754_v22 = vld [vmem:[%s19932_s13 + $0x7f8] sm:$0xff]  }
0x1665   : > { %v5654_v45 = vmul.f32 %v5646_v34, %v5622_v28  ;;  %v5656_v57 = vpack.c.bf16 %v5652_v60, %v5648_v33  ;;  %v15752_v30 = vld [vmem:[%s19932_s13 + $0x7b0] sm:$0xff]   ;;  %v15755_v5 = vld [vmem:[%s19932_s13 + $0x738] sm:$0xff]  }
0x1666   : > { %v5657_v63 = vpack.c.bf16 %v5653_v43, %v5649_v37  ;;  %v15756_v23 = vld [vmem:[%s19932_s13 + $0x7b8] sm:$0xff]  }
0x1667   : > { %5947 = vmatprep.mubr.bf16.mxu1 %v5656_v57  ;;  %v5658_v16 = vpack.c.bf16 %v5654_v45, %v5650_v44  ;;  %v13187_v34 = vld [vmem:[%s19931_s12 + $0x1c] sm:$0xf] }
0x1668   : > { %5948 = vmatmul.mubr.bf16.vlgmr.msra.gmra.mrb[92].mxu1 %v5655_v19  ;;  %v6012_v45 = vrot.slane %v13187_v34, %v17010_v53  ;;  %v6016_v61 = vrot.slane %v13187_v34, %v17016_v55 }
0x1669   : > { %5988 = vmatprep.mubr.bf16.mxu0 %v5658_v16  ;;  %6070 = vmatpush1.bf16.msra.mxu1 %v13188_v4  ;;  %v15730_v4 = vld [vmem:[%s19932_s13 + $0x7c8] sm:$0xff]  }
0x166a   : > { %5989 = vmatmul.mubr.bf16.vlgmr.msra.gmra.mrb[96].mxu0 %v5657_v63  ;;  %6071 = vmatprep.subr.bf16.mxu1 %v13193_v12  ;;  %v6020_v63 = vrot.slane %v13187_v34, %v17013_v54 }
0x166b   : > { %6113 = vmatpush1.bf16.msra.mxu0 %v13190_v32  ;;  %6101 = vmatprep.mubr.bf16.mxu1 %v16518_v49  ;;  %v15731_v32 = vld [vmem:[%s19932_s13 + $0x708] sm:$0xff]  }
0x166c   : > { %6114 = vmatprep.subr.bf16.mxu0 %v13195_v50  ;;  %6144 = vmatprep.mubr.bf16.mxu0 %v16518_v49 }
0x166d   : > { %6072 = vmatpush1.bf16.msra.mxu1 %v13192_v1  ;;  %v6024_v1 = vrot.slane %v13187_v34, %v17019_v56 }
0x166e   : > { %14651 = vmatprep.subr.bf16.mxu1 %v15725_v25 }
0x166f   : > { %6115 = vmatpush1.bf16.msra.mxu0 %v13194_v6 }
0x1670   : > { %13196 = vmatmul.mubr.msk.bf16.vlgmr.msra.gmra.mrb[96].mxu1 %vm744_vm4, %v17695_v47  ;;  %14673 = vmatprep.subr.bf16.mxu0 %v15726_v51 }
0x1671   : > { %14652 = vmatpush3.bf16.msra.mxu1 %v15727_v52 }
0x1672   : > { %13197 = vmatmul.mubr.msk.bf16.vlgmr.msra.gmra.mrb[100].mxu0 %vm744_vm4, %v17695_v47  ;;  %v15729_v47 = vld [vmem:[%s19932_s13 + $0x748] sm:$0xff]  }
0x1673   : > { %14674 = vmatpush3.bf16.msra.mxu0 %v15728_v62  ;;  %14653 = vmatprep.subr.bf16.mxu1 %v15729_v47 }
0x1674   : > { %14675 = vmatprep.subr.bf16.mxu0 %v15730_v4 }
0x1675   : > { %14654 = vmatpush3.bf16.msra.mxu1 %v15731_v32 }
0x1676   : > { %14655 = vmatprep.subr.bf16.mxu1 %v15733_v41 }
0x1677   : > { %14676 = vmatpush3.bf16.msra.mxu0 %v15732_v58 }
0x1678   : > { %14677 = vmatprep.subr.bf16.mxu0 %v15734_v2 }
0x1679   : > { %14656 = vmatpush3.bf16.msra.mxu1 %v15735_v8 }
0x167a   : > { %14657 = vmatprep.subr.bf16.mxu1 %v15737_v26 }
0x167b   : > { %14678 = vmatpush3.bf16.msra.mxu0 %v15736_v7 }
0x167c   : > { %14679 = vmatprep.subr.bf16.mxu0 %v15738_v48 }
0x167d   : > { %14658 = vmatpush3.bf16.msra.mxu1 %v15739_v42 }
0x167e   : > { %14659 = vmatprep.subr.bf16.mxu1 %v15741_v13 }
0x167f   : > { %14680 = vmatpush3.bf16.msra.mxu0 %v15740_v9 }
0x1680   : > { %14681 = vmatprep.subr.bf16.mxu0 %v15742_v36 }
0x1681   : > { %14660 = vmatpush3.bf16.msra.mxu1 %v15743_v20 }
0x1682   : > { %14661 = vmatprep.subr.bf16.mxu1 %v15745_v17 }
0x1683   : > { %14682 = vmatpush3.bf16.msra.mxu0 %v15744_v21 }
0x1684   : > { %14683 = vmatprep.subr.bf16.mxu0 %v15746_v27 }
0x1685   : > { %14662 = vmatpush3.bf16.msra.mxu1 %v15747_v15 }
0x1686   : > { %14663 = vmatprep.subr.bf16.mxu1 %v15749_v29 }
0x1687   : > { %14684 = vmatpush3.bf16.msra.mxu0 %v15748_v39 }
0x1688   : > { %14685 = vmatprep.subr.bf16.mxu0 %v15750_v31 }
0x1689   : > { %14664 = vmatpush3.bf16.msra.mxu1 %v15751_v46 }
0x168a   : > { %14665 = vmatprep.subr.bf16.mxu1 %v15753_v38 }
0x168b   : > { %14686 = vmatpush3.bf16.msra.mxu0 %v15752_v30 }
0x168c   : > { %14687 = vmatprep.subr.bf16.mxu0 %v15754_v22 }
0x168d   : > { %14666 = vmatpush3.bf16.msra.mxu1 %v15755_v5 }
0x168e   : > { %15230 = vmatprep.subr.bf16.mxu1 %v16502_v0 }
0x168f   : > { %14688 = vmatpush3.bf16.msra.mxu0 %v15756_v23 }
0x1690   : > { %15238 = vmatprep.subr.bf16.mxu0 %v16502_v0 }
0x173b   : > { %v14623_v40 = vpop.f32.mrb[92].mxu1 }
0x173c   : > { %v14624_v18 = vpop.f32.mrb[93].mxu1 }
0x173d   : > { %v14645_v33 = vpop.f32.mrb[96].mxu0  ;;  %v14625_v60 = vadd.f32 %v14624_v18, %v14623_v40  ;;  %v14626_v28 = vpop.f32.mrb[94].mxu1 }
0x173e   : > { %v14646_v10 = vpop.f32.mrb[97].mxu0  ;;  %v14627_v11 = vpop.f32.mrb[95].mxu1 }
0x173f   : > { %v14647_v37 = vadd.f32 %v14646_v10, %v14645_v33  ;;  %v14648_v19 = vpop.f32.mrb[98].mxu0  ;;  %v14628_v43 = vadd.f32 %v14627_v11, %v14626_v28 }
0x1740   : > { %v14649_v44 = vpop.f32.mrb[99].mxu0 }
0x1741   : > { %v5991_v57 = vadd.f32 %v14647_v37, %v14625_v60  ;;  %v14650_v14 = vadd.f32 %v14649_v44, %v14648_v19 }
0x1743   : > { %v18269_v12 = vadd.f32 %v5991_v57, %v18133_v59  ;;  %v5994_v16 = vadd.f32 %v14650_v14, %v14628_v43  ;;  %v6103_v50 = vpop.f32.mrb[96].mxu1 }
0x1744   : > { %v6104_v6 = vadd.f32 %v6103_v50, %v6012_v45  ;;  %v6105_v25 = vpop.f32.mrb[97].mxu1 }
0x1745   : > { %v18273_v51 = vadd.f32 %v5994_v16, %v18137_v24  ;;  %v6146_v52 = vpop.f32.mrb[100].mxu0  ;;  %v6106_v62 = vadd.f32 %v6105_v25, %v6016_v61  ;;  %v6107_v47 = vpop.f32.mrb[98].mxu1 }
0x1746   : > { %v6163_v4 = vmul.f32 0.70710677, %v6104_v6  ;;  %v6147_v32 = vadd.f32 %v6146_v52, %v6020_v63  ;;  %v6148_v58 = vpop.f32.mrb[101].mxu0  ;;  %v6108_v41 = vadd.f32 %v6107_v47, %v6012_v45  ;;  %v6109_v2 = vpop.f32.mrb[99].mxu1  ;;  %v6155_v30 = vmul.f32 0.5, %v6104_v6 }
0x1747   : > { %v6164_v8 = vmul.f32 0.70710677, %v6106_v62  ;;  %v6149_v59 = vadd.f32 %v6148_v58, %v6024_v1  ;;  %v6150_v7 = vpop.f32.mrb[102].mxu0  ;;  %v6110_v26 = vadd.f32 %v6109_v2, %v6016_v61  ;;  %v6156_v38 = vmul.f32 0.5, %v6106_v62 }
0x1748   : > { %16209 = verf.f32 %v6163_v4  ;;  %v6165_v48 = vmul.f32 0.70710677, %v6147_v32  ;;  %v6152_v42 = vpop.f32.mrb[103].mxu0  ;;  %v6167_v13 = vmul.f32 0.70710677, %v6108_v41  ;;  %v6151_v24 = vadd.f32 %v6150_v7, %v6020_v63 }
0x1749   : > { %16211 = verf.f32 %v6164_v8  ;;  %v6166_v9 = vmul.f32 0.70710677, %v6149_v59  ;;  %v6168_v36 = vmul.f32 0.70710677, %v6110_v26  ;;  %v6153_v20 = vadd.f32 %v6152_v42, %v6024_v1 }
0x174a   : > { %16213 = verf.f32 %v6165_v48  ;;  %v6169_v21 = vmul.f32 0.70710677, %v6151_v24  ;;  %v6157_v23 = vmul.f32 0.5, %v6147_v32  ;;  %v6159_v18 = vmul.f32 0.5, %v6108_v41 }
0x174b   : > { %16215 = verf.f32 %v6166_v9  ;;  %v6170_v17 = vmul.f32 0.70710677, %v6153_v20  ;;  %v6158_v28 = vmul.f32 0.5, %v6149_v59  ;;  %v6160_v10 = vmul.f32 0.5, %v6110_v26 }
0x174c   : > { %16217 = verf.f32 %v6167_v13  ;;  %v6161_v44 = vmul.f32 0.5, %v6151_v24  ;;  %v6162_v61 = vmul.f32 0.5, %v6153_v20  ;;  %v13295_v24 = vld [vmem:[%s19933_s14 + $0x1] ss:$0 sm:$0xff] }
0x174d   : > { %16219 = verf.f32 %v6168_v36 }
0x174e   : > { %16221 = verf.f32 %v6169_v21 }
0x174f   : > { %16223 = verf.f32 %v6170_v17 }
0x1752   : > { %v16210_v27 = vpop.eup %16209 }
0x1753   : > { %v16212_v15 = vpop.eup %16211  ;;  %v6179_v31 = vadd.f32 1.0, %v16210_v27 }
0x1754   : > { %v16214_v39 = vpop.eup %16213  ;;  %v6180_v22 = vadd.f32 1.0, %v16212_v15 }
0x1755   : > { %v16216_v29 = vpop.eup %16215  ;;  %v6181_v40 = vadd.f32 1.0, %v16214_v39  ;;  %v6187_v19 = vmul.f32 %v6179_v31, %v6155_v30 }
0x1756   : > { %v16218_v46 = vpop.eup %16217  ;;  %v6182_v34 = vadd.f32 1.0, %v16216_v29  ;;  %v6188_v57 = vmul.f32 %v6180_v22, %v6156_v38 }
0x1757   : > { %v16220_v5 = vpop.eup %16219  ;;  %v6183_v33 = vadd.f32 1.0, %v16218_v46  ;;  %v6189_v16 = vmul.f32 %v6181_v40, %v6157_v23 }
0x1758   : > { %v16222_v60 = vpop.eup %16221  ;;  %v6184_v11 = vadd.f32 1.0, %v16220_v5  ;;  %v6190_v6 = vmul.f32 %v6182_v34, %v6158_v28 }
0x1759   : > { %v16224_v37 = vpop.eup %16223  ;;  %v6191_v43 = vmul.f32 %v6183_v33, %v6159_v18  ;;  %v6185_v45 = vadd.f32 1.0, %v16222_v60  ;;  %v15758_v18 = vld [vmem:[%s19924_s5 + $0x28] sm:$0xff]  }
0x175a   : > { %v6192_v14 = vmul.f32 %v6184_v11, %v6160_v10  ;;  %v6186_v63 = vadd.f32 1.0, %v16224_v37 }
0x175b   : > { %v6195_v50 = vpack.c.bf16 %v6191_v43, %v6187_v19  ;;  %v6193_v1 = vmul.f32 %v6185_v45, %v6161_v44  ;;  %v13298_v19 = vld [vmem:[%s19934_s15 + $0x1] ss:$0 sm:$0xff] }
0x175c   : > { %v6194_v25 = vmul.f32 %v6186_v63, %v6162_v61  ;;  %v6196_v52 = vpack.c.bf16 %v6192_v14, %v6188_v57  ;;  %v13299_v14 = vld [vmem:[%s19935_s16 + $0x1] ss:$0 sm:$0xff] }
0x175d   : > { %v6197_v62 = vpack.c.bf16 %v6193_v1, %v6189_v16  ;;  %v13305_v1 = vld [vmem:[%s19925_s6 + $0x2] ss:$0 sm:$0xff] }
0x175e   : > { %6487 = vmatprep.mubr.bf16.mxu1 %v6196_v52  ;;  %v6198_v47 = vpack.c.bf16 %v6194_v25, %v6190_v6 }
0x175f   : > { %6488 = vmatmul.mubr.bf16.vlgmr.msra.gmra.mrb[100].mxu1 %v6195_v50 }
0x1760   : > { %6528 = vmatprep.mubr.bf16.mxu0 %v6198_v47  ;;  %15234 = vmatprep.mubr.msk.bf16.mxu1 %vm16503_vm1, %v16502_v0 }
0x1761   : > { %6529 = vmatmul.mubr.bf16.vlgmr.msra.gmra.mrb[104].mxu0 %v6197_v62 }
0x1762   : > { %15240 = vmatprep.mubr.msk.bf16.mxu0 %vm16503_vm1, %v16502_v0 }
0x1832   : > { %v14667_v4 = vpop.f32.mrb[100].mxu1 }
0x1833   : > { %v14668_v32 = vpop.f32.mrb[101].mxu1 }
0x1834   : > { %v14689_v58 = vpop.f32.mrb[104].mxu0  ;;  %v14669_v41 = vadd.f32 %v14668_v32, %v14667_v4  ;;  %v14670_v2 = vpop.f32.mrb[102].mxu1 }
0x1835   : > { %v14690_v8 = vpop.f32.mrb[105].mxu0  ;;  %v14671_v59 = vpop.f32.mrb[103].mxu1 }
0x1836   : > { %v14691_v7 = vadd.f32 %v14690_v8, %v14689_v58  ;;  %v14692_v26 = vpop.f32.mrb[106].mxu0  ;;  %v14672_v48 = vadd.f32 %v14671_v59, %v14670_v2 }
0x1837   : > { %v14693_v42 = vpop.f32.mrb[107].mxu0 }
0x1838   : > { %v6531_v9 = vadd.f32 %v14691_v7, %v14669_v41  ;;  %v14694_v13 = vadd.f32 %v14693_v42, %v14692_v26 }
0x183a   : > { %v6537_v36 = vadd.f32 %v6531_v9, %v18269_v12  ;;  %v6534_v20 = vadd.f32 %v14694_v13, %v14672_v48 }
0x183c   : > { %v6538_v21 = vadd.f32 %v6534_v20, %v18273_v51  ;;  %v6547_v17 = vadd.f32 %v13295_v24, %v6537_v36 }
0x183e   : > { %v6549_v27 = vadd.f32 %v6547_v17, %v17689_v3  ;;  %v6548_v15 = vadd.f32 %v13295_v24, %v6538_v21 }
0x1840   : > { %v6555_v39 = vsel %vm744_vm4, %v6549_v27, 0.0  ;;  %v6550_v29 = vadd.f32 %v6548_v15, %v17691_v35  ;;  %v15757_v35 = vld [vmem:[%s19924_s5 + $0x20] sm:$0xff]  }
0x1841   : > { %6556 = vadd.xlane.f32.xlu1 %v6555_v39  ;;  %15231 = vmatpush3.bf16.msra.mxu1 %v15757_v35  ;;  %v16436_v15 = vld [vmem:[%s16759_s27] ss:$0 sm:$0xff] }
0x1842   : > { %v6558_v31 = vsel %vm744_vm4, %v6550_v29, 0.0  ;;  %15232 = vmatprep.subr.bf16.mxu1 %v16502_v0 }
0x1843   : > { %6559 = vadd.xlane.f32.xlu0 %v6558_v31 }
0x1845   : > { %15233 = vmatpush3.bf16.msra.mxu1 %v15758_v18 }
0x1846   : > { %15244 = vmatprep.subr.bf16.mxu1 %v16502_v0 }
0x18ce   : > { %v6557_v46 = vpop.xlane.xlu1 %6556 }
0x18cf   : > { %v6561_v30 = vmul.f32 0.03125, %v6557_v46 }
0x18d0   : > { %v6560_v38 = vpop.xlane.xlu0 %6559 }
0x18d1   : > { %v6563_v22 = vsub.f32 %v6549_v27, %v6561_v30  ;;  %v6562_v12 = vmul.f32 0.03125, %v6560_v38 }
0x18d3   : > { %v6564_v5 = vsub.f32 %v6550_v29, %v6562_v12  ;;  %v6565_v23 = vmul.f32 %v6563_v22, %v6563_v22 }
0x18d5   : > { %v6567_v51 = vsel %vm744_vm4, %v6565_v23, 0.0  ;;  %v6566_v40 = vmul.f32 %v6564_v5, %v6564_v5 }
0x18d6   : > { %6568 = vadd.xlane.f32.xlu1 %v6567_v51 }
0x18d7   : > { %v6570_v3 = vsel %vm744_vm4, %v6566_v40, 0.0 }
0x18d8   : > { %6571 = vadd.xlane.f32.xlu0 %v6570_v3 }
0x1963   : > { %v6569_v33 = vpop.xlane.xlu1 %6568 }
0x1964   : > { %v6573_v60 = vmul.f32 0.03125, %v6569_v33 }
0x1965   : > { %v6572_v28 = vpop.xlane.xlu0 %6571 }
0x1966   : > { %v6575_v34 = vadd.f32 1e-05, %v6573_v60  ;;  %v6574_v10 = vmul.f32 0.03125, %v6572_v28 }
0x1968   : > { %16225 = vrsqrt.f32 %v6575_v34  ;;  %v6576_v11 = vadd.f32 1e-05, %v6574_v10 }
0x196a   : > { %16227 = vrsqrt.f32 %v6576_v11 }
0x1972   : > { %v16226_v37 = vpop.eup %16225 }
0x1973   : > { %v6579_v43 = vmul.f32 %v16226_v37, %v6563_v22 }
0x1974   : > { %v16228_v44 = vpop.eup %16227 }
0x1975   : > { %v6587_v45 = vmul.f32 %v13298_v19, %v6579_v43  ;;  %v6580_v57 = vmul.f32 %v16228_v44, %v6564_v5 }
0x1977   : > { %v6588_v61 = vmul.f32 %v13298_v19, %v6580_v57  ;;  %v18304_v63 = vadd.f32 %v13299_v14, %v6587_v45 }
0x1979   : > { %v18306_v16 = vadd.f32 %v13299_v14, %v6588_v61 }
0x197b   : > { %v6597_v50 = vpack.c.bf16 %v18306_v16, %v18304_v63 }
0x197d   : > { %15235 = vmatmul.mubr.msk.bf16.vlgmr.msra.gmra.mrb[104].mxu1 %vm744_vm4, %v6597_v50 }
0x197e   : > { %15246 = vmatprep.mubr.msk.bf16.mxu1 %vm16503_vm1, %v16502_v0 }
0x1a50   : > { %v6660_v6 = vpop.f32.mrb[104].mxu1 }
0x1a51   : > { %v15236_v25 = vpop.f32.mrb[105].mxu1  ;;  %v6661_v62 = vadd.f32 %v13305_v1, %v6660_v6 }
0x1a52   : > { %v6663_v52 = vpop.f32.mrb[106].mxu1 }
0x1a53   : > { %v6664_v47 = vadd.f32 %v13305_v1, %v6663_v52  ;;  %v15237_v4 = vpop.f32.mrb[107].mxu1 }
0x1a55   : > { %v18316_v32 = vpack.c.bf16 %v6664_v47, %v6661_v62 }
0x1a57   : > { %6794 = vrot.lane.b32.xlu0 %v18316_v32, %s20010_s24  ;;  %6669 = vrot.lane.b32.xlu1 %v18316_v32, %s20011_s22 }
0x1a5b   : > { %6917 = vrot.lane.b32.xlu0 %v18316_v32, %s20012_s2  ;;  %6792 = vrot.lane.b32.xlu1 %v18316_v32, %s20013_s26 }
0x1a5f   : > { %7042 = vrot.lane.b32.xlu0 %v18316_v32, %s20014_s29  ;;  %6919 = vrot.lane.b32.xlu1 %v18316_v32, %s20015_s23 }
0x1a63   : > { %7044 = vrot.lane.b32.xlu1 %v18316_v32, %s20016_s28 }
0x1ac9   : > { %v6670_v58 = vpop.permute.xlu1 %6669  ;;  %v6795_v2 = vpop.permute.xlu0 %6794 }
0x1aca   : > { %v6675_v41 = vsel %vm793_vm5, %v6670_v58, 0  ;;  %v6800_v59 = vsel %vm793_vm5, %v6795_v2, 0 }
0x1acb   : > { %15239 = vmatpush3.bf16.xpose.msra.mxu0 %v6675_v41 }
0x1acc   : > { %15250 = vmatprep.subr.bf16.mxu0 %v16502_v0 }
0x1acd   : > { %v6793_v8 = vpop.permute.xlu1 %6792  ;;  %v6918_v42 = vpop.permute.xlu0 %6917 }
0x1ad1   : > { %v6920_v7 = vpop.permute.xlu1 %6919  ;;  %v7043_v13 = vpop.permute.xlu0 %7042 }
0x1ad2   : > { %15241 = vmatmul.mubr.msk.bf16.vlgmr.msra.gmra.mrb[108].mxu0 %vm793_vm5, %v18316_v32  ;;  %v6925_v26 = vsel %vm793_vm5, %v6920_v7, 0 }
0x1ad3   : > { %15251 = vmatpush3.bf16.xpose.msra.mxu0 %v6800_v59  ;;  %15252 = vmatprep.mubr.msk.bf16.mxu0 %vm16503_vm1, %v16502_v0 }
0x1ad4   : > { %15262 = vmatprep.subr.bf16.mxu0 %v16502_v0 }
0x1ad5   : > { %v7045_v48 = vpop.permute.xlu1 %7044 }
0x1ad6   : > { %v7050_v9 = vsel %vm793_vm5, %v7045_v48, 0 }
0x1ada   : > { %15253 = vmatmul.mubr.msk.bf16.vlgmr.msra.gmra.mrb[112].mxu0 %vm793_vm5, %v6793_v8 }
0x1adb   : > { %15263 = vmatpush3.bf16.xpose.msra.mxu0 %v6925_v26  ;;  %15264 = vmatprep.mubr.msk.bf16.mxu0 %vm16503_vm1, %v16502_v0 }
0x1adc   : > { %15274 = vmatprep.subr.bf16.mxu0 %v16502_v0 }
0x1ae2   : > { %15265 = vmatmul.mubr.msk.bf16.vlgmr.msra.gmra.mrb[116].mxu0 %vm793_vm5, %v6918_v42 }
0x1ae3   : > { %15275 = vmatpush3.bf16.xpose.msra.mxu0 %v7050_v9  ;;  %15276 = vmatprep.mubr.msk.bf16.mxu0 %vm16503_vm1, %v16502_v0 }
0x1ae4   : > { %15286 = vmatprep.subr.bf16.mxu0 %v16502_v0 }
0x1aea   : > { %15277 = vmatmul.mubr.msk.bf16.vlgmr.msra.gmra.mrb[120].mxu0 %vm793_vm5, %v7043_v13 }
0x1aeb   : > { %15290 = vmatprep.mubr.msk.bf16.mxu0 %vm16503_vm1, %v16502_v0 }
0x1ba5   : > { %v6711_v24 = vpop.f32.mrb[108].mxu0 }
0x1ba6   : > { %v6718_v36 = vmul.f32 0.35355338, %v6711_v24  ;;  %v15242_v20 = vpop.f32.mrb[109].mxu0 }
0x1ba7   : > { %v6714_v21 = vpop.f32.mrb[110].mxu0 }
0x1ba8   : > { %v6719_v17 = vmul.f32 0.35355338, %v6714_v21  ;;  %v15243_v27 = vpop.f32.mrb[111].mxu0  ;;  %v6720_v39 = vadd.f32 %v16436_v15, %v6718_v36 }
0x1baa   : > { %v6722_v29 = vsel %vm851_vm6, %v6720_v39, -inf  ;;  %v6721_v31 = vadd.f32 %v16436_v15, %v6719_v17 }
0x1bab   : > { %6723 = vmax.xlane.f32.xlu1 %v6722_v29 }
0x1bac   : > { %v6725_v46 = vsel %vm851_vm6, %v6721_v31, -inf }
0x1bad   : > { %6726 = vmax.xlane.f32.xlu0 %v6725_v46  ;;  %v6836_v30 = vpop.f32.mrb[112].mxu0 }
0x1bae   : > { %v6843_v38 = vmul.f32 0.35355338, %v6836_v30  ;;  %v15254_v22 = vpop.f32.mrb[113].mxu0 }
0x1baf   : > { %v6839_v12 = vpop.f32.mrb[114].mxu0 }
0x1bb0   : > { %v6844_v5 = vmul.f32 0.35355338, %v6839_v12  ;;  %v15255_v23 = vpop.f32.mrb[115].mxu0  ;;  %v6845_v51 = vadd.f32 %v16436_v15, %v6843_v38 }
0x1bb2   : > { %v6847_v40 = vsel %vm851_vm6, %v6845_v51, -inf  ;;  %v6846_v3 = vadd.f32 %v16436_v15, %v6844_v5 }
0x1bb3   : > { %6848 = vmax.xlane.f32.xlu0 %v6847_v40 }
0x1bb4   : > { %v6850_v35 = vsel %vm851_vm6, %v6846_v3, -inf }
0x1bb5   : > { %6851 = vmax.xlane.f32.xlu1 %v6850_v35  ;;  %v6961_v18 = vpop.f32.mrb[116].mxu0 }
0x1bb6   : > { %v6968_v33 = vmul.f32 0.35355338, %v6961_v18  ;;  %v15266_v60 = vpop.f32.mrb[117].mxu0 }
0x1bb7   : > { %v6964_v28 = vpop.f32.mrb[118].mxu0 }
0x1bb8   : > { %v6969_v34 = vmul.f32 0.35355338, %v6964_v28  ;;  %v15267_v10 = vpop.f32.mrb[119].mxu0  ;;  %v6970_v11 = vadd.f32 %v16436_v15, %v6968_v33 }
0x1bba   : > { %v6972_v37 = vsel %vm851_vm6, %v6970_v11, -inf  ;;  %v6971_v19 = vadd.f32 %v16436_v15, %v6969_v34 }
0x1bbb   : > { %6973 = vmax.xlane.f32.xlu0 %v6972_v37 }
0x1bbc   : > { %v6975_v43 = vsel %vm851_vm6, %v6971_v19, -inf }
0x1bbd   : > { %6976 = vmax.xlane.f32.xlu1 %v6975_v43  ;;  %v7086_v44 = vpop.f32.mrb[120].mxu0 }
0x1bbe   : > { %v7093_v45 = vmul.f32 0.35355338, %v7086_v44  ;;  %v15278_v57 = vpop.f32.mrb[121].mxu0 }
0x1bbf   : > { %v7089_v14 = vpop.f32.mrb[122].mxu0 }
0x1bc0   : > { %v7094_v61 = vmul.f32 0.35355338, %v7089_v14  ;;  %v15279_v50 = vpop.f32.mrb[123].mxu0  ;;  %v7095_v1 = vadd.f32 %v16436_v15, %v7093_v45 }
0x1bc2   : > { %v7097_v6 = vsel %vm851_vm6, %v7095_v1, -inf  ;;  %v7096_v25 = vadd.f32 %v16436_v15, %v7094_v61 }
0x1bc3   : > { %7098 = vmax.xlane.f32.xlu0 %v7097_v6 }
0x1bc4   : > { %v7100_v52 = vsel %vm851_vm6, %v7096_v25, -inf }
0x1bc5   : > { %7101 = vmax.xlane.f32.xlu1 %v7100_v52 }
0x1c38   : > { %v6724_v62 = vpop.xlane.xlu1 %6723 }
0x1c39   : > { %v6728_v47 = vsub.f32 %v6720_v39, %v6724_v62 }
0x1c3a   : > { %v6727_v4 = vpop.xlane.xlu0 %6726 }
0x1c3b   : > { %v6730_v58 = vmul.f32 1.442695, %v6728_v47  ;;  %v6729_v41 = vsub.f32 %v6721_v31, %v6727_v4 }
0x1c3d   : > { %16229 = vpow2.f32 %v6730_v58  ;;  %v6732_v2 = vmul.f32 1.442695, %v6729_v41 }
0x1c3f   : > { %16231 = vpow2.f32 %v6732_v2 }
0x1c40   : > { %v6849_v8 = vpop.xlane.xlu0 %6848 }
0x1c41   : > { %v6853_v59 = vsub.f32 %v6845_v51, %v6849_v8 }
0x1c42   : > { %v6852_v36 = vpop.xlane.xlu1 %6851 }
0x1c43   : > { %v6855_v7 = vmul.f32 1.442695, %v6853_v59  ;;  %v6854_v20 = vsub.f32 %v6846_v3, %v6852_v36 }
0x1c45   : > { %16233 = vpow2.f32 %v6855_v7  ;;  %v6857_v27 = vmul.f32 1.442695, %v6854_v20 }
0x1c47   : > { %v16230_v26 = vpop.eup %16229  ;;  %16235 = vpow2.f32 %v6857_v27 }
0x1c48   : > { %v6734_v48 = vsel %vm851_vm6, %v16230_v26, 0.0  ;;  %v6974_v17 = vpop.xlane.xlu0 %6973 }
0x1c49   : > { %v16232_v42 = vpop.eup %16231  ;;  %6735 = vadd.xlane.f32.xlu0 %v6734_v48  ;;  %v6978_v29 = vsub.f32 %v6970_v11, %v6974_v17 }
0x1c4a   : > { %v6737_v9 = vsel %vm851_vm6, %v16232_v42, 0.0  ;;  %v6977_v21 = vpop.xlane.xlu1 %6976 }
0x1c4b   : > { %6738 = vadd.xlane.f32.xlu1 %v6737_v9  ;;  %v6979_v15 = vsub.f32 %v6971_v19, %v6977_v21  ;;  %v6980_v38 = vmul.f32 1.442695, %v6978_v29 }
0x1c4d   : > { %v6982_v46 = vmul.f32 1.442695, %v6979_v15 }
0x1c4f   : > { %v18364_v13 = vpop.eup %16233  ;;  %16237 = vpow2.f32 %v6982_v46 }
0x1c50   : > { %v6859_v24 = vsel %vm851_vm6, %v18364_v13, 0.0  ;;  %v7099_v31 = vpop.xlane.xlu0 %7098  ;;  %16239 = vpow2.f32 %v6980_v38 }
0x1c51   : > { %6860 = vadd.xlane.f32.xlu0 %v6859_v24  ;;  %v7103_v22 = vsub.f32 %v7095_v1, %v7099_v31  ;;  %v16236_v23 = vpop.eup %16235  ;;  %v15759_v31 = vld [vmem:[%s20025_s0 + $0x20] sm:$0xff]  }
0x1c52   : > { %v7102_v39 = vpop.xlane.xlu1 %7101  ;;  %v6862_v51 = vsel %vm851_vm6, %v16236_v23, 0.0  ;;  %15287 = vmatpush3.bf16.msra.mxu0 %v15759_v31 }
0x1c53   : > { %v7104_v30 = vsub.f32 %v7096_v25, %v7102_v39  ;;  %v7105_v5 = vmul.f32 1.442695, %v7103_v22  ;;  %15288 = vmatprep.subr.bf16.mxu0 %v16502_v0 }
0x1c55   : > { %v7107_v12 = vmul.f32 1.442695, %v7104_v30 }
0x1c57   : > { %16241 = vpow2.f32 %v7107_v12  ;;  %v15760_v12 = vld [vmem:[%s20025_s0 + $0x28] sm:$0xff]  }
0x1c58   : > { %16243 = vpow2.f32 %v7105_v5  ;;  %15289 = vmatpush3.bf16.msra.mxu0 %v15760_v12  ;;  %v13337_v12 = vld [vmem:[%s19930_s11 + $0x2c8] sm:$0xff] }
0x1c59   : > { %v16238_v40 = vpop.eup %16237 }
0x1c5a   : > { %v16240_v3 = vpop.eup %16239  ;;  %v6987_v35 = vsel %vm851_vm6, %v16238_v40, 0.0 }
0x1c5b   : > { %v6984_v33 = vsel %vm851_vm6, %v16240_v3, 0.0 }
0x1c5c   : > { %6870 = vrot.lane.b32.xlu1 %v18316_v32, %s20017_s20 }
0x1c61   : > { %v16242_v18 = vpop.eup %16241 }
0x1c62   : > { %v16244_v60 = vpop.eup %16243  ;;  %v7112_v28 = vsel %vm851_vm6, %v16242_v18, 0.0 }
0x1c63   : > { %v7109_v34 = vsel %vm851_vm6, %v16244_v60, 0.0 }
0x1c67   : > { %6745 = vrot.lane.b32.xlu0 %v18316_v32, %s20018_s4 }
0x1c80   : > { %6863 = vadd.xlane.f32.xlu1 %v6862_v51 }
0x1c84   : > { %6988 = vadd.xlane.f32.xlu1 %v6987_v35 }
0x1c86   : > { %6985 = vadd.xlane.f32.xlu0 %v6984_v33 }
0x1c88   : > { %7113 = vadd.xlane.f32.xlu1 %v7112_v28 }
0x1c8a   : > { %7110 = vadd.xlane.f32.xlu0 %v7109_v34 }
0x1c99   : > { %6995 = vrot.lane.b32.xlu1 %v18316_v32, %s20019_s25 }
0x1ca0   : > { %7120 = vrot.lane.b32.xlu0 %v18316_v32, %s20024_s3 }
0x1cd6   : > { %v6736_v10 = vpop.xlane.xlu0 %6735 }
0x1cd7   : > { %16245 = vrcp.f32 %v6736_v10 }
0x1cd8   : > { %v6739_v11 = vpop.xlane.xlu1 %6738 }
0x1cd9   : > { %16247 = vrcp.f32 %v6739_v11 }
0x1cdc   : > { %v6871_v61 = vpop.permute.xlu1 %6870 }
0x1cde   : > { %v6861_v37 = vpop.xlane.xlu0 %6860 }
0x1cdf   : > { %16249 = vrcp.f32 %v6861_v37 }
0x1ce1   : > { %v16246_v19 = vpop.eup %16245 }
0x1ce2   : > { %v6746_v43 = vpop.permute.xlu0 %6745  ;;  %v6742_v45 = vmul.f32 %v16246_v19, %v16230_v26 }
0x1ce3   : > { %v16248_v44 = vpop.eup %16247  ;;  %15245 = vmatpush3.bf16.msra.mxu1 %v6746_v43 }
0x1ce4   : > { %v6743_v57 = vmul.f32 %v16248_v44, %v16232_v42  ;;  %15256 = vmatprep.subr.bf16.mxu1 %v16502_v0 }
0x1ce6   : > { %v6744_v14 = vpack.c.bf16 %v6743_v57, %v6742_v45 }
0x1ce8   : > { %15247 = vmatmul.mubr.msk.bf16.vlgmr.msra.gmra.mrb[108].mxu1 %vm851_vm6, %v6744_v14 }
0x1ce9   : > { %15257 = vmatpush3.bf16.msra.mxu1 %v6871_v61  ;;  %15258 = vmatprep.mubr.msk.bf16.mxu1 %vm16503_vm1, %v16502_v0  ;;  %v16250_v6 = vpop.eup %16249 }
0x1cea   : > { %15268 = vmatprep.subr.bf16.mxu1 %v16502_v0  ;;  %v6867_v47 = vmul.f32 %v16250_v6, %v18364_v13  ;;  %v13322_v6 = vld [vmem:[%s20029_s7 + $0x2] ss:$0 sm:$0xff]  ;;  %s20042_s7 = smov %s20041_s30 }
0x1d0d   : > { %v6864_v32 = vpop.xlane.xlu1 %6863 }
0x1d0e   : > { %16251 = vrcp.f32 %v6864_v32 }
0x1d11   : > { %v6989_v50 = vpop.xlane.xlu1 %6988 }
0x1d12   : > { %16253 = vrcp.f32 %v6989_v50 }
0x1d13   : > { %v6986_v1 = vpop.xlane.xlu0 %6985 }
0x1d14   : > { %16255 = vrcp.f32 %v6986_v1 }
0x1d15   : > { %v7114_v25 = vpop.xlane.xlu1 %7113 }
0x1d17   : > { %v7111_v52 = vpop.xlane.xlu0 %7110 }
0x1d18   : > { %v16252_v62 = vpop.eup %16251  ;;  %16257 = vrcp.f32 %v7111_v52 }
0x1d19   : > { %v6868_v4 = vmul.f32 %v16252_v62, %v16236_v23  ;;  %16259 = vrcp.f32 %v7114_v25  ;;  %v6996_v2 = vpop.permute.xlu1 %6995 }
0x1d1b   : > { %v6869_v58 = vpack.c.bf16 %v6868_v4, %v6867_v47  ;;  %v7121_v42 = vpop.permute.xlu0 %7120 }
0x1d1c   : > { %v16254_v41 = vpop.eup %16253 }
0x1d1d   : > { %15259 = vmatmul.mubr.msk.bf16.vlgmr.msra.gmra.mrb[112].mxu1 %vm851_vm6, %v6869_v58  ;;  %v6993_v7 = vmul.f32 %v16254_v41, %v16238_v40 }
0x1d1e   : > { %v16256_v8 = vpop.eup %16255  ;;  %15269 = vmatpush3.bf16.msra.mxu1 %v6996_v2  ;;  %15270 = vmatprep.mubr.msk.bf16.mxu1 %vm16503_vm1, %v16502_v0 }
0x1d1f   : > { %v6992_v59 = vmul.f32 %v16256_v8, %v16240_v3  ;;  %15280 = vmatprep.subr.bf16.mxu1 %v16502_v0 }
0x1d21   : > { %v6994_v26 = vpack.c.bf16 %v6993_v7, %v6992_v59 }
0x1d22   : > { %v16258_v48 = vpop.eup %16257 }
0x1d23   : > { %v16260_v9 = vpop.eup %16259  ;;  %v7117_v13 = vmul.f32 %v16258_v48, %v16244_v60 }
0x1d24   : > { %v7118_v24 = vmul.f32 %v16260_v9, %v16242_v18 }
0x1d25   : > { %15271 = vmatmul.mubr.msk.bf16.vlgmr.msra.gmra.mrb[116].mxu1 %vm851_vm6, %v6994_v26 }
0x1d26   : > { %15281 = vmatpush3.bf16.msra.mxu1 %v7121_v42  ;;  %15282 = vmatprep.mubr.msk.bf16.mxu1 %vm16503_vm1, %v16502_v0  ;;  %v7119_v36 = vpack.c.bf16 %v7118_v24, %v7117_v13 }
0x1d2d   : > { %15283 = vmatmul.mubr.msk.bf16.vlgmr.msra.gmra.mrb[120].mxu1 %vm851_vm6, %v7119_v36 }
0x1d2e   : > { %7423 = vmatprep.mubr.bf16.mxu1 %v16518_v49 }
0x1dbb   : > { %v6785_v20 = vpop.f32.mrb[108].mxu1 }
0x1dbc   : > { %v15248_v21 = vpop.f32.mrb[109].mxu1 }
0x1dbd   : > { %v6788_v17 = vpop.f32.mrb[110].mxu1  ;;  %v13332_v21 = vld [vmem:[%s19930_s11 + $0x240] sm:$0xff] }
0x1dbe   : > { %v15249_v27 = vpop.f32.mrb[111].mxu1 }
0x1df0   : > { %v6910_v15 = vpop.f32.mrb[112].mxu1 }
0x1df1   : > { %v15260_v39 = vpop.f32.mrb[113].mxu1 }
0x1df2   : > { %v6913_v29 = vpop.f32.mrb[114].mxu1 }
0x1df3   : > { %v15462_v46 = vpack.i.bf16 %v6913_v29, %v6910_v15  ;;  %v15261_v30 = vpop.f32.mrb[115].mxu1  ;;  %v13333_v15 = vld [vmem:[%s19930_s11 + $0x248] sm:$0xff] }
0x1df4   : > { %v13336_v30 = vld [vmem:[%s19930_s11 + $0x2c0] sm:$0xff] }
0x1df5   : > { %15463 = vrot.lane.b32.xlu1 %v15462_v46, %s20026_s17  ;;  %v13334_v46 = vld [vmem:[%s19930_s11 + $0x280] sm:$0xff] }
0x1df8   : > { %v7035_v38 = vpop.f32.mrb[116].mxu1 }
0x1df9   : > { %v15272_v22 = vpop.f32.mrb[117].mxu1 }
0x1dfa   : > { %v7038_v5 = vpop.f32.mrb[118].mxu1  ;;  %v13344_v22 = vcombine.high %v13334_v46, %v13336_v30 }
0x1dfb   : > { %v15467_v23 = vpack.i.bf16 %v7038_v5, %v7035_v38  ;;  %v15273_v51 = vpop.f32.mrb[119].mxu1  ;;  %v13335_v38 = vld [vmem:[%s19930_s11 + $0x288] sm:$0xff]  ;;  %v13343_v5 = vcombine.low %v13334_v46, %v13336_v30  ;;  %v15778_v46 = vld [vmem:[%s19932_s13 + $0x9e0] sm:$0xff]  }
0x1dfc   : > { %v13346_v51 = vcombine.high %v13335_v38, %v13337_v12  ;;  %v15779_v30 = vld [vmem:[%s19932_s13 + $0x920] sm:$0xff]  }
0x1dfd   : > { %15468 = vrot.lane.b32.xlu0 %v15467_v23, %s20027_s19  ;;  %v13345_v23 = vcombine.low %v13335_v38, %v13337_v12  ;;  %v15780_v38 = vld [vmem:[%s19932_s13 + $0x9a0] sm:$0xff]   ;;  %v15782_v12 = vld [vmem:[%s19932_s13 + $0x9e8] sm:$0xff]   ;;  %s20038_s19 = sld [smem:[#allocation9_spill]] }
0x1e00   : > { %v7160_v40 = vpop.f32.mrb[120].mxu1 }
0x1e01   : > { %v15284_v3 = vpop.f32.mrb[121].mxu1 }
0x1e02   : > { %v7163_v35 = vpop.f32.mrb[122].mxu1  ;;  %v13415_v3 = vld [vmem:[%s19930_s11 + $0x250] sm:$0xff] }
0x1e03   : > { %v15472_v18 = vpack.i.bf16 %v7163_v35, %v7160_v40  ;;  %v15285_v33 = vpop.f32.mrb[123].mxu1  ;;  %v13413_v40 = vld [vmem:[%s19930_s11 + $0x210] sm:$0xff]  ;;  %v13414_v35 = vld [vmem:[%s19930_s11 + $0x218] sm:$0xff] }
0x1e04   : > { %v13416_v33 = vld [vmem:[%s19930_s11 + $0x258] sm:$0xff] }
0x1e05   : > { %15473 = vrot.lane.b32.xlu1 %v15472_v18, %s20028_s18  ;;  %v13423_v18 = vcombine.high %v13413_v40, %v13415_v3  ;;  %s20037_s18 = sld [smem:[#allocation6_spill]] }
0x1e67   : > { %v15464_v60 = vpop.permute.xlu1 %15463 }
0x1e68   : > { %v15466_v34 = vunpack.i.h.bf16 %v15464_v60  ;;  %v15465_v10 = vunpack.i.l.bf16 %v15464_v60  ;;  %v13422_v60 = vcombine.low %v13413_v40, %v13415_v3  ;;  %v15786_v40 = vld [vmem:[%s19932_s13 + $0x9f0] sm:$0xff]  }
0x1e69   : > { %v15787_v3 = vld [vmem:[%s19932_s13 + $0x930] sm:$0xff]  }
0x1e6a   : > { %v7192_v43 = vsel %vm793_vm5, %v6788_v17, %v15466_v34  ;;  %v7191_v44 = vsel %vm793_vm5, %v6785_v20, %v15465_v10  ;;  %v13331_v17 = vld [vmem:[%s19930_s11 + $0x208] sm:$0xff]  ;;  %v13425_v34 = vcombine.high %v13414_v35, %v13416_v33 }
0x1e6b   : > { %v13341_v29 = vcombine.low %v13331_v17, %v13333_v15  ;;  %v13342_v31 = vcombine.high %v13331_v17, %v13333_v15  ;;  %v15772_v17 = vld [vmem:[%s19932_s13 + $0x990] sm:$0xff]   ;;  %v15774_v15 = vld [vmem:[%s19932_s13 + $0x9d8] sm:$0xff]  }
0x1e6d   : > { %7434 = vmatprep.subr.bf16.mxu0 %v13342_v31  ;;  %v15777_v31 = vld [vmem:[%s19932_s13 + $0x960] sm:$0xff]  }
0x1e6f   : > { %v15469_v28 = vpop.permute.xlu0 %15468 }
0x1e70   : > { %v15471_v11 = vunpack.i.h.bf16 %v15469_v28  ;;  %v15470_v37 = vunpack.i.l.bf16 %v15469_v28  ;;  %v13424_v28 = vcombine.low %v13414_v35, %v13416_v33  ;;  %v15788_v35 = vld [vmem:[%s19932_s13 + $0x9b0] sm:$0xff]   ;;  %v15790_v33 = vld [vmem:[%s19932_s13 + $0x9f8] sm:$0xff]  }
0x1e72   : > { %v7194_v14 = vsel %vm851_vm6, %v7192_v43, %v15471_v11  ;;  %v7193_v61 = vsel %vm851_vm6, %v7191_v44, %v15470_v37 }
0x1e77   : > { %v15474_v19 = vpop.permute.xlu1 %15473 }
0x1e78   : > { %v15476_v45 = vunpack.i.h.bf16 %v15474_v19  ;;  %v15475_v57 = vunpack.i.l.bf16 %v15474_v19 }
0x1e7a   : > { %v7196_v32 = vsel %vm1325_vm7, %v7194_v14, %v15476_v45  ;;  %v7195_v50 = vsel %vm1325_vm7, %v7193_v61, %v15475_v57  ;;  %v13328_v14 = vld [vmem:[%s19928_s9 + $0x2] ss:$0 sm:$0xff] }
0x1e7b   : > { %v7197_v1 = vpack.c.bf16 %v7196_v32, %v7195_v50 }
0x1e7d   : > { %15291 = vmatmul.mubr.msk.bf16.vlgmr.msra.gmra.mrb[124].mxu0 %vm744_vm4, %v7197_v1  ;;  %v13329_v1 = vld [vmem:[%s19929_s10 + $0x2] ss:$0 sm:$0xff] }
0x1e7e   : > { %7466 = vmatprep.mubr.bf16.mxu0 %v16518_v49  ;;  %7435 = vmatpush1.bf16.msra.mxu0 %v13341_v29  ;;  %v15776_v29 = vld [vmem:[%s19932_s13 + $0x998] sm:$0xff]  }
0x1e7f   : > { %7436 = vmatprep.subr.bf16.mxu0 %v13346_v51  ;;  %v15785_v51 = vld [vmem:[%s19932_s13 + $0x970] sm:$0xff]  }
0x1e82   : > { %7437 = vmatpush1.bf16.msra.mxu0 %v13345_v23  ;;  %v15784_v23 = vld [vmem:[%s19932_s13 + $0x9a8] sm:$0xff]  }
0x1e83   : > { %7699 = vmatprep.subr.bf16.mxu0 %v13425_v34  ;;  %v15793_v34 = vld [vmem:[%s19932_s13 + $0x840] sm:$0xff]  }
0x1f50   : > { %v7260_v25 = vpop.f32.mrb[124].mxu0 }
0x1f51   : > { %v7261_v52 = vadd.f32 %v13322_v6, %v7260_v25  ;;  %v15292_v62 = vpop.f32.mrb[125].mxu0  ;;  %v13417_v25 = vld [vmem:[%s19930_s11 + $0x290] sm:$0xff] }
0x1f52   : > { %v7263_v47 = vpop.f32.mrb[126].mxu0  ;;  %v13418_v62 = vld [vmem:[%s19930_s11 + $0x298] sm:$0xff] }
0x1f53   : > { %v7267_v4 = vadd.f32 %v7261_v52, %v18304_v63  ;;  %v7264_v58 = vadd.f32 %v13322_v6, %v7263_v47  ;;  %v15293_v41 = vpop.f32.mrb[127].mxu0  ;;  %v13419_v52 = vld [vmem:[%s19930_s11 + $0x2d0] sm:$0xff]  ;;  %v13420_v47 = vld [vmem:[%s19930_s11 + $0x2d8] sm:$0xff] }
0x1f55   : > { %v7268_v2 = vadd.f32 %v7264_v58, %v18306_v16  ;;  %v7273_v8 = vsel %vm744_vm4, %v7267_v4, 0.0  ;;  %v13330_v16 = vld [vmem:[%s19930_s11 + $0x200] sm:$0xff] }
0x1f56   : > { %7274 = vadd.xlane.f32.xlu0 %v7273_v8  ;;  %v13340_v27 = vcombine.high %v13330_v16, %v13332_v21  ;;  %v13339_v39 = vcombine.low %v13330_v16, %v13332_v21  ;;  %v13429_v8 = vcombine.high %v13418_v62, %v13420_v47  ;;  %v15770_v16 = vld [vmem:[%s19932_s13 + $0x9d0] sm:$0xff]  }
0x1f57   : > { %v7276_v59 = vsel %vm744_vm4, %v7268_v2, 0.0  ;;  %v15771_v21 = vld [vmem:[%s19932_s13 + $0x910] sm:$0xff]  }
0x1f58   : > { %7277 = vadd.xlane.f32.xlu1 %v7276_v59  ;;  %7391 = vmatprep.subr.bf16.mxu1 %v13340_v27  ;;  %v13426_v59 = vcombine.low %v13417_v25, %v13419_v52  ;;  %v15773_v27 = vld [vmem:[%s19932_s13 + $0x958] sm:$0xff]  }
0x1f59   : > { %7392 = vmatpush1.bf16.msra.mxu1 %v13339_v39  ;;  %v15775_v39 = vld [vmem:[%s19932_s13 + $0x918] sm:$0xff]  }
0x1f5a   : > { %7393 = vmatprep.subr.bf16.mxu1 %v13344_v22  ;;  %v15781_v22 = vld [vmem:[%s19932_s13 + $0x968] sm:$0xff]  }
0x1f5d   : > { %7394 = vmatpush1.bf16.msra.mxu1 %v13343_v5  ;;  %v15783_v5 = vld [vmem:[%s19932_s13 + $0x928] sm:$0xff]  }
0x1f5e   : > { %7656 = vmatprep.subr.bf16.mxu1 %v13423_v18  ;;  %v15789_v18 = vld [vmem:[%s19932_s13 + $0x978] sm:$0xff]  }
0x1fe3   : > { %v7275_v7 = vpop.xlane.xlu0 %7274 }
0x1fe4   : > { %v7279_v26 = vmul.f32 0.03125, %v7275_v7  ;;  %v13428_v7 = vcombine.low %v13418_v62, %v13420_v47 }
0x1fe5   : > { %v7278_v48 = vpop.xlane.xlu1 %7277 }
0x1fe6   : > { %v7281_v42 = vsub.f32 %v7267_v4, %v7279_v26  ;;  %v7280_v9 = vmul.f32 0.03125, %v7278_v48  ;;  %v15761_v26 = vld [vmem:[%s19932_s13 + $0x940] sm:$0xff]  }
0x1fe7   : > { %v15762_v48 = vld [vmem:[%s19932_s13 + $0x9c0] sm:$0xff]  }
0x1fe8   : > { %v7282_v13 = vsub.f32 %v7268_v2, %v7280_v9  ;;  %v7283_v24 = vmul.f32 %v7281_v42, %v7281_v42  ;;  %v13427_v2 = vcombine.high %v13417_v25, %v13419_v52  ;;  %v15764_v9 = vld [vmem:[%s19932_s13 + $0x980] sm:$0xff]  }
0x1fea   : > { %v7285_v36 = vsel %vm744_vm4, %v7283_v24, 0.0  ;;  %v7284_v63 = vmul.f32 %v7282_v13, %v7282_v13  ;;  %v15766_v24 = vld [vmem:[%s19932_s13 + $0x9c8] sm:$0xff]  }
0x1feb   : > { %7286 = vadd.xlane.f32.xlu0 %v7285_v36  ;;  %v15767_v36 = vld [vmem:[%s19932_s13 + $0x908] sm:$0xff]  }
0x1fec   : > { %v7288_v20 = vsel %vm744_vm4, %v7284_v63, 0.0  ;;  %v15768_v63 = vld [vmem:[%s19932_s13 + $0x988] sm:$0xff]  }
0x1fef   : > { %7289 = vadd.xlane.f32.xlu0 %v7288_v20  ;;  %v15769_v20 = vld [vmem:[%s19932_s13 + $0x950] sm:$0xff]  }
0x2078   : > { %v7287_v10 = vpop.xlane.xlu0 %7286 }
0x2079   : > { %v7291_v11 = vmul.f32 0.03125, %v7287_v10  ;;  %v15794_v10 = vld [vmem:[%s19932_s13 + $0x8c0] sm:$0xff]  }
0x207b   : > { %v7293_v37 = vadd.f32 1e-05, %v7291_v11  ;;  %v13338_v11 = vld [vmem:[%s19931_s12 + $0x20] sm:$0xf] }
0x207c   : > { %v7290_v19 = vpop.xlane.xlu0 %7289 }
0x207d   : > { %16261 = vrsqrt.f32 %v7293_v37  ;;  %v7292_v43 = vmul.f32 0.03125, %v7290_v19  ;;  %v7331_v37 = vrot.slane %v13338_v11, %v17010_v53  ;;  %v7339_v19 = vrot.slane %v13338_v11, %v17013_v54 }
0x207f   : > { %v7294_v44 = vadd.f32 1e-05, %v7292_v43  ;;  %v7335_v43 = vrot.slane %v13338_v11, %v17016_v55 }
0x2081   : > { %16263 = vrsqrt.f32 %v7294_v44  ;;  %v7343_v44 = vrot.slane %v13338_v11, %v17019_v56 }
0x2087   : > { %v16262_v45 = vpop.eup %16261 }
0x2088   : > { %v7297_v57 = vmul.f32 %v16262_v45, %v7281_v42  ;;  %v15763_v42 = vld [vmem:[%s19932_s13 + $0x900] sm:$0xff]  }
0x208a   : > { %v7305_v32 = vmul.f32 %v13328_v14, %v7297_v57 }
0x208b   : > { %v16264_v61 = vpop.eup %16263 }
0x208c   : > { %v7298_v50 = vmul.f32 %v16264_v61, %v7282_v13  ;;  %v18477_v4 = vadd.f32 %v13329_v1, %v7305_v32  ;;  %v15765_v13 = vld [vmem:[%s19932_s13 + $0x948] sm:$0xff]  }
0x208e   : > { %v7306_v6 = vmul.f32 %v13328_v14, %v7298_v50 }
0x2090   : > { %v18479_v58 = vadd.f32 %v13329_v1, %v7306_v6  ;;  %v13421_v1 = vld [vmem:[%s19931_s12 + $0x24] sm:$0xf] }
0x2092   : > { %v18483_v41 = vpack.c.bf16 %v18479_v58, %v18477_v4 }
0x2094   : > { %13347 = vmatmul.mubr.msk.bf16.vlgmr.msra.gmra.mrb[124].mxu1 %vm744_vm4, %v18483_v41  ;;  %13348 = vmatmul.mubr.msk.bf16.vlgmr.msra.gmra.mrb[128].mxu0 %vm744_vm4, %v18483_v41 }
0x2095   : > { %7657 = vmatpush1.bf16.msra.mxu1 %v13422_v60  ;;  %7700 = vmatpush1.bf16.msra.mxu0 %v13424_v28  ;;  %v15791_v60 = vld [vmem:[%s19932_s13 + $0x938] sm:$0xff]  }
0x2096   : > { %7658 = vmatprep.subr.bf16.mxu1 %v13427_v2  ;;  %7701 = vmatprep.subr.bf16.mxu0 %v13429_v8  ;;  %v15792_v28 = vld [vmem:[%s19932_s13 + $0x9b8] sm:$0xff]  }
0x2097   : > { %7688 = vmatprep.mubr.bf16.mxu1 %v16518_v49  ;;  %7731 = vmatprep.mubr.bf16.mxu0 %v16518_v49 }
0x2099   : > { %7659 = vmatpush1.bf16.msra.mxu1 %v13426_v59  ;;  %7702 = vmatpush1.bf16.msra.mxu0 %v13428_v7  ;;  %v7599_v7 = vrot.slane %v13421_v1, %v17010_v53 }
0x209a   : > { %14717 = vmatprep.subr.bf16.mxu1 %v15761_v26  ;;  %14739 = vmatprep.subr.bf16.mxu0 %v15762_v48 }
0x209c   : > { %13430 = vmatmul.mubr.msk.bf16.vlgmr.msra.gmra.mrb[128].mxu1 %vm744_vm4, %v18483_v41  ;;  %13431 = vmatmul.mubr.msk.bf16.vlgmr.msra.gmra.mrb[132].mxu0 %vm744_vm4, %v18483_v41 }
0x209d   : > { %14718 = vmatpush3.bf16.msra.mxu1 %v15763_v42  ;;  %14740 = vmatpush3.bf16.msra.mxu0 %v15764_v9 }
0x209e   : > { %14719 = vmatprep.subr.bf16.mxu1 %v15765_v13  ;;  %14741 = vmatprep.subr.bf16.mxu0 %v15766_v24  ;;  %v7607_v13 = vrot.slane %v13421_v1, %v17013_v54 }
0x20a1   : > { %14720 = vmatpush3.bf16.msra.mxu1 %v15767_v36  ;;  %14742 = vmatpush3.bf16.msra.mxu0 %v15768_v63  ;;  %v7603_v63 = vrot.slane %v13421_v1, %v17016_v55 }
0x20a2   : > { %14721 = vmatprep.subr.bf16.mxu1 %v15769_v20  ;;  %14743 = vmatprep.subr.bf16.mxu0 %v15770_v16  ;;  %v7611_v16 = vrot.slane %v13421_v1, %v17019_v56 }
0x20a5   : > { %14722 = vmatpush3.bf16.msra.mxu1 %v15771_v21  ;;  %14744 = vmatpush3.bf16.msra.mxu0 %v15772_v17 }
0x20a6   : > { %14723 = vmatprep.subr.bf16.mxu1 %v15773_v27  ;;  %14745 = vmatprep.subr.bf16.mxu0 %v15774_v15 }
0x20a9   : > { %14724 = vmatpush3.bf16.msra.mxu1 %v15775_v39  ;;  %14746 = vmatpush3.bf16.msra.mxu0 %v15776_v29 }
0x20aa   : > { %14725 = vmatprep.subr.bf16.mxu1 %v15777_v31  ;;  %14747 = vmatprep.subr.bf16.mxu0 %v15778_v46 }
0x20ad   : > { %14726 = vmatpush3.bf16.msra.mxu1 %v15779_v30  ;;  %14748 = vmatpush3.bf16.msra.mxu0 %v15780_v38 }
0x20ae   : > { %14727 = vmatprep.subr.bf16.mxu1 %v15781_v22  ;;  %14749 = vmatprep.subr.bf16.mxu0 %v15782_v12 }
0x20b1   : > { %14728 = vmatpush3.bf16.msra.mxu1 %v15783_v5  ;;  %14750 = vmatpush3.bf16.msra.mxu0 %v15784_v23 }
0x20b2   : > { %14729 = vmatprep.subr.bf16.mxu1 %v15785_v51  ;;  %14751 = vmatprep.subr.bf16.mxu0 %v15786_v40 }
0x20b5   : > { %14730 = vmatpush3.bf16.msra.mxu1 %v15787_v3  ;;  %14752 = vmatpush3.bf16.msra.mxu0 %v15788_v35 }
0x20b6   : > { %14731 = vmatprep.subr.bf16.mxu1 %v15789_v18  ;;  %14753 = vmatprep.subr.bf16.mxu0 %v15790_v33 }
0x20b9   : > { %14732 = vmatpush3.bf16.msra.mxu1 %v15791_v60  ;;  %14754 = vmatpush3.bf16.msra.mxu0 %v15792_v28 }
0x20ba   : > { %14761 = vmatprep.subr.bf16.mxu1 %v15793_v34  ;;  %14783 = vmatprep.subr.bf16.mxu0 %v15794_v10 }
0x2167   : > { %v7425_v45 = vpop.f32.mrb[124].mxu1  ;;  %v7468_v57 = vpop.f32.mrb[128].mxu0 }
0x2168   : > { %v7426_v14 = vadd.f32 %v7425_v45, %v7331_v37  ;;  %v7469_v61 = vadd.f32 %v7468_v57, %v7339_v19  ;;  %v7427_v32 = vpop.f32.mrb[125].mxu1  ;;  %v7470_v50 = vpop.f32.mrb[129].mxu0 }
0x2169   : > { %v7428_v6 = vadd.f32 %v7427_v32, %v7335_v43  ;;  %v18607_v25 = vadd.f32 %v7470_v50, %v7343_v44  ;;  %v7429_v52 = vpop.f32.mrb[126].mxu1  ;;  %v7472_v62 = vpop.f32.mrb[130].mxu0 }
0x216a   : > { %v7485_v47 = vmul.f32 0.70710677, %v7426_v14  ;;  %v7487_v2 = vmul.f32 0.70710677, %v7469_v61  ;;  %v7430_v26 = vadd.f32 %v7429_v52, %v7331_v37  ;;  %v18611_v48 = vadd.f32 %v7472_v62, %v7339_v19  ;;  %v7431_v42 = vpop.f32.mrb[127].mxu1  ;;  %v7474_v9 = vpop.f32.mrb[131].mxu0 }
0x216b   : > { %v7486_v8 = vmul.f32 0.70710677, %v7428_v6  ;;  %v7488_v59 = vmul.f32 0.70710677, %v18607_v25  ;;  %v18614_v24 = vadd.f32 %v7431_v42, %v7335_v43  ;;  %v18616_v36 = vadd.f32 %v7474_v9, %v7343_v44 }
0x216c   : > { %16265 = verf.f32 %v7485_v47  ;;  %v7489_v20 = vmul.f32 0.70710677, %v7430_v26  ;;  %v7491_v21 = vmul.f32 0.70710677, %v18611_v48  ;;  %v7477_v43 = vmul.f32 0.5, %v7426_v14 }
0x216d   : > { %16267 = verf.f32 %v7487_v2  ;;  %v7490_v17 = vmul.f32 0.70710677, %v18614_v24  ;;  %v7492_v15 = vmul.f32 0.70710677, %v18616_v36  ;;  %v7479_v44 = vmul.f32 0.5, %v7469_v61 }
0x216e   : > { %16269 = verf.f32 %v7486_v8  ;;  %v7478_v50 = vmul.f32 0.5, %v7428_v6  ;;  %v7480_v47 = vmul.f32 0.5, %v18607_v25  ;;  %v7481_v2 = vmul.f32 0.5, %v7430_v26 }
0x216f   : > { %16271 = verf.f32 %v7488_v59  ;;  %v7690_v27 = vpop.f32.mrb[128].mxu1  ;;  %v7733_v29 = vpop.f32.mrb[132].mxu0  ;;  %v7483_v9 = vmul.f32 0.5, %v18611_v48 }
0x2170   : > { %16273 = verf.f32 %v7489_v20  ;;  %v18623_v39 = vadd.f32 %v7690_v27, %v7599_v7  ;;  %v7692_v31 = vpop.f32.mrb[129].mxu1  ;;  %v18625_v46 = vadd.f32 %v7733_v29, %v7607_v13  ;;  %v7735_v38 = vpop.f32.mrb[133].mxu0 }
0x2171   : > { %16275 = verf.f32 %v7491_v21  ;;  %v18627_v30 = vadd.f32 %v7692_v31, %v7603_v63  ;;  %v7694_v22 = vpop.f32.mrb[130].mxu1  ;;  %v18630_v5 = vadd.f32 %v7735_v38, %v7611_v16  ;;  %v7737_v23 = vpop.f32.mrb[134].mxu0 }
0x2172   : > { %16277 = verf.f32 %v7490_v17  ;;  %v7750_v12 = vmul.f32 0.70710677, %v18623_v39  ;;  %v7696_v51 = vpop.f32.mrb[131].mxu1  ;;  %v7752_v40 = vmul.f32 0.70710677, %v18625_v46  ;;  %v7739_v3 = vpop.f32.mrb[135].mxu0  ;;  %v7695_v33 = vadd.f32 %v7694_v22, %v7599_v7 }
0x2173   : > { %16279 = verf.f32 %v7492_v15  ;;  %v7751_v35 = vmul.f32 0.70710677, %v18627_v30  ;;  %v7753_v18 = vmul.f32 0.70710677, %v18630_v5  ;;  %v18635_v60 = vadd.f32 %v7737_v23, %v7607_v13 }
0x2174   : > { %16281 = verf.f32 %v7750_v12  ;;  %v18637_v28 = vadd.f32 %v7696_v51, %v7603_v63  ;;  %v7754_v11 = vmul.f32 0.70710677, %v7695_v33  ;;  %v18639_v37 = vadd.f32 %v7739_v3, %v7611_v16 }
0x2175   : > { %16283 = verf.f32 %v7752_v40  ;;  %v7756_v45 = vmul.f32 0.70710677, %v18635_v60  ;;  %v7482_v13 = vmul.f32 0.5, %v18614_v24  ;;  %v7484_v17 = vmul.f32 0.5, %v18616_v36 }
0x2176   : > { %v16266_v34 = vpop.eup %16265  ;;  %16285 = verf.f32 %v7751_v35  ;;  %v7755_v1 = vmul.f32 0.70710677, %v18637_v28  ;;  %v7757_v14 = vmul.f32 0.70710677, %v18639_v37  ;;  %v7742_v36 = vmul.f32 0.5, %v18623_v39 }
0x2177   : > { %v16268_v10 = vpop.eup %16267  ;;  %16287 = verf.f32 %v7753_v18  ;;  %v7501_v32 = vadd.f32 1.0, %v16266_v34 }
0x2178   : > { %v16270_v19 = vpop.eup %16269  ;;  %16289 = verf.f32 %v7754_v11  ;;  %v7503_v62 = vadd.f32 1.0, %v16268_v10  ;;  %v7744_v11 = vmul.f32 0.5, %v18625_v46 }
0x2179   : > { %v16272_v57 = vpop.eup %16271  ;;  %16291 = verf.f32 %v7756_v45  ;;  %v7502_v59 = vadd.f32 1.0, %v16270_v19  ;;  %v18647_v20 = vmul.f32 %v7501_v32, %v7477_v43  ;;  %v7746_v43 = vmul.f32 0.5, %v7695_v33 }
0x217a   : > { %v16274_v52 = vpop.eup %16273  ;;  %16293 = verf.f32 %v7755_v1  ;;  %v7504_v42 = vadd.f32 1.0, %v16272_v57  ;;  %v18651_v26 = vmul.f32 %v7503_v62, %v7479_v44  ;;  %v7743_v57 = vmul.f32 0.5, %v18627_v30 }
0x217b   : > { %v16276_v8 = vpop.eup %16275  ;;  %v7505_v7 = vadd.f32 1.0, %v16274_v52  ;;  %16295 = verf.f32 %v7757_v14  ;;  %v7510_v29 = vmul.f32 %v7502_v59, %v7478_v50  ;;  %v7748_v32 = vmul.f32 0.5, %v18635_v60 }
0x217c   : > { %v16278_v61 = vpop.eup %16277  ;;  %v7507_v6 = vadd.f32 1.0, %v16276_v8  ;;  %v7512_v38 = vmul.f32 %v7504_v42, %v7480_v47  ;;  %v7747_v1 = vmul.f32 0.5, %v18637_v28  ;;  %v7745_v59 = vmul.f32 0.5, %v18630_v5  ;;  %v15795_v28 = vld [vmem:[%s19932_s13 + $0x800] sm:$0xff]  }
0x217d   : > { %v16280_v63 = vpop.eup %16279  ;;  %v18649_v16 = vmul.f32 %v7505_v7, %v7481_v2  ;;  %v7506_v25 = vadd.f32 1.0, %v16278_v61  ;;  %v7749_v33 = vmul.f32 0.5, %v18639_v37  ;;  %v15796_v5 = vld [vmem:[%s19932_s13 + $0x880] sm:$0xff]   ;;  %v15797_v37 = vld [vmem:[%s19932_s13 + $0x848] sm:$0xff]  }
0x217e   : > { %v18653_v21 = vmul.f32 %v7507_v6, %v7483_v9  ;;  %v7508_v27 = vadd.f32 1.0, %v16280_v63  ;;  %v16282_v15 = vpop.eup %16281  ;;  %v15798_v63 = vld [vmem:[%s19932_s13 + $0x8c8] sm:$0xff]  }
0x217f   : > { %v7517_v48 = vpack.c.bf16 %v18649_v16, %v18647_v20  ;;  %v7514_v24 = vmul.f32 %v7506_v25, %v7482_v13  ;;  %v16284_v31 = vpop.eup %16283  ;;  %v7766_v3 = vadd.f32 1.0, %v16282_v15  ;;  %v15799_v25 = vld [vmem:[%s19932_s13 + $0x808] sm:$0xff]   ;;  %v15802_v15 = vld [vmem:[%s19932_s13 + $0x8d0] sm:$0xff]   ;;  %v15825_v20 = vld [vmem:[%s19932_s13 + $0xa40] sm:$0xff]  }
0x2180   : > { %v7519_v22 = vpack.c.bf16 %v18653_v21, %v18651_v26  ;;  %v7516_v12 = vmul.f32 %v7508_v27, %v7484_v17  ;;  %v16286_v23 = vpop.eup %16285  ;;  %v7768_v34 = vadd.f32 1.0, %v16284_v31  ;;  %v15801_v17 = vld [vmem:[%s19932_s13 + $0x850] sm:$0xff]   ;;  %v15800_v27 = vld [vmem:[%s19932_s13 + $0x888] sm:$0xff]   ;;  %v15826_v16 = vld [vmem:[%s19932_s13 + $0xac0] sm:$0xff]  }
0x2181   : > { %v7518_v51 = vpack.c.bf16 %v7514_v24, %v7510_v29  ;;  %v16288_v40 = vpop.eup %16287  ;;  %v7767_v19 = vadd.f32 1.0, %v16286_v23  ;;  %v7774_v52 = vmul.f32 %v7766_v3, %v7742_v36  ;;  %v15803_v29 = vld [vmem:[%s19932_s13 + $0x810] sm:$0xff]   ;;  %v15805_v24 = vld [vmem:[%s19932_s13 + $0x858] sm:$0xff]   ;;  %v15809_v23 = vld [vmem:[%s19932_s13 + $0x860] sm:$0xff]  }
0x2182   : > { %v7520_v35 = vpack.c.bf16 %v7516_v12, %v7512_v38  ;;  %v16290_v18 = vpop.eup %16289  ;;  %v7769_v62 = vadd.f32 1.0, %v16288_v40  ;;  %v7776_v8 = vmul.f32 %v7768_v34, %v7744_v11  ;;  %v15804_v31 = vld [vmem:[%s19932_s13 + $0x890] sm:$0xff]   ;;  %v15806_v38 = vld [vmem:[%s19932_s13 + $0x8d8] sm:$0xff]   ;;  %v15810_v40 = vld [vmem:[%s19932_s13 + $0x8e0] sm:$0xff]  }
0x2183   : > { %v16292_v10 = vpop.eup %16291  ;;  %v7770_v44 = vadd.f32 1.0, %v16290_v18  ;;  %v7775_v7 = vmul.f32 %v7767_v19, %v7743_v57  ;;  %v15807_v12 = vld [vmem:[%s19932_s13 + $0x818] sm:$0xff]   ;;  %v15811_v3 = vld [vmem:[%s19932_s13 + $0x820] sm:$0xff]   ;;  %v15814_v36 = vld [vmem:[%s19932_s13 + $0x8e8] sm:$0xff]  }
0x2184   : > { %v16294_v45 = vpop.eup %16293  ;;  %v7772_v50 = vadd.f32 1.0, %v16292_v10  ;;  %v7777_v60 = vmul.f32 %v7769_v62, %v7745_v59  ;;  %v15812_v18 = vld [vmem:[%s19932_s13 + $0x8a0] sm:$0xff]   ;;  %v15815_v34 = vld [vmem:[%s19932_s13 + $0x828] sm:$0xff]   ;;  %v15817_v10 = vld [vmem:[%s19932_s13 + $0x870] sm:$0xff]  }
0x2185   : > { %v7778_v47 = vmul.f32 %v7770_v44, %v7746_v43  ;;  %v7771_v2 = vadd.f32 1.0, %v16294_v45  ;;  %v16296_v39 = vpop.eup %16295  ;;  %v15816_v11 = vld [vmem:[%s19932_s13 + $0x8a8] sm:$0xff]   ;;  %v15818_v19 = vld [vmem:[%s19932_s13 + $0x8f0] sm:$0xff]   ;;  %v15821_v44 = vld [vmem:[%s19932_s13 + $0x878] sm:$0xff]  }
0x2186   : > { %v7780_v46 = vmul.f32 %v7772_v50, %v7748_v32  ;;  %v7773_v30 = vadd.f32 1.0, %v16296_v39  ;;  %v15819_v43 = vld [vmem:[%s19932_s13 + $0x830] sm:$0xff]   ;;  %v13560_v57 = vld [vmem:[%s19930_s11 + $0x220] sm:$0xff]  ;;  %v15822_v50 = vld [vmem:[%s19932_s13 + $0x8f8] sm:$0xff]  }
0x2187   : > { %v7782_v14 = vpack.c.bf16 %v7778_v47, %v7774_v52  ;;  %v7779_v61 = vmul.f32 %v7771_v2, %v7747_v1  ;;  %v15820_v45 = vld [vmem:[%s19932_s13 + $0x8b0] sm:$0xff]   ;;  %v13562_v32 = vld [vmem:[%s19930_s11 + $0x260] sm:$0xff]  ;;  %v15823_v1 = vld [vmem:[%s19932_s13 + $0x838] sm:$0xff]  }
0x2188   : > { %v7784_v42 = vpack.c.bf16 %v7780_v46, %v7776_v8  ;;  %v7781_v9 = vmul.f32 %v7773_v30, %v7749_v33  ;;  %v13561_v52 = vld [vmem:[%s19930_s11 + $0x228] sm:$0xff]  ;;  %v13570_v47 = vcombine.high %v13560_v57, %v13562_v32  ;;  %v15824_v2 = vld [vmem:[%s19932_s13 + $0x8b8] sm:$0xff]   ;;  %v13564_v39 = vld [vmem:[%s19930_s11 + $0x2a0] sm:$0xff]  ;;  %v13569_v46 = vcombine.low %v13560_v57, %v13562_v32 }
0x2189   : > { %v7783_v6 = vpack.c.bf16 %v7779_v61, %v7775_v7  ;;  %v13563_v62 = vld [vmem:[%s19930_s11 + $0x268] sm:$0xff]  ;;  %v13566_v8 = vld [vmem:[%s19930_s11 + $0x2e0] sm:$0xff]  ;;  %v18909_v57 = vld [vmem:[%s19930_s11 + $0x278] sm:$0xff] }
0x218a   : > { %v7785_v13 = vpack.c.bf16 %v7781_v9, %v7777_v60  ;;  %v13572_v59 = vcombine.high %v13561_v52, %v13563_v62  ;;  %v13565_v33 = vld [vmem:[%s19930_s11 + $0x2a8] sm:$0xff]  ;;  %v13571_v61 = vcombine.low %v13561_v52, %v13563_v62  ;;  %v15827_v26 = vld [vmem:[%s19932_s13 + $0xa00] sm:$0xff]  }
0x218b   : > { %8074 = vmatprep.mubr.bf16.mxu1 %v7783_v6  ;;  %v13567_v7 = vld [vmem:[%s19930_s11 + $0x2e8] sm:$0xff]  ;;  %v15828_v21 = vld [vmem:[%s19932_s13 + $0xa80] sm:$0xff]  }
0x218c   : > { %8075 = vmatmul.mubr.bf16.vlgmr.msra.gmra.mrb[132].mxu1 %v7782_v14  ;;  %8115 = vmatprep.mubr.bf16.mxu0 %v7785_v13  ;;  %v13574_v14 = vcombine.high %v13564_v39, %v13566_v8  ;;  %v13576_v30 = vcombine.high %v13565_v33, %v13567_v7  ;;  %v13575_v60 = vcombine.low %v13565_v33, %v13567_v7  ;;  %v15831_v9 = vld [vmem:[%s19932_s13 + $0xa08] sm:$0xff]   ;;  %v15834_v13 = vld [vmem:[%s19932_s13 + $0xad0] sm:$0xff]  }
0x218d   : > { %14762 = vmatpush3.bf16.msra.mxu1 %v15795_v28  ;;  %8116 = vmatmul.mubr.bf16.vlgmr.msra.gmra.mrb[136].mxu0 %v7784_v42  ;;  %v13573_v42 = vcombine.low %v13564_v39, %v13566_v8  ;;  %v15832_v6 = vld [vmem:[%s19932_s13 + $0xa88] sm:$0xff]   ;;  %v15833_v28 = vld [vmem:[%s19932_s13 + $0xa50] sm:$0xff]  }
0x218e   : > { %8348 = vmatprep.mubr.bf16.mxu1 %v7518_v51  ;;  %14784 = vmatpush3.bf16.msra.mxu0 %v15796_v5  ;;  %v15808_v51 = vld [vmem:[%s19932_s13 + $0x898] sm:$0xff]   ;;  %v15835_v5 = vld [vmem:[%s19932_s13 + $0xa10] sm:$0xff]  }
0x218f   : > { %8389 = vmatprep.mubr.bf16.mxu0 %v7520_v35  ;;  %14763 = vmatprep.subr.bf16.mxu1 %v15797_v37  ;;  %v15813_v35 = vld [vmem:[%s19932_s13 + $0x868] sm:$0xff]   ;;  %v15836_v37 = vld [vmem:[%s19932_s13 + $0xa90] sm:$0xff]  }
0x2190   : > { %14785 = vmatprep.subr.bf16.mxu0 %v15798_v63  ;;  %v15837_v63 = vld [vmem:[%s19932_s13 + $0xa58] sm:$0xff]  }
0x2191   : > { %14764 = vmatpush3.bf16.msra.mxu1 %v15799_v25  ;;  %v15838_v25 = vld [vmem:[%s19932_s13 + $0xad8] sm:$0xff]  }
0x2192   : > { %14765 = vmatprep.subr.bf16.mxu1 %v15801_v17  ;;  %14786 = vmatpush3.bf16.msra.mxu0 %v15800_v27  ;;  %v15839_v17 = vld [vmem:[%s19932_s13 + $0xa18] sm:$0xff]  }
0x2193   : > { %14787 = vmatprep.subr.bf16.mxu0 %v15802_v15  ;;  %v15840_v27 = vld [vmem:[%s19932_s13 + $0xa98] sm:$0xff]   ;;  %v15841_v15 = vld [vmem:[%s19932_s13 + $0xa60] sm:$0xff]  }
0x2195   : > { %14766 = vmatpush3.bf16.msra.mxu1 %v15803_v29  ;;  %v15842_v29 = vld [vmem:[%s19932_s13 + $0xae0] sm:$0xff]  }
0x2196   : > { %14767 = vmatprep.subr.bf16.mxu1 %v15805_v24  ;;  %14788 = vmatpush3.bf16.msra.mxu0 %v15804_v31  ;;  %v15843_v24 = vld [vmem:[%s19932_s13 + $0xa20] sm:$0xff]  }
0x2197   : > { %14789 = vmatprep.subr.bf16.mxu0 %v15806_v38  ;;  %v15844_v31 = vld [vmem:[%s19932_s13 + $0xaa0] sm:$0xff]   ;;  %v15845_v38 = vld [vmem:[%s19932_s13 + $0xa68] sm:$0xff]  }
0x2199   : > { %14768 = vmatpush3.bf16.msra.mxu1 %v15807_v12  ;;  %v15846_v12 = vld [vmem:[%s19932_s13 + $0xae8] sm:$0xff]  }
0x219a   : > { %14769 = vmatprep.subr.bf16.mxu1 %v15809_v23  ;;  %14790 = vmatpush3.bf16.msra.mxu0 %v15808_v51  ;;  %v15847_v23 = vld [vmem:[%s19932_s13 + $0xa28] sm:$0xff]  }
0x219b   : > { %14791 = vmatprep.subr.bf16.mxu0 %v15810_v40  ;;  %v15848_v51 = vld [vmem:[%s19932_s13 + $0xaa8] sm:$0xff]   ;;  %v15849_v40 = vld [vmem:[%s19932_s13 + $0xa70] sm:$0xff]  }
0x219d   : > { %14770 = vmatpush3.bf16.msra.mxu1 %v15811_v3  ;;  %v15850_v3 = vld [vmem:[%s19932_s13 + $0xaf0] sm:$0xff]  }
0x219e   : > { %14771 = vmatprep.subr.bf16.mxu1 %v15813_v35  ;;  %14792 = vmatpush3.bf16.msra.mxu0 %v15812_v18  ;;  %v15851_v35 = vld [vmem:[%s19932_s13 + $0xa30] sm:$0xff]  }
0x219f   : > { %14793 = vmatprep.subr.bf16.mxu0 %v15814_v36  ;;  %v15852_v18 = vld [vmem:[%s19932_s13 + $0xab0] sm:$0xff]   ;;  %v15853_v36 = vld [vmem:[%s19932_s13 + $0xa78] sm:$0xff]  }
0x21a1   : > { %14772 = vmatpush3.bf16.msra.mxu1 %v15815_v34  ;;  %v15854_v34 = vld [vmem:[%s19932_s13 + $0xaf8] sm:$0xff]  }
0x21a2   : > { %14773 = vmatprep.subr.bf16.mxu1 %v15817_v10  ;;  %14794 = vmatpush3.bf16.msra.mxu0 %v15816_v11  ;;  %v15855_v10 = vld [vmem:[%s19932_s13 + $0xa38] sm:$0xff]  }
0x21a3   : > { %14795 = vmatprep.subr.bf16.mxu0 %v15818_v19  ;;  %v15856_v11 = vld [vmem:[%s19932_s13 + $0xab8] sm:$0xff]   ;;  %v18892_v19 = vld [vmem:[%s19930_s11 + $0x230] sm:$0xff] }
0x21a5   : > { %14774 = vmatpush3.bf16.msra.mxu1 %v15819_v43  ;;  %v18897_v43 = vld [vmem:[%s19930_s11 + $0x270] sm:$0xff] }
0x21a6   : > { %14775 = vmatprep.subr.bf16.mxu1 %v15821_v44  ;;  %14796 = vmatpush3.bf16.msra.mxu0 %v15820_v45  ;;  %v18902_v44 = vld [vmem:[%s19930_s11 + $0x238] sm:$0xff]  ;;  %v13685_v45 = vcombine.high %v18892_v19, %v18897_v43  ;;  %v13684_v32 = vcombine.low %v18892_v19, %v18897_v43  ;;  %v15857_v19 = vld [vmem:[%s19932_s13 + $0xb40] sm:$0xff]  }
0x21a7   : > { %14797 = vmatprep.subr.bf16.mxu0 %v15822_v50  ;;  %v13686_v50 = vcombine.low %v18902_v44, %v18909_v57  ;;  %v15858_v43 = vld [vmem:[%s19932_s13 + $0xbc0] sm:$0xff]  }
0x21a9   : > { %14776 = vmatpush3.bf16.msra.mxu1 %v15823_v1  ;;  %v13687_v1 = vcombine.high %v18902_v44, %v18909_v57  ;;  %v15859_v44 = vld [vmem:[%s19932_s13 + $0xb00] sm:$0xff]  }
0x21aa   : > { %8468 = vmatprep.subr.bf16.mxu1 %v13570_v47  ;;  %14798 = vmatpush3.bf16.msra.mxu0 %v15824_v2  ;;  %v15860_v57 = vld [vmem:[%s19932_s13 + $0xb80] sm:$0xff]  }
0x21ab   : > { %8511 = vmatprep.subr.bf16.mxu0 %v13572_v59 }
0x21ac   : > { %8349 = vmatmul.mubr.bf16.vlgmr.msra.gmra.mrb[136].mxu1 %v7517_v48  ;;  %v15829_v48 = vld [vmem:[%s19932_s13 + $0xa48] sm:$0xff]  }
0x21ad   : > { %8469 = vmatpush1.bf16.msra.mxu1 %v13569_v46  ;;  %8500 = vmatprep.mubr.bf16.mxu1 %v16518_v49 }
0x21ae   : > { %8390 = vmatmul.mubr.bf16.vlgmr.msra.gmra.mrb[140].mxu0 %v7519_v22  ;;  %8470 = vmatprep.subr.bf16.mxu1 %v13574_v14  ;;  %v15830_v22 = vld [vmem:[%s19932_s13 + $0xac8] sm:$0xff]  }
0x21af   : > { %8512 = vmatpush1.bf16.msra.mxu0 %v13571_v61  ;;  %8543 = vmatprep.mubr.bf16.mxu0 %v16518_v49 }
0x21b0   : > { %8513 = vmatprep.subr.bf16.mxu0 %v13576_v30 }
0x21b1   : > { %8471 = vmatpush1.bf16.msra.mxu1 %v13573_v42 }
0x21b2   : > { %14805 = vmatprep.subr.bf16.mxu1 %v15825_v20 }
0x21b3   : > { %8514 = vmatpush1.bf16.msra.mxu0 %v13575_v60 }
0x21b4   : > { %13577 = vmatmul.mubr.msk.bf16.vlgmr.msra.gmra.mrb[140].mxu1 %vm744_vm4, %v18483_v41  ;;  %14827 = vmatprep.subr.bf16.mxu0 %v15826_v16 }
0x21b5   : > { %14806 = vmatpush3.bf16.msra.mxu1 %v15827_v26 }
0x21b6   : > { %13578 = vmatmul.mubr.msk.bf16.vlgmr.msra.gmra.mrb[144].mxu0 %vm744_vm4, %v18483_v41  ;;  %14807 = vmatprep.subr.bf16.mxu1 %v15829_v48  ;;  %v13568_v48 = vld [vmem:[%s19931_s12 + $0x28] sm:$0xf] }
0x21b7   : > { %14828 = vmatpush3.bf16.msra.mxu0 %v15828_v21 }
0x21b8   : > { %14829 = vmatprep.subr.bf16.mxu0 %v15830_v22 }
0x21b9   : > { %14808 = vmatpush3.bf16.msra.mxu1 %v15831_v9 }
0x21ba   : > { %14809 = vmatprep.subr.bf16.mxu1 %v15833_v28 }
0x21bb   : > { %14830 = vmatpush3.bf16.msra.mxu0 %v15832_v6 }
0x21bc   : > { %14831 = vmatprep.subr.bf16.mxu0 %v15834_v13 }
0x21bd   : > { %14810 = vmatpush3.bf16.msra.mxu1 %v15835_v5 }
0x21be   : > { %14811 = vmatprep.subr.bf16.mxu1 %v15837_v63  ;;  %v8411_v63 = vrot.slane %v13568_v48, %v17010_v53 }
0x21bf   : > { %14832 = vmatpush3.bf16.msra.mxu0 %v15836_v37 }
0x21c0   : > { %14833 = vmatprep.subr.bf16.mxu0 %v15838_v25 }
0x21c1   : > { %14812 = vmatpush3.bf16.msra.mxu1 %v15839_v17 }
0x21c2   : > { %14813 = vmatprep.subr.bf16.mxu1 %v15841_v15  ;;  %v8415_v15 = vrot.slane %v13568_v48, %v17016_v55 }
0x21c3   : > { %14834 = vmatpush3.bf16.msra.mxu0 %v15840_v27 }
0x21c4   : > { %14835 = vmatprep.subr.bf16.mxu0 %v15842_v29  ;;  %v8419_v29 = vrot.slane %v13568_v48, %v17013_v54 }
0x21c5   : > { %14814 = vmatpush3.bf16.msra.mxu1 %v15843_v24 }
0x21c6   : > { %14815 = vmatprep.subr.bf16.mxu1 %v15845_v38  ;;  %v8423_v38 = vrot.slane %v13568_v48, %v17019_v56 }
0x21c7   : > { %14836 = vmatpush3.bf16.msra.mxu0 %v15844_v31 }
0x21c8   : > { %14837 = vmatprep.subr.bf16.mxu0 %v15846_v12 }
0x21c9   : > { %14816 = vmatpush3.bf16.msra.mxu1 %v15847_v23 }
0x21ca   : > { %14817 = vmatprep.subr.bf16.mxu1 %v15849_v40 }
0x21cb   : > { %14838 = vmatpush3.bf16.msra.mxu0 %v15848_v51 }
0x21cc   : > { %14839 = vmatprep.subr.bf16.mxu0 %v15850_v3 }
0x21cd   : > { %14818 = vmatpush3.bf16.msra.mxu1 %v15851_v35 }
0x21ce   : > { %14819 = vmatprep.subr.bf16.mxu1 %v15853_v36 }
0x21cf   : > { %14840 = vmatpush3.bf16.msra.mxu0 %v15852_v18 }
0x21d0   : > { %14841 = vmatprep.subr.bf16.mxu0 %v15854_v34 }
0x21d1   : > { %14820 = vmatpush3.bf16.msra.mxu1 %v15855_v10 }
0x21d2   : > { %9008 = vmatprep.subr.bf16.mxu1 %v13685_v45 }
0x21d3   : > { %14842 = vmatpush3.bf16.msra.mxu0 %v15856_v11 }
0x21d4   : > { %9051 = vmatprep.subr.bf16.mxu0 %v13687_v1 }
0x225f   : > { %v14733_v52 = vpop.f32.mrb[132].mxu1 }
0x2260   : > { %v14734_v62 = vpop.f32.mrb[133].mxu1  ;;  %v14755_v47 = vpop.f32.mrb[136].mxu0 }
0x2261   : > { %v14735_v2 = vadd.f32 %v14734_v62, %v14733_v52  ;;  %v14736_v39 = vpop.f32.mrb[134].mxu1  ;;  %v14756_v8 = vpop.f32.mrb[137].mxu0 }
0x2262   : > { %v14737_v59 = vpop.f32.mrb[135].mxu1  ;;  %v14757_v46 = vadd.f32 %v14756_v8, %v14755_v47  ;;  %v14758_v33 = vpop.f32.mrb[138].mxu0 }
0x2263   : > { %v14738_v7 = vadd.f32 %v14737_v59, %v14736_v39  ;;  %v14759_v14 = vpop.f32.mrb[139].mxu0 }
0x2264   : > { %v8118_v61 = vadd.f32 %v14757_v46, %v14735_v2  ;;  %v14760_v30 = vadd.f32 %v14759_v14, %v14758_v33 }
0x2266   : > { %v8121_v42 = vadd.f32 %v14760_v30, %v14738_v7 }
0x227f   : > { %v14777_v60 = vpop.f32.mrb[136].mxu1 }
0x2280   : > { %v14778_v20 = vpop.f32.mrb[137].mxu1 }
0x2281   : > { %v14799_v16 = vpop.f32.mrb[140].mxu0  ;;  %v14779_v26 = vadd.f32 %v14778_v20, %v14777_v60  ;;  %v14780_v21 = vpop.f32.mrb[138].mxu1 }
0x2282   : > { %v14800_v22 = vpop.f32.mrb[141].mxu0  ;;  %v14781_v9 = vpop.f32.mrb[139].mxu1 }
0x2283   : > { %v8351_v6 = vadd.f32 %v14779_v26, %v8118_v61  ;;  %v14801_v28 = vadd.f32 %v14800_v22, %v14799_v16  ;;  %v14802_v13 = vpop.f32.mrb[142].mxu0  ;;  %v14782_v5 = vadd.f32 %v14781_v9, %v14780_v21 }
0x2284   : > { %v14803_v37 = vpop.f32.mrb[143].mxu0 }
0x2285   : > { %v18921_v25 = vadd.f32 %v14801_v28, %v8351_v6  ;;  %v8354_v17 = vadd.f32 %v14782_v5, %v8121_v42  ;;  %v14804_v27 = vadd.f32 %v14803_v37, %v14802_v13 }
0x2287   : > { %v18925_v24 = vadd.f32 %v14804_v27, %v8354_v17  ;;  %v8502_v31 = vpop.f32.mrb[140].mxu1 }
0x2288   : > { %v8503_v12 = vadd.f32 %v8502_v31, %v8411_v63  ;;  %v8504_v23 = vpop.f32.mrb[141].mxu1 }
0x2289   : > { %v8545_v51 = vpop.f32.mrb[144].mxu0  ;;  %v8505_v40 = vadd.f32 %v8504_v23, %v8415_v15  ;;  %v8506_v3 = vpop.f32.mrb[142].mxu1 }
0x228a   : > { %v8562_v35 = vmul.f32 0.70710677, %v8503_v12  ;;  %v8546_v18 = vadd.f32 %v8545_v51, %v8419_v29  ;;  %v8547_v36 = vpop.f32.mrb[145].mxu0  ;;  %v8507_v34 = vadd.f32 %v8506_v3, %v8411_v63  ;;  %v8508_v10 = vpop.f32.mrb[143].mxu1  ;;  %v8554_v16 = vmul.f32 0.5, %v8503_v12  ;;  %v13679_v3 = vld [vmem:[%s19930_s11 + $0x2b0] sm:$0xff] }
0x228b   : > { %v8563_v11 = vmul.f32 0.70710677, %v8505_v40  ;;  %v8548_v45 = vadd.f32 %v8547_v36, %v8423_v38  ;;  %v8549_v1 = vpop.f32.mrb[146].mxu0  ;;  %v8509_v52 = vadd.f32 %v8508_v10, %v8415_v15  ;;  %v8555_v26 = vmul.f32 0.5, %v8505_v40 }
0x228c   : > { %16297 = verf.f32 %v8562_v35  ;;  %v8564_v62 = vmul.f32 0.70710677, %v8546_v18  ;;  %v8551_v47 = vpop.f32.mrb[147].mxu0  ;;  %v8566_v39 = vmul.f32 0.70710677, %v8507_v34  ;;  %v8550_v8 = vadd.f32 %v8549_v1, %v8419_v29  ;;  %v13681_v35 = vld [vmem:[%s19930_s11 + $0x2f0] sm:$0xff] }
0x228d   : > { %16299 = verf.f32 %v8563_v11  ;;  %v8565_v2 = vmul.f32 0.70710677, %v8548_v45  ;;  %v8567_v59 = vmul.f32 0.70710677, %v8509_v52  ;;  %v8552_v46 = vadd.f32 %v8551_v47, %v8423_v38  ;;  %v13680_v1 = vld [vmem:[%s19930_s11 + $0x2b8] sm:$0xff] }
0x228e   : > { %16301 = verf.f32 %v8564_v62  ;;  %v8568_v33 = vmul.f32 0.70710677, %v8550_v8  ;;  %v8556_v22 = vmul.f32 0.5, %v8546_v18  ;;  %v8558_v6 = vmul.f32 0.5, %v8507_v34 }
0x228f   : > { %16303 = verf.f32 %v8565_v2  ;;  %v8569_v7 = vmul.f32 0.70710677, %v8552_v46  ;;  %v8557_v5 = vmul.f32 0.5, %v8548_v45  ;;  %v8559_v63 = vmul.f32 0.5, %v8509_v52  ;;  %v13682_v52 = vld [vmem:[%s19930_s11 + $0x2f8] sm:$0xff] }
0x2290   : > { %16305 = verf.f32 %v8566_v39  ;;  %v8560_v31 = vmul.f32 0.5, %v8550_v8  ;;  %v8561_v12 = vmul.f32 0.5, %v8552_v46  ;;  %v13689_v47 = vcombine.high %v13679_v3, %v13681_v35  ;;  %v15864_v46 = vld [vmem:[%s19932_s13 + $0xb88] sm:$0xff]  }
0x2291   : > { %16307 = verf.f32 %v8567_v59  ;;  %v13691_v39 = vcombine.high %v13680_v1, %v13682_v52  ;;  %v13688_v8 = vcombine.low %v13679_v3, %v13681_v35  ;;  %v13690_v59 = vcombine.low %v13680_v1, %v13682_v52 }
0x2292   : > { %16309 = verf.f32 %v8568_v33  ;;  %v15865_v33 = vld [vmem:[%s19932_s13 + $0xb50] sm:$0xff]  }
0x2293   : > { %16311 = verf.f32 %v8569_v7  ;;  %v15866_v7 = vld [vmem:[%s19932_s13 + $0xbd0] sm:$0xff]  }
0x2296   : > { %v16298_v14 = vpop.eup %16297 }
0x2297   : > { %v16300_v61 = vpop.eup %16299  ;;  %v8578_v60 = vadd.f32 1.0, %v16298_v14  ;;  %v15867_v14 = vld [vmem:[%s19932_s13 + $0xb10] sm:$0xff]  }
0x2298   : > { %v16302_v30 = vpop.eup %16301  ;;  %v8579_v21 = vadd.f32 1.0, %v16300_v61  ;;  %v15868_v61 = vld [vmem:[%s19932_s13 + $0xb90] sm:$0xff]  }
0x2299   : > { %v16304_v42 = vpop.eup %16303  ;;  %v8580_v9 = vadd.f32 1.0, %v16302_v30  ;;  %v8586_v15 = vmul.f32 %v8578_v60, %v8554_v16  ;;  %v15869_v30 = vld [vmem:[%s19932_s13 + $0xb58] sm:$0xff]   ;;  %v15873_v16 = vld [vmem:[%s19932_s13 + $0xb60] sm:$0xff]  }
0x229a   : > { %v16306_v20 = vpop.eup %16305  ;;  %v8581_v37 = vadd.f32 1.0, %v16304_v42  ;;  %v8587_v23 = vmul.f32 %v8579_v21, %v8555_v26  ;;  %v15870_v42 = vld [vmem:[%s19932_s13 + $0xbd8] sm:$0xff]   ;;  %v15874_v26 = vld [vmem:[%s19932_s13 + $0xbe0] sm:$0xff]  }
0x229b   : > { %v16308_v48 = vpop.eup %16307  ;;  %v8582_v28 = vadd.f32 1.0, %v16306_v20  ;;  %v8588_v18 = vmul.f32 %v8580_v9, %v8556_v22  ;;  %v15871_v60 = vld [vmem:[%s19932_s13 + $0xb18] sm:$0xff]   ;;  %v15875_v21 = vld [vmem:[%s19932_s13 + $0xb20] sm:$0xff]   ;;  %v15877_v22 = vld [vmem:[%s19932_s13 + $0xb68] sm:$0xff]  }
0x229c   : > { %v16310_v13 = vpop.eup %16309  ;;  %v8583_v17 = vadd.f32 1.0, %v16308_v48  ;;  %v8589_v10 = vmul.f32 %v8581_v37, %v8557_v5  ;;  %v15872_v20 = vld [vmem:[%s19932_s13 + $0xb98] sm:$0xff]   ;;  %v15876_v48 = vld [vmem:[%s19932_s13 + $0xba0] sm:$0xff]   ;;  %v15878_v9 = vld [vmem:[%s19932_s13 + $0xbe8] sm:$0xff]  }
0x229d   : > { %v16312_v27 = vpop.eup %16311  ;;  %v8590_v29 = vmul.f32 %v8582_v28, %v8558_v6  ;;  %v8584_v38 = vadd.f32 1.0, %v16310_v13  ;;  %v15879_v6 = vld [vmem:[%s19932_s13 + $0xb28] sm:$0xff]   ;;  %v15881_v13 = vld [vmem:[%s19932_s13 + $0xb70] sm:$0xff]  }
0x229e   : > { %v8591_v51 = vmul.f32 %v8583_v17, %v8559_v63  ;;  %v8585_v40 = vadd.f32 1.0, %v16312_v27  ;;  %v15880_v28 = vld [vmem:[%s19932_s13 + $0xba8] sm:$0xff]   ;;  %v15882_v5 = vld [vmem:[%s19932_s13 + $0xbf0] sm:$0xff]   ;;  %v15885_v17 = vld [vmem:[%s19932_s13 + $0xb78] sm:$0xff]  }
0x229f   : > { %v8594_v36 = vpack.c.bf16 %v8590_v29, %v8586_v15  ;;  %v8592_v34 = vmul.f32 %v8584_v38, %v8560_v31  ;;  %v15883_v37 = vld [vmem:[%s19932_s13 + $0xb30] sm:$0xff]   ;;  %v15886_v27 = vld [vmem:[%s19932_s13 + $0xbf8] sm:$0xff]  }
0x22a0   : > { %v8593_v11 = vmul.f32 %v8585_v40, %v8561_v12  ;;  %v8595_v45 = vpack.c.bf16 %v8591_v51, %v8587_v23  ;;  %v15884_v63 = vld [vmem:[%s19932_s13 + $0xbb0] sm:$0xff]   ;;  %v15887_v15 = vld [vmem:[%s19932_s13 + $0xb38] sm:$0xff]   ;;  %v13683_v40 = vld [vmem:[%s19931_s12 + $0x2c] sm:$0xf] }
0x22a1   : > { %v8596_v62 = vpack.c.bf16 %v8592_v34, %v8588_v18  ;;  %v15888_v29 = vld [vmem:[%s19932_s13 + $0xbb8] sm:$0xff]   ;;  %v8955_v52 = vrot.slane %v13683_v40, %v17016_v55 }
0x22a2   : > { %8886 = vmatprep.mubr.bf16.mxu1 %v8595_v45  ;;  %v8597_v2 = vpack.c.bf16 %v8593_v11, %v8589_v10  ;;  %v8951_v11 = vrot.slane %v13683_v40, %v17010_v53 }
0x22a3   : > { %8887 = vmatmul.mubr.bf16.vlgmr.msra.gmra.mrb[144].mxu1 %v8594_v36 }
0x22a4   : > { %8927 = vmatprep.mubr.bf16.mxu0 %v8597_v2  ;;  %9009 = vmatpush1.bf16.msra.mxu1 %v13684_v32  ;;  %v15862_v32 = vld [vmem:[%s19932_s13 + $0xbc8] sm:$0xff]  }
0x22a5   : > { %8928 = vmatmul.mubr.bf16.vlgmr.msra.gmra.mrb[148].mxu0 %v8596_v62  ;;  %9010 = vmatprep.subr.bf16.mxu1 %v13689_v47  ;;  %v8959_v62 = vrot.slane %v13683_v40, %v17013_v54 }
0x22a6   : > { %9052 = vmatpush1.bf16.msra.mxu0 %v13686_v50  ;;  %9040 = vmatprep.mubr.bf16.mxu1 %v16518_v49  ;;  %v15863_v50 = vld [vmem:[%s19932_s13 + $0xb08] sm:$0xff]  }
0x22a7   : > { %9053 = vmatprep.subr.bf16.mxu0 %v13691_v39  ;;  %9083 = vmatprep.mubr.bf16.mxu0 %v16518_v49 }
0x22a8   : > { %9011 = vmatpush1.bf16.msra.mxu1 %v13688_v8  ;;  %v8963_v8 = vrot.slane %v13683_v40, %v17019_v56 }
0x22a9   : > { %14849 = vmatprep.subr.bf16.mxu1 %v15857_v19 }
0x22aa   : > { %9054 = vmatpush1.bf16.msra.mxu0 %v13690_v59 }
0x22ab   : > { %13692 = vmatmul.mubr.msk.bf16.vlgmr.msra.gmra.mrb[148].mxu1 %vm744_vm4, %v18483_v41  ;;  %14871 = vmatprep.subr.bf16.mxu0 %v15858_v43 }
0x22ac   : > { %14850 = vmatpush3.bf16.msra.mxu1 %v15859_v44 }
0x22ad   : > { %13693 = vmatmul.mubr.msk.bf16.vlgmr.msra.gmra.mrb[152].mxu0 %vm744_vm4, %v18483_v41  ;;  %v15861_v41 = vld [vmem:[%s19932_s13 + $0xb48] sm:$0xff]  }
0x22ae   : > { %14872 = vmatpush3.bf16.msra.mxu0 %v15860_v57  ;;  %14851 = vmatprep.subr.bf16.mxu1 %v15861_v41 }
0x22af   : > { %14873 = vmatprep.subr.bf16.mxu0 %v15862_v32 }
0x22b0   : > { %14852 = vmatpush3.bf16.msra.mxu1 %v15863_v50 }
0x22b1   : > { %14853 = vmatprep.subr.bf16.mxu1 %v15865_v33 }
0x22b2   : > { %14874 = vmatpush3.bf16.msra.mxu0 %v15864_v46 }
0x22b3   : > { %14875 = vmatprep.subr.bf16.mxu0 %v15866_v7 }
0x22b4   : > { %14854 = vmatpush3.bf16.msra.mxu1 %v15867_v14 }
0x22b5   : > { %14855 = vmatprep.subr.bf16.mxu1 %v15869_v30 }
0x22b6   : > { %14876 = vmatpush3.bf16.msra.mxu0 %v15868_v61 }
0x22b7   : > { %14877 = vmatprep.subr.bf16.mxu0 %v15870_v42 }
0x22b8   : > { %14856 = vmatpush3.bf16.msra.mxu1 %v15871_v60 }
0x22b9   : > { %14857 = vmatprep.subr.bf16.mxu1 %v15873_v16 }
0x22ba   : > { %14878 = vmatpush3.bf16.msra.mxu0 %v15872_v20 }
0x22bb   : > { %14879 = vmatprep.subr.bf16.mxu0 %v15874_v26 }
0x22bc   : > { %14858 = vmatpush3.bf16.msra.mxu1 %v15875_v21 }
0x22bd   : > { %14859 = vmatprep.subr.bf16.mxu1 %v15877_v22 }
0x22be   : > { %14880 = vmatpush3.bf16.msra.mxu0 %v15876_v48 }
0x22bf   : > { %14881 = vmatprep.subr.bf16.mxu0 %v15878_v9 }
0x22c0   : > { %14860 = vmatpush3.bf16.msra.mxu1 %v15879_v6 }
0x22c1   : > { %14861 = vmatprep.subr.bf16.mxu1 %v15881_v13 }
0x22c2   : > { %14882 = vmatpush3.bf16.msra.mxu0 %v15880_v28 }
0x22c3   : > { %14883 = vmatprep.subr.bf16.mxu0 %v15882_v5 }
0x22c4   : > { %14862 = vmatpush3.bf16.msra.mxu1 %v15883_v37 }
0x22c5   : > { %14863 = vmatprep.subr.bf16.mxu1 %v15885_v17 }
0x22c6   : > { %14884 = vmatpush3.bf16.msra.mxu0 %v15884_v63 }
0x22c7   : > { %14885 = vmatprep.subr.bf16.mxu0 %v15886_v27 }
0x22c8   : > { %14864 = vmatpush3.bf16.msra.mxu1 %v15887_v15 }
0x22c9   : > { %15294 = vmatprep.subr.bf16.mxu1 %v16502_v0 }
0x22ca   : > { %14886 = vmatpush3.bf16.msra.mxu0 %v15888_v29 }
0x22cb   : > { %15302 = vmatprep.subr.bf16.mxu0 %v16502_v0 }
0x2376   : > { %v14821_v31 = vpop.f32.mrb[144].mxu1 }
0x2377   : > { %v14822_v38 = vpop.f32.mrb[145].mxu1 }
0x2378   : > { %v14843_v23 = vpop.f32.mrb[148].mxu0  ;;  %v14823_v51 = vadd.f32 %v14822_v38, %v14821_v31  ;;  %v14824_v12 = vpop.f32.mrb[146].mxu1 }
0x2379   : > { %v14844_v3 = vpop.f32.mrb[149].mxu0  ;;  %v14825_v35 = vpop.f32.mrb[147].mxu1 }
0x237a   : > { %v14845_v18 = vadd.f32 %v14844_v3, %v14843_v23  ;;  %v14846_v36 = vpop.f32.mrb[150].mxu0  ;;  %v14826_v34 = vadd.f32 %v14825_v35, %v14824_v12 }
0x237b   : > { %v14847_v10 = vpop.f32.mrb[151].mxu0 }
0x237c   : > { %v8930_v45 = vadd.f32 %v14845_v18, %v14823_v51  ;;  %v14848_v1 = vadd.f32 %v14847_v10, %v14846_v36 }
0x237e   : > { %v19057_v47 = vadd.f32 %v8930_v45, %v18921_v25  ;;  %v8933_v2 = vadd.f32 %v14848_v1, %v14826_v34  ;;  %v9042_v39 = vpop.f32.mrb[148].mxu1 }
0x237f   : > { %v9043_v59 = vadd.f32 %v9042_v39, %v8951_v11  ;;  %v9044_v19 = vpop.f32.mrb[149].mxu1 }
0x2380   : > { %v19061_v43 = vadd.f32 %v8933_v2, %v18925_v24  ;;  %v9085_v44 = vpop.f32.mrb[152].mxu0  ;;  %v9045_v57 = vadd.f32 %v9044_v19, %v8955_v52  ;;  %v9046_v41 = vpop.f32.mrb[150].mxu1 }
0x2381   : > { %v9102_v32 = vmul.f32 0.70710677, %v9043_v59  ;;  %v9086_v50 = vadd.f32 %v9085_v44, %v8959_v62  ;;  %v9087_v46 = vpop.f32.mrb[153].mxu0  ;;  %v9047_v33 = vadd.f32 %v9046_v41, %v8951_v11  ;;  %v9048_v7 = vpop.f32.mrb[151].mxu1  ;;  %v9094_v63 = vmul.f32 0.5, %v9043_v59 }
0x2382   : > { %v9103_v14 = vmul.f32 0.70710677, %v9045_v57  ;;  %v9088_v25 = vadd.f32 %v9087_v46, %v8963_v8  ;;  %v9089_v61 = vpop.f32.mrb[154].mxu0  ;;  %v9049_v30 = vadd.f32 %v9048_v7, %v8955_v52  ;;  %v9095_v17 = vmul.f32 0.5, %v9045_v57 }
0x2383   : > { %16313 = verf.f32 %v9102_v32  ;;  %v9104_v42 = vmul.f32 0.70710677, %v9086_v50  ;;  %v9091_v60 = vpop.f32.mrb[155].mxu0  ;;  %v9106_v16 = vmul.f32 0.70710677, %v9047_v33  ;;  %v9090_v24 = vadd.f32 %v9089_v61, %v8959_v62 }
0x2384   : > { %16315 = verf.f32 %v9103_v14  ;;  %v9105_v20 = vmul.f32 0.70710677, %v9088_v25  ;;  %v9107_v26 = vmul.f32 0.70710677, %v9049_v30  ;;  %v9092_v21 = vadd.f32 %v9091_v60, %v8963_v8 }
0x2385   : > { %16317 = verf.f32 %v9104_v42  ;;  %v9108_v48 = vmul.f32 0.70710677, %v9090_v24  ;;  %v9096_v29 = vmul.f32 0.5, %v9086_v50  ;;  %v9098_v38 = vmul.f32 0.5, %v9047_v33 }
0x2386   : > { %16319 = verf.f32 %v9105_v20  ;;  %v9109_v22 = vmul.f32 0.70710677, %v9092_v21  ;;  %v9097_v12 = vmul.f32 0.5, %v9088_v25  ;;  %v9099_v3 = vmul.f32 0.5, %v9049_v30 }
0x2387   : > { %16321 = verf.f32 %v9106_v16  ;;  %v9100_v10 = vmul.f32 0.5, %v9090_v24  ;;  %v9101_v52 = vmul.f32 0.5, %v9092_v21  ;;  %v13791_v24 = vld [vmem:[%s19933_s14 + $0x2] ss:$0 sm:$0xff] }
0x2388   : > { %16323 = verf.f32 %v9107_v26 }
0x2389   : > { %16325 = verf.f32 %v9108_v48 }
0x238a   : > { %16327 = verf.f32 %v9109_v22 }
0x238d   : > { %v16314_v9 = vpop.eup %16313 }
0x238e   : > { %v16316_v6 = vpop.eup %16315  ;;  %v9118_v5 = vadd.f32 1.0, %v16314_v9 }
0x238f   : > { %v16318_v28 = vpop.eup %16317  ;;  %v9119_v27 = vadd.f32 1.0, %v16316_v6 }
0x2390   : > { %v16320_v13 = vpop.eup %16319  ;;  %v9120_v31 = vadd.f32 1.0, %v16318_v28  ;;  %v9126_v36 = vmul.f32 %v9118_v5, %v9094_v63 }
0x2391   : > { %v16322_v37 = vpop.eup %16321  ;;  %v9121_v40 = vadd.f32 1.0, %v16320_v13  ;;  %v9127_v45 = vmul.f32 %v9119_v27, %v9095_v17 }
0x2392   : > { %v16324_v15 = vpop.eup %16323  ;;  %v9122_v23 = vadd.f32 1.0, %v16322_v37  ;;  %v9128_v2 = vmul.f32 %v9120_v31, %v9096_v29 }
0x2393   : > { %v16326_v51 = vpop.eup %16325  ;;  %v9123_v35 = vadd.f32 1.0, %v16324_v15  ;;  %v9129_v59 = vmul.f32 %v9121_v40, %v9097_v12 }
0x2394   : > { %v16328_v18 = vpop.eup %16327  ;;  %v9130_v34 = vmul.f32 %v9122_v23, %v9098_v38  ;;  %v9124_v11 = vadd.f32 1.0, %v16326_v51  ;;  %v15890_v38 = vld [vmem:[%s19924_s5 + $0x38] sm:$0xff]  }
0x2395   : > { %v9131_v1 = vmul.f32 %v9123_v35, %v9099_v3  ;;  %v9125_v62 = vadd.f32 1.0, %v16328_v18 }
0x2396   : > { %v9134_v39 = vpack.c.bf16 %v9130_v34, %v9126_v36  ;;  %v9132_v8 = vmul.f32 %v9124_v11, %v9100_v10  ;;  %v13794_v36 = vld [vmem:[%s19934_s15 + $0x2] ss:$0 sm:$0xff] }
0x2397   : > { %v9133_v19 = vmul.f32 %v9125_v62, %v9101_v52  ;;  %v9135_v44 = vpack.c.bf16 %v9131_v1, %v9127_v45  ;;  %v13795_v1 = vld [vmem:[%s19935_s16 + $0x2] ss:$0 sm:$0xff] }
0x2398   : > { %v9136_v57 = vpack.c.bf16 %v9132_v8, %v9128_v2  ;;  %v13801_v8 = vld [vmem:[%s19925_s6 + $0x3] ss:$0 sm:$0xff] }
0x2399   : > { %9426 = vmatprep.mubr.bf16.mxu1 %v9135_v44  ;;  %v9137_v41 = vpack.c.bf16 %v9133_v19, %v9129_v59 }
0x239a   : > { %9427 = vmatmul.mubr.bf16.vlgmr.msra.gmra.mrb[152].mxu1 %v9134_v39 }
0x239b   : > { %9467 = vmatprep.mubr.bf16.mxu0 %v9137_v41  ;;  %15298 = vmatprep.mubr.msk.bf16.mxu1 %vm16503_vm1, %v16502_v0 }
0x239c   : > { %9468 = vmatmul.mubr.bf16.vlgmr.msra.gmra.mrb[156].mxu0 %v9136_v57 }
0x239d   : > { %15304 = vmatprep.mubr.msk.bf16.mxu0 %vm16503_vm1, %v16502_v0 }
0x246d   : > { %v14865_v32 = vpop.f32.mrb[152].mxu1 }
0x246e   : > { %v14866_v50 = vpop.f32.mrb[153].mxu1 }
0x246f   : > { %v14887_v46 = vpop.f32.mrb[156].mxu0  ;;  %v14867_v33 = vadd.f32 %v14866_v50, %v14865_v32  ;;  %v14868_v7 = vpop.f32.mrb[154].mxu1 }
0x2470   : > { %v14888_v14 = vpop.f32.mrb[157].mxu0  ;;  %v14869_v25 = vpop.f32.mrb[155].mxu1 }
0x2471   : > { %v14889_v61 = vadd.f32 %v14888_v14, %v14887_v46  ;;  %v14890_v30 = vpop.f32.mrb[158].mxu0  ;;  %v14870_v42 = vadd.f32 %v14869_v25, %v14868_v7 }
0x2472   : > { %v14891_v60 = vpop.f32.mrb[159].mxu0 }
0x2473   : > { %v9470_v20 = vadd.f32 %v14889_v61, %v14867_v33  ;;  %v14892_v16 = vadd.f32 %v14891_v60, %v14890_v30 }
0x2475   : > { %v9476_v26 = vadd.f32 %v9470_v20, %v19057_v47  ;;  %v9473_v21 = vadd.f32 %v14892_v16, %v14870_v42 }
0x2477   : > { %v9477_v48 = vadd.f32 %v9473_v21, %v19061_v43  ;;  %v9486_v22 = vadd.f32 %v13791_v24, %v9476_v26 }
0x2479   : > { %v9488_v9 = vadd.f32 %v9486_v22, %v18477_v4  ;;  %v9487_v6 = vadd.f32 %v13791_v24, %v9477_v48  ;;  %v16437_v22 = vld [vmem:[%s16759_s27] ss:$0 sm:$0xff]  ;;  %s20030_s27 = smov 40  }
0x247b   : > { %v9494_v28 = vsel %vm744_vm4, %v9488_v9, 0.0  ;;  %v9489_v13 = vadd.f32 %v9487_v6, %v18479_v58  ;;  %v15889_v58 = vld [vmem:[%s19924_s5 + $0x30] sm:$0xff]  }
0x247c   : > { %9495 = vadd.xlane.f32.xlu1 %v9494_v28  ;;  %15295 = vmatpush3.bf16.msra.mxu1 %v15889_v58 }
0x247d   : > { %v9497_v5 = vsel %vm744_vm4, %v9489_v13, 0.0  ;;  %15296 = vmatprep.subr.bf16.mxu1 %v16502_v0 }
0x247e   : > { %9498 = vadd.xlane.f32.xlu0 %v9497_v5 }
0x2480   : > { %15297 = vmatpush3.bf16.msra.mxu1 %v15890_v38 }
0x2481   : > { %15308 = vmatprep.subr.bf16.mxu1 %v16502_v0 }
0x2509   : > { %v9496_v37 = vpop.xlane.xlu1 %9495 }
0x250a   : > { %v9500_v63 = vmul.f32 0.03125, %v9496_v37 }
0x250b   : > { %v9499_v17 = vpop.xlane.xlu0 %9498 }
0x250c   : > { %v9502_v27 = vsub.f32 %v9488_v9, %v9500_v63  ;;  %v9501_v47 = vmul.f32 0.03125, %v9499_v17 }
0x250e   : > { %v9503_v15 = vsub.f32 %v9489_v13, %v9501_v47  ;;  %v9504_v29 = vmul.f32 %v9502_v27, %v9502_v27 }
0x2510   : > { %v9506_v43 = vsel %vm744_vm4, %v9504_v29, 0.0  ;;  %v9505_v31 = vmul.f32 %v9503_v15, %v9503_v15 }
0x2511   : > { %9507 = vadd.xlane.f32.xlu1 %v9506_v43 }
0x2512   : > { %v9509_v4 = vsel %vm744_vm4, %v9505_v31, 0.0 }
0x2513   : > { %9510 = vadd.xlane.f32.xlu0 %v9509_v4 }
0x259e   : > { %v9508_v23 = vpop.xlane.xlu1 %9507 }
0x259f   : > { %v9512_v51 = vmul.f32 0.03125, %v9508_v23 }
0x25a0   : > { %v9511_v12 = vpop.xlane.xlu0 %9510 }
0x25a1   : > { %v9514_v40 = vadd.f32 1e-05, %v9512_v51  ;;  %v9513_v3 = vmul.f32 0.03125, %v9511_v12 }
0x25a3   : > { %16329 = vrsqrt.f32 %v9514_v40  ;;  %v9515_v35 = vadd.f32 1e-05, %v9513_v3 }
0x25a5   : > { %16331 = vrsqrt.f32 %v9515_v35 }
0x25ad   : > { %v16330_v18 = vpop.eup %16329 }
0x25ae   : > { %v9518_v34 = vmul.f32 %v16330_v18, %v9502_v27 }
0x25af   : > { %v16332_v10 = vpop.eup %16331 }
0x25b0   : > { %v9526_v11 = vmul.f32 %v13794_v36, %v9518_v34  ;;  %v9519_v45 = vmul.f32 %v16332_v10, %v9503_v15 }
0x25b2   : > { %v9527_v52 = vmul.f32 %v13794_v36, %v9519_v45  ;;  %v19092_v62 = vadd.f32 %v13795_v1, %v9526_v11 }
0x25b4   : > { %v19094_v2 = vadd.f32 %v13795_v1, %v9527_v52 }
0x25b6   : > { %v9536_v39 = vpack.c.bf16 %v19094_v2, %v19092_v62 }
0x25b8   : > { %15299 = vmatmul.mubr.msk.bf16.vlgmr.msra.gmra.mrb[156].mxu1 %vm744_vm4, %v9536_v39 }
0x25b9   : > { %15310 = vmatprep.mubr.msk.bf16.mxu1 %vm16503_vm1, %v16502_v0 }
0x268b   : > { %v9599_v59 = vpop.f32.mrb[156].mxu1 }
0x268c   : > { %v15300_v19 = vpop.f32.mrb[157].mxu1  ;;  %v9600_v57 = vadd.f32 %v13801_v8, %v9599_v59 }
0x268d   : > { %v9602_v44 = vpop.f32.mrb[158].mxu1 }
0x268e   : > { %v9603_v41 = vadd.f32 %v13801_v8, %v9602_v44  ;;  %v15301_v32 = vpop.f32.mrb[159].mxu1 }
0x2690   : > { %v19104_v50 = vpack.c.bf16 %v9603_v41, %v9600_v57 }
0x2692   : > { %9733 = vrot.lane.b32.xlu0 %v19104_v50, %s20010_s24  ;;  %9608 = vrot.lane.b32.xlu1 %v19104_v50, %s20011_s22 }
0x2696   : > { %9856 = vrot.lane.b32.xlu0 %v19104_v50, %s20012_s2  ;;  %9731 = vrot.lane.b32.xlu1 %v19104_v50, %s20013_s26  ;;  %s20031_s2 = sld [smem:[#allocation19_spill]]  ;;  %s20032_s26 = smov 8  }
0x269a   : > { %9981 = vrot.lane.b32.xlu0 %v19104_v50, %s20014_s29  ;;  %9858 = vrot.lane.b32.xlu1 %v19104_v50, %s20015_s23  ;;  %s604_s29 = sand.u32 1, %s20037_s18  }
0x269b   : > { %s12528_s18 = scalar_lea.sflag [#allocation3], %s604_s29 }
0x269e   : > { %9983 = vrot.lane.b32.xlu1 %v19104_v50, %s20016_s28  ;;  %s20033_s28 = smov 16  }
0x2704   : > { %v9609_v46 = vpop.permute.xlu1 %9608  ;;  %v9734_v7 = vpop.permute.xlu0 %9733 }
0x2705   : > { %v9614_v33 = vsel %vm793_vm5, %v9609_v46, 0  ;;  %v9739_v25 = vsel %vm793_vm5, %v9734_v7, 0 }
0x2706   : > { %15303 = vmatpush3.bf16.xpose.msra.mxu0 %v9614_v33 }
0x2707   : > { %15314 = vmatprep.subr.bf16.mxu0 %v16502_v0 }
0x2708   : > { %v9732_v14 = vpop.permute.xlu1 %9731  ;;  %v9857_v60 = vpop.permute.xlu0 %9856 }
0x270c   : > { %v9859_v61 = vpop.permute.xlu1 %9858  ;;  %v9982_v16 = vpop.permute.xlu0 %9981 }
0x270d   : > { %15305 = vmatmul.mubr.msk.bf16.vlgmr.msra.gmra.mrb[160].mxu0 %vm793_vm5, %v19104_v50  ;;  %v9864_v30 = vsel %vm793_vm5, %v9859_v61, 0 }
0x270e   : > { %15315 = vmatpush3.bf16.xpose.msra.mxu0 %v9739_v25  ;;  %15316 = vmatprep.mubr.msk.bf16.mxu0 %vm16503_vm1, %v16502_v0 }
0x270f   : > { %15326 = vmatprep.subr.bf16.mxu0 %v16502_v0 }
0x2710   : > { %v9984_v42 = vpop.permute.xlu1 %9983 }
0x2711   : > { %v9989_v20 = vsel %vm793_vm5, %v9984_v42, 0 }
0x2715   : > { %15317 = vmatmul.mubr.msk.bf16.vlgmr.msra.gmra.mrb[164].mxu0 %vm793_vm5, %v9732_v14 }
0x2716   : > { %15327 = vmatpush3.bf16.xpose.msra.mxu0 %v9864_v30  ;;  %15328 = vmatprep.mubr.msk.bf16.mxu0 %vm16503_vm1, %v16502_v0 }
0x2717   : > { %15338 = vmatprep.subr.bf16.mxu0 %v16502_v0 }
0x271d   : > { %15329 = vmatmul.mubr.msk.bf16.vlgmr.msra.gmra.mrb[168].mxu0 %vm793_vm5, %v9857_v60 }
0x271e   : > { %15339 = vmatpush3.bf16.xpose.msra.mxu0 %v9989_v20  ;;  %15340 = vmatprep.mubr.msk.bf16.mxu0 %vm16503_vm1, %v16502_v0 }
0x271f   : > { %15350 = vmatprep.subr.bf16.mxu0 %v16502_v0 }
0x2725   : > { %15341 = vmatmul.mubr.msk.bf16.vlgmr.msra.gmra.mrb[172].mxu0 %vm793_vm5, %v9982_v16 }
0x2726   : > { %15354 = vmatprep.mubr.msk.bf16.mxu0 %vm16503_vm1, %v16502_v0 }
0x27e0   : > { %v9650_v24 = vpop.f32.mrb[160].mxu0 }
0x27e1   : > { %v9657_v26 = vmul.f32 0.35355338, %v9650_v24  ;;  %v15306_v21 = vpop.f32.mrb[161].mxu0 }
0x27e2   : > { %v9653_v48 = vpop.f32.mrb[162].mxu0 }
0x27e3   : > { %v9659_v9 = vadd.f32 %v16437_v22, %v9657_v26  ;;  %v9658_v6 = vmul.f32 0.35355338, %v9653_v48  ;;  %v15307_v28 = vpop.f32.mrb[163].mxu0 }
0x27e5   : > { %v9660_v13 = vadd.f32 %v16437_v22, %v9658_v6  ;;  %v9661_v5 = vsel %vm851_vm6, %v9659_v9, -inf }
0x27e6   : > { %9662 = vmax.xlane.f32.xlu1 %v9661_v5 }
0x27e7   : > { %v9664_v37 = vsel %vm851_vm6, %v9660_v13, -inf }
0x27e8   : > { %9665 = vmax.xlane.f32.xlu0 %v9664_v37  ;;  %v9775_v63 = vpop.f32.mrb[164].mxu0 }
0x27e9   : > { %v9782_v17 = vmul.f32 0.35355338, %v9775_v63  ;;  %v15318_v27 = vpop.f32.mrb[165].mxu0 }
0x27ea   : > { %v9778_v47 = vpop.f32.mrb[166].mxu0 }
0x27eb   : > { %v9784_v15 = vadd.f32 %v16437_v22, %v9782_v17  ;;  %v9783_v29 = vmul.f32 0.35355338, %v9778_v47  ;;  %v15319_v43 = vpop.f32.mrb[167].mxu0 }
0x27ed   : > { %v9785_v31 = vadd.f32 %v16437_v22, %v9783_v29  ;;  %v9786_v4 = vsel %vm851_vm6, %v9784_v15, -inf }
0x27ee   : > { %9787 = vmax.xlane.f32.xlu0 %v9786_v4 }
0x27ef   : > { %v9789_v58 = vsel %vm851_vm6, %v9785_v31, -inf }
0x27f0   : > { %9790 = vmax.xlane.f32.xlu1 %v9789_v58  ;;  %v9900_v38 = vpop.f32.mrb[168].mxu0 }
0x27f1   : > { %v9907_v23 = vmul.f32 0.35355338, %v9900_v38  ;;  %v15330_v51 = vpop.f32.mrb[169].mxu0 }
0x27f2   : > { %v9903_v12 = vpop.f32.mrb[170].mxu0 }
0x27f3   : > { %v9909_v40 = vadd.f32 %v16437_v22, %v9907_v23  ;;  %v9908_v3 = vmul.f32 0.35355338, %v9903_v12  ;;  %v15331_v35 = vpop.f32.mrb[171].mxu0 }
0x27f5   : > { %v9910_v18 = vadd.f32 %v16437_v22, %v9908_v3  ;;  %v9911_v36 = vsel %vm851_vm6, %v9909_v40, -inf }
0x27f6   : > { %9912 = vmax.xlane.f32.xlu0 %v9911_v36 }
0x27f7   : > { %v9914_v34 = vsel %vm851_vm6, %v9910_v18, -inf }
0x27f8   : > { %9915 = vmax.xlane.f32.xlu1 %v9914_v34  ;;  %v10025_v10 = vpop.f32.mrb[172].mxu0 }
0x27f9   : > { %v10032_v11 = vmul.f32 0.35355338, %v10025_v10  ;;  %v15342_v45 = vpop.f32.mrb[173].mxu0 }
0x27fa   : > { %v10028_v1 = vpop.f32.mrb[174].mxu0 }
0x27fb   : > { %v10034_v52 = vadd.f32 %v16437_v22, %v10032_v11  ;;  %v10033_v39 = vmul.f32 0.35355338, %v10028_v1  ;;  %v15343_v8 = vpop.f32.mrb[175].mxu0 }
0x27fd   : > { %v10035_v59 = vadd.f32 %v16437_v22, %v10033_v39  ;;  %v10036_v19 = vsel %vm851_vm6, %v10034_v52, -inf }
0x27fe   : > { %10037 = vmax.xlane.f32.xlu0 %v10036_v19 }
0x27ff   : > { %v10039_v44 = vsel %vm851_vm6, %v10035_v59, -inf }
0x2800   : > { %10040 = vmax.xlane.f32.xlu1 %v10039_v44 }
0x2873   : > { %v9663_v57 = vpop.xlane.xlu1 %9662 }
0x2874   : > { %v9667_v41 = vsub.f32 %v9659_v9, %v9663_v57 }
0x2875   : > { %v9666_v32 = vpop.xlane.xlu0 %9665 }
0x2876   : > { %v9669_v46 = vmul.f32 1.442695, %v9667_v41  ;;  %v9668_v33 = vsub.f32 %v9660_v13, %v9666_v32 }
0x2878   : > { %16333 = vpow2.f32 %v9669_v46  ;;  %v9671_v7 = vmul.f32 1.442695, %v9668_v33 }
0x287a   : > { %16335 = vpow2.f32 %v9671_v7 }
0x287b   : > { %v9788_v14 = vpop.xlane.xlu0 %9787 }
0x287c   : > { %v9792_v25 = vsub.f32 %v9784_v15, %v9788_v14 }
0x287d   : > { %v9791_v26 = vpop.xlane.xlu1 %9790 }
0x287e   : > { %v9794_v61 = vmul.f32 1.442695, %v9792_v25  ;;  %v9793_v21 = vsub.f32 %v9785_v31, %v9791_v26 }
0x2880   : > { %16337 = vpow2.f32 %v9794_v61  ;;  %v9796_v9 = vmul.f32 1.442695, %v9793_v21 }
0x2882   : > { %v16334_v30 = vpop.eup %16333  ;;  %16339 = vpow2.f32 %v9796_v9 }
0x2883   : > { %v9673_v42 = vsel %vm851_vm6, %v16334_v30, 0.0  ;;  %v9913_v22 = vpop.xlane.xlu0 %9912 }
0x2884   : > { %v16336_v60 = vpop.eup %16335  ;;  %9674 = vadd.xlane.f32.xlu0 %v9673_v42  ;;  %v9917_v13 = vsub.f32 %v9909_v40, %v9913_v22 }
0x2885   : > { %v9676_v20 = vsel %vm851_vm6, %v16336_v60, 0.0  ;;  %v9916_v48 = vpop.xlane.xlu1 %9915 }
0x2886   : > { %9677 = vadd.xlane.f32.xlu1 %v9676_v20  ;;  %v9918_v6 = vsub.f32 %v9910_v18, %v9916_v48  ;;  %v9919_v17 = vmul.f32 1.442695, %v9917_v13 }
0x2888   : > { %v9921_v37 = vmul.f32 1.442695, %v9918_v6 }
0x288a   : > { %v19152_v16 = vpop.eup %16337  ;;  %16341 = vpow2.f32 %v9921_v37 }
0x288b   : > { %v9798_v24 = vsel %vm851_vm6, %v19152_v16, 0.0  ;;  %v10038_v5 = vpop.xlane.xlu0 %10037  ;;  %16343 = vpow2.f32 %v9919_v17 }
0x288c   : > { %9799 = vadd.xlane.f32.xlu0 %v9798_v24  ;;  %v10042_v27 = vsub.f32 %v10034_v52, %v10038_v5  ;;  %v16340_v29 = vpop.eup %16339  ;;  %v15891_v5 = vld [vmem:[%s20031_s2 + $0x30] sm:$0xff]  }
0x288d   : > { %v10041_v28 = vpop.xlane.xlu1 %10040  ;;  %v9801_v43 = vsel %vm851_vm6, %v16340_v29, 0.0  ;;  %15351 = vmatpush3.bf16.msra.mxu0 %v15891_v5 }
0x288e   : > { %v10043_v63 = vsub.f32 %v10035_v59, %v10041_v28  ;;  %v10044_v15 = vmul.f32 1.442695, %v10042_v27  ;;  %15352 = vmatprep.subr.bf16.mxu0 %v16502_v0 }
0x2890   : > { %v10046_v47 = vmul.f32 1.442695, %v10043_v63 }
0x2892   : > { %16345 = vpow2.f32 %v10046_v47  ;;  %v15892_v47 = vld [vmem:[%s20031_s2 + $0x38] sm:$0xff]  }
0x2893   : > { %16347 = vpow2.f32 %v10044_v15  ;;  %15353 = vmatpush3.bf16.msra.mxu0 %v15892_v47  ;;  %v13833_v47 = vld [vmem:[%s19930_s11 + $0x3c8] sm:$0xff] }
0x2894   : > { %v16342_v31 = vpop.eup %16341 }
0x2895   : > { %v16344_v4 = vpop.eup %16343  ;;  %v9926_v58 = vsel %vm851_vm6, %v16342_v31, 0.0 }
0x2896   : > { %v9923_v23 = vsel %vm851_vm6, %v16344_v4, 0.0 }
0x2897   : > { %9809 = vrot.lane.b32.xlu1 %v19104_v50, %s20017_s20  ;;  %s20034_s20 = smov 24  }
0x289c   : > { %v16346_v38 = vpop.eup %16345 }
0x289d   : > { %v16348_v51 = vpop.eup %16347  ;;  %v10051_v12 = vsel %vm851_vm6, %v16346_v38, 0.0 }
0x289e   : > { %v10048_v40 = vsel %vm851_vm6, %v16348_v51, 0.0 }
0x28a2   : > { %9684 = vrot.lane.b32.xlu0 %v19104_v50, %s20018_s4  ;;  %s14293_s4 = sshll.u32 %s20038_s19, 4  ;;  %s16520_s19 = smov [#allocation2]  }
0x28a3   : > { %s19877_s21 = scalar_lea.hbm %s20041_s30, %s14293_s4 }
0x28bb   : > { %9802 = vadd.xlane.f32.xlu1 %v9801_v43 }
0x28bf   : > { %9927 = vadd.xlane.f32.xlu1 %v9926_v58 }
0x28c1   : > { %9924 = vadd.xlane.f32.xlu0 %v9923_v23 }
0x28c3   : > { %10052 = vadd.xlane.f32.xlu1 %v10051_v12 }
0x28c5   : > { %10049 = vadd.xlane.f32.xlu0 %v10048_v40 }
0x28d4   : > { %9934 = vrot.lane.b32.xlu1 %v19104_v50, %s20019_s25  ;;  %s605_s25 = scalar_lea.vmem [#allocation2], %s604_s29 }
0x28db   : > { %10059 = vrot.lane.b32.xlu0 %v19104_v50, %s20030_s27  ;;  %s16442_s27 = sshll.u32 %s16520_s19, 4  ;;  %s16443_s27 = int_to_ptr.vmem [resolvable:$false] %s16442_s27 }
0x28dc   : > { %s16444_s24 = scalar_lea.vmem %s16443_s27, 32 }
0x2911   : > { %v9675_v3 = vpop.xlane.xlu0 %9674 }
0x2912   : > { %16349 = vrcp.f32 %v9675_v3 }
0x2913   : > { %v9678_v35 = vpop.xlane.xlu1 %9677 }
0x2914   : > { %16351 = vrcp.f32 %v9678_v35 }
0x2917   : > { %v9810_v52 = vpop.permute.xlu1 %9809 }
0x2919   : > { %v9800_v18 = vpop.xlane.xlu0 %9799 }
0x291a   : > { %16353 = vrcp.f32 %v9800_v18 }
0x291c   : > { %v16350_v36 = vpop.eup %16349 }
0x291d   : > { %v9685_v34 = vpop.permute.xlu0 %9684  ;;  %v9681_v11 = vmul.f32 %v16350_v36, %v16334_v30 }
0x291e   : > { %v16352_v10 = vpop.eup %16351  ;;  %15309 = vmatpush3.bf16.msra.mxu1 %v9685_v34 }
0x291f   : > { %v9682_v45 = vmul.f32 %v16352_v10, %v16336_v60  ;;  %15320 = vmatprep.subr.bf16.mxu1 %v16502_v0 }
0x2921   : > { %v9683_v1 = vpack.c.bf16 %v9682_v45, %v9681_v11 }
0x2923   : > { %15311 = vmatmul.mubr.msk.bf16.vlgmr.msra.gmra.mrb[160].mxu1 %vm851_vm6, %v9683_v1 }
0x2924   : > { %15321 = vmatpush3.bf16.msra.mxu1 %v9810_v52  ;;  %15322 = vmatprep.mubr.msk.bf16.mxu1 %vm16503_vm1, %v16502_v0  ;;  %v16354_v59 = vpop.eup %16353 }
0x2925   : > { %15332 = vmatprep.subr.bf16.mxu1 %v16502_v0  ;;  %v9806_v41 = vmul.f32 %v16354_v59, %v19152_v16  ;;  %v13818_v59 = vld [vmem:[%s20035_s1 + $0x3] ss:$0 sm:$0xff]  ;;  %s12540_s1 = sshll.u32 %s605_s25, 4  ;;  %s19879_s1 = int_to_ptr.vmem [resolvable:$true] %s12540_s1 }
0x2926   : > { %s16438_s17 = scalar_lea.vmem %s19879_s1, 16  ;;  %p16445_p0 = scmp.lt.s32.totalorder %s19879_s1, %s16443_s27 }
0x2927   : > { %p16439_p11 = scmp.ne.s32.totalorder %s19879_s1, %s16438_s17  ;;  %p16446_p1 = scmp.lt.s32.totalorder %s16444_s24, %s16438_s17 }
0x2929   : > { %p16440_p12 = pnand %p16439_p11, %p16659_p5  ;;  %p16447_p2 = por %p16446_p1, %p16445_p0 }
0x292b   : > { %p16441_p13 = pneg %p16440_p12 }
0x292d   : > { %p16448_p3 = pnand %p16447_p2, %p16441_p13 }
0x2948   : > { %v9803_v50 = vpop.xlane.xlu1 %9802 }
0x2949   : > { %16355 = vrcp.f32 %v9803_v50 }
0x294c   : > { %v9928_v39 = vpop.xlane.xlu1 %9927 }
0x294d   : > { %16357 = vrcp.f32 %v9928_v39 }
0x294e   : > { %v9925_v8 = vpop.xlane.xlu0 %9924 }
0x294f   : > { %16359 = vrcp.f32 %v9925_v8 }
0x2950   : > { %v10053_v19 = vpop.xlane.xlu1 %10052 }
0x2952   : > { %v10050_v44 = vpop.xlane.xlu0 %10049 }
0x2953   : > { %v16356_v57 = vpop.eup %16355  ;;  %16361 = vrcp.f32 %v10050_v44 }
0x2954   : > { %v9807_v32 = vmul.f32 %v16356_v57, %v16340_v29  ;;  %16363 = vrcp.f32 %v10053_v19  ;;  %v9935_v7 = vpop.permute.xlu1 %9934 }
0x2956   : > { %v9808_v46 = vpack.c.bf16 %v9807_v32, %v9806_v41  ;;  %v10060_v60 = vpop.permute.xlu0 %10059 }
0x2957   : > { %v16358_v33 = vpop.eup %16357 }
0x2958   : > { %15323 = vmatmul.mubr.msk.bf16.vlgmr.msra.gmra.mrb[164].mxu1 %vm851_vm6, %v9808_v46  ;;  %v9932_v61 = vmul.f32 %v16358_v33, %v16342_v31 }
0x2959   : > { %v16360_v14 = vpop.eup %16359  ;;  %15333 = vmatpush3.bf16.msra.mxu1 %v9935_v7  ;;  %15334 = vmatprep.mubr.msk.bf16.mxu1 %vm16503_vm1, %v16502_v0 }
0x295a   : > { %v9931_v25 = vmul.f32 %v16360_v14, %v16344_v4  ;;  %15344 = vmatprep.subr.bf16.mxu1 %v16502_v0 }
0x295c   : > { %v9933_v30 = vpack.c.bf16 %v9932_v61, %v9931_v25 }
0x295d   : > { %v16362_v42 = vpop.eup %16361 }
0x295e   : > { %v16364_v20 = vpop.eup %16363  ;;  %v10056_v16 = vmul.f32 %v16362_v42, %v16348_v51 }
0x295f   : > { %v10057_v24 = vmul.f32 %v16364_v20, %v16346_v38 }
0x2960   : > { %15335 = vmatmul.mubr.msk.bf16.vlgmr.msra.gmra.mrb[168].mxu1 %vm851_vm6, %v9933_v30 }
0x2961   : > { %15345 = vmatpush3.bf16.msra.mxu1 %v10060_v60  ;;  %15346 = vmatprep.mubr.msk.bf16.mxu1 %vm16503_vm1, %v16502_v0  ;;  %v10058_v26 = vpack.c.bf16 %v10057_v24, %v10056_v16 }
0x2968   : > { %15347 = vmatmul.mubr.msk.bf16.vlgmr.msra.gmra.mrb[172].mxu1 %vm851_vm6, %v10058_v26 }
0x2969   : > { %10362 = vmatprep.mubr.bf16.mxu1 %v16518_v49 }
0x29f6   : > { %v9724_v21 = vpop.f32.mrb[160].mxu1 }
0x29f7   : > { %v15312_v48 = vpop.f32.mrb[161].mxu1 }
0x29f8   : > { %v9727_v22 = vpop.f32.mrb[162].mxu1  ;;  %v13828_v48 = vld [vmem:[%s19930_s11 + $0x340] sm:$0xff] }
0x29f9   : > { %v15313_v9 = vpop.f32.mrb[163].mxu1 }
0x2a2b   : > { %v9849_v6 = vpop.f32.mrb[164].mxu1 }
0x2a2c   : > { %v15324_v28 = vpop.f32.mrb[165].mxu1 }
0x2a2d   : > { %v9852_v13 = vpop.f32.mrb[166].mxu1 }
0x2a2e   : > { %v15477_v37 = vpack.i.bf16 %v9852_v13, %v9849_v6  ;;  %v15325_v63 = vpop.f32.mrb[167].mxu1  ;;  %v13829_v6 = vld [vmem:[%s19930_s11 + $0x348] sm:$0xff] }
0x2a2f   : > { %v13832_v63 = vld [vmem:[%s19930_s11 + $0x3c0] sm:$0xff] }
0x2a30   : > { %15478 = vrot.lane.b32.xlu1 %v15477_v37, %s20032_s26  ;;  %v13830_v37 = vld [vmem:[%s19930_s11 + $0x380] sm:$0xff] }
0x2a33   : > { %v9974_v17 = vpop.f32.mrb[168].mxu1 }
0x2a34   : > { %v15336_v27 = vpop.f32.mrb[169].mxu1 }
0x2a35   : > { %v9977_v15 = vpop.f32.mrb[170].mxu1  ;;  %v13840_v27 = vcombine.high %v13830_v37, %v13832_v63 }
0x2a36   : > { %v15482_v29 = vpack.i.bf16 %v9977_v15, %v9974_v17  ;;  %v15337_v43 = vpop.f32.mrb[171].mxu1  ;;  %v13831_v17 = vld [vmem:[%s19930_s11 + $0x388] sm:$0xff]  ;;  %v13839_v15 = vcombine.low %v13830_v37, %v13832_v63  ;;  %v15910_v37 = vld [vmem:[%s19932_s13 + $0xde0] sm:$0xff]  }
0x2a37   : > { %v13842_v43 = vcombine.high %v13831_v17, %v13833_v47  ;;  %v15911_v63 = vld [vmem:[%s19932_s13 + $0xd20] sm:$0xff]  }
0x2a38   : > { %15483 = vrot.lane.b32.xlu0 %v15482_v29, %s20033_s28  ;;  %v13841_v29 = vcombine.low %v13831_v17, %v13833_v47  ;;  %v15912_v17 = vld [vmem:[%s19932_s13 + $0xda0] sm:$0xff]   ;;  %v15914_v47 = vld [vmem:[%s19932_s13 + $0xde8] sm:$0xff]  }
0x2a3b   : > { %v10099_v31 = vpop.f32.mrb[172].mxu1 }
0x2a3c   : > { %v15348_v4 = vpop.f32.mrb[173].mxu1 }
0x2a3d   : > { %v10102_v58 = vpop.f32.mrb[174].mxu1  ;;  %v13911_v4 = vld [vmem:[%s19930_s11 + $0x350] sm:$0xff] }
0x2a3e   : > { %v15487_v38 = vpack.i.bf16 %v10102_v58, %v10099_v31  ;;  %v15349_v23 = vpop.f32.mrb[175].mxu1  ;;  %v13909_v31 = vld [vmem:[%s19930_s11 + $0x310] sm:$0xff]  ;;  %v13910_v58 = vld [vmem:[%s19930_s11 + $0x318] sm:$0xff] }
0x2a3f   : > { %v13912_v23 = vld [vmem:[%s19930_s11 + $0x358] sm:$0xff] }
0x2a40   : > { %15488 = vrot.lane.b32.xlu1 %v15487_v38, %s20034_s20  ;;  %v13919_v38 = vcombine.high %v13909_v31, %v13911_v4  ;;  %s20040_s20 = sld [smem:[#allocation22_spill]] }
0x2aa2   : > { %v15479_v51 = vpop.permute.xlu1 %15478 }
0x2aa3   : > { %v15481_v40 = vunpack.i.h.bf16 %v15479_v51  ;;  %v15480_v3 = vunpack.i.l.bf16 %v15479_v51  ;;  %v13918_v51 = vcombine.low %v13909_v31, %v13911_v4  ;;  %v15918_v31 = vld [vmem:[%s19932_s13 + $0xdf0] sm:$0xff]  }
0x2aa4   : > { %v15919_v4 = vld [vmem:[%s19932_s13 + $0xd30] sm:$0xff]  }
0x2aa5   : > { %v10131_v34 = vsel %vm793_vm5, %v9727_v22, %v15481_v40  ;;  %v10130_v10 = vsel %vm793_vm5, %v9724_v21, %v15480_v3  ;;  %v13827_v22 = vld [vmem:[%s19930_s11 + $0x308] sm:$0xff]  ;;  %v13921_v40 = vcombine.high %v13910_v58, %v13912_v23 }
0x2aa6   : > { %v13837_v13 = vcombine.low %v13827_v22, %v13829_v6  ;;  %v13838_v5 = vcombine.high %v13827_v22, %v13829_v6  ;;  %v15904_v22 = vld [vmem:[%s19932_s13 + $0xd90] sm:$0xff]   ;;  %v15906_v6 = vld [vmem:[%s19932_s13 + $0xdd8] sm:$0xff]  }
0x2aa8   : > { %10373 = vmatprep.subr.bf16.mxu0 %v13838_v5  ;;  %v15909_v5 = vld [vmem:[%s19932_s13 + $0xd60] sm:$0xff]  }
0x2aaa   : > { %v15484_v12 = vpop.permute.xlu0 %15483 }
0x2aab   : > { %v15486_v35 = vunpack.i.h.bf16 %v15484_v12  ;;  %v15485_v18 = vunpack.i.l.bf16 %v15484_v12  ;;  %v13920_v12 = vcombine.low %v13910_v58, %v13912_v23  ;;  %v15920_v58 = vld [vmem:[%s19932_s13 + $0xdb0] sm:$0xff]   ;;  %v15922_v23 = vld [vmem:[%s19932_s13 + $0xdf8] sm:$0xff]  }
0x2aad   : > { %v10133_v1 = vsel %vm851_vm6, %v10131_v34, %v15486_v35  ;;  %v10132_v52 = vsel %vm851_vm6, %v10130_v10, %v15485_v18 }
0x2ab2   : > { %v15489_v36 = vpop.permute.xlu1 %15488 }
0x2ab3   : > { %v15491_v11 = vunpack.i.h.bf16 %v15489_v36  ;;  %v15490_v45 = vunpack.i.l.bf16 %v15489_v36 }
0x2ab5   : > { %v10135_v50 = vsel %vm1325_vm7, %v10133_v1, %v15491_v11  ;;  %v10134_v39 = vsel %vm1325_vm7, %v10132_v52, %v15490_v45  ;;  %v13824_v1 = vld [vmem:[%s19928_s9 + $0x3] ss:$0 sm:$0xff] }
0x2ab6   : > { %v10136_v8 = vpack.c.bf16 %v10135_v50, %v10134_v39 }
0x2ab8   : > { %15355 = vmatmul.mubr.msk.bf16.vlgmr.msra.gmra.mrb[176].mxu0 %vm744_vm4, %v10136_v8  ;;  %v13825_v8 = vld [vmem:[%s19929_s10 + $0x3] ss:$0 sm:$0xff] }
0x2ab9   : > { %10405 = vmatprep.mubr.bf16.mxu0 %v16518_v49  ;;  %10374 = vmatpush1.bf16.msra.mxu0 %v13837_v13  ;;  %v15908_v13 = vld [vmem:[%s19932_s13 + $0xd98] sm:$0xff]  }
0x2aba   : > { %10375 = vmatprep.subr.bf16.mxu0 %v13842_v43  ;;  %v15917_v43 = vld [vmem:[%s19932_s13 + $0xd70] sm:$0xff]  }
0x2abd   : > { %10376 = vmatpush1.bf16.msra.mxu0 %v13841_v29  ;;  %v15916_v29 = vld [vmem:[%s19932_s13 + $0xda8] sm:$0xff]  }
0x2abe   : > { %10638 = vmatprep.subr.bf16.mxu0 %v13921_v40  ;;  %v15925_v40 = vld [vmem:[%s19932_s13 + $0xc40] sm:$0xff]  }
0x2b8b   : > { %v10199_v19 = vpop.f32.mrb[176].mxu0 }
0x2b8c   : > { %v10200_v44 = vadd.f32 %v13818_v59, %v10199_v19  ;;  %v15356_v57 = vpop.f32.mrb[177].mxu0  ;;  %v13913_v19 = vld [vmem:[%s19930_s11 + $0x390] sm:$0xff] }
0x2b8d   : > { %v10202_v41 = vpop.f32.mrb[178].mxu0  ;;  %v13914_v57 = vld [vmem:[%s19930_s11 + $0x398] sm:$0xff] }
0x2b8e   : > { %v10206_v32 = vadd.f32 %v10200_v44, %v19092_v62  ;;  %v10203_v46 = vadd.f32 %v13818_v59, %v10202_v41  ;;  %v15357_v33 = vpop.f32.mrb[179].mxu0  ;;  %v13915_v44 = vld [vmem:[%s19930_s11 + $0x3d0] sm:$0xff]  ;;  %v13916_v41 = vld [vmem:[%s19930_s11 + $0x3d8] sm:$0xff] }
0x2b90   : > { %v10207_v7 = vadd.f32 %v10203_v46, %v19094_v2  ;;  %v10212_v14 = vsel %vm744_vm4, %v10206_v32, 0.0  ;;  %v13826_v2 = vld [vmem:[%s19930_s11 + $0x300] sm:$0xff] }
0x2b91   : > { %10213 = vadd.xlane.f32.xlu0 %v10212_v14  ;;  %v13836_v9 = vcombine.high %v13826_v2, %v13828_v48  ;;  %v13835_v28 = vcombine.low %v13826_v2, %v13828_v48  ;;  %v13925_v14 = vcombine.high %v13914_v57, %v13916_v41  ;;  %v15902_v2 = vld [vmem:[%s19932_s13 + $0xdd0] sm:$0xff]  }
0x2b92   : > { %v10215_v25 = vsel %vm744_vm4, %v10207_v7, 0.0  ;;  %v15903_v48 = vld [vmem:[%s19932_s13 + $0xd10] sm:$0xff]  }
0x2b93   : > { %10216 = vadd.xlane.f32.xlu1 %v10215_v25  ;;  %10330 = vmatprep.subr.bf16.mxu1 %v13836_v9  ;;  %v13922_v25 = vcombine.low %v13913_v19, %v13915_v44  ;;  %v15905_v9 = vld [vmem:[%s19932_s13 + $0xd58] sm:$0xff]  }
0x2b94   : > { %10331 = vmatpush1.bf16.msra.mxu1 %v13835_v28  ;;  %v15907_v28 = vld [vmem:[%s19932_s13 + $0xd18] sm:$0xff]  }
0x2b95   : > { %10332 = vmatprep.subr.bf16.mxu1 %v13840_v27  ;;  %v15913_v27 = vld [vmem:[%s19932_s13 + $0xd68] sm:$0xff]  }
0x2b98   : > { %10333 = vmatpush1.bf16.msra.mxu1 %v13839_v15  ;;  %v15915_v15 = vld [vmem:[%s19932_s13 + $0xd28] sm:$0xff]  }
0x2b99   : > { %10595 = vmatprep.subr.bf16.mxu1 %v13919_v38  ;;  %v15921_v38 = vld [vmem:[%s19932_s13 + $0xd78] sm:$0xff]  }
0x2c1e   : > { %v10214_v61 = vpop.xlane.xlu0 %10213 }
0x2c1f   : > { %v10218_v30 = vmul.f32 0.03125, %v10214_v61  ;;  %v13924_v61 = vcombine.low %v13914_v57, %v13916_v41 }
0x2c20   : > { %v10217_v42 = vpop.xlane.xlu1 %10216 }
0x2c21   : > { %v10220_v60 = vsub.f32 %v10206_v32, %v10218_v30  ;;  %v10219_v20 = vmul.f32 0.03125, %v10217_v42  ;;  %v15893_v30 = vld [vmem:[%s19932_s13 + $0xd40] sm:$0xff]  }
0x2c22   : > { %v15894_v42 = vld [vmem:[%s19932_s13 + $0xdc0] sm:$0xff]  }
0x2c23   : > { %v10221_v16 = vsub.f32 %v10207_v7, %v10219_v20  ;;  %v10222_v24 = vmul.f32 %v10220_v60, %v10220_v60  ;;  %v13923_v7 = vcombine.high %v13913_v19, %v13915_v44  ;;  %v15896_v20 = vld [vmem:[%s19932_s13 + $0xd80] sm:$0xff]  }
0x2c25   : > { %v10224_v26 = vsel %vm744_vm4, %v10222_v24, 0.0  ;;  %v10223_v62 = vmul.f32 %v10221_v16, %v10221_v16  ;;  %v15898_v24 = vld [vmem:[%s19932_s13 + $0xdc8] sm:$0xff]  }
0x2c26   : > { %10225 = vadd.xlane.f32.xlu0 %v10224_v26  ;;  %v15899_v26 = vld [vmem:[%s19932_s13 + $0xd08] sm:$0xff]  }
0x2c27   : > { %v10227_v21 = vsel %vm744_vm4, %v10223_v62, 0.0  ;;  %v15900_v62 = vld [vmem:[%s19932_s13 + $0xd88] sm:$0xff]  }
0x2c2a   : > { %10228 = vadd.xlane.f32.xlu0 %v10227_v21  ;;  %v15901_v21 = vld [vmem:[%s19932_s13 + $0xd50] sm:$0xff]  }
0x2cb3   : > { %v10226_v3 = vpop.xlane.xlu0 %10225 }
0x2cb4   : > { %v10230_v35 = vmul.f32 0.03125, %v10226_v3  ;;  %v15926_v3 = vld [vmem:[%s19932_s13 + $0xcc0] sm:$0xff]  }
0x2cb6   : > { %v10232_v18 = vadd.f32 1e-05, %v10230_v35  ;;  %v13834_v35 = vld [vmem:[%s19931_s12 + $0x30] sm:$0xf] }
0x2cb7   : > { %v10229_v36 = vpop.xlane.xlu0 %10228 }
0x2cb8   : > { %16365 = vrsqrt.f32 %v10232_v18  ;;  %v10231_v34 = vmul.f32 0.03125, %v10229_v36  ;;  %v10270_v18 = vrot.slane %v13834_v35, %v17010_v53  ;;  %v10278_v36 = vrot.slane %v13834_v35, %v17013_v54 }
0x2cba   : > { %v10233_v10 = vadd.f32 1e-05, %v10231_v34  ;;  %v10274_v34 = vrot.slane %v13834_v35, %v17016_v55 }
0x2cbc   : > { %16367 = vrsqrt.f32 %v10233_v10  ;;  %v10282_v10 = vrot.slane %v13834_v35, %v17019_v56 }
0x2cc2   : > { %v16366_v11 = vpop.eup %16365 }
0x2cc3   : > { %v10236_v45 = vmul.f32 %v16366_v11, %v10220_v60  ;;  %v15895_v60 = vld [vmem:[%s19932_s13 + $0xd00] sm:$0xff]  }
0x2cc5   : > { %v10244_v50 = vmul.f32 %v13824_v1, %v10236_v45 }
0x2cc6   : > { %v16368_v52 = vpop.eup %16367 }
0x2cc7   : > { %v10237_v39 = vmul.f32 %v16368_v52, %v10221_v16  ;;  %v19265_v32 = vadd.f32 %v13825_v8, %v10244_v50  ;;  %v15897_v16 = vld [vmem:[%s19932_s13 + $0xd48] sm:$0xff]  }
0x2cc9   : > { %v10245_v59 = vmul.f32 %v13824_v1, %v10237_v39 }
0x2ccb   : > { %v10253_v46 = vadd.f32 %v13825_v8, %v10245_v59  ;;  %v13917_v8 = vld [vmem:[%s19931_s12 + $0x34] sm:$0xf] }
0x2ccd   : > { %v19268_v33 = vpack.c.bf16 %v10253_v46, %v19265_v32 }
0x2ccf   : > { %13843 = vmatmul.mubr.msk.bf16.vlgmr.msra.gmra.mrb[176].mxu1 %vm744_vm4, %v19268_v33  ;;  %13844 = vmatmul.mubr.msk.bf16.vlgmr.msra.gmra.mrb[180].mxu0 %vm744_vm4, %v19268_v33 }
0x2cd0   : > { %10596 = vmatpush1.bf16.msra.mxu1 %v13918_v51  ;;  %10639 = vmatpush1.bf16.msra.mxu0 %v13920_v12  ;;  %v15923_v51 = vld [vmem:[%s19932_s13 + $0xd38] sm:$0xff]  }
0x2cd1   : > { %10597 = vmatprep.subr.bf16.mxu1 %v13923_v7  ;;  %10640 = vmatprep.subr.bf16.mxu0 %v13925_v14  ;;  %v15924_v12 = vld [vmem:[%s19932_s13 + $0xdb8] sm:$0xff]  }
0x2cd2   : > { %10627 = vmatprep.mubr.bf16.mxu1 %v16518_v49  ;;  %10670 = vmatprep.mubr.bf16.mxu0 %v16518_v49 }
0x2cd4   : > { %10598 = vmatpush1.bf16.msra.mxu1 %v13922_v25  ;;  %10641 = vmatpush1.bf16.msra.mxu0 %v13924_v61  ;;  %v10538_v25 = vrot.slane %v13917_v8, %v17010_v53 }
0x2cd5   : > { %14915 = vmatprep.subr.bf16.mxu1 %v15893_v30  ;;  %14937 = vmatprep.subr.bf16.mxu0 %v15894_v42 }
0x2cd7   : > { %13926 = vmatmul.mubr.msk.bf16.vlgmr.msra.gmra.mrb[180].mxu1 %vm744_vm4, %v19268_v33  ;;  %13927 = vmatmul.mubr.msk.bf16.vlgmr.msra.gmra.mrb[184].mxu0 %vm744_vm4, %v19268_v33 }
0x2cd8   : > { %14916 = vmatpush3.bf16.msra.mxu1 %v15895_v60  ;;  %14938 = vmatpush3.bf16.msra.mxu0 %v15896_v20  ;;  %v10546_v20 = vrot.slane %v13917_v8, %v17013_v54 }
0x2cd9   : > { %14917 = vmatprep.subr.bf16.mxu1 %v15897_v16  ;;  %14939 = vmatprep.subr.bf16.mxu0 %v15898_v24 }
0x2cdc   : > { %14918 = vmatpush3.bf16.msra.mxu1 %v15899_v26  ;;  %14940 = vmatpush3.bf16.msra.mxu0 %v15900_v62  ;;  %v10542_v26 = vrot.slane %v13917_v8, %v17016_v55 }
0x2cdd   : > { %14919 = vmatprep.subr.bf16.mxu1 %v15901_v21  ;;  %14941 = vmatprep.subr.bf16.mxu0 %v15902_v2  ;;  %v10550_v21 = vrot.slane %v13917_v8, %v17019_v56 }
0x2ce0   : > { %14920 = vmatpush3.bf16.msra.mxu1 %v15903_v48  ;;  %14942 = vmatpush3.bf16.msra.mxu0 %v15904_v22 }
0x2ce1   : > { %14921 = vmatprep.subr.bf16.mxu1 %v15905_v9  ;;  %14943 = vmatprep.subr.bf16.mxu0 %v15906_v6 }
0x2ce4   : > { %14922 = vmatpush3.bf16.msra.mxu1 %v15907_v28  ;;  %14944 = vmatpush3.bf16.msra.mxu0 %v15908_v13 }
0x2ce5   : > { %14923 = vmatprep.subr.bf16.mxu1 %v15909_v5  ;;  %14945 = vmatprep.subr.bf16.mxu0 %v15910_v37 }
0x2ce8   : > { %14924 = vmatpush3.bf16.msra.mxu1 %v15911_v63  ;;  %14946 = vmatpush3.bf16.msra.mxu0 %v15912_v17 }
0x2ce9   : > { %14925 = vmatprep.subr.bf16.mxu1 %v15913_v27  ;;  %14947 = vmatprep.subr.bf16.mxu0 %v15914_v47 }
0x2cec   : > { %14926 = vmatpush3.bf16.msra.mxu1 %v15915_v15  ;;  %14948 = vmatpush3.bf16.msra.mxu0 %v15916_v29 }
0x2ced   : > { %14927 = vmatprep.subr.bf16.mxu1 %v15917_v43  ;;  %14949 = vmatprep.subr.bf16.mxu0 %v15918_v31 }
0x2cf0   : > { %14928 = vmatpush3.bf16.msra.mxu1 %v15919_v4  ;;  %14950 = vmatpush3.bf16.msra.mxu0 %v15920_v58 }
0x2cf1   : > { %14929 = vmatprep.subr.bf16.mxu1 %v15921_v38  ;;  %14951 = vmatprep.subr.bf16.mxu0 %v15922_v23 }
0x2cf4   : > { %14930 = vmatpush3.bf16.msra.mxu1 %v15923_v51  ;;  %14952 = vmatpush3.bf16.msra.mxu0 %v15924_v12 }
0x2cf5   : > { %14959 = vmatprep.subr.bf16.mxu1 %v15925_v40  ;;  %14981 = vmatprep.subr.bf16.mxu0 %v15926_v3 }
0x2da2   : > { %v10364_v11 = vpop.f32.mrb[176].mxu1  ;;  %v10407_v45 = vpop.f32.mrb[180].mxu0 }
0x2da3   : > { %v10365_v1 = vadd.f32 %v10364_v11, %v10270_v18  ;;  %v10408_v52 = vadd.f32 %v10407_v45, %v10278_v36  ;;  %v10366_v50 = vpop.f32.mrb[177].mxu1  ;;  %v10409_v39 = vpop.f32.mrb[181].mxu0 }
0x2da4   : > { %v10367_v59 = vadd.f32 %v10366_v50, %v10274_v34  ;;  %v19392_v19 = vadd.f32 %v10409_v39, %v10282_v10  ;;  %v10368_v44 = vpop.f32.mrb[178].mxu1  ;;  %v10411_v57 = vpop.f32.mrb[182].mxu0 }
0x2da5   : > { %v10424_v41 = vmul.f32 0.70710677, %v10365_v1  ;;  %v10426_v46 = vmul.f32 0.70710677, %v10408_v52  ;;  %v10369_v61 = vadd.f32 %v10368_v44, %v10270_v18  ;;  %v19396_v30 = vadd.f32 %v10411_v57, %v10278_v36  ;;  %v10370_v42 = vpop.f32.mrb[179].mxu1  ;;  %v10413_v60 = vpop.f32.mrb[183].mxu0 }
0x2da6   : > { %v10425_v7 = vmul.f32 0.70710677, %v10367_v59  ;;  %v10427_v14 = vmul.f32 0.70710677, %v19392_v19  ;;  %v19399_v16 = vadd.f32 %v10370_v42, %v10274_v34  ;;  %v19401_v24 = vadd.f32 %v10413_v60, %v10282_v10 }
0x2da7   : > { %16369 = verf.f32 %v10424_v41  ;;  %v10428_v62 = vmul.f32 0.70710677, %v10369_v61  ;;  %v10430_v2 = vmul.f32 0.70710677, %v19396_v30  ;;  %v10416_v36 = vmul.f32 0.5, %v10365_v1 }
0x2da8   : > { %16371 = verf.f32 %v10426_v46  ;;  %v10429_v48 = vmul.f32 0.70710677, %v19399_v16  ;;  %v10431_v9 = vmul.f32 0.70710677, %v19401_v24  ;;  %v10418_v34 = vmul.f32 0.5, %v10408_v52 }
0x2da9   : > { %16373 = verf.f32 %v10425_v7  ;;  %v10417_v50 = vmul.f32 0.5, %v10367_v59  ;;  %v10419_v57 = vmul.f32 0.5, %v19392_v19  ;;  %v10420_v41 = vmul.f32 0.5, %v10369_v61 }
0x2daa   : > { %16375 = verf.f32 %v10427_v14  ;;  %v10629_v22 = vpop.f32.mrb[180].mxu1  ;;  %v10672_v28 = vpop.f32.mrb[184].mxu0  ;;  %v10422_v42 = vmul.f32 0.5, %v19396_v30  ;;  %v10421_v60 = vmul.f32 0.5, %v19399_v16 }
0x2dab   : > { %16377 = verf.f32 %v10428_v62  ;;  %v19408_v6 = vadd.f32 %v10629_v22, %v10538_v25  ;;  %v10631_v13 = vpop.f32.mrb[181].mxu1  ;;  %v19410_v5 = vadd.f32 %v10672_v28, %v10546_v20  ;;  %v10674_v63 = vpop.f32.mrb[185].mxu0 }
0x2dac   : > { %16379 = verf.f32 %v10430_v2  ;;  %v19412_v37 = vadd.f32 %v10631_v13, %v10542_v26  ;;  %v10633_v17 = vpop.f32.mrb[182].mxu1  ;;  %v19415_v47 = vadd.f32 %v10674_v63, %v10550_v21  ;;  %v10676_v15 = vpop.f32.mrb[186].mxu0  ;;  %v10423_v2 = vmul.f32 0.5, %v19401_v24 }
0x2dad   : > { %16381 = verf.f32 %v10429_v48  ;;  %v10689_v27 = vmul.f32 0.70710677, %v19408_v6  ;;  %v10635_v29 = vpop.f32.mrb[183].mxu1  ;;  %v10691_v43 = vmul.f32 0.70710677, %v19410_v5  ;;  %v10678_v31 = vpop.f32.mrb[187].mxu0  ;;  %v10634_v38 = vadd.f32 %v10633_v17, %v10538_v25 }
0x2dae   : > { %16383 = verf.f32 %v10431_v9  ;;  %v10690_v4 = vmul.f32 0.70710677, %v19412_v37  ;;  %v10692_v58 = vmul.f32 0.70710677, %v19415_v47  ;;  %v19420_v23 = vadd.f32 %v10676_v15, %v10546_v20 }
0x2daf   : > { %16385 = verf.f32 %v10689_v27  ;;  %v19422_v51 = vadd.f32 %v10635_v29, %v10542_v26  ;;  %v10693_v3 = vmul.f32 0.70710677, %v10634_v38  ;;  %v19424_v35 = vadd.f32 %v10678_v31, %v10550_v21 }
0x2db0   : > { %16387 = verf.f32 %v10691_v43  ;;  %v10695_v10 = vmul.f32 0.70710677, %v19420_v23  ;;  %v10681_v24 = vmul.f32 0.5, %v19408_v6 }
0x2db1   : > { %v16370_v12 = vpop.eup %16369  ;;  %16389 = verf.f32 %v10690_v4  ;;  %v10694_v39 = vmul.f32 0.70710677, %v19422_v51  ;;  %v10696_v1 = vmul.f32 0.70710677, %v19424_v35 }
0x2db2   : > { %v16372_v40 = vpop.eup %16371  ;;  %16391 = verf.f32 %v10692_v58  ;;  %v10440_v45 = vadd.f32 1.0, %v16370_v12 }
0x2db3   : > { %v16374_v18 = vpop.eup %16373  ;;  %16393 = verf.f32 %v10693_v3  ;;  %v10442_v44 = vadd.f32 1.0, %v16372_v40  ;;  %v10683_v40 = vmul.f32 0.5, %v19410_v5 }
0x2db4   : > { %v16376_v11 = vpop.eup %16375  ;;  %16395 = verf.f32 %v10695_v10  ;;  %v10441_v7 = vadd.f32 1.0, %v16374_v18  ;;  %v19432_v26 = vmul.f32 %v10440_v45, %v10416_v36  ;;  %v10685_v18 = vmul.f32 0.5, %v10634_v38 }
0x2db5   : > { %v16378_v8 = vpop.eup %16377  ;;  %16397 = verf.f32 %v10694_v39  ;;  %v10443_v25 = vadd.f32 1.0, %v16376_v11  ;;  %v19436_v61 = vmul.f32 %v10442_v44, %v10418_v34  ;;  %v10682_v10 = vmul.f32 0.5, %v19412_v37 }
0x2db6   : > { %v16380_v46 = vpop.eup %16379  ;;  %v10444_v14 = vadd.f32 1.0, %v16378_v8  ;;  %16399 = verf.f32 %v10696_v1  ;;  %v10449_v9 = vmul.f32 %v10441_v7, %v10417_v50  ;;  %v10687_v11 = vmul.f32 0.5, %v19420_v23 }
0x2db7   : > { %v16382_v52 = vpop.eup %16381  ;;  %v10446_v59 = vadd.f32 1.0, %v16380_v46  ;;  %v10451_v13 = vmul.f32 %v10443_v25, %v10419_v57  ;;  %v10686_v50 = vmul.f32 0.5, %v19422_v51  ;;  %v10684_v46 = vmul.f32 0.5, %v19415_v47  ;;  %v15927_v51 = vld [vmem:[%s19932_s13 + $0xc00] sm:$0xff]  }
0x2db8   : > { %v16384_v20 = vpop.eup %16383  ;;  %v19434_v62 = vmul.f32 %v10444_v14, %v10420_v41  ;;  %v10445_v19 = vadd.f32 1.0, %v16382_v52  ;;  %v10688_v38 = vmul.f32 0.5, %v19424_v35  ;;  %v15928_v47 = vld [vmem:[%s19932_s13 + $0xc80] sm:$0xff]   ;;  %v15929_v35 = vld [vmem:[%s19932_s13 + $0xc48] sm:$0xff]  }
0x2db9   : > { %v19438_v21 = vmul.f32 %v10446_v59, %v10422_v42  ;;  %v10447_v48 = vadd.f32 1.0, %v16384_v20  ;;  %v16386_v22 = vpop.eup %16385  ;;  %v15931_v20 = vld [vmem:[%s19932_s13 + $0xc08] sm:$0xff]  }
0x2dba   : > { %v10456_v30 = vpack.c.bf16 %v19434_v62, %v19432_v26  ;;  %v10453_v16 = vmul.f32 %v10445_v19, %v10421_v60  ;;  %v16388_v28 = vpop.eup %16387  ;;  %v10705_v43 = vadd.f32 1.0, %v16386_v22  ;;  %v15930_v60 = vld [vmem:[%s19932_s13 + $0xcc8] sm:$0xff]   ;;  %v15933_v19 = vld [vmem:[%s19932_s13 + $0xc50] sm:$0xff]   ;;  %v15957_v26 = vld [vmem:[%s19932_s13 + $0xe40] sm:$0xff]  }
0x2dbb   : > { %v10458_v63 = vpack.c.bf16 %v19438_v21, %v19436_v61  ;;  %v10455_v17 = vmul.f32 %v10447_v48, %v10423_v2  ;;  %v16390_v27 = vpop.eup %16389  ;;  %v10707_v58 = vadd.f32 1.0, %v16388_v28  ;;  %v15932_v2 = vld [vmem:[%s19932_s13 + $0xc88] sm:$0xff]   ;;  %v15934_v48 = vld [vmem:[%s19932_s13 + $0xcd0] sm:$0xff]   ;;  %v15938_v28 = vld [vmem:[%s19932_s13 + $0xcd8] sm:$0xff]  }
0x2dbc   : > { %v10457_v15 = vpack.c.bf16 %v10453_v16, %v10449_v9  ;;  %v16392_v29 = vpop.eup %16391  ;;  %v10706_v3 = vadd.f32 1.0, %v16390_v27  ;;  %v10713_v39 = vmul.f32 %v10705_v43, %v10681_v24  ;;  %v15935_v22 = vld [vmem:[%s19932_s13 + $0xc10] sm:$0xff]   ;;  %v15937_v9 = vld [vmem:[%s19932_s13 + $0xc58] sm:$0xff]   ;;  %v15945_v43 = vld [vmem:[%s19932_s13 + $0xc68] sm:$0xff]  }
0x2dbd   : > { %v10459_v31 = vpack.c.bf16 %v10455_v17, %v10451_v13  ;;  %v16394_v4 = vpop.eup %16393  ;;  %v10708_v8 = vadd.f32 1.0, %v16392_v29  ;;  %v10715_v41 = vmul.f32 %v10707_v58, %v10683_v40  ;;  %v15936_v16 = vld [vmem:[%s19932_s13 + $0xc90] sm:$0xff]   ;;  %v15939_v13 = vld [vmem:[%s19932_s13 + $0xc18] sm:$0xff]   ;;  %v15941_v17 = vld [vmem:[%s19932_s13 + $0xc60] sm:$0xff]  }
0x2dbe   : > { %v16396_v12 = vpop.eup %16395  ;;  %v10709_v36 = vadd.f32 1.0, %v16394_v4  ;;  %v10714_v7 = vmul.f32 %v10706_v3, %v10682_v10  ;;  %v15940_v27 = vld [vmem:[%s19932_s13 + $0xc98] sm:$0xff]   ;;  %v15943_v29 = vld [vmem:[%s19932_s13 + $0xc20] sm:$0xff]   ;;  %v15946_v4 = vld [vmem:[%s19932_s13 + $0xce8] sm:$0xff]  }
0x2dbf   : > { %v16398_v34 = vpop.eup %16397  ;;  %v10711_v45 = vadd.f32 1.0, %v16396_v12  ;;  %v10716_v23 = vmul.f32 %v10708_v8, %v10684_v46  ;;  %v15947_v24 = vld [vmem:[%s19932_s13 + $0xc28] sm:$0xff]   ;;  %v15949_v58 = vld [vmem:[%s19932_s13 + $0xc70] sm:$0xff]   ;;  %v14058_v10 = vld [vmem:[%s19930_s11 + $0x360] sm:$0xff] }
0x2dc0   : > { %v10717_v44 = vmul.f32 %v10709_v36, %v10685_v18  ;;  %v10710_v57 = vadd.f32 1.0, %v16398_v34  ;;  %v16400_v6 = vpop.eup %16399  ;;  %v15948_v12 = vld [vmem:[%s19932_s13 + $0xca8] sm:$0xff]   ;;  %v15950_v40 = vld [vmem:[%s19932_s13 + $0xcf0] sm:$0xff]   ;;  %v15953_v18 = vld [vmem:[%s19932_s13 + $0xc78] sm:$0xff]  }
0x2dc1   : > { %v10719_v5 = vmul.f32 %v10711_v45, %v10687_v11  ;;  %v10712_v37 = vadd.f32 1.0, %v16400_v6  ;;  %v15951_v3 = vld [vmem:[%s19932_s13 + $0xc30] sm:$0xff]   ;;  %v14056_v34 = vld [vmem:[%s19930_s11 + $0x320] sm:$0xff]  ;;  %v15954_v11 = vld [vmem:[%s19932_s13 + $0xcf8] sm:$0xff]  }
0x2dc2   : > { %v10721_v14 = vpack.c.bf16 %v10717_v44, %v10713_v39  ;;  %v10718_v1 = vmul.f32 %v10710_v57, %v10686_v50  ;;  %v15952_v36 = vld [vmem:[%s19932_s13 + $0xcb0] sm:$0xff]   ;;  %v15955_v45 = vld [vmem:[%s19932_s13 + $0xc38] sm:$0xff]   ;;  %v14057_v50 = vld [vmem:[%s19930_s11 + $0x328] sm:$0xff]  ;;  %v14066_v8 = vcombine.high %v14056_v34, %v14058_v10  ;;  %v14065_v46 = vcombine.low %v14056_v34, %v14058_v10 }
0x2dc3   : > { %v10723_v52 = vpack.c.bf16 %v10719_v5, %v10715_v41  ;;  %v10720_v25 = vmul.f32 %v10712_v37, %v10688_v38  ;;  %v14059_v39 = vld [vmem:[%s19930_s11 + $0x368] sm:$0xff]  ;;  %v15956_v44 = vld [vmem:[%s19932_s13 + $0xcb8] sm:$0xff]   ;;  %v14060_v57 = vld [vmem:[%s19930_s11 + $0x3a0] sm:$0xff] }
0x2dc4   : > { %v10722_v42 = vpack.c.bf16 %v10718_v1, %v10714_v7  ;;  %v14062_v6 = vld [vmem:[%s19930_s11 + $0x3e0] sm:$0xff]  ;;  %v14068_v41 = vcombine.high %v14057_v50, %v14059_v39  ;;  %v14061_v5 = vld [vmem:[%s19930_s11 + $0x3a8] sm:$0xff] }
0x2dc5   : > { %v10724_v59 = vpack.c.bf16 %v10720_v25, %v10716_v23  ;;  %v14063_v38 = vld [vmem:[%s19930_s11 + $0x3e8] sm:$0xff]  ;;  %v14070_v7 = vcombine.high %v14060_v57, %v14062_v6  ;;  %v14069_v37 = vcombine.low %v14060_v57, %v14062_v6  ;;  %v15958_v62 = vld [vmem:[%s19932_s13 + $0xec0] sm:$0xff]  }
0x2dc6   : > { %11013 = vmatprep.mubr.bf16.mxu1 %v10722_v42  ;;  %v14072_v1 = vcombine.high %v14061_v5, %v14063_v38  ;;  %v15959_v61 = vld [vmem:[%s19932_s13 + $0xe00] sm:$0xff]   ;;  %v15963_v23 = vld [vmem:[%s19932_s13 + $0xe08] sm:$0xff]   ;;  %v15965_v42 = vld [vmem:[%s19932_s13 + $0xe50] sm:$0xff]  }
0x2dc7   : > { %11014 = vmatmul.mubr.bf16.vlgmr.msra.gmra.mrb[184].mxu1 %v10721_v14  ;;  %11053 = vmatprep.mubr.bf16.mxu0 %v10724_v59  ;;  %v14067_v14 = vcombine.low %v14057_v50, %v14059_v39  ;;  %v15960_v21 = vld [vmem:[%s19932_s13 + $0xe80] sm:$0xff]   ;;  %v15964_v25 = vld [vmem:[%s19932_s13 + $0xe88] sm:$0xff]   ;;  %v15967_v59 = vld [vmem:[%s19932_s13 + $0xe10] sm:$0xff]  }
0x2dc8   : > { %14960 = vmatpush3.bf16.msra.mxu1 %v15927_v51  ;;  %11054 = vmatmul.mubr.bf16.vlgmr.msra.gmra.mrb[188].mxu0 %v10723_v52  ;;  %v14071_v52 = vcombine.low %v14061_v5, %v14063_v38  ;;  %v15966_v51 = vld [vmem:[%s19932_s13 + $0xed0] sm:$0xff]  }
0x2dc9   : > { %11285 = vmatprep.mubr.bf16.mxu1 %v10457_v15  ;;  %14982 = vmatpush3.bf16.msra.mxu0 %v15928_v47  ;;  %v15942_v15 = vld [vmem:[%s19932_s13 + $0xce0] sm:$0xff]   ;;  %v15968_v47 = vld [vmem:[%s19932_s13 + $0xe90] sm:$0xff]  }
0x2dca   : > { %11325 = vmatprep.mubr.bf16.mxu0 %v10459_v31  ;;  %14961 = vmatprep.subr.bf16.mxu1 %v15929_v35  ;;  %v15944_v31 = vld [vmem:[%s19932_s13 + $0xca0] sm:$0xff]   ;;  %v15969_v35 = vld [vmem:[%s19932_s13 + $0xe58] sm:$0xff]  }
0x2dcb   : > { %14983 = vmatprep.subr.bf16.mxu0 %v15930_v60  ;;  %v15970_v60 = vld [vmem:[%s19932_s13 + $0xed8] sm:$0xff]  }
0x2dcc   : > { %14962 = vmatpush3.bf16.msra.mxu1 %v15931_v20  ;;  %v15971_v20 = vld [vmem:[%s19932_s13 + $0xe18] sm:$0xff]  }
0x2dcd   : > { %14963 = vmatprep.subr.bf16.mxu1 %v15933_v19  ;;  %14984 = vmatpush3.bf16.msra.mxu0 %v15932_v2  ;;  %v15972_v19 = vld [vmem:[%s19932_s13 + $0xe98] sm:$0xff]   ;;  %v15973_v2 = vld [vmem:[%s19932_s13 + $0xe60] sm:$0xff]  }
0x2dce   : > { %14985 = vmatprep.subr.bf16.mxu0 %v15934_v48  ;;  %v15974_v48 = vld [vmem:[%s19932_s13 + $0xee0] sm:$0xff]  }
0x2dd0   : > { %14964 = vmatpush3.bf16.msra.mxu1 %v15935_v22  ;;  %v15975_v22 = vld [vmem:[%s19932_s13 + $0xe20] sm:$0xff]  }
0x2dd1   : > { %14965 = vmatprep.subr.bf16.mxu1 %v15937_v9  ;;  %14986 = vmatpush3.bf16.msra.mxu0 %v15936_v16  ;;  %v15976_v9 = vld [vmem:[%s19932_s13 + $0xea0] sm:$0xff]   ;;  %v15977_v16 = vld [vmem:[%s19932_s13 + $0xe68] sm:$0xff]  }
0x2dd2   : > { %14987 = vmatprep.subr.bf16.mxu0 %v15938_v28  ;;  %v15978_v28 = vld [vmem:[%s19932_s13 + $0xee8] sm:$0xff]  }
0x2dd4   : > { %14966 = vmatpush3.bf16.msra.mxu1 %v15939_v13  ;;  %v15979_v13 = vld [vmem:[%s19932_s13 + $0xe28] sm:$0xff]  }
0x2dd5   : > { %14967 = vmatprep.subr.bf16.mxu1 %v15941_v17  ;;  %14988 = vmatpush3.bf16.msra.mxu0 %v15940_v27  ;;  %v15980_v17 = vld [vmem:[%s19932_s13 + $0xea8] sm:$0xff]   ;;  %v15981_v27 = vld [vmem:[%s19932_s13 + $0xe70] sm:$0xff]  }
0x2dd6   : > { %14989 = vmatprep.subr.bf16.mxu0 %v15942_v15  ;;  %v15982_v15 = vld [vmem:[%s19932_s13 + $0xef0] sm:$0xff]  }
0x2dd8   : > { %14968 = vmatpush3.bf16.msra.mxu1 %v15943_v29  ;;  %v15983_v29 = vld [vmem:[%s19932_s13 + $0xe30] sm:$0xff]  }
0x2dd9   : > { %14969 = vmatprep.subr.bf16.mxu1 %v15945_v43  ;;  %14990 = vmatpush3.bf16.msra.mxu0 %v15944_v31  ;;  %v15984_v43 = vld [vmem:[%s19932_s13 + $0xeb0] sm:$0xff]   ;;  %v15985_v31 = vld [vmem:[%s19932_s13 + $0xe78] sm:$0xff]  }
0x2dda   : > { %14991 = vmatprep.subr.bf16.mxu0 %v15946_v4  ;;  %v15986_v4 = vld [vmem:[%s19932_s13 + $0xef8] sm:$0xff]  }
0x2ddc   : > { %14970 = vmatpush3.bf16.msra.mxu1 %v15947_v24  ;;  %v15987_v24 = vld [vmem:[%s19932_s13 + $0xe38] sm:$0xff]  }
0x2ddd   : > { %14971 = vmatprep.subr.bf16.mxu1 %v15949_v58  ;;  %14992 = vmatpush3.bf16.msra.mxu0 %v15948_v12  ;;  %v15988_v58 = vld [vmem:[%s19932_s13 + $0xeb8] sm:$0xff]   ;;  %v19677_v12 = vld [vmem:[%s19930_s11 + $0x330] sm:$0xff] }
0x2dde   : > { %14993 = vmatprep.subr.bf16.mxu0 %v15950_v40  ;;  %v19682_v40 = vld [vmem:[%s19930_s11 + $0x370] sm:$0xff] }
0x2ddf   : > { %v14180_v34 = vcombine.low %v19677_v12, %v19682_v40 }
0x2de0   : > { %14972 = vmatpush3.bf16.msra.mxu1 %v15951_v3  ;;  %v19687_v3 = vld [vmem:[%s19930_s11 + $0x338] sm:$0xff] }
0x2de1   : > { %14973 = vmatprep.subr.bf16.mxu1 %v15953_v18  ;;  %14994 = vmatpush3.bf16.msra.mxu0 %v15952_v36  ;;  %v14181_v18 = vcombine.high %v19677_v12, %v19682_v40  ;;  %v19694_v36 = vld [vmem:[%s19930_s11 + $0x378] sm:$0xff]  ;;  %v15989_v12 = vld [vmem:[%s19932_s13 + $0xf40] sm:$0xff]  }
0x2de2   : > { %14995 = vmatprep.subr.bf16.mxu0 %v15954_v11  ;;  %v14182_v10 = vcombine.low %v19687_v3, %v19694_v36  ;;  %v14183_v11 = vcombine.high %v19687_v3, %v19694_v36  ;;  %v15990_v40 = vld [vmem:[%s19932_s13 + $0xfc0] sm:$0xff]   ;;  %v15994_v36 = vld [vmem:[%s19932_s13 + $0xfc8] sm:$0xff]  }
0x2de3   : > { %v15992_v3 = vld [vmem:[%s19932_s13 + $0xf80] sm:$0xff]  }
0x2de4   : > { %14974 = vmatpush3.bf16.msra.mxu1 %v15955_v45 }
0x2de5   : > { %11403 = vmatprep.subr.bf16.mxu1 %v14066_v8  ;;  %14996 = vmatpush3.bf16.msra.mxu0 %v15956_v44 }
0x2de6   : > { %11446 = vmatprep.subr.bf16.mxu0 %v14068_v41 }
0x2de7   : > { %11286 = vmatmul.mubr.bf16.vlgmr.msra.gmra.mrb[188].mxu1 %v10456_v30  ;;  %v15961_v30 = vld [vmem:[%s19932_s13 + $0xe48] sm:$0xff]  }
0x2de8   : > { %11404 = vmatpush1.bf16.msra.mxu1 %v14065_v46  ;;  %11435 = vmatprep.mubr.bf16.mxu1 %v16518_v49 }
0x2de9   : > { %11326 = vmatmul.mubr.bf16.vlgmr.msra.gmra.mrb[192].mxu0 %v10458_v63  ;;  %11405 = vmatprep.subr.bf16.mxu1 %v14070_v7  ;;  %v15962_v63 = vld [vmem:[%s19932_s13 + $0xec8] sm:$0xff]  }
0x2dea   : > { %11447 = vmatpush1.bf16.msra.mxu0 %v14067_v14  ;;  %11478 = vmatprep.mubr.bf16.mxu0 %v16518_v49 }
0x2deb   : > { %11448 = vmatprep.subr.bf16.mxu0 %v14072_v1 }
0x2dec   : > { %11406 = vmatpush1.bf16.msra.mxu1 %v14069_v37 }
0x2ded   : > { %15003 = vmatprep.subr.bf16.mxu1 %v15957_v26  ;;  %v14064_v26 = vld [vmem:[%s19931_s12 + $0x38] sm:$0xf] }
0x2dee   : > { %11449 = vmatpush1.bf16.msra.mxu0 %v14071_v52 }
0x2def   : > { %14073 = vmatmul.mubr.msk.bf16.vlgmr.msra.gmra.mrb[192].mxu1 %vm744_vm4, %v19268_v33  ;;  %15025 = vmatprep.subr.bf16.mxu0 %v15958_v62 }
0x2df0   : > { %15004 = vmatpush3.bf16.msra.mxu1 %v15959_v61 }
0x2df1   : > { %14074 = vmatmul.mubr.msk.bf16.vlgmr.msra.gmra.mrb[196].mxu0 %vm744_vm4, %v19268_v33  ;;  %15005 = vmatprep.subr.bf16.mxu1 %v15961_v30 }
0x2df2   : > { %15026 = vmatpush3.bf16.msra.mxu0 %v15960_v21 }
0x2df3   : > { %15027 = vmatprep.subr.bf16.mxu0 %v15962_v63 }
0x2df4   : > { %15006 = vmatpush3.bf16.msra.mxu1 %v15963_v23 }
0x2df5   : > { %15007 = vmatprep.subr.bf16.mxu1 %v15965_v42 }
0x2df6   : > { %15028 = vmatpush3.bf16.msra.mxu0 %v15964_v25  ;;  %v11346_v25 = vrot.slane %v14064_v26, %v17010_v53 }
0x2df7   : > { %15029 = vmatprep.subr.bf16.mxu0 %v15966_v51  ;;  %v11350_v51 = vrot.slane %v14064_v26, %v17016_v55 }
0x2df8   : > { %15008 = vmatpush3.bf16.msra.mxu1 %v15967_v59  ;;  %v11354_v59 = vrot.slane %v14064_v26, %v17013_v54 }
0x2df9   : > { %15009 = vmatprep.subr.bf16.mxu1 %v15969_v35  ;;  %v11358_v35 = vrot.slane %v14064_v26, %v17019_v56 }
0x2dfa   : > { %15030 = vmatpush3.bf16.msra.mxu0 %v15968_v47 }
0x2dfb   : > { %15031 = vmatprep.subr.bf16.mxu0 %v15970_v60 }
0x2dfc   : > { %15010 = vmatpush3.bf16.msra.mxu1 %v15971_v20 }
0x2dfd   : > { %15011 = vmatprep.subr.bf16.mxu1 %v15973_v2 }
0x2dfe   : > { %15032 = vmatpush3.bf16.msra.mxu0 %v15972_v19 }
0x2dff   : > { %15033 = vmatprep.subr.bf16.mxu0 %v15974_v48 }
0x2e00   : > { %15012 = vmatpush3.bf16.msra.mxu1 %v15975_v22 }
0x2e01   : > { %15013 = vmatprep.subr.bf16.mxu1 %v15977_v16 }
0x2e02   : > { %15034 = vmatpush3.bf16.msra.mxu0 %v15976_v9 }
0x2e03   : > { %15035 = vmatprep.subr.bf16.mxu0 %v15978_v28 }
0x2e04   : > { %15014 = vmatpush3.bf16.msra.mxu1 %v15979_v13 }
0x2e05   : > { %15015 = vmatprep.subr.bf16.mxu1 %v15981_v27 }
0x2e06   : > { %15036 = vmatpush3.bf16.msra.mxu0 %v15980_v17 }
0x2e07   : > { %15037 = vmatprep.subr.bf16.mxu0 %v15982_v15 }
0x2e08   : > { %15016 = vmatpush3.bf16.msra.mxu1 %v15983_v29 }
0x2e09   : > { %15017 = vmatprep.subr.bf16.mxu1 %v15985_v31 }
0x2e0a   : > { %15038 = vmatpush3.bf16.msra.mxu0 %v15984_v43 }
0x2e0b   : > { %15039 = vmatprep.subr.bf16.mxu0 %v15986_v4 }
0x2e0c   : > { %15018 = vmatpush3.bf16.msra.mxu1 %v15987_v24 }
0x2e0d   : > { %11940 = vmatprep.subr.bf16.mxu1 %v14181_v18 }
0x2e0e   : > { %15040 = vmatpush3.bf16.msra.mxu0 %v15988_v58 }
0x2e0f   : > { %11983 = vmatprep.subr.bf16.mxu0 %v14183_v11 }
0x2e9a   : > { %v14931_v45 = vpop.f32.mrb[184].mxu1 }
0x2e9b   : > { %v14932_v50 = vpop.f32.mrb[185].mxu1  ;;  %v14953_v39 = vpop.f32.mrb[188].mxu0 }
0x2e9c   : > { %v14933_v8 = vadd.f32 %v14932_v50, %v14931_v45  ;;  %v14934_v44 = vpop.f32.mrb[186].mxu1  ;;  %v14954_v57 = vpop.f32.mrb[189].mxu0 }
0x2e9d   : > { %v14935_v6 = vpop.f32.mrb[187].mxu1  ;;  %v14955_v41 = vadd.f32 %v14954_v57, %v14953_v39  ;;  %v14956_v46 = vpop.f32.mrb[190].mxu0 }
0x2e9e   : > { %v14957_v5 = vpop.f32.mrb[191].mxu0 }
0x2e9f   : > { %v11056_v38 = vadd.f32 %v14955_v41, %v14933_v8 }
0x2eba   : > { %v14975_v7 = vpop.f32.mrb[188].mxu1 }
0x2ebb   : > { %v14976_v14 = vpop.f32.mrb[189].mxu1 }
0x2ebc   : > { %v14997_v1 = vpop.f32.mrb[192].mxu0  ;;  %v14977_v37 = vadd.f32 %v14976_v14, %v14975_v7  ;;  %v14978_v52 = vpop.f32.mrb[190].mxu1 }
0x2ebd   : > { %v14998_v62 = vpop.f32.mrb[193].mxu0  ;;  %v14979_v61 = vpop.f32.mrb[191].mxu1 }
0x2ebe   : > { %v11288_v21 = vadd.f32 %v14977_v37, %v11056_v38  ;;  %v14999_v30 = vadd.f32 %v14998_v62, %v14997_v1  ;;  %v15000_v63 = vpop.f32.mrb[194].mxu0 }
0x2ebf   : > { %v15001_v23 = vpop.f32.mrb[195].mxu0 }
0x2ec0   : > { %v19706_v42 = vadd.f32 %v14999_v30, %v11288_v21 }
0x2ec2   : > { %v11437_v47 = vpop.f32.mrb[192].mxu1 }
0x2ec3   : > { %v11438_v60 = vadd.f32 %v11437_v47, %v11346_v25  ;;  %v11439_v20 = vpop.f32.mrb[193].mxu1 }
0x2ec4   : > { %v11480_v19 = vpop.f32.mrb[196].mxu0  ;;  %v11440_v2 = vadd.f32 %v11439_v20, %v11350_v51  ;;  %v11441_v48 = vpop.f32.mrb[194].mxu1 }
0x2ec5   : > { %v11497_v22 = vmul.f32 0.70710677, %v11438_v60  ;;  %v11481_v9 = vadd.f32 %v11480_v19, %v11354_v59  ;;  %v11482_v16 = vpop.f32.mrb[197].mxu0  ;;  %v11442_v28 = vadd.f32 %v11441_v48, %v11346_v25  ;;  %v11443_v13 = vpop.f32.mrb[195].mxu1  ;;  %v11489_v46 = vmul.f32 0.5, %v11438_v60  ;;  %v14175_v19 = vld [vmem:[%s19930_s11 + $0x3b0] sm:$0xff] }
0x2ec6   : > { %v11498_v17 = vmul.f32 0.70710677, %v11440_v2  ;;  %v11483_v27 = vadd.f32 %v11482_v16, %v11358_v35  ;;  %v11484_v15 = vpop.f32.mrb[198].mxu0  ;;  %v11444_v29 = vadd.f32 %v11443_v13, %v11350_v51  ;;  %v11490_v5 = vmul.f32 0.5, %v11440_v2  ;;  %v14177_v2 = vld [vmem:[%s19930_s11 + $0x3f0] sm:$0xff] }
0x2ec7   : > { %16401 = verf.f32 %v11497_v22  ;;  %v11499_v43 = vmul.f32 0.70710677, %v11481_v9  ;;  %v11486_v31 = vpop.f32.mrb[199].mxu0  ;;  %v11501_v24 = vmul.f32 0.70710677, %v11442_v28  ;;  %v11485_v58 = vadd.f32 %v11484_v15, %v11354_v59 }
0x2ec8   : > { %16403 = verf.f32 %v11498_v17  ;;  %v11500_v4 = vmul.f32 0.70710677, %v11483_v27  ;;  %v11502_v18 = vmul.f32 0.70710677, %v11444_v29  ;;  %v11487_v11 = vadd.f32 %v11486_v31, %v11358_v35  ;;  %v14176_v17 = vld [vmem:[%s19930_s11 + $0x3b8] sm:$0xff] }
0x2ec9   : > { %16405 = verf.f32 %v11499_v43  ;;  %v11503_v45 = vmul.f32 0.70710677, %v11485_v58  ;;  %v11491_v14 = vmul.f32 0.5, %v11481_v9  ;;  %v11493_v37 = vmul.f32 0.5, %v11442_v28 }
0x2eca   : > { %16407 = verf.f32 %v11500_v4  ;;  %v11504_v50 = vmul.f32 0.70710677, %v11487_v11  ;;  %v11492_v62 = vmul.f32 0.5, %v11483_v27  ;;  %v11494_v21 = vmul.f32 0.5, %v11444_v29  ;;  %v14178_v27 = vld [vmem:[%s19930_s11 + $0x3f8] sm:$0xff] }
0x2ecb   : > { %16409 = verf.f32 %v11501_v24  ;;  %v11495_v51 = vmul.f32 0.5, %v11485_v58  ;;  %v11496_v60 = vmul.f32 0.5, %v11487_v11  ;;  %v14185_v29 = vcombine.high %v14175_v19, %v14177_v2  ;;  %v15997_v58 = vld [vmem:[%s19932_s13 + $0xf50] sm:$0xff]  }
0x2ecc   : > { %16411 = verf.f32 %v11502_v18  ;;  %v14187_v31 = vcombine.high %v14176_v17, %v14178_v27  ;;  %v14184_v4 = vcombine.low %v14175_v19, %v14177_v2  ;;  %v14186_v24 = vcombine.low %v14176_v17, %v14178_v27  ;;  %v15998_v18 = vld [vmem:[%s19932_s13 + $0xfd0] sm:$0xff]  }
0x2ecd   : > { %16413 = verf.f32 %v11503_v45  ;;  %v15999_v11 = vld [vmem:[%s19932_s13 + $0xf10] sm:$0xff]  }
0x2ece   : > { %16415 = verf.f32 %v11504_v50  ;;  %v16000_v45 = vld [vmem:[%s19932_s13 + $0xf90] sm:$0xff]   ;;  %v16001_v50 = vld [vmem:[%s19932_s13 + $0xf58] sm:$0xff]  }
0x2ed1   : > { %v16402_v39 = vpop.eup %16401 }
0x2ed2   : > { %v16404_v8 = vpop.eup %16403  ;;  %v11513_v6 = vadd.f32 1.0, %v16402_v39  ;;  %v16002_v39 = vld [vmem:[%s19932_s13 + $0xfd8] sm:$0xff]  }
0x2ed3   : > { %v16406_v44 = vpop.eup %16405  ;;  %v11514_v38 = vadd.f32 1.0, %v16404_v8  ;;  %v16003_v8 = vld [vmem:[%s19932_s13 + $0xf18] sm:$0xff]  }
0x2ed4   : > { %v16408_v57 = vpop.eup %16407  ;;  %v11515_v1 = vadd.f32 1.0, %v16406_v44  ;;  %v11521_v23 = vmul.f32 %v11513_v6, %v11489_v46  ;;  %v16004_v44 = vld [vmem:[%s19932_s13 + $0xf98] sm:$0xff]   ;;  %v16006_v6 = vld [vmem:[%s19932_s13 + $0xfe0] sm:$0xff]  }
0x2ed5   : > { %v16410_v41 = vpop.eup %16409  ;;  %v11516_v61 = vadd.f32 1.0, %v16408_v57  ;;  %v11522_v47 = vmul.f32 %v11514_v38, %v11490_v5  ;;  %v16005_v57 = vld [vmem:[%s19932_s13 + $0xf60] sm:$0xff]   ;;  %v16009_v5 = vld [vmem:[%s19932_s13 + $0xf68] sm:$0xff]  }
0x2ed6   : > { %v16412_v7 = vpop.eup %16411  ;;  %v11517_v52 = vadd.f32 1.0, %v16410_v41  ;;  %v11523_v48 = vmul.f32 %v11515_v1, %v11491_v14  ;;  %v16007_v41 = vld [vmem:[%s19932_s13 + $0xf20] sm:$0xff]   ;;  %v16010_v38 = vld [vmem:[%s19932_s13 + $0xfe8] sm:$0xff]   ;;  %v16013_v1 = vld [vmem:[%s19932_s13 + $0xf70] sm:$0xff]  }
0x2ed7   : > { %v16414_v26 = vpop.eup %16413  ;;  %v11518_v30 = vadd.f32 1.0, %v16412_v7  ;;  %v11524_v16 = vmul.f32 %v11516_v61, %v11492_v62  ;;  %v16008_v46 = vld [vmem:[%s19932_s13 + $0xfa0] sm:$0xff]   ;;  %v16011_v7 = vld [vmem:[%s19932_s13 + $0xf28] sm:$0xff]   ;;  %v16017_v62 = vld [vmem:[%s19932_s13 + $0xf78] sm:$0xff]  }
0x2ed8   : > { %v16416_v63 = vpop.eup %16415  ;;  %v11525_v25 = vmul.f32 %v11517_v52, %v11493_v37  ;;  %v11519_v59 = vadd.f32 1.0, %v16414_v26  ;;  %v16012_v14 = vld [vmem:[%s19932_s13 + $0xfa8] sm:$0xff]   ;;  %v16014_v37 = vld [vmem:[%s19932_s13 + $0xff0] sm:$0xff]   ;;  %v16018_v61 = vld [vmem:[%s19932_s13 + $0xff8] sm:$0xff]  }
0x2ed9   : > { %v11526_v35 = vmul.f32 %v11518_v30, %v11494_v21  ;;  %v11520_v20 = vadd.f32 1.0, %v16416_v63  ;;  %v16015_v52 = vld [vmem:[%s19932_s13 + $0xf30] sm:$0xff]   ;;  %v16019_v21 = vld [vmem:[%s19932_s13 + $0xf38] sm:$0xff]  }
0x2eda   : > { %v11529_v22 = vpack.c.bf16 %v11525_v25, %v11521_v23  ;;  %v11527_v9 = vmul.f32 %v11519_v59, %v11495_v51  ;;  %v16016_v26 = vld [vmem:[%s19932_s13 + $0xfb0] sm:$0xff]   ;;  %v16020_v30 = vld [vmem:[%s19932_s13 + $0xfb8] sm:$0xff]  }
0x2edb   : > { %v11528_v28 = vmul.f32 %v11520_v20, %v11496_v60  ;;  %v11530_v13 = vpack.c.bf16 %v11526_v35, %v11522_v47  ;;  %v14179_v47 = vld [vmem:[%s19931_s12 + $0x3c] sm:$0xf] }
0x2edc   : > { %v11531_v15 = vpack.c.bf16 %v11527_v9, %v11523_v48  ;;  %v11883_v48 = vrot.slane %v14179_v47, %v17010_v53  ;;  %v11887_v9 = vrot.slane %v14179_v47, %v17016_v55  ;;  %v11895_v17 = vrot.slane %v14179_v47, %v17019_v56 }
0x2edd   : > { %11821 = vmatprep.mubr.bf16.mxu1 %v11530_v13  ;;  %v11532_v43 = vpack.c.bf16 %v11528_v28, %v11524_v16  ;;  %v11891_v16 = vrot.slane %v14179_v47, %v17013_v54 }
0x2ede   : > { %11822 = vmatmul.mubr.bf16.vlgmr.msra.gmra.mrb[196].mxu1 %v11529_v22 }
0x2edf   : > { %11861 = vmatprep.mubr.bf16.mxu0 %v11532_v43  ;;  %11941 = vmatpush1.bf16.msra.mxu1 %v14180_v34  ;;  %v15995_v34 = vld [vmem:[%s19932_s13 + $0xf08] sm:$0xff]  }
0x2ee0   : > { %11862 = vmatmul.mubr.bf16.vlgmr.msra.gmra.mrb[200].mxu0 %v11531_v15  ;;  %11942 = vmatprep.subr.bf16.mxu1 %v14185_v29 }
0x2ee1   : > { %11984 = vmatpush1.bf16.msra.mxu0 %v14182_v10  ;;  %11972 = vmatprep.mubr.bf16.mxu1 %v16518_v49  ;;  %v15996_v10 = vld [vmem:[%s19932_s13 + $0xf88] sm:$0xff]  }
0x2ee2   : > { %11985 = vmatprep.subr.bf16.mxu0 %v14187_v31  ;;  %12015 = vmatprep.mubr.bf16.mxu0 %v16518_v49  ;;  %v15991_v49 = vld [vmem:[%s19932_s13 + $0xf00] sm:$0xff]  }
0x2ee3   : > { %11943 = vmatpush1.bf16.msra.mxu1 %v14184_v4 }
0x2ee4   : > { %15047 = vmatprep.subr.bf16.mxu1 %v15989_v12 }
0x2ee5   : > { %11986 = vmatpush1.bf16.msra.mxu0 %v14186_v24 }
0x2ee6   : > { %14188 = vmatmul.mubr.msk.bf16.vlgmr.msra.gmra.mrb[200].mxu1 %vm744_vm4, %v19268_v33  ;;  %15069 = vmatprep.subr.bf16.mxu0 %v15990_v40 }
0x2ee7   : > { %15048 = vmatpush3.bf16.msra.mxu1 %v15991_v49 }
0x2ee8   : > { %14189 = vmatmul.mubr.msk.bf16.vlgmr.msra.gmra.mrb[204].mxu0 %vm744_vm4, %v19268_v33  ;;  %v15993_v33 = vld [vmem:[%s19932_s13 + $0xf48] sm:$0xff]  }
0x2ee9   : > { %15070 = vmatpush3.bf16.msra.mxu0 %v15992_v3  ;;  %15049 = vmatprep.subr.bf16.mxu1 %v15993_v33 }
0x2eea   : > { %15071 = vmatprep.subr.bf16.mxu0 %v15994_v36 }
0x2eeb   : > { %15050 = vmatpush3.bf16.msra.mxu1 %v15995_v34 }
0x2eec   : > { %15051 = vmatprep.subr.bf16.mxu1 %v15997_v58 }
0x2eed   : > { %15072 = vmatpush3.bf16.msra.mxu0 %v15996_v10 }
0x2eee   : > { %15073 = vmatprep.subr.bf16.mxu0 %v15998_v18 }
0x2eef   : > { %15052 = vmatpush3.bf16.msra.mxu1 %v15999_v11 }
0x2ef0   : > { %15053 = vmatprep.subr.bf16.mxu1 %v16001_v50 }
0x2ef1   : > { %15074 = vmatpush3.bf16.msra.mxu0 %v16000_v45 }
0x2ef2   : > { %15075 = vmatprep.subr.bf16.mxu0 %v16002_v39 }
0x2ef3   : > { %15054 = vmatpush3.bf16.msra.mxu1 %v16003_v8 }
0x2ef4   : > { %15055 = vmatprep.subr.bf16.mxu1 %v16005_v57 }
0x2ef5   : > { %15076 = vmatpush3.bf16.msra.mxu0 %v16004_v44 }
0x2ef6   : > { %15077 = vmatprep.subr.bf16.mxu0 %v16006_v6 }
0x2ef7   : > { %15056 = vmatpush3.bf16.msra.mxu1 %v16007_v41 }
0x2ef8   : > { %15057 = vmatprep.subr.bf16.mxu1 %v16009_v5 }
0x2ef9   : > { %15078 = vmatpush3.bf16.msra.mxu0 %v16008_v46 }
0x2efa   : > { %15079 = vmatprep.subr.bf16.mxu0 %v16010_v38 }
0x2efb   : > { %15058 = vmatpush3.bf16.msra.mxu1 %v16011_v7 }
0x2efc   : > { %15059 = vmatprep.subr.bf16.mxu1 %v16013_v1 }
0x2efd   : > { %15080 = vmatpush3.bf16.msra.mxu0 %v16012_v14 }
0x2efe   : > { %15081 = vmatprep.subr.bf16.mxu0 %v16014_v37 }
0x2eff   : > { %15060 = vmatpush3.bf16.msra.mxu1 %v16015_v52 }
0x2f00   : > { %15061 = vmatprep.subr.bf16.mxu1 %v16017_v62 }
0x2f01   : > { %15082 = vmatpush3.bf16.msra.mxu0 %v16016_v26 }
0x2f02   : > { %15083 = vmatprep.subr.bf16.mxu0 %v16018_v61 }
0x2f03   : > { %15062 = vmatpush3.bf16.msra.mxu1 %v16019_v21 }
0x2f05   : > { %15084 = vmatpush3.bf16.msra.mxu0 %v16020_v30 }
0x2fb1   : > { %v15019_v63 = vpop.f32.mrb[196].mxu1 }
0x2fb2   : > { %v15020_v23 = vpop.f32.mrb[197].mxu1 }
0x2fb3   : > { %v15041_v25 = vpop.f32.mrb[200].mxu0  ;;  %v15021_v51 = vadd.f32 %v15020_v23, %v15019_v63  ;;  %v15022_v59 = vpop.f32.mrb[198].mxu1 }
0x2fb4   : > { %v15042_v35 = vpop.f32.mrb[201].mxu0  ;;  %v15023_v60 = vpop.f32.mrb[199].mxu1 }
0x2fb5   : > { %v15043_v20 = vadd.f32 %v15042_v35, %v15041_v25  ;;  %v15044_v19 = vpop.f32.mrb[202].mxu0 }
0x2fb6   : > { %v15045_v2 = vpop.f32.mrb[203].mxu0 }
0x2fb7   : > { %v11864_v22 = vadd.f32 %v15043_v20, %v15021_v51 }
0x2fb9   : > { %v19838_v28 = vadd.f32 %v11864_v22, %v19706_v42  ;;  %v11974_v13 = vpop.f32.mrb[200].mxu1 }
0x2fba   : > { %v11975_v27 = vadd.f32 %v11974_v13, %v11883_v48  ;;  %v11976_v15 = vpop.f32.mrb[201].mxu1 }
0x2fbb   : > { %v12017_v29 = vpop.f32.mrb[204].mxu0  ;;  %v11977_v43 = vadd.f32 %v11976_v15, %v11887_v9  ;;  %v11978_v31 = vpop.f32.mrb[202].mxu1 }
0x2fbc   : > { %v12034_v4 = vmul.f32 0.70710677, %v11975_v27  ;;  %v12018_v24 = vadd.f32 %v12017_v29, %v11891_v16  ;;  %v12019_v12 = vpop.f32.mrb[205].mxu0  ;;  %v11979_v53 = vadd.f32 %v11978_v31, %v11883_v48  ;;  %v11980_v40 = vpop.f32.mrb[203].mxu1  ;;  %v12026_v6 = vmul.f32 0.5, %v11975_v27 }
0x2fbd   : > { %v12035_v49 = vmul.f32 0.70710677, %v11977_v43  ;;  %v12020_v55 = vadd.f32 %v12019_v12, %v11895_v17  ;;  %v12021_v3 = vpop.f32.mrb[206].mxu0  ;;  %v11981_v54 = vadd.f32 %v11980_v40, %v11887_v9  ;;  %v12027_v41 = vmul.f32 0.5, %v11977_v43  ;;  %v14287_v40 = vld [vmem:[%s19933_s14 + $0x3] ss:$0 sm:$0xff] }
0x2fbe   : > { %16417 = verf.f32 %v12034_v4  ;;  %v12036_v42 = vmul.f32 0.70710677, %v12018_v24  ;;  %v12023_v33 = vpop.f32.mrb[207].mxu0  ;;  %v12038_v56 = vmul.f32 0.70710677, %v11979_v53  ;;  %v12022_v34 = vadd.f32 %v12021_v3, %v11891_v16 }
0x2fbf   : > { %16419 = verf.f32 %v12035_v49  ;;  %v12037_v36 = vmul.f32 0.70710677, %v12020_v55  ;;  %v12039_v10 = vmul.f32 0.70710677, %v11981_v54  ;;  %v12024_v58 = vadd.f32 %v12023_v33, %v11895_v17 }
0x2fc0   : > { %16421 = verf.f32 %v12036_v42  ;;  %v12040_v18 = vmul.f32 0.70710677, %v12022_v34  ;;  %v12028_v38 = vmul.f32 0.5, %v12018_v24  ;;  %v12030_v14 = vmul.f32 0.5, %v11979_v53 }
0x2fc1   : > { %16423 = verf.f32 %v12037_v36  ;;  %v12041_v11 = vmul.f32 0.70710677, %v12024_v58  ;;  %v12029_v52 = vmul.f32 0.5, %v12020_v55  ;;  %v12031_v62 = vmul.f32 0.5, %v11981_v54 }
0x2fc2   : > { %16425 = verf.f32 %v12038_v56  ;;  %v12032_v23 = vmul.f32 0.5, %v12022_v34  ;;  %v12033_v47 = vmul.f32 0.5, %v12024_v58  ;;  %v12448_v34 = vld [vmem:[%s20036_s8] sm:$0xff]  ;;  %v12450_v58 = vld [vmem:[%s20036_s8 + $0x10] sm:$0xff] }
0x2fc3   : > { %16427 = verf.f32 %v12039_v10 }
0x2fc4   : > { %16429 = verf.f32 %v12040_v18  ;;  %v12451_v18 = vld [vmem:[%s20036_s8 + $0x18] sm:$0xff] }
0x2fc5   : > { %16431 = verf.f32 %v12041_v11  ;;  %v15373_v11 = vpack.c.bf16 %v12451_v18, %v12450_v58 }
0x2fc8   : > { %v16418_v45 = vpop.eup %16417 }
0x2fc9   : > { %v16420_v50 = vpop.eup %16419  ;;  %v12050_v44 = vadd.f32 1.0, %v16418_v45 }
0x2fca   : > { %v16422_v39 = vpop.eup %16421  ;;  %v12051_v46 = vadd.f32 1.0, %v16420_v50 }
0x2fcb   : > { %v16424_v8 = vpop.eup %16423  ;;  %v12052_v7 = vadd.f32 1.0, %v16422_v39  ;;  %v12058_v30 = vmul.f32 %v12050_v44, %v12026_v6  ;;  %v14290_v44 = vld [vmem:[%s19934_s15 + $0x3] ss:$0 sm:$0xff] }
0x2fcc   : > { %v16426_v57 = vpop.eup %16425  ;;  %v12053_v26 = vadd.f32 1.0, %v16424_v8  ;;  %v12059_v51 = vmul.f32 %v12051_v46, %v12027_v41  ;;  %v14291_v6 = vld [vmem:[%s19935_s16 + $0x3] ss:$0 sm:$0xff] }
0x2fcd   : > { %v16428_v5 = vpop.eup %16427  ;;  %v12054_v1 = vadd.f32 1.0, %v16426_v57  ;;  %v12060_v60 = vmul.f32 %v12052_v7, %v12028_v38 }
0x2fce   : > { %v16430_v37 = vpop.eup %16429  ;;  %v12055_v61 = vadd.f32 1.0, %v16428_v5  ;;  %v12061_v2 = vmul.f32 %v12053_v26, %v12029_v52  ;;  %v12452_v5 = vld [vmem:[%s20040_s20] sm:$0x1] }
0x2fcf   : > { %v16432_v21 = vpop.eup %16431  ;;  %v12062_v63 = vmul.f32 %v12054_v1, %v12030_v14  ;;  %v12056_v25 = vadd.f32 1.0, %v16430_v37 }
0x2fd0   : > { %v12063_v59 = vmul.f32 %v12055_v61, %v12031_v62  ;;  %v12057_v35 = vadd.f32 1.0, %v16432_v21 }
0x2fd1   : > { %v12066_v20 = vpack.c.bf16 %v12062_v63, %v12058_v30  ;;  %v12064_v19 = vmul.f32 %v12056_v25, %v12032_v23 }
0x2fd2   : > { %v12065_v48 = vmul.f32 %v12057_v35, %v12033_v47  ;;  %v12067_v22 = vpack.c.bf16 %v12063_v59, %v12059_v51 }
0x2fd3   : > { %v12068_v9 = vpack.c.bf16 %v12064_v19, %v12060_v60 }
0x2fd4   : > { %12358 = vmatprep.mubr.bf16.mxu1 %v12067_v22  ;;  %v12069_v16 = vpack.c.bf16 %v12065_v48, %v12061_v2 }
0x2fd5   : > { %12359 = vmatmul.mubr.bf16.vlgmr.msra.gmra.mrb[204].mxu1 %v12066_v20 }
0x2fd6   : > { %12398 = vmatprep.mubr.bf16.mxu0 %v12069_v16  ;;  %15366 = vmatprep.mubr.msk.f32.mxu1 %vm16503_vm1, %v16502_v0 }
0x2fd7   : > { %12399 = vmatmul.mubr.bf16.vlgmr.msra.gmra.mrb[208].mxu0 %v12068_v9 }
0x30a8   : > { %v15063_v13 = vpop.f32.mrb[204].mxu1 }
0x30a9   : > { %v15064_v17 = vpop.f32.mrb[205].mxu1 }
0x30aa   : > { %v15085_v27 = vpop.f32.mrb[208].mxu0  ;;  %v15065_v15 = vadd.f32 %v15064_v17, %v15063_v13  ;;  %v15066_v29 = vpop.f32.mrb[206].mxu1 }
0x30ab   : > { %v15086_v43 = vpop.f32.mrb[209].mxu0  ;;  %v15067_v31 = vpop.f32.mrb[207].mxu1 }
0x30ac   : > { %v15087_v4 = vadd.f32 %v15086_v43, %v15085_v27  ;;  %v15088_v24 = vpop.f32.mrb[210].mxu0 }
0x30ad   : > { %v15089_v12 = vpop.f32.mrb[211].mxu0 }
0x30ae   : > { %v12401_v53 = vadd.f32 %v15087_v4, %v15065_v15 }
0x30b0   : > { %v12406_v49 = vadd.f32 %v12401_v53, %v19838_v28  ;;  %v12449_v28 = vld [vmem:[%s20036_s8 + $0x8] sm:$0xff] }
0x30b1   : > { %v15370_v10 = vpack.c.bf16 %v12449_v28, %v12448_v34 }
0x30b2   : > { %v12415_v55 = vadd.f32 %v14287_v40, %v12406_v49 }
0x30b4   : > { %v12416_v0 = vadd.f32 %v12415_v55, %v19265_v32  ;;  %v16519_v32 = vmov 0.0|0.0  }
0x30b5   : > { %15369 = vmatprep.subr.bf16.mxu1 %v16519_v32 }
0x30b6   : > { %v12421_v3 = vsel %vm744_vm4, %v12416_v0, 0.0  ;;  %15371 = vmatpush3.bf16.msra.mxu1 %v15370_v10 }
0x30b7   : > { %12422 = vadd.xlane.f32.xlu1 %v12421_v3  ;;  %15372 = vmatprep.subr.bf16.mxu1 %v16519_v32 }
0x30ba   : > { %15374 = vmatpush3.bf16.msra.mxu1 %v15373_v11 }
0x3144   : > { %v12423_v54 = vpop.xlane.xlu1 %12422 }
0x3145   : > { %v12424_v42 = vmul.f32 0.03125, %v12423_v54 }
0x3147   : > { %v12425_v33 = vsub.f32 %v12416_v0, %v12424_v42 }
0x3149   : > { %v12426_v36 = vmul.f32 %v12425_v33, %v12425_v33 }
0x314b   : > { %v12427_v56 = vsel %vm744_vm4, %v12426_v36, 0.0 }
0x314c   : > { %12428 = vadd.xlane.f32.xlu0 %v12427_v56 }
0x31d9   : > { %v12429_v45 = vpop.xlane.xlu0 %12428 }
0x31da   : > { %v12430_v50 = vmul.f32 0.03125, %v12429_v45 }
0x31dc   : > { %v12431_v39 = vadd.f32 1e-05, %v12430_v50 }
0x31de   : > { %16433 = vrsqrt.f32 %v12431_v39 }
0x31e8   : > { %v16434_v8 = vpop.eup %16433 }
0x31e9   : > { %v12433_v57 = vmul.f32 %v16434_v8, %v12425_v33 }
0x31eb   : > { %v12440_v41 = vmul.f32 %v14290_v44, %v12433_v57 }
0x31ed   : > { %v12447_v46 = vadd.f32 %v14291_v6, %v12440_v41 }
0x31ef   : > { %15367 = vmatmul.mubr.msk.f32.vlgmr.msra.gmra.mrb[208].mxu1 %vm744_vm4, %v12447_v46 }
0x32c2   : > { %v12522_v38 = vpop.f32.mrb[208].mxu1 }
0x32c3   : > { %v12523_v7 = vadd.f32 %v12522_v38, %v12452_v5  ;;  %v15368_v14 = vpop.f32.mrb[209].mxu1 }
0x32c5   : > { %12526 = vst [vmem:[%s605_s25] sm:$0x1] %v12523_v7 }
0x32c6   : > { %16451 = shalt.err (!%p16448_p3)
}
0x32c7   : > { %s16452_s22 = scalar_lea.hbm %s19877_s21, 16  ;;  %s16456_s23 = scalar_lea.hbm %s20042_s7, 32 }
0x32c8   : > { %p16453_p4 = scmp.ne.s32.totalorder %s19877_s21, %s16452_s22  ;;  %p16457_p9 = scmp.lt.u32.totalorder %s19877_s21, %s20042_s7 }
0x32c9   : > { %p16458_p10 = scmp.lt.u32.totalorder %s16456_s23, %s16452_s22  ;;  %p16460_p12 = scmp.lt.u32.totalorder %s16452_s22, %s19877_s21 }
0x32ca   : > { %p16454_p7 = pnand %p16453_p4, %p16659_p5 }
0x32cb   : > { %p16459_p11 = por %p16458_p10, %p16457_p9 }
0x32cc   : > { %p16455_p8 = pneg %p16454_p7 }
0x32cd   : > { %p16461_p13 = por %p16460_p12, %p16459_p11 }
0x32cf   : > { %p16462_p0 = pnand %p16461_p13, %p16455_p8 }
0x32d1   : > { %16465 = shalt.err (!%p16462_p0)
}
0x32d2   : > { %15375 = dma.vmem_to_hbm [thread:$0]  (%p16659_p5), %s19879_s1, 16, %s19877_s21, %s12528_s18  }
0x32d3 PF: > { %s20043_s4 = sld [smem:[#allocation8_spill]]  ;;  %s20044_s25 = sld [smem:[#allocation5_spill]] }
0x32d9   : > { %p15381_p1 = scmp.ge.s32.totalorder %s20043_s4, 2  ;;  %s12552_s0 = sand.u32 1, %s20044_s25  }
0x32da   : > { %s12553_s30 = scalar_lea.sflag [#allocation3], %s12552_s0 }
0x32db   : > { %p15378_p2 = pnand %p15381_p1, %p16663_p6 }
0x32dd   : > { %16483 = dma.done.wait (!%p15378_p2), %s12553_s30, 16  }
0x32de   : > { %16485 = vsyncadd (!%p15378_p2), %s12553_s30, 4294967280  ;;  %s20046_s21 = sld [smem:[#allocation10_spill]]  ;;  %s20047_s0 = sld [smem:[#allocation6_spill]] }
0x32df   : > { %s20048_s30 = sld [smem:[#allocation7_spill]]  ;;  %s20049_s20 = sld [smem:[#allocation11_spill]] }
0x32e4   : > { %p29_p3 = scmp.ge.s32.totalorder %s20046_s21, 4  }
0x32e6   :  { %31 = sbr.rel (!%p29_p3) target bundleno = 14 (0xe), region = 170 }
0x32ed   :  { %12557 = vsyncpa [#allocation3], 1 }
0x32ee   :  { %12559 = vsyncpa [#allocation3 + $0x1], 1 }

</bundles_post_ra>
